<compile_context>
chip_gen: v5e
topology: v5e:2x2
jax: 0.10.0
libtpu: 0.0.40
codegen_flags: <defaults>
</compile_context>

<pallas_src>
import functools
import math

import jax
import jax.numpy as jnp
from jax.experimental import pallas as pl
from jax.experimental.pallas import tpu as pltpu


# BasicConv's padding table (only the "same"-conv combinations it supports).
_BASICCONV_PAD = {(3, 1): 1, (3, 2): 2, (5, 1): 2, (5, 2): 4, (7, 1): 3, (7, 2): 6}


def _round_up(x, m):
    return (x + m - 1) // m * m


# ---------------------------------------------------------------------------
# Fused Pallas kernel: one ResidualModule forward for a block of batch images.
# ---------------------------------------------------------------------------
def _residual_module_kernel(x_ref, w1_ref, w2_ref, w3_ref, bias_ref, alpha_ref,
                            o_ref, pad_ref, col_ref, *, K1, D1, P1, PD):
    """
    x_ref   : (B, H, W, C) f32     input tile (NHWC, channels on lanes)
    w1_ref  : (K1*K1*C, C) bf16    BasicConv weight, im2col (tap-major) layout
    w2_ref  : (9*C, C)     bf16    3x3 dilation-2 conv weight, im2col layout
    w3_ref  : (C, C)       bf16    1x1 conv weight with BN scale folded in
    bias_ref: (1, C)       f32     folded inference-mode BatchNorm bias
    alpha_ref: (1,) SMEM   f32     PReLU slope (nn.PReLU default: single shared param)
    o_ref   : (B, H, W, C) f32     output tile
    pad_ref : (B, Hp, Wp, C) bf16  zero-padded conv-input scratch
    col_ref : (B*H*W, KK*C) bf16   im2col slab scratch
    """
    B, H, W, C = x_ref.shape
    M = H * W
    Hp = pad_ref.shape[1]
    Wp = pad_ref.shape[2]
    bf16 = jnp.bfloat16

    # Re-establish the zero border every grid step (megacore-safe; the interior is
    # fully overwritten by each conv_same call, so only the border needs zeros).
    pad_ref[:, 0:PD, :, :] = jnp.zeros((B, PD, Wp, C), bf16)
    pad_ref[:, PD + H:Hp, :, :] = jnp.zeros((B, Hp - PD - H, Wp, C), bf16)
    pad_ref[:, PD:PD + H, 0:PD, :] = jnp.zeros((B, H, PD, C), bf16)
    pad_ref[:, PD:PD + H, PD + W:Wp, :] = jnp.zeros((B, H, Wp - PD - W, C), bf16)

    def conv_same(get_input, w_ref, K, dil, pad):
        """'same' KxK conv (stride 1, dilation `dil`) as a single im2col MXU matmul."""
        # Stage the (bf16) conv input into the padded scratch interior.
        for b in range(B):
            pad_ref[b, PD:PD + H, PD:PD + W, :] = get_input(b)
        # Build the (B*M, K*K*C) im2col slab: one shifted tap copy per (ky, kx),
        # written straight into its final slab columns (lane offsets are multiples of C).
        for b in range(B):
            for ky in range(K):
                for kx in range(K):
                    r0 = PD - pad + ky * dil
                    c0 = PD - pad + kx * dil
                    t = ky * K + kx
                    col_ref[b * M:(b + 1) * M, t * C:(t + 1) * C] = (
                        pad_ref[b, r0:r0 + H, c0:c0 + W, :].reshape(M, C))
        # One long-K bf16 matmul per conv keeps the MXU fed; accumulate in f32.
        return jnp.dot(col_ref[:, :K * K * C], w_ref[...],
                       preferred_element_type=jnp.float32)          # (B*M, C) f32

    # op[0]: BasicConv(C, C, kernel_size, dilation, relu=False, bn=False, bias=False)
    y = conv_same(lambda b: x_ref[b].astype(bf16), w1_ref, K1, D1, P1)
    # op[1]: Conv2d(C, C, 3, stride=1, padding=2, dilation=2, bias=False)
    y_hw = y.astype(bf16).reshape(B, H, W, C)
    y = conv_same(lambda b: y_hw[b], w2_ref, 3, 2, 2)
    # op[2] + op[3]: 1x1 conv (BN scale folded into the weight) then + BN bias
    y = jnp.dot(y.astype(bf16), w3_ref[...], preferred_element_type=jnp.float32)
    y = y + bias_ref[...]
    # op[4]: PReLU (single shared slope)
    a = alpha_ref[0]
    y = jnp.where(y >= 0.0, y, a * y)
    # residual add (f32)
    o_ref[...] = x_ref[...] + y.reshape(B, H, W, C)


# ---------------------------------------------------------------------------
# Wrapper
# ---------------------------------------------------------------------------
def _conv_weight_to_im2col(w, dtype=jnp.bfloat16):
    """PyTorch Conv2d weight (Cout, Cin, kH, kW) -> (kH*kW*Cin, Cout), tap-major."""
    co, ci, kh, kw = w.shape
    return jnp.transpose(w, (2, 3, 1, 0)).reshape(kh * kw * ci, co).astype(dtype)


def _pick_batch_block(n, hw, target_rows=1024):
    """Largest divisor b of n with b*hw <= target_rows, keeping >=2 grid steps when n>=2
    so the batch axis can still be split across TensorCores (v7x megacore)."""
    best = 1
    for b in range(1, n + 1):
        if n % b:
            continue
        if b * hw > max(target_rows, hw):
            continue
        if n >= 2 and n // b < 2:
            continue
        best = b
    return best


def residual_module_forward(x_nchw, params):
    """Full ResidualModule forward.  Input/output in PyTorch NCHW, float32."""
    N, C, H, W = x_nchw.shape
    k1 = int(params["kernel_size"])
    d1 = int(params["dilation"])
    assert (k1, d1) in _BASICCONV_PAD, "BasicConv 'same' padding table does not cover (k, d)"
    p1 = _BASICCONV_PAD[(k1, d1)]
    PD = max(p1, 2)                       # conv2 is 3x3, dilation 2, padding 2
    Hp = H + 2 * PD
    Wp = _round_up(W + 2 * PD, 8)         # sublane-aligned padded scratch
    KK = max(k1 * k1, 9)

    b_blk = _pick_batch_block(N, H * W)
    grid_n = N // b_blk

    # Weights repacked for im2col matmuls and cast to bf16 host-side (halves weight DMA).
    w1 = _conv_weight_to_im2col(params["w1"])                      # (k1*k1*C, C) bf16
    w2 = _conv_weight_to_im2col(params["w2"])                      # (9*C,     C) bf16
    # Fold inference-mode BN scale into the 1x1 weight; only +bias stays in-kernel.
    inv = params["bn_gamma"] * jax.lax.rsqrt(params["bn_var"] + 1e-5)
    w3 = jnp.transpose(params["w3"][:, :, 0, 0] * inv[:, None], (1, 0)).astype(jnp.bfloat16)
    bias = (params["bn_beta"] - params["bn_mean"] * inv).reshape(1, C).astype(jnp.float32)
    alpha = jnp.reshape(params["prelu_alpha"], (1,)).astype(jnp.float32)

    x_nhwc = jnp.transpose(x_nchw, (0, 2, 3, 1)).astype(jnp.float32)  # C on lanes

    kernel = functools.partial(_residual_module_kernel, K1=k1, D1=d1, P1=p1, PD=PD)

    flops = 2 * N * H * W * C * C * (k1 * k1 + 9 + 1)
    bytes_accessed = (2 * N * H * W * C) * 4 + int(w1.size + w2.size + w3.size) * 2 + (C + C + 1) * 4
    cost = pl.CostEstimate(flops=flops, transcendentals=0, bytes_accessed=bytes_accessed)

    out_nhwc = pl.pallas_call(
        kernel,
        out_shape=jax.ShapeDtypeStruct((N, H, W, C), jnp.float32),
        grid=(grid_n,),
        in_specs=[
            pl.BlockSpec((b_blk, H, W, C), lambda n: (n, 0, 0, 0)),
            pl.BlockSpec((k1 * k1 * C, C), lambda n: (0, 0)),
            pl.BlockSpec((9 * C, C), lambda n: (0, 0)),
            pl.BlockSpec((C, C), lambda n: (0, 0)),
            pl.BlockSpec((1, C), lambda n: (0, 0)),
            pl.BlockSpec(memory_space=pltpu.MemorySpace.SMEM),
        ],
        out_specs=pl.BlockSpec((b_blk, H, W, C), lambda n: (n, 0, 0, 0)),
        scratch_shapes=[
            pltpu.VMEM((b_blk, Hp, Wp, C), jnp.bfloat16),          # padded conv input
            pltpu.VMEM((b_blk * H * W, KK * C), jnp.bfloat16),     # im2col slab
        ],
        compiler_params=pltpu.CompilerParams(
            dimension_semantics=("parallel",),
            # Demo footprint is ~3 MiB; 32 MiB is safe on every generation (<=64 MiB v7x).
            vmem_limit_bytes=32 * 1024 * 1024,
        ),
        cost_estimate=cost,
    )(x_nhwc, w1, w2, w3, bias, alpha)

    return jnp.transpose(out_nhwc, (0, 3, 1, 2))                   # NHWC -> NCHW


# ---------------------------------------------------------------------------
# Pure-JAX references (numerical sanity checks)
# ---------------------------------------------------------------------------
def _reference_forward(x, params, *, bf16_operands=False):
    """bf16_operands=False: exact PyTorch-equivalent f32 math.
    bf16_operands=True : mirrors the kernel's bf16-operand / f32-accumulate arithmetic."""
    def maybe_bf16(v):
        return v.astype(jnp.bfloat16).astype(jnp.float32) if bf16_operands else v

    def conv(inp, w, dil, pad):
        return jax.lax.conv_general_dilated(
            maybe_bf16(inp), maybe_bf16(w), window_strides=(1, 1),
            padding=((pad, pad), (pad, pad)), rhs_dilation=(dil, dil),
            dimension_numbers=("NCHW", "OIHW", "NCHW"),
            precision=jax.lax.Precision.HIGHEST)

    k1 = int(params["kernel_size"])
    d1 = int(params["dilation"])
    inv = params["bn_gamma"] * jax.lax.rsqrt(params["bn_var"] + 1e-5)
    bias = (params["bn_beta"] - params["bn_mean"] * inv).reshape(1, -1, 1, 1)

    y = conv(x, params["w1"], d1, _BASICCONV_PAD[(k1, d1)])
    y = conv(y, params["w2"], 2, 2)
    if bf16_operands:
        # mirror the kernel: BN scale folded into the 1x1 weight before the bf16 cast
        w3_folded = (params["w3"][:, :, 0, 0] * inv[:, None])[:, :, None, None]
        y = conv(y, w3_folded, 1, 0) + bias
    else:
        y = conv(y, params["w3"], 1, 0) * inv.reshape(1, -1, 1, 1) + bias
    a = params["prelu_alpha"].reshape(())
    y = jnp.where(y >= 0.0, y, a * y)
    return x + y


if __name__ == "__main__":
    key = jax.random.PRNGKey(0)
    kx, kw1, kw2, kw3, kg, kb = jax.random.split(key, 6)

    # Small but TPU-friendly shapes: C = 128 keeps loads / matmuls / stores lane-dense.
    N, C, H, W = 2, 128, 16, 16
    kernel_size, dilation = 3, 1

    x = jax.random.normal(kx, (N, C, H, W), jnp.float32)
    params = dict(
        kernel_size=kernel_size,
        dilation=dilation,
        w1=jax.random.normal(kw1, (C, C, kernel_size, kernel_size), jnp.float32)
        * (1.0 / math.sqrt(C * kernel_size * kernel_size)),
        w2=jax.random.normal(kw2, (C, C, 3, 3), jnp.float32) * (1.0 / math.sqrt(C * 9)),
        w3=jax.random.normal(kw3, (C, C, 1, 1), jnp.float32) * (1.0 / math.sqrt(C)),
        bn_gamma=1.0 + 0.1 * jax.random.normal(kg, (C,), jnp.float32),
        bn_beta=0.1 * jax.random.normal(kb, (C,), jnp.float32),
        bn_mean=jnp.zeros((C,), jnp.float32),
        bn_var=jnp.ones((C,), jnp.float32),
        prelu_alpha=jnp.full((1,), 0.25, jnp.float32),   # nn.PReLU() default init
    )

    out = jax.block_until_ready(residual_module_forward(x, params))
    assert out.shape == (N, C, H, W), out.shape
    assert bool(jnp.all(jnp.isfinite(out)))

    # Tight check against a reference that mirrors the kernel's bf16-operand arithmetic.
    ref_bf16 = jax.block_until_ready(_reference_forward(x, params, bf16_operands=True))
    err_bf16 = float(jnp.max(jnp.abs(out - ref_bf16)))
    assert err_bf16 < 2e-2, f"bf16-matched max abs err {err_bf16}"

    # Loose check against the exact f32 (PyTorch-equivalent) reference: bf16 matmul
    # operands through three chained convolutions introduce ~1e-2-level absolute error.
    ref_f32 = jax.block_until_ready(_reference_forward(x, params, bf16_operands=False))
    err_f32 = float(jnp.max(jnp.abs(out - ref_f32)))
    assert err_f32 < 2e-1, f"f32 max abs err {err_f32}"

    print("KERNEL_OK")
</pallas_src>

<mosaic_0001>
module attributes {stable_mosaic.version = 11 : i64} {
  func.func @_residual_module_kernel(%arg0: i32, %arg1: memref<1x16x16x128xf32, #tpu.memory_space<vmem>>, %arg2: memref<1152x128xbf16, #tpu.memory_space<vmem>>, %arg3: memref<1152x128xbf16, #tpu.memory_space<vmem>>, %arg4: memref<128x128xbf16, #tpu.memory_space<vmem>>, %arg5: memref<1x128xf32, #tpu.memory_space<vmem>>, %arg6: memref<1xf32, #tpu.memory_space<smem>>, %arg7: memref<1x16x16x128xf32, #tpu.memory_space<vmem>>, %arg8: memref<1x20x24x128xbf16, #tpu.memory_space<vmem>>, %arg9: memref<256x1152xbf16, #tpu.memory_space<vmem>>) attributes {dimension_semantics = [#tpu.dimension_semantics<parallel>], iteration_bounds = array<i64: 2>, scalar_prefetch = 0 : i64, scratch_operands = 2 : i64, tpu.core_type = #tpu.core_type<tc>, window_params = [{transform_indices = @transform_0, window_bounds = array<i64: 1, 16, 16, 128>}, {pipeline_mode = #tpu.pipeline_mode<synchronous>, transform_indices = @transform_1, window_bounds = array<i64: 1152, 128>}, {pipeline_mode = #tpu.pipeline_mode<synchronous>, transform_indices = @transform_2, window_bounds = array<i64: 1152, 128>}, {pipeline_mode = #tpu.pipeline_mode<synchronous>, transform_indices = @transform_3, window_bounds = array<i64: 128, 128>}, {pipeline_mode = #tpu.pipeline_mode<synchronous>, transform_indices = @transform_4, window_bounds = array<i64: 1, 128>}, {transform_indices = @transform_5, window_bounds = array<i64: 1>}, {transform_indices = @transform_6, window_bounds = array<i64: 1, 16, 16, 128>}]} {
    %cst = arith.constant 0.000000e+00 : bf16
    %0 = vector.broadcast %cst : bf16 to vector<1x2x24x128xbf16>
    %c0 = arith.constant 0 : index
    %c0_0 = arith.constant 0 : index
    %c0_1 = arith.constant 0 : index
    %c0_2 = arith.constant 0 : index
    %1 = vector.load %arg8[%c0, %c0_0, %c0_1, %c0_2] : memref<1x20x24x128xbf16, #tpu.memory_space<vmem>>, vector<1x2x24x128xbf16>
    tpu.vector_store %arg8[%c0, %c0_0, %c0_1, %c0_2], %0 {strides = array<i32>} : memref<1x20x24x128xbf16, #tpu.memory_space<vmem>>, vector<1x2x24x128xbf16>,
    %cst_3 = arith.constant 0.000000e+00 : bf16
    %2 = vector.broadcast %cst_3 : bf16 to vector<1x2x24x128xbf16>
    %c0_4 = arith.constant 0 : index
    %c18 = arith.constant 18 : index
    %c0_5 = arith.constant 0 : index
    %c0_6 = arith.constant 0 : index
    %3 = vector.load %arg8[%c0_4, %c18, %c0_5, %c0_6] : memref<1x20x24x128xbf16, #tpu.memory_space<vmem>>, vector<1x2x24x128xbf16>
    tpu.vector_store %arg8[%c0_4, %c18, %c0_5, %c0_6], %2 {strides = array<i32>} : memref<1x20x24x128xbf16, #tpu.memory_space<vmem>>, vector<1x2x24x128xbf16>,
    %cst_7 = arith.constant 0.000000e+00 : bf16
    %4 = vector.broadcast %cst_7 : bf16 to vector<1x16x2x128xbf16>
    %c0_8 = arith.constant 0 : index
    %c2 = arith.constant 2 : index
    %c0_9 = arith.constant 0 : index
    %c0_10 = arith.constant 0 : index
    %5 = vector.load %arg8[%c0_8, %c2, %c0_9, %c0_10] : memref<1x20x24x128xbf16, #tpu.memory_space<vmem>>, vector<1x16x2x128xbf16>
    tpu.vector_store %arg8[%c0_8, %c2, %c0_9, %c0_10], %4 {strides = array<i32>} : memref<1x20x24x128xbf16, #tpu.memory_space<vmem>>, vector<1x16x2x128xbf16>,
    %cst_11 = arith.constant 0.000000e+00 : bf16
    %6 = vector.broadcast %cst_11 : bf16 to vector<1x16x6x128xbf16>
    %c0_12 = arith.constant 0 : index
    %c2_13 = arith.constant 2 : index
    %c18_14 = arith.constant 18 : index
    %c0_15 = arith.constant 0 : index
    %7 = vector.load %arg8[%c0_12, %c2_13, %c18_14, %c0_15] : memref<1x20x24x128xbf16, #tpu.memory_space<vmem>>, vector<1x16x6x128xbf16>
    tpu.vector_store %arg8[%c0_12, %c2_13, %c18_14, %c0_15], %6 {strides = array<i32>} : memref<1x20x24x128xbf16, #tpu.memory_space<vmem>>, vector<1x16x6x128xbf16>,
    %c0_16 = arith.constant 0 : index
    %c0_17 = arith.constant 0 : index
    %c0_18 = arith.constant 0 : index
    %c0_19 = arith.constant 0 : index
    %8 = vector.load %arg1[%c0_16, %c0_17, %c0_18, %c0_19] : memref<1x16x16x128xf32, #tpu.memory_space<vmem>>, vector<1x16x16x128xf32>
    %9 = vector.shape_cast %8 : vector<1x16x16x128xf32> to vector<16x16x128xf32>
    %10 = arith.truncf %9 : vector<16x16x128xf32> to vector<16x16x128xbf16>
    %c0_20 = arith.constant 0 : index
    %c2_21 = arith.constant 2 : index
    %c2_22 = arith.constant 2 : index
    %c0_23 = arith.constant 0 : index
    %11 = vector.load %arg8[%c0_20, %c2_21, %c2_22, %c0_23] : memref<1x20x24x128xbf16, #tpu.memory_space<vmem>>, vector<1x16x16x128xbf16>
    %12 = vector.shape_cast %11 : vector<1x16x16x128xbf16> to vector<16x16x128xbf16>
    %13 = vector.shape_cast %10 : vector<16x16x128xbf16> to vector<1x16x16x128xbf16>
    tpu.vector_store %arg8[%c0_20, %c2_21, %c2_22, %c0_23], %13 {strides = array<i32>} : memref<1x20x24x128xbf16, #tpu.memory_space<vmem>>, vector<1x16x16x128xbf16>,
    %c0_24 = arith.constant 0 : index
    %c1 = arith.constant 1 : index
    %c1_25 = arith.constant 1 : index
    %c0_26 = arith.constant 0 : index
    %14 = vector.load %arg8[%c0_24, %c1, %c1_25, %c0_26] : memref<1x20x24x128xbf16, #tpu.memory_space<vmem>>, vector<1x16x16x128xbf16>
    %15 = vector.shape_cast %14 : vector<1x16x16x128xbf16> to vector<16x16x128xbf16>
    %16 = vector.shape_cast %15 : vector<16x16x128xbf16> to vector<256x128xbf16>
    %c0_27 = arith.constant 0 : index
    %c0_28 = arith.constant 0 : index
    %17 = vector.load %arg9[%c0_27, %c0_28] : memref<256x1152xbf16, #tpu.memory_space<vmem>>, vector<256x128xbf16>
    tpu.vector_store %arg9[%c0_27, %c0_28], %16 {strides = array<i32>} : memref<256x1152xbf16, #tpu.memory_space<vmem>>, vector<256x128xbf16>,
    %c0_29 = arith.constant 0 : index
    %c1_30 = arith.constant 1 : index
    %c2_31 = arith.constant 2 : index
    %c0_32 = arith.constant 0 : index
    %18 = vector.load %arg8[%c0_29, %c1_30, %c2_31, %c0_32] : memref<1x20x24x128xbf16, #tpu.memory_space<vmem>>, vector<1x16x16x128xbf16>
    %19 = vector.shape_cast %18 : vector<1x16x16x128xbf16> to vector<16x16x128xbf16>
    %20 = vector.shape_cast %19 : vector<16x16x128xbf16> to vector<256x128xbf16>
    %c0_33 = arith.constant 0 : index
    %c128 = arith.constant 128 : index
    %21 = vector.load %arg9[%c0_33, %c128] : memref<256x1152xbf16, #tpu.memory_space<vmem>>, vector<256x128xbf16>
    tpu.vector_store %arg9[%c0_33, %c128], %20 {strides = array<i32>} : memref<256x1152xbf16, #tpu.memory_space<vmem>>, vector<256x128xbf16>,
    %c0_34 = arith.constant 0 : index
    %c1_35 = arith.constant 1 : index
    %c3 = arith.constant 3 : index
    %c0_36 = arith.constant 0 : index
    %22 = vector.load %arg8[%c0_34, %c1_35, %c3, %c0_36] : memref<1x20x24x128xbf16, #tpu.memory_space<vmem>>, vector<1x16x16x128xbf16>
    %23 = vector.shape_cast %22 : vector<1x16x16x128xbf16> to vector<16x16x128xbf16>
    %24 = vector.shape_cast %23 : vector<16x16x128xbf16> to vector<256x128xbf16>
    %c0_37 = arith.constant 0 : index
    %c256 = arith.constant 256 : index
    %25 = vector.load %arg9[%c0_37, %c256] : memref<256x1152xbf16, #tpu.memory_space<vmem>>, vector<256x128xbf16>
    tpu.vector_store %arg9[%c0_37, %c256], %24 {strides = array<i32>} : memref<256x1152xbf16, #tpu.memory_space<vmem>>, vector<256x128xbf16>,
    %c0_38 = arith.constant 0 : index
    %c2_39 = arith.constant 2 : index
    %c1_40 = arith.constant 1 : index
    %c0_41 = arith.constant 0 : index
    %26 = vector.load %arg8[%c0_38, %c2_39, %c1_40, %c0_41] : memref<1x20x24x128xbf16, #tpu.memory_space<vmem>>, vector<1x16x16x128xbf16>
    %27 = vector.shape_cast %26 : vector<1x16x16x128xbf16> to vector<16x16x128xbf16>
    %28 = vector.shape_cast %27 : vector<16x16x128xbf16> to vector<256x128xbf16>
    %c0_42 = arith.constant 0 : index
    %c384 = arith.constant 384 : index
    %29 = vector.load %arg9[%c0_42, %c384] : memref<256x1152xbf16, #tpu.memory_space<vmem>>, vector<256x128xbf16>
    tpu.vector_store %arg9[%c0_42, %c384], %28 {strides = array<i32>} : memref<256x1152xbf16, #tpu.memory_space<vmem>>, vector<256x128xbf16>,
    %c0_43 = arith.constant 0 : index
    %c2_44 = arith.constant 2 : index
    %c2_45 = arith.constant 2 : index
    %c0_46 = arith.constant 0 : index
    %30 = vector.load %arg8[%c0_43, %c2_44, %c2_45, %c0_46] : memref<1x20x24x128xbf16, #tpu.memory_space<vmem>>, vector<1x16x16x128xbf16>
    %31 = vector.shape_cast %30 : vector<1x16x16x128xbf16> to vector<16x16x128xbf16>
    %32 = vector.shape_cast %31 : vector<16x16x128xbf16> to vector<256x128xbf16>
    %c0_47 = arith.constant 0 : index
    %c512 = arith.constant 512 : index
    %33 = vector.load %arg9[%c0_47, %c512] : memref<256x1152xbf16, #tpu.memory_space<vmem>>, vector<256x128xbf16>
    tpu.vector_store %arg9[%c0_47, %c512], %32 {strides = array<i32>} : memref<256x1152xbf16, #tpu.memory_space<vmem>>, vector<256x128xbf16>,
    %c0_48 = arith.constant 0 : index
    %c2_49 = arith.constant 2 : index
    %c3_50 = arith.constant 3 : index
    %c0_51 = arith.constant 0 : index
    %34 = vector.load %arg8[%c0_48, %c2_49, %c3_50, %c0_51] : memref<1x20x24x128xbf16, #tpu.memory_space<vmem>>, vector<1x16x16x128xbf16>
    %35 = vector.shape_cast %34 : vector<1x16x16x128xbf16> to vector<16x16x128xbf16>
    %36 = vector.shape_cast %35 : vector<16x16x128xbf16> to vector<256x128xbf16>
    %c0_52 = arith.constant 0 : index
    %c640 = arith.constant 640 : index
    %37 = vector.load %arg9[%c0_52, %c640] : memref<256x1152xbf16, #tpu.memory_space<vmem>>, vector<256x128xbf16>
    tpu.vector_store %arg9[%c0_52, %c640], %36 {strides = array<i32>} : memref<256x1152xbf16, #tpu.memory_space<vmem>>, vector<256x128xbf16>,
    %c0_53 = arith.constant 0 : index
    %c3_54 = arith.constant 3 : index
    %c1_55 = arith.constant 1 : index
    %c0_56 = arith.constant 0 : index
    %38 = vector.load %arg8[%c0_53, %c3_54, %c1_55, %c0_56] : memref<1x20x24x128xbf16, #tpu.memory_space<vmem>>, vector<1x16x16x128xbf16>
    %39 = vector.shape_cast %38 : vector<1x16x16x128xbf16> to vector<16x16x128xbf16>
    %40 = vector.shape_cast %39 : vector<16x16x128xbf16> to vector<256x128xbf16>
    %c0_57 = arith.constant 0 : index
    %c768 = arith.constant 768 : index
    %41 = vector.load %arg9[%c0_57, %c768] : memref<256x1152xbf16, #tpu.memory_space<vmem>>, vector<256x128xbf16>
    tpu.vector_store %arg9[%c0_57, %c768], %40 {strides = array<i32>} : memref<256x1152xbf16, #tpu.memory_space<vmem>>, vector<256x128xbf16>,
    %c0_58 = arith.constant 0 : index
    %c3_59 = arith.constant 3 : index
    %c2_60 = arith.constant 2 : index
    %c0_61 = arith.constant 0 : index
    %42 = vector.load %arg8[%c0_58, %c3_59, %c2_60, %c0_61] : memref<1x20x24x128xbf16, #tpu.memory_space<vmem>>, vector<1x16x16x128xbf16>
    %43 = vector.shape_cast %42 : vector<1x16x16x128xbf16> to vector<16x16x128xbf16>
    %44 = vector.shape_cast %43 : vector<16x16x128xbf16> to vector<256x128xbf16>
    %c0_62 = arith.constant 0 : index
    %c896 = arith.constant 896 : index
    %45 = vector.load %arg9[%c0_62, %c896] : memref<256x1152xbf16, #tpu.memory_space<vmem>>, vector<256x128xbf16>
    tpu.vector_store %arg9[%c0_62, %c896], %44 {strides = array<i32>} : memref<256x1152xbf16, #tpu.memory_space<vmem>>, vector<256x128xbf16>,
    %c0_63 = arith.constant 0 : index
    %c3_64 = arith.constant 3 : index
    %c3_65 = arith.constant 3 : index
    %c0_66 = arith.constant 0 : index
    %46 = vector.load %arg8[%c0_63, %c3_64, %c3_65, %c0_66] : memref<1x20x24x128xbf16, #tpu.memory_space<vmem>>, vector<1x16x16x128xbf16>
    %47 = vector.shape_cast %46 : vector<1x16x16x128xbf16> to vector<16x16x128xbf16>
    %48 = vector.shape_cast %47 : vector<16x16x128xbf16> to vector<256x128xbf16>
    %c0_67 = arith.constant 0 : index
    %c1024 = arith.constant 1024 : index
    %49 = vector.load %arg9[%c0_67, %c1024] : memref<256x1152xbf16, #tpu.memory_space<vmem>>, vector<256x128xbf16>
    tpu.vector_store %arg9[%c0_67, %c1024], %48 {strides = array<i32>} : memref<256x1152xbf16, #tpu.memory_space<vmem>>, vector<256x128xbf16>,
    %c0_68 = arith.constant 0 : index
    %c0_69 = arith.constant 0 : index
    %50 = vector.load %arg9[%c0_68, %c0_69] : memref<256x1152xbf16, #tpu.memory_space<vmem>>, vector<256x1152xbf16>
    %c0_70 = arith.constant 0 : index
    %c0_71 = arith.constant 0 : index
    %51 = vector.load %arg2[%c0_70, %c0_71] : memref<1152x128xbf16, #tpu.memory_space<vmem>>, vector<1152x128xbf16>
    %cst_72 = arith.constant dense<0.000000e+00> : vector<256x128xf32>
    %52 = tpu.matmul %50, %51, %cst_72 {dimension_numbers = #tpu.dot_dimension_numbers<[1], [0], [0], [1], [0, 0, 1, 1], [], []>} : vector<256x1152xbf16>, vector<1152x128xbf16>, vector<256x128xf32> -> vector<256x128xf32>
    %53 = arith.truncf %52 : vector<256x128xf32> to vector<256x128xbf16>
    %54 = vector.shape_cast %53 : vector<256x128xbf16> to vector<1x16x16x128xbf16>
    %55 = vector.shape_cast %54 : vector<1x16x16x128xbf16> to vector<16x16x128xbf16>
    %c0_73 = arith.constant 0 : index
    %c2_74 = arith.constant 2 : index
    %c2_75 = arith.constant 2 : index
    %c0_76 = arith.constant 0 : index
    %56 = vector.load %arg8[%c0_73, %c2_74, %c2_75, %c0_76] : memref<1x20x24x128xbf16, #tpu.memory_space<vmem>>, vector<1x16x16x128xbf16>
    %57 = vector.shape_cast %56 : vector<1x16x16x128xbf16> to vector<16x16x128xbf16>
    %58 = vector.shape_cast %55 : vector<16x16x128xbf16> to vector<1x16x16x128xbf16>
    tpu.vector_store %arg8[%c0_73, %c2_74, %c2_75, %c0_76], %58 {strides = array<i32>} : memref<1x20x24x128xbf16, #tpu.memory_space<vmem>>, vector<1x16x16x128xbf16>,
    %c0_77 = arith.constant 0 : index
    %c0_78 = arith.constant 0 : index
    %c0_79 = arith.constant 0 : index
    %c0_80 = arith.constant 0 : index
    %59 = vector.load %arg8[%c0_77, %c0_78, %c0_79, %c0_80] : memref<1x20x24x128xbf16, #tpu.memory_space<vmem>>, vector<1x16x16x128xbf16>
    %60 = vector.shape_cast %59 : vector<1x16x16x128xbf16> to vector<16x16x128xbf16>
    %61 = vector.shape_cast %60 : vector<16x16x128xbf16> to vector<256x128xbf16>
    %c0_81 = arith.constant 0 : index
    %c0_82 = arith.constant 0 : index
    %62 = vector.load %arg9[%c0_81, %c0_82] : memref<256x1152xbf16, #tpu.memory_space<vmem>>, vector<256x128xbf16>
    tpu.vector_store %arg9[%c0_81, %c0_82], %61 {strides = array<i32>} : memref<256x1152xbf16, #tpu.memory_space<vmem>>, vector<256x128xbf16>,
    %c0_83 = arith.constant 0 : index
    %c0_84 = arith.constant 0 : index
    %c2_85 = arith.constant 2 : index
    %c0_86 = arith.constant 0 : index
    %63 = vector.load %arg8[%c0_83, %c0_84, %c2_85, %c0_86] : memref<1x20x24x128xbf16, #tpu.memory_space<vmem>>, vector<1x16x16x128xbf16>
    %64 = vector.shape_cast %63 : vector<1x16x16x128xbf16> to vector<16x16x128xbf16>
    %65 = vector.shape_cast %64 : vector<16x16x128xbf16> to vector<256x128xbf16>
    %c0_87 = arith.constant 0 : index
    %c128_88 = arith.constant 128 : index
    %66 = vector.load %arg9[%c0_87, %c128_88] : memref<256x1152xbf16, #tpu.memory_space<vmem>>, vector<256x128xbf16>
    tpu.vector_store %arg9[%c0_87, %c128_88], %65 {strides = array<i32>} : memref<256x1152xbf16, #tpu.memory_space<vmem>>, vector<256x128xbf16>,
    %c0_89 = arith.constant 0 : index
    %c0_90 = arith.constant 0 : index
    %c4 = arith.constant 4 : index
    %c0_91 = arith.constant 0 : index
    %67 = vector.load %arg8[%c0_89, %c0_90, %c4, %c0_91] : memref<1x20x24x128xbf16, #tpu.memory_space<vmem>>, vector<1x16x16x128xbf16>
    %68 = vector.shape_cast %67 : vector<1x16x16x128xbf16> to vector<16x16x128xbf16>
    %69 = vector.shape_cast %68 : vector<16x16x128xbf16> to vector<256x128xbf16>
    %c0_92 = arith.constant 0 : index
    %c256_93 = arith.constant 256 : index
    %70 = vector.load %arg9[%c0_92, %c256_93] : memref<256x1152xbf16, #tpu.memory_space<vmem>>, vector<256x128xbf16>
    tpu.vector_store %arg9[%c0_92, %c256_93], %69 {strides = array<i32>} : memref<256x1152xbf16, #tpu.memory_space<vmem>>, vector<256x128xbf16>,
    %c0_94 = arith.constant 0 : index
    %c2_95 = arith.constant 2 : index
    %c0_96 = arith.constant 0 : index
    %c0_97 = arith.constant 0 : index
    %71 = vector.load %arg8[%c0_94, %c2_95, %c0_96, %c0_97] : memref<1x20x24x128xbf16, #tpu.memory_space<vmem>>, vector<1x16x16x128xbf16>
    %72 = vector.shape_cast %71 : vector<1x16x16x128xbf16> to vector<16x16x128xbf16>
    %73 = vector.shape_cast %72 : vector<16x16x128xbf16> to vector<256x128xbf16>
    %c0_98 = arith.constant 0 : index
    %c384_99 = arith.constant 384 : index
    %74 = vector.load %arg9[%c0_98, %c384_99] : memref<256x1152xbf16, #tpu.memory_space<vmem>>, vector<256x128xbf16>
    tpu.vector_store %arg9[%c0_98, %c384_99], %73 {strides = array<i32>} : memref<256x1152xbf16, #tpu.memory_space<vmem>>, vector<256x128xbf16>,
    %c0_100 = arith.constant 0 : index
    %c2_101 = arith.constant 2 : index
    %c2_102 = arith.constant 2 : index
    %c0_103 = arith.constant 0 : index
    %75 = vector.load %arg8[%c0_100, %c2_101, %c2_102, %c0_103] : memref<1x20x24x128xbf16, #tpu.memory_space<vmem>>, vector<1x16x16x128xbf16>
    %76 = vector.shape_cast %75 : vector<1x16x16x128xbf16> to vector<16x16x128xbf16>
    %77 = vector.shape_cast %76 : vector<16x16x128xbf16> to vector<256x128xbf16>
    %c0_104 = arith.constant 0 : index
    %c512_105 = arith.constant 512 : index
    %78 = vector.load %arg9[%c0_104, %c512_105] : memref<256x1152xbf16, #tpu.memory_space<vmem>>, vector<256x128xbf16>
    tpu.vector_store %arg9[%c0_104, %c512_105], %77 {strides = array<i32>} : memref<256x1152xbf16, #tpu.memory_space<vmem>>, vector<256x128xbf16>,
    %c0_106 = arith.constant 0 : index
    %c2_107 = arith.constant 2 : index
    %c4_108 = arith.constant 4 : index
    %c0_109 = arith.constant 0 : index
    %79 = vector.load %arg8[%c0_106, %c2_107, %c4_108, %c0_109] : memref<1x20x24x128xbf16, #tpu.memory_space<vmem>>, vector<1x16x16x128xbf16>
    %80 = vector.shape_cast %79 : vector<1x16x16x128xbf16> to vector<16x16x128xbf16>
    %81 = vector.shape_cast %80 : vector<16x16x128xbf16> to vector<256x128xbf16>
    %c0_110 = arith.constant 0 : index
    %c640_111 = arith.constant 640 : index
    %82 = vector.load %arg9[%c0_110, %c640_111] : memref<256x1152xbf16, #tpu.memory_space<vmem>>, vector<256x128xbf16>
    tpu.vector_store %arg9[%c0_110, %c640_111], %81 {strides = array<i32>} : memref<256x1152xbf16, #tpu.memory_space<vmem>>, vector<256x128xbf16>,
    %c0_112 = arith.constant 0 : index
    %c4_113 = arith.constant 4 : index
    %c0_114 = arith.constant 0 : index
    %c0_115 = arith.constant 0 : index
    %83 = vector.load %arg8[%c0_112, %c4_113, %c0_114, %c0_115] : memref<1x20x24x128xbf16, #tpu.memory_space<vmem>>, vector<1x16x16x128xbf16>
    %84 = vector.shape_cast %83 : vector<1x16x16x128xbf16> to vector<16x16x128xbf16>
    %85 = vector.shape_cast %84 : vector<16x16x128xbf16> to vector<256x128xbf16>
    %c0_116 = arith.constant 0 : index
    %c768_117 = arith.constant 768 : index
    %86 = vector.load %arg9[%c0_116, %c768_117] : memref<256x1152xbf16, #tpu.memory_space<vmem>>, vector<256x128xbf16>
    tpu.vector_store %arg9[%c0_116, %c768_117], %85 {strides = array<i32>} : memref<256x1152xbf16, #tpu.memory_space<vmem>>, vector<256x128xbf16>,
    %c0_118 = arith.constant 0 : index
    %c4_119 = arith.constant 4 : index
    %c2_120 = arith.constant 2 : index
    %c0_121 = arith.constant 0 : index
    %87 = vector.load %arg8[%c0_118, %c4_119, %c2_120, %c0_121] : memref<1x20x24x128xbf16, #tpu.memory_space<vmem>>, vector<1x16x16x128xbf16>
    %88 = vector.shape_cast %87 : vector<1x16x16x128xbf16> to vector<16x16x128xbf16>
    %89 = vector.shape_cast %88 : vector<16x16x128xbf16> to vector<256x128xbf16>
    %c0_122 = arith.constant 0 : index
    %c896_123 = arith.constant 896 : index
    %90 = vector.load %arg9[%c0_122, %c896_123] : memref<256x1152xbf16, #tpu.memory_space<vmem>>, vector<256x128xbf16>
    tpu.vector_store %arg9[%c0_122, %c896_123], %89 {strides = array<i32>} : memref<256x1152xbf16, #tpu.memory_space<vmem>>, vector<256x128xbf16>,
    %c0_124 = arith.constant 0 : index
    %c4_125 = arith.constant 4 : index
    %c4_126 = arith.constant 4 : index
    %c0_127 = arith.constant 0 : index
    %91 = vector.load %arg8[%c0_124, %c4_125, %c4_126, %c0_127] : memref<1x20x24x128xbf16, #tpu.memory_space<vmem>>, vector<1x16x16x128xbf16>
    %92 = vector.shape_cast %91 : vector<1x16x16x128xbf16> to vector<16x16x128xbf16>
    %93 = vector.shape_cast %92 : vector<16x16x128xbf16> to vector<256x128xbf16>
    %c0_128 = arith.constant 0 : index
    %c1024_129 = arith.constant 1024 : index
    %94 = vector.load %arg9[%c0_128, %c1024_129] : memref<256x1152xbf16, #tpu.memory_space<vmem>>, vector<256x128xbf16>
    tpu.vector_store %arg9[%c0_128, %c1024_129], %93 {strides = array<i32>} : memref<256x1152xbf16, #tpu.memory_space<vmem>>, vector<256x128xbf16>,
    %c0_130 = arith.constant 0 : index
    %c0_131 = arith.constant 0 : index
    %95 = vector.load %arg9[%c0_130, %c0_131] : memref<256x1152xbf16, #tpu.memory_space<vmem>>, vector<256x1152xbf16>
    %c0_132 = arith.constant 0 : index
    %c0_133 = arith.constant 0 : index
    %96 = vector.load %arg3[%c0_132, %c0_133] : memref<1152x128xbf16, #tpu.memory_space<vmem>>, vector<1152x128xbf16>
    %cst_134 = arith.constant dense<0.000000e+00> : vector<256x128xf32>
    %97 = tpu.matmul %95, %96, %cst_134 {dimension_numbers = #tpu.dot_dimension_numbers<[1], [0], [0], [1], [0, 0, 1, 1], [], []>} : vector<256x1152xbf16>, vector<1152x128xbf16>, vector<256x128xf32> -> vector<256x128xf32>
    %98 = arith.truncf %97 : vector<256x128xf32> to vector<256x128xbf16>
    %c0_135 = arith.constant 0 : index
    %c0_136 = arith.constant 0 : index
    %99 = vector.load %arg4[%c0_135, %c0_136] : memref<128x128xbf16, #tpu.memory_space<vmem>>, vector<128x128xbf16>
    %cst_137 = arith.constant dense<0.000000e+00> : vector<256x128xf32>
    %100 = tpu.matmul %98, %99, %cst_137 {dimension_numbers = #tpu.dot_dimension_numbers<[1], [0], [0], [1], [0, 0, 1, 1], [], []>} : vector<256x128xbf16>, vector<128x128xbf16>, vector<256x128xf32> -> vector<256x128xf32>
    %c0_138 = arith.constant 0 : index
    %c0_139 = arith.constant 0 : index
    %101 = vector.load %arg5[%c0_138, %c0_139] : memref<1x128xf32, #tpu.memory_space<vmem>>, vector<1x128xf32>
    %102 = vector.broadcast %101 : vector<1x128xf32> to vector<256x128xf32>
    %103 = arith.addf %100, %102 : vector<256x128xf32>
    %c0_140 = arith.constant 0 : index
    %104 = memref.load %arg6[%c0_140] : memref<1xf32, #tpu.memory_space<smem>>
    %cst_141 = arith.constant 0.000000e+00 : f32
    %105 = vector.broadcast %cst_141 : f32 to vector<256x128xf32>
    %106 = arith.cmpf oge, %103, %105 : vector<256x128xf32>
    %107 = vector.broadcast %104 : f32 to vector<256x128xf32>
    %108 = arith.mulf %107, %103 : vector<256x128xf32>
    %109 = arith.select %106, %103, %108 : vector<256x128xi1>, vector<256x128xf32>
    %c0_142 = arith.constant 0 : index
    %c0_143 = arith.constant 0 : index
    %c0_144 = arith.constant 0 : index
    %c0_145 = arith.constant 0 : index
    %110 = vector.load %arg1[%c0_142, %c0_143, %c0_144, %c0_145] : memref<1x16x16x128xf32, #tpu.memory_space<vmem>>, vector<1x16x16x128xf32>
    %111 = vector.shape_cast %109 : vector<256x128xf32> to vector<1x16x16x128xf32>
    %112 = arith.addf %110, %111 : vector<1x16x16x128xf32>
    %c0_146 = arith.constant 0 : index
    %c0_147 = arith.constant 0 : index
    %c0_148 = arith.constant 0 : index
    %c0_149 = arith.constant 0 : index
    %113 = vector.load %arg7[%c0_146, %c0_147, %c0_148, %c0_149] : memref<1x16x16x128xf32, #tpu.memory_space<vmem>>, vector<1x16x16x128xf32>
    tpu.vector_store %arg7[%c0_146, %c0_147, %c0_148, %c0_149], %112 {strides = array<i32>} : memref<1x16x16x128xf32, #tpu.memory_space<vmem>>, vector<1x16x16x128xf32>,
    return
  }
  func.func @transform_0(%arg0: i32) -> (i32, i32, i32, i32) {
    %c0_i32 = arith.constant 0 : i32
    %c0_i32_0 = arith.constant 0 : i32
    %c0_i32_1 = arith.constant 0 : i32
    %c0_i32_2 = arith.constant 0 : i32
    return %arg0, %c0_i32, %c0_i32_0, %c0_i32_1 : i32, i32, i32, i32
  }
  func.func @transform_1(%arg0: i32) -> (i32, i32) {
    %c0_i32 = arith.constant 0 : i32
    %c0_i32_0 = arith.constant 0 : i32
    %c0_i32_1 = arith.constant 0 : i32
    return %c0_i32, %c0_i32_0 : i32, i32
  }
  func.func @transform_2(%arg0: i32) -> (i32, i32) {
    %c0_i32 = arith.constant 0 : i32
    %c0_i32_0 = arith.constant 0 : i32
    %c0_i32_1 = arith.constant 0 : i32
    return %c0_i32, %c0_i32_0 : i32, i32
  }
  func.func @transform_3(%arg0: i32) -> (i32, i32) {
    %c0_i32 = arith.constant 0 : i32
    %c0_i32_0 = arith.constant 0 : i32
    %c0_i32_1 = arith.constant 0 : i32
    return %c0_i32, %c0_i32_0 : i32, i32
  }
  func.func @transform_4(%arg0: i32) -> (i32, i32) {
    %c0_i32 = arith.constant 0 : i32
    %c0_i32_0 = arith.constant 0 : i32
    %c0_i32_1 = arith.constant 0 : i32
    return %c0_i32, %c0_i32_0 : i32, i32
  }
  func.func @transform_5(%arg0: i32) -> i32 {
    %c0_i32 = arith.constant 0 : i32
    %c0_i32_0 = arith.constant 0 : i32
    return %c0_i32 : i32
  }
  func.func @transform_6(%arg0: i32) -> (i32, i32, i32, i32) {
    %c0_i32 = arith.constant 0 : i32
    %c0_i32_0 = arith.constant 0 : i32
    %c0_i32_1 = arith.constant 0 : i32
    %c0_i32_2 = arith.constant 0 : i32
    return %arg0, %c0_i32, %c0_i32_0, %c0_i32_1 : i32, i32, i32, i32
  }
}

</mosaic_0001>

<bundles_post_ra>
// kernel: tpu_custom_call.1
= control target key start
LH: loop header
LB: loop body
LE: loop exit
PB: predicated region body
PF: predicated region fallthrough
CT: control target
= control target key end

     0   :  { %s17282_s0 = inlined_call_operand.hbm [shape: f32[2,16,16,128], index: 0, kind: input, shape index: {}]   ;;  %s17283_s1 = inlined_call_operand.hbm [shape: bf16[1152,128], index: 1, kind: input, shape index: {}]   ;;  %s17284_s2 = inlined_call_operand.hbm [shape: bf16[1152,128], index: 2, kind: input, shape index: {}]   ;;  %s17285_s3 = inlined_call_operand.hbm [shape: bf16[128,128], index: 3, kind: input, shape index: {}]   ;;  %s17286_s4 = inlined_call_operand.vmem [shape: f32[1,128], index: 4, kind: input, shape index: {}]   ;;  %s17287_s5 = inlined_call_operand.<no memory space> [shape: f32[1], index: 5, kind: input, shape index: {}]   ;;  %s17288_s6 = inlined_call_operand.hbm [shape: f32[2,16,16,128], index: 6, kind: output, shape index: {}]  }
   0x1   :  { %11 = sst [smem:[#allocation4]] %s17287_s5 }
   0x2   :  { %12 = vsyncpa [#allocation6], 0 }
   0x3   :  { %14 = vsyncpa [#allocation6 + $0x1], 0 }
   0x4   :  { %15 = vsyncpa [#allocation9], 0 }
   0x5   :  { %16 = vsyncpa [#allocation12], 0 }
   0x6   :  { %17 = vsyncpa [#allocation7], 0 }
   0x7   :  { %19 = vsyncpa [#allocation7 + $0x1], 0  ;;  %s14458_s23 = smov 0   ;;  %s14460_s24 = smov 0  }
   0x8   :  { %s14462_s25 = smov 0   ;;  %s14464_s26 = smov 0  }
   0x9 LB: > { %s14479_s5 = sadd.s32 4294967295, %s14408_s26   ;;  %s11739_s27 = sadd.s32 4294967294, %s14408_s26   ;;  %s14408_s26 = sphi %s14464_s26, %s17528_s26   ;;  %s14404_s25 = sphi %s14462_s25, %s17527_s25   ;;  %s14400_s24 = sphi %s14460_s24, %s17526_s24   ;;  %s14396_s23 = sphi %s14458_s23, %s17525_s23  }
   0xa   : > { %p45_p0 = scmp.ne.s32.totalorder %s14400_s24, %s14396_s23  ;;  %p46_p1 = scmp.eq.s32.totalorder %s14479_s5, 0 }
   0xb   : > { %p174_p2 = scmp.eq.s32.totalorder %s14479_s5, 1  ;;  %p180_p3 = scmp.eq.s32.totalorder %s11739_s27, 1 }
   0xc   : > { %p14488_p4 = por %p46_p1, %p45_p0  ;;  %p11740_p5 = scmp.ge.s32.totalorder %s14408_s26, 1 }
   0xd   : > { %p14493_p6 = por %p180_p3, %p45_p0  ;;  %p187_p7 = scmp.lt.s32.totalorder %s14408_s26, 3 }
   0xe   : > { %s198_s8 = sshll.u32 %s17283_s1, 4  ;;  %s14410_s10 = smov [#allocation8]   ;;  %s199_s8 = int_to_ptr.hbm [resolvable:$true] %s198_s8 }
   0xf   : > { %p14501_p8 = pnand %p11740_p5, %p187_p7  ;;  %s200_s11 = sshll.u32 %s14410_s10, 4  ;;  %s201_s11 = int_to_ptr.vmem [resolvable:$true] %s200_s11 }
  0x10   : > { %s212_s15 = sshll.u32 %s17284_s2, 4  ;;  %s14411_s16 = smov 64   ;;  %s213_s15 = int_to_ptr.hbm [resolvable:$true] %s212_s15 }
  0x11   : > { %p14145_p9 = pneg %p14501_p8  ;;  %s14412_s17 = smov 4  }
  0x12   : > { %s14413_s18 = smov [#allocation10]   ;;  %s226_s22 = sshll.u32 %s17285_s3, 4  ;;  %s227_s22 = int_to_ptr.hbm [resolvable:$true] %s226_s22 }
  0x13   : > { %p14509_p10 = pnand %p14145_p9, %p46_p1  ;;  %s214_s19 = sshll.u32 %s14413_s18, 4  ;;  %s215_s19 = int_to_ptr.vmem [resolvable:$true] %s214_s19 }
  0x14   : > { %s14414_s27 = smov [#allocation11]   ;;  %s14525_s7 = sadd.s32 1, %s14408_s26  }
  0x15   : > { %14148 = dma.hbm_to_vmem [thread:$0]  (!%p14509_p10), %s199_s8, 9216, %s201_s11, [#allocation9], %s14411_s16, %s14411_s16, %s14412_s17  }
  0x16   : > { %14151 = dma.hbm_to_vmem [thread:$0]  (!%p14509_p10), %s213_s15, 9216, %s215_s19, [#allocation9], %s14411_s16, %s14411_s16, %s14412_s17  }
  0x17   : > { %s228_s30 = sshll.u32 %s14414_s27, 4  ;;  %s29_s8 = ssub.s32 %s14408_s26, %s14525_s7  ;;  %s229_s30 = int_to_ptr.vmem [resolvable:$true] %s228_s30 }
  0x18   : > { %14154 = dma.hbm_to_vmem [thread:$0]  (!%p14509_p10), %s227_s22, 1024, %s229_s30, [#allocation12], %s14411_s16, %s14411_s16, %s14412_s17  }
  0x19   : > { %s32_s10 = sadd.s32 1, %s14404_s25  ;;  %p30_p12 = scmp.eq.s32.totalorder %s29_s8, 0 }
  0x1a   : > { %p39_p13 = scmp.ne.s32.totalorder %s14404_s25, %s14400_s24  ;;  %p40_p0 = scmp.eq.s32.totalorder %s14408_s26, 0 }
  0x1b   : > { %p14166_p3 = scmp.lt.s32.totalorder %s14408_s26, 2  ;;  %s248_s14 = sand.u32 1, %s14404_s25  }
  0x1c   : > { %s14537_s11 = scalar_select %p30_p12, %s14404_s25, %s32_s10  }
  0x1d   : > { %p41_p5 = por %p40_p0, %p39_p13  ;;  %p14541_p7 = por %p174_p2, %p39_p13 }
  0x1e   : > { %s13663_s15 = sshll.u32 %s14408_s26, 8  ;;  %s11745_s12 = sshll.u32 %s248_s14, 8 }
  0x1f   : > { %s257_s17 = scalar_lea.hbm %s17282_s0, %s13663_s15  ;;  %s252_s20 = scalar_lea.vmem [#allocation5], %s11745_s12 }
  0x20   : > { %s258_s19 = sshll.u32 %s257_s17, 4  ;;  %s260_s21 = sshll.u32 %s252_s20, 4  ;;  %s259_s19 = int_to_ptr.hbm [resolvable:$true] %s258_s19  ;;  %s261_s21 = int_to_ptr.vmem [resolvable:$true] %s260_s21 }
  0x21   : > { %p14552_p9 = pnand %p14166_p3, %p41_p5  ;;  %s249_s27 = scalar_lea.sflag [#allocation6], %s248_s14 }
  0x22   : > { %s14304_s30 = sshra.s32 %s259_s19, 4  ;;  %s14311_s12 = scalar_lea.hbm %s17282_s0, 512  ;;  %s14305_s30 = int_to_ptr.hbm [resolvable:$true] %s14304_s30 }
  0x23   : > { %s14306_s8 = scalar_lea.hbm %s14305_s30, 256  ;;  %p14308_p10 = pneg %p14552_p9 }
  0x24   : > { %p14307_p2 = scmp.ne.s32.totalorder %s14305_s30, %s14306_s8  ;;  %p14312_p0 = scmp.lt.s32.totalorder %s14305_s30, %s17282_s0 }
  0x25   : > { %p14313_p3 = scmp.lt.s32.totalorder %s14311_s12, %s14306_s8 }
  0x26   : > { %p14309_p12 = pnand %p14308_p10, %p14307_p2 }
  0x27   : > { %p14314_p5 = por %p14313_p3, %p14312_p0 }
  0x28   : > { %p14310_p13 = pneg %p14309_p12 }
  0x2a   : > { %p14315_p11 = pnand %p14314_p5, %p14310_p13 }
  0x2c   : > { %14318 = shalt.err (!%p14315_p11)
}
  0x2d   : > { %s14415_s14 = smov 128   ;;  %s14416_s17 = smov 8  }
  0x2e   : > { %14158 = dma.hbm_to_vmem [thread:$0]  (!%p14552_p9), %s259_s19, 4096, %s261_s21, %s249_s27, %s14415_s14, %s14415_s14, %s14416_s17  }
  0x2f   : > { %272 = sbr.rel (%p14501_p8) target bundleno = 1838 (0x72e), region = 44 }
  0x34   : > { %s14569_s20 = sand.u32 1, %s14400_s24  }
  0x35   : > { %s11749_s30 = sshll.u32 %s14569_s20, 8  ;;  %s275_s8 = scalar_lea.sflag [#allocation6], %s14569_s20 }
  0x36   : > { %s14575_s10 = scalar_lea.vmem [#allocation5], %s11749_s30 }
  0x37   : > { %14379 = dma.done.wait (%p14488_p4), %s275_s8, 4096  }
  0x38   : > { %14381 = vsyncadd (%p14488_p4), %s275_s8, 4294963200 }
  0x39   : > { %14383 = dma.done.wait (%p46_p1), [#allocation9], 18432  }
  0x3a   : > { %14385 = vsyncadd (%p46_p1), [#allocation9], 4294948864 }
  0x3b   : > { %14387 = dma.done.wait (%p46_p1), [#allocation12], 1024  }
  0x3c   : > { %14389 = vsyncadd (%p46_p1), [#allocation12], 4294966272  ;;  %v14417_v0 = vmov 0   ;;  %v13815_v1 = vld [vmem:[#allocation8 + $0x38] sm:$0xff]  ;;  %v13814_v4 = vld [vmem:[#allocation8 + $0x30] sm:$0xff]  ;;  %vm466_vm3 = vcmask 1040384  }
  0x3d   : > { %324 = vst [vmem:[#allocation2] sm:$0xf] %v14417_v0  ;;  %v14595_v2 = vld [vmem:[#allocation8 + $0xb8] sm:$0xff]  ;;  %6112 = vmatpush.bf16.msra.mxu0 %v13815_v1  ;;  %v14602_v5 = vld [vmem:[#allocation8 + $0xb0] sm:$0xff]  ;;  %14105 = vmatpush.bf16.msra.mxu3 %v13815_v1  ;;  %v13813_v7 = vld [vmem:[#allocation8 + $0x28] sm:$0xff]  ;;  %vm467_vm4 = vcmask 1044484  }
  0x3e   : > { %325 = vst [vmem:[#allocation2 + $0x4] sm:$0xf] %v14417_v0  ;;  %v14597_v3 = vld [vmem:[#allocation8 + $0x78] sm:$0xff]  ;;  %6290 = vmatpush.bf16.msra.mxu2 %v14595_v2  ;;  %v14606_v6 = vld [vmem:[#allocation8 + $0x70] sm:$0xff]  ;;  %v14612_v8 = vld [vmem:[#allocation8 + $0xa8] sm:$0xff]  ;;  %vm1241_vm8 = vcmask 1042432  }
  0x3f   : > { %327 = vst [vmem:[#allocation2 + $0xc] sm:$0xf] %v14417_v0  ;;  %6201 = vmatpush.bf16.msra.mxu1 %v14597_v3  ;;  %vm694_vm0 = vsmask.f32 3328  ;;  %v14616_v9 = vld [vmem:[#allocation8 + $0x68] sm:$0xff]  ;;  %v13812_v17 = vld [vmem:[#allocation8 + $0x20] sm:$0xff]  ;;  %vm14710_vm10 = vmor %vm466_vm3, %vm467_vm4 }
  0x40   : > { %328 = vst [vmem:[#allocation2 + $0x10] sm:$0xf] %v14417_v0  ;;  %vm695_vm1 = vsmask.f32 7440  ;;  %v14620_v18 = vld [vmem:[#allocation8 + $0xa0] sm:$0xff]  ;;  %v13811_v28 = vld [vmem:[#allocation8 + $0x18] sm:$0xff] }
  0x41   : > { %329 = vst [vmem:[#allocation2 + $0x14] sm:$0xf] %v14417_v0  ;;  %6113 = vmatpush.bf16.msra.mxu0 %v13814_v4  ;;  %14106 = vmatpush.bf16.msra.mxu3 %v13814_v4  ;;  %v14622_v19 = vld [vmem:[#allocation8 + $0x60] sm:$0xff]  ;;  %v14630_v29 = vld [vmem:[#allocation8 + $0x98] sm:$0xff]  ;;  %vm14634_vm2 = vmor %vm694_vm0, %vm695_vm1  ;;  %vm1468_vm5 = vsmask.f32 2304 }
  0x42   : > { %326 = vst [vmem:[#allocation2 + $0x8] sm:$0xf] %v14417_v0  ;;  %6291 = vmatpush.bf16.msra.mxu2 %v14602_v5  ;;  %v14640_v31 = vld [vmem:[#allocation8 + $0x58] sm:$0xff]  ;;  %v13810_v36 = vld [vmem:[#allocation8 + $0x10] sm:$0xff]  ;;  %v13809_v39 = vld [vmem:[#allocation8 + $0x8] sm:$0xff]  ;;  %vm1242_vm9 = vcmask 1046532  }
  0x43   : > { %331 = vst [vmem:[#allocation2 + $0xd8] sm:$0xf] %v14417_v0  ;;  %6202 = vmatpush.bf16.msra.mxu1 %v14606_v6  ;;  %v14650_v37 = vld [vmem:[#allocation8 + $0x90] sm:$0xff]  ;;  %v14656_v40 = vld [vmem:[#allocation8 + $0x88] sm:$0xff]  ;;  %v13808_v53 = vld [vmem:[#allocation8] sm:$0xff]  ;;  %vm7585_vm11 = vcmask 1041408  }
  0x44   : > { %332 = vst [vmem:[#allocation2 + $0xdc] sm:$0xf] %v14417_v0  ;;  %v14653_v38 = vld [vmem:[#allocation8 + $0x50] sm:$0xff]  ;;  %v14662_v44 = vld [vmem:[#allocation8 + $0x48] sm:$0xff]  ;;  %v14669_v54 = vld [vmem:[#allocation8 + $0x80] sm:$0xff]  ;;  %vm7586_vm12 = vcmask 1045508  }
  0x45   : > { %333 = vst [vmem:[#allocation2 + $0xe0] sm:$0xf] %v14417_v0  ;;  %6114 = vmatpush.bf16.msra.mxu0 %v13813_v7  ;;  %14107 = vmatpush.bf16.msra.mxu3 %v13813_v7  ;;  %v7153_v42 = vld [vmem:[#allocation2] sm:$0xf]  ;;  %v7154_v45 = vld [vmem:[#allocation2 + $0x4] sm:$0xf]  ;;  %vm14718_vm13 = vmor %vm1241_vm8, %vm1242_vm9 }
  0x46   : > { %334 = vst [vmem:[#allocation2 + $0xe4] sm:$0xf] %v14417_v0  ;;  %v646_v10 = vld [vmem:[#allocation2 + $0xc] sm:$0xf]  ;;  %6292 = vmatpush.bf16.msra.mxu2 %v14612_v8  ;;  %v392_v46 = vld [vmem:[%s14575_s10 + $0xb0] sm:$0xff]  ;;  %v14672_v56 = vld [vmem:[#allocation8 + $0x40] sm:$0xff] }
  0x47   : > { %335 = vst [vmem:[#allocation2 + $0xe8] sm:$0xf] %v14417_v0  ;;  %v647_v11 = vld [vmem:[#allocation2 + $0x10] sm:$0xf]  ;;  %v698_v13 = vshrl.u32 %v646_v10, 16  ;;  %v701_v14 = vshll.u32 %v646_v10, 16  ;;  %6203 = vmatpush.bf16.msra.mxu1 %v14616_v9  ;;  %v424_v60 = vpack.c.bf16 %v392_v46, %v392_v46  ;;  %vm14736_vm14 = vmor %vm7585_vm11, %vm7586_vm12 }
  0x48   : > { %336 = vst [vmem:[#allocation2 + $0xec] sm:$0xf] %v14417_v0  ;;  %v648_v12 = vld [vmem:[#allocation2 + $0x14] sm:$0x1]  ;;  %v707_v15 = vshll.u32 %v647_v11, 16  ;;  %v711_v16 = vshrl.u32 %v647_v11, 16 }
  0x49   : > { %338 = vst [vmem:[#allocation2 + $0x18] sm:$0x1] %v14417_v0  ;;  %v717_v20 = vshll.u32 %v648_v12, 16  ;;  %v700_v21 = vrot.slane %v698_v13, 4  ;;  %v703_v22 = vrot.slane %v701_v14, 5  ;;  %6115 = vmatpush.bf16.msra.mxu0 %v13812_v17  ;;  %14108 = vmatpush.bf16.msra.mxu3 %v13812_v17  ;;  %v393_v4 = vld [vmem:[%s14575_s10 + $0xb8] sm:$0xff] }
  0x4a   : > { %339 = vst [vmem:[#allocation2 + $0x24] sm:$0x1] %v14417_v0  ;;  %v709_v23 = vrot.slane %v707_v15, 5  ;;  %v713_v24 = vrot.slane %v711_v16, 4  ;;  %6293 = vmatpush.bf16.msra.mxu2 %v14620_v18  ;;  %v1420_v41 = vld [vmem:[#allocation2 + $0xc] sm:$0xe]  ;;  %v425_v10 = vpack.c.bf16 %v393_v4, %v393_v4 }
  0x4b   : > { %340 = vst [vmem:[#allocation2 + $0x30] sm:$0x1] %v14417_v0  ;;  %v704_v25 = vor.u32 %v703_v22, %v700_v21  ;;  %v719_v27 = vrot.slane %v717_v20, 5  ;;  %6204 = vmatpush.bf16.msra.mxu1 %v14622_v19  ;;  %v1421_v43 = vld [vmem:[#allocation2 + $0x10] sm:$0xf]  ;;  %v1472_v48 = vshrl.u32 %v1420_v41, 16 }
  0x4c   : > { %341 = vst [vmem:[#allocation2 + $0x3c] sm:$0x1] %v14417_v0  ;;  %v714_v26 = vor.u32 %v713_v24, %v709_v23  ;;  %v1422_v47 = vld [vmem:[#allocation2 + $0x14] sm:$0x3]  ;;  %v1475_v49 = vshll.u32 %v1420_v41, 16  ;;  %v1481_v51 = vshrl.u32 %v1421_v43, 16 }
  0x4d   : > { %342 = vst [vmem:[#allocation2 + $0x48] sm:$0x1] %v14417_v0  ;;  %v705_v32 = vrot.slane %v704_v25, 4  ;;  %6116 = vmatpush.bf16.msra.mxu0 %v13811_v28  ;;  %14109 = vmatpush.bf16.msra.mxu3 %v13811_v28  ;;  %v1484_v52 = vshll.u32 %v1421_v43, 16  ;;  %v1474_v57 = vrot.slane %v1472_v48, 5  ;;  %v1491_v58 = vshrl.u32 %v1422_v47, 16 }
  0x4e   : > { %343 = vst [vmem:[#allocation2 + $0x54] sm:$0x1] %v14417_v0  ;;  %v715_v33 = vrot.slane %v714_v26, 4  ;;  %6294 = vmatpush.bf16.msra.mxu2 %v14630_v29  ;;  %v1494_v59 = vshll.u32 %v1422_v47, 16  ;;  %v1477_v62 = vrot.slane %v1475_v49, 6  ;;  %v1483_v63 = vrot.slane %v1481_v51, 5 }
  0x4f   : > { %344 = vst [vmem:[#allocation2 + $0x60] sm:$0x1] %v14417_v0  ;;  %v710_v34 = vsel %vm14634_vm2, %v705_v32, %v709_v23  ;;  %6205 = vmatpush.bf16.msra.mxu1 %v14640_v31  ;;  %v1486_v1 = vrot.slane %v1484_v52, 6  ;;  %v1493_v7 = vrot.slane %v1491_v58, 5  ;;  %v524_v14 = vrot.slane %v424_v60, 7  ;;  %v370_v16 = vld [vmem:[%s14575_s10] sm:$0xff] }
  0x50   : > { %345 = vst [vmem:[#allocation2 + $0x6c] sm:$0x1] %v14417_v0  ;;  %v720_v35 = vsel %vm14634_vm2, %v715_v33, %v719_v27  ;;  %v1478_v11 = vor.u32 %v1477_v62, %v1474_v57  ;;  %v1496_v13 = vrot.slane %v1494_v59, 6  ;;  %vm1469_vm6 = vsmask.f32 6416  ;;  %v371_v26 = vld [vmem:[%s14575_s10 + $0x8] sm:$0xff] }
  0x51   : > { %346 = vst [vmem:[#allocation2 + $0x78] sm:$0x1] %v14417_v0  ;;  %6117 = vmatpush.bf16.msra.mxu0 %v13810_v36  ;;  %14110 = vmatpush.bf16.msra.mxu3 %v13810_v36  ;;  %v1487_v12 = vor.u32 %v1486_v1, %v1483_v63  ;;  %v1146_v15 = vld [vmem:[#allocation2 + $0x10] sm:$0xf]  ;;  %v525_v22 = vrot.slane %v524_v14, 4  ;;  %vm14693_vm7 = vmor %vm1468_vm5, %vm1469_vm6  ;;  %v402_v32 = vpack.c.bf16 %v370_v16, %v370_v16  ;;  %v372_v59 = vld [vmem:[%s14575_s10 + $0x10] sm:$0xff] }
  0x52   : > { %347 = vst [vmem:[#allocation2 + $0x84] sm:$0x1] %v14417_v0  ;;  %6295 = vmatpush.bf16.msra.mxu2 %v14650_v37  ;;  %v1479_v17 = vrot.slane %v1478_v11, 4  ;;  %v1497_v21 = vor.u32 %v1496_v13, %v1493_v7  ;;  %v7490_v24 = vld [vmem:[#allocation2 + $0x4] sm:$0xf]  ;;  %v1246_v28 = vrot.slane %v1146_v15, 5  ;;  %v403_v43 = vpack.c.bf16 %v371_v26, %v371_v26 }
  0x53   : > { %1113 = vst [vmem:[#allocation3] sm:$0xf] %v710_v34  ;;  %6206 = vmatpush.bf16.msra.mxu1 %v14653_v38  ;;  %v1489_v20 = vrot.slane %v1487_v12, 4  ;;  %v1145_v27 = vld [vmem:[#allocation2 + $0xc] sm:$0xe]  ;;  %v394_v33 = vld [vmem:[%s14575_s10 + $0xc0] sm:$0xff]  ;;  %v404_v11 = vpack.c.bf16 %v372_v59, %v372_v59 }
  0x54   : > { %1114 = vst [vmem:[#allocation3 + $0x24] sm:$0xf] %v720_v35  ;;  %v1147_v34 = vld [vmem:[#allocation2 + $0x14] sm:$0x1]  ;;  %v1488_v35 = vsel %vm14693_vm7, %v1479_v17, %v1487_v12  ;;  %v7590_v41 = vrot.slane %v7490_v24, 6  ;;  %v1248_v47 = vrot.slane %v1246_v28, 4 }
  0x55   : > { %348 = vst [vmem:[#allocation2 + $0x90] sm:$0x1] %v14417_v0  ;;  %6118 = vmatpush.bf16.msra.mxu0 %v13809_v39  ;;  %14111 = vmatpush.bf16.msra.mxu3 %v13809_v39  ;;  %v1498_v36 = vsel %vm14693_vm7, %v1489_v20, %v1497_v21  ;;  %v7491_v39 = vld [vmem:[#allocation2 + $0x8] sm:$0x3]  ;;  %v1249_v48 = vrot.slane %v1147_v34, 5  ;;  %v469_v49 = vrot.slane %v402_v32, 7 }
  0x56   : > { %349 = vst [vmem:[#allocation2 + $0x9c] sm:$0x1] %v14417_v0  ;;  %6296 = vmatpush.bf16.msra.mxu2 %v14656_v40  ;;  %v7593_v57 = vrot.slane %v7491_v39, 6  ;;  %v471_v58 = vrot.slane %v403_v43, 7  ;;  %v7219_v4 = vld [vmem:[#allocation2 + $0x8] sm:$0x1] }
  0x57   : > { %350 = vst [vmem:[#allocation2 + $0xa8] sm:$0x1] %v14417_v0  ;;  %6207 = vmatpush.bf16.msra.mxu1 %v14662_v44  ;;  %v1250_v1 = vsel %vm14718_vm13, %v1248_v47, %v1249_v48  ;;  %v470_v7 = vrot.slane %v469_v49, 4  ;;  %v7318_v15 = vrot.slane %v7219_v4, 5  ;;  %v14752_v26 = vrot.slane %v404_v11, 7  ;;  %s11427_s28 = sld [smem:[#allocation4]] }
  0x58   : > { %351 = vst [vmem:[#allocation2 + $0xb4] sm:$0x1] %v14417_v0  ;;  %s17103_s21 = scalar_lea.vmem [#allocation13], %s11749_s30  ;;  %s14104_s22 = sshll.u32 %s14479_s5, 8 }
  0x59   : > { %352 = vst [vmem:[#allocation2 + $0xc0] sm:$0x1] %v14417_v0  ;;  %6119 = vmatpush.bf16.msra.mxu0 %v13808_v53  ;;  %14112 = vmatpush.bf16.msra.mxu3 %v13808_v53  ;;  %v7218_v53 = vld [vmem:[#allocation2 + $0x4] sm:$0xf]  ;;  %s11633_s12 = scalar_lea.hbm %s17288_s6, %s14104_s22  ;;  %s11634_s18 = sshll.u32 %s17103_s21, 4  ;;  %s11635_s18 = int_to_ptr.vmem [resolvable:$true] %s11634_s18 }
  0x5a   : > { %v11804_v50 = vld [vmem:[#allocation3] sm:$0xf]  ;;  %353 = vst [vmem:[#allocation2 + $0xcc] sm:$0x1] %v14417_v0  ;;  %6297 = vmatpush.bf16.msra.mxu2 %v14669_v54  ;;  %s11636_s16 = sshll.u32 %s11633_s12, 4  ;;  %s11622_s5 = scalar_lea.sflag [#allocation7], %s14569_s20  ;;  %s11637_s16 = int_to_ptr.hbm [resolvable:$true] %s11636_s16 }
  0x5b   : > { %v13668_v55 = vld [vmem:[#allocation3 + $0x20] sm:$0xf0]  ;;  %7185 = vst [vmem:[#allocation3] sm:$0xf] %v7153_v42  ;;  %6208 = vmatpush.bf16.msra.mxu1 %v14672_v56  ;;  %s14348_s14 = sshra.s32 %s11637_s16, 4  ;;  %s14349_s14 = int_to_ptr.hbm [resolvable:$true] %s14348_s14 }
  0x5c   : > { %7186 = vst [vmem:[#allocation3 + $0x24] sm:$0xf] %v7154_v45  ;;  %v11805_v61 = vor.u32 %v13668_v55, %v11804_v50  ;;  %v426_v45 = vpack.c.bf16 %v394_v33, %v394_v33  ;;  %v395_v50 = vld [vmem:[%s14575_s10 + $0xc8] sm:$0xff]  ;;  %v13847_v55 = vld [vmem:[#allocation8 + $0x138] sm:$0xff]  ;;  %s14350_s17 = scalar_lea.hbm %s14349_s14, 256  ;;  %p14355_p11 = scmp.lt.s32.totalorder %s14349_s14, %s17288_s6 }
  0x5d   : > { %354 = vst [vmem:[#allocation2 + $0x20] sm:$0xe] %v14417_v0  ;;  %14113 = vmatpush.bf16.msrb.mxu3 %v14597_v3  ;;  %v14687_v3 = vrot.slane %v425_v10, 7  ;;  %6468 = vmatpush.bf16.msrb.mxu0 %v13847_v55  ;;  %v427_v62 = vpack.c.bf16 %v395_v50, %v395_v50  ;;  %v17305_v10 = vmov 0  ;;  %v475_v50 = vrot.slane %v14752_v26, 4  ;;  %p14351_p1 = scmp.ne.s32.totalorder %s14349_s14, %s14350_s17 }
  0x5e   : > { %355 = vst [vmem:[#allocation2 + $0x2c] sm:$0xe] %v14417_v0  ;;  %6120 = vmatmul.bf16.vlgmr.msra.gmra.mxu0 %v11805_v61  ;;  %v7217_v61 = vld [vmem:[#allocation2] sm:$0xe]  ;;  %v14730_v63 = vrot.slane %v426_v45, 7  ;;  %v17306_v10 = vsel %vm14736_vm14, 4294967295, %v17305_v10 }
  0x5f   : > { %356 = vst [vmem:[#allocation2 + $0x38] sm:$0xe] %v14417_v0  ;;  %v528_v25 = vrot.slane %v14687_v3, 4  ;;  %v527_v52 = vsel %vm14710_vm10, %v525_v22, %v14687_v3  ;;  %v12666_v3 = vrot.slane %v7217_v61, 9  ;;  %v14746_v17 = vrot.slane %v427_v62, 7  ;;  %v373_v22 = vld [vmem:[%s14575_s10 + $0x18] sm:$0xff]  ;;  %p14352_p4 = pnand %p14351_p1, %p14541_p7 }
  0x60   : > { %357 = vst [vmem:[#allocation2 + $0x44] sm:$0xe] %v14417_v0  ;;  %v530_v16 = vrot.slane %v14730_v63, 4 }
  0x61   : > { %358 = vst [vmem:[#allocation2 + $0x50] sm:$0xe] %v14417_v0  ;;  %14114 = vmatpush.bf16.msrb.mxu3 %v14606_v6  ;;  %v7489_v6 = vld [vmem:[#allocation2] sm:$0xc]  ;;  %p14353_p8 = pneg %p14352_p4 }
  0x62   : > { %359 = vst [vmem:[#allocation2 + $0x5c] sm:$0xe] %v14417_v0  ;;  %v12682_v51 = vrot.slane %v7489_v6, 10 }
  0x63   : > { %360 = vst [vmem:[#allocation2 + $0x68] sm:$0xe] %v14417_v0 }
  0x64   : > { %361 = vst [vmem:[#allocation2 + $0x74] sm:$0xe] %v14417_v0  ;;  %v7591_v12 = vsel %vm14736_vm14, %v12682_v51, %v7590_v41 }
  0x65   : > { %362 = vst [vmem:[#allocation2 + $0x80] sm:$0xe] %v14417_v0  ;;  %14115 = vmatpush.bf16.msrb.mxu3 %v14616_v9  ;;  %v11754_v9 = vrot.slane %v1145_v27, 9 }
  0x66   : > { %363 = vst [vmem:[#allocation2 + $0x8c] sm:$0xe] %v14417_v0 }
  0x67   : > { %364 = vst [vmem:[#allocation2 + $0x98] sm:$0xe] %v14417_v0  ;;  %v1247_v60 = vsel %vm14718_vm13, %v11754_v9, %v1246_v28  ;;  %v14755_v28 = vld [vmem:[#allocation2 + $0x10] sm:$0xf]  ;;  %v14761_v9 = vld [vmem:[#allocation2 + $0xc] sm:$0xc] }
  0x68   : > { %365 = vst [vmem:[#allocation2 + $0xa4] sm:$0xe] %v14417_v0  ;;  %v12683_v11 = vrot.slane %v14761_v9, 10 }
  0x69   : > { %366 = vst [vmem:[#allocation2 + $0xb0] sm:$0xe] %v14417_v0  ;;  %14116 = vmatpush.bf16.msrb.mxu3 %v14622_v19  ;;  %v7315_v19 = vrot.slane %v7218_v53, 5 }
  0x6a   : > { %367 = vst [vmem:[#allocation2 + $0xbc] sm:$0xe] %v14417_v0 }
  0x6b   : > { %368 = vst [vmem:[#allocation2 + $0xc8] sm:$0xe] %v14417_v0  ;;  %v7317_v21 = vrot.slane %v7315_v19, 4 }
  0x6c   : > { %369 = vst [vmem:[#allocation2 + $0xd4] sm:$0xe] %v14417_v0  ;;  %v7592_v0 = vrot.slane %v7590_v41, 4 }
  0x6d   : > { %1951 = vst [vmem:[#allocation3 + $0x8] sm:$0xf] %v1488_v35  ;;  %14117 = vmatpush.bf16.msrb.mxu3 %v14640_v31  ;;  %v472_v31 = vsel %vm14710_vm10, %v470_v7, %v471_v58  ;;  %v7316_v35 = vsel %vm14718_vm13, %v12666_v3, %v7315_v19 }
  0x6e   : > { %1952 = vst [vmem:[#allocation3 + $0x2c] sm:$0xf] %v1498_v36  ;;  %v7594_v13 = vsel %vm14736_vm14, %v7592_v0, %v7593_v57  ;;  %v405_v36 = vpack.c.bf16 %v373_v22, %v373_v22 }
  0x6f   : > { %630 = vst [vmem:[#allocation2 + $0x9c] sm:$0xe] %v524_v14  ;;  %v473_v14 = vrot.slane %v471_v58, 4  ;;  %v7597_v58 = vrot.slane %v14755_v28, 6 }
  0x70   : > { %631 = vst [vmem:[#allocation2 + $0xa0] sm:$0xf] %v527_v52  ;;  %v14766_v59 = vrot.slane %v405_v36, 7 }
  0x71   : > { %17307 = vst [vmem:[#allocation18_spill] sm:$0xff] %v17306_v10  ;;  %14118 = vmatpush.bf16.msrb.mxu3 %v14653_v38  ;;  %v7319_v38 = vsel %vm14718_vm13, %v7317_v21, %v7318_v15  ;;  %v14773_v15 = vrot.slane %v7597_v58, 4 }
  0x72   : > { %632 = vst [vmem:[#allocation2 + $0xa4] sm:$0x1] %v528_v25  ;;  %v533_v25 = vrot.slane %v14746_v17, 4 }
  0x73   : > { %1388 = vst [vmem:[#allocation3 + $0x4] sm:$0xf] %v1247_v60 }
  0x74   : > { %1389 = vst [vmem:[#allocation3 + $0x28] sm:$0xf] %v1250_v1  ;;  %v11812_v20 = vld [vmem:[#allocation3 + $0x8] sm:$0xf] }
  0x75   : > { %597 = vst [vmem:[#allocation2 + $0x18] sm:$0xe] %v469_v49  ;;  %v13669_v24 = vld [vmem:[#allocation3 + $0x28] sm:$0xf0]  ;;  %14119 = vmatpush.bf16.msrb.mxu3 %v14662_v44 }
  0x76   : > { %7732 = vst [vmem:[#allocation3 + $0x8] sm:$0xf] %v7591_v12  ;;  %v11813_v6 = vor.u32 %v13669_v24, %v11812_v20  ;;  %v682_v27 = vld [vmem:[#allocation2 + $0x9c] sm:$0xf] }
  0x77   : > { %7733 = vst [vmem:[#allocation3 + $0x2c] sm:$0xf] %v7594_v13  ;;  %v683_v32 = vld [vmem:[#allocation2 + $0xa0] sm:$0xf]  ;;  %v986_v33 = vshrl.u32 %v682_v27, 16  ;;  %v989_v34 = vshll.u32 %v682_v27, 16 }
  0x78   : > { %598 = vst [vmem:[#allocation2 + $0x1c] sm:$0xf] %v472_v31  ;;  %6298 = vmatmul.bf16.vlgmr.msra.gmra.mxu2 %v11813_v6  ;;  %v995_v41 = vshll.u32 %v683_v32, 16  ;;  %v999_v43 = vshrl.u32 %v683_v32, 16  ;;  %v14777_v6 = vld [vmem:[#allocation2 + $0x14] sm:$0x3] }
  0x79   : > { %v684_v39 = vld [vmem:[#allocation2 + $0xa4] sm:$0x1]  ;;  %599 = vst [vmem:[#allocation2 + $0x20] sm:$0x1] %v473_v14  ;;  %v988_v45 = vrot.slane %v986_v33, 4  ;;  %v991_v47 = vrot.slane %v989_v34, 5  ;;  %14120 = vmatpush.bf16.msrb.mxu3 %v14672_v56  ;;  %v532_v56 = vsel %vm14710_vm10, %v530_v16, %v14746_v17 }
  0x7a   : > { %v1005_v48 = vshll.u32 %v684_v39, 16  ;;  %v13664_v49 = vld [vmem:[#allocation3 + $0x4] sm:$0xf]  ;;  %v997_v51 = vrot.slane %v995_v41, 5  ;;  %v1001_v52 = vrot.slane %v999_v43, 4 }
  0x7b   : > { %v11806_v53 = vld [vmem:[#allocation3 + $0x24] sm:$0xf0]  ;;  %7457 = vst [vmem:[#allocation3 + $0x4] sm:$0xf] %v7316_v35  ;;  %v992_v55 = vor.u32 %v991_v47, %v988_v45 }
  0x7c   : > { %v11809_v0 = vor.u32 %v13664_v49, %v11806_v53  ;;  %7458 = vst [vmem:[#allocation3 + $0x28] sm:$0xf] %v7319_v38  ;;  %v649_v57 = vld [vmem:[#allocation2 + $0x18] sm:$0xf]  ;;  %v1002_v60 = vor.u32 %v1001_v52, %v997_v51  ;;  %v1007_v61 = vrot.slane %v1005_v48, 5 }
  0x7d   : > { %v722_v62 = vshrl.u32 %v649_v57, 16  ;;  %v725_v1 = vshll.u32 %v649_v57, 16  ;;  %v1423_v4 = vld [vmem:[#allocation2 + $0x18] sm:$0xe]  ;;  %v993_v19 = vrot.slane %v992_v55, 4  ;;  %v7600_v57 = vrot.slane %v14777_v6, 6 }
  0x7e   : > { %6209 = vmatmul.bf16.vlgmr.msra.gmra.mxu1 %v11809_v0  ;;  %v1500_v44 = vshrl.u32 %v1423_v4, 16  ;;  %v1503_v7 = vshll.u32 %v1423_v4, 16  ;;  %633 = vst [vmem:[#allocation2 + $0xa8] sm:$0xe] %v14730_v63  ;;  %v1003_v12 = vrot.slane %v1002_v60, 4 }
  0x7f   : > { %v650_v13 = vld [vmem:[#allocation2 + $0x1c] sm:$0xf]  ;;  %v724_v14 = vrot.slane %v722_v62, 4  ;;  %v727_v3 = vrot.slane %v725_v1, 5  ;;  %v998_v20 = vsel %vm14634_vm2, %v993_v19, %v997_v51  ;;  %634 = vst [vmem:[#allocation2 + $0xac] sm:$0xf] %v532_v56 }
  0x80   : > { %v651_v21 = vld [vmem:[#allocation2 + $0x20] sm:$0x1]  ;;  %v731_v31 = vshll.u32 %v650_v13, 16  ;;  %v735_v22 = vshrl.u32 %v650_v13, 16  ;;  %v1424_v24 = vld [vmem:[#allocation2 + $0x1c] sm:$0xf]  ;;  %v1008_v27 = vsel %vm14634_vm2, %v1003_v12, %v1007_v61 }
  0x81   : > { %1137 = vst [vmem:[#allocation3 + $0x360] sm:$0xf] %v998_v20  ;;  %v728_v32 = vor.u32 %v727_v3, %v724_v14  ;;  %v741_v33 = vshll.u32 %v651_v21, 16  ;;  %v1425_v34 = vld [vmem:[#allocation2 + $0x20] sm:$0x3]  ;;  %v1502_v35 = vrot.slane %v1500_v44, 5 }
  0x82   : > { %1138 = vst [vmem:[#allocation3 + $0x384] sm:$0xf] %v1008_v27  ;;  %v733_v36 = vrot.slane %v731_v31, 5  ;;  %v737_v39 = vrot.slane %v735_v22, 4  ;;  %v1505_v41 = vrot.slane %v1503_v7, 6  ;;  %v1509_v43 = vshrl.u32 %v1424_v24, 16 }
  0x83   : > { %v729_v38 = vrot.slane %v728_v32, 4  ;;  %v743_v45 = vrot.slane %v741_v33, 5  ;;  %v1512_v63 = vshll.u32 %v1424_v24, 16  ;;  %v1519_v47 = vshrl.u32 %v1425_v34, 16  ;;  %635 = vst [vmem:[#allocation2 + $0xb0] sm:$0x1] %v533_v25 }
  0x84   : > { %v738_v16 = vor.u32 %v737_v39, %v733_v36  ;;  %v1506_v48 = vor.u32 %v1505_v41, %v1502_v35  ;;  %v1511_v49 = vrot.slane %v1509_v43, 5  ;;  %v1522_v51 = vshll.u32 %v1425_v34, 16  ;;  %v1148_v52 = vld [vmem:[#allocation2 + $0x18] sm:$0xe]  ;;  %v396_v61 = vld [vmem:[%s14575_s10 + $0xd0] sm:$0xff] }
  0x85   : > { %v734_v53 = vsel %vm14634_vm2, %v729_v38, %v733_v36  ;;  %v1514_v55 = vrot.slane %v1512_v63, 6  ;;  %v1521_v0 = vrot.slane %v1519_v47, 5  ;;  %v685_v60 = vld [vmem:[#allocation2 + $0xa8] sm:$0xf]  ;;  %v1149_v12 = vld [vmem:[#allocation2 + $0x1c] sm:$0xf]  ;;  %v428_v33 = vpack.c.bf16 %v396_v61, %v396_v61 }
  0x86   : > { %v739_v62 = vrot.slane %v738_v16, 4  ;;  %1115 = vst [vmem:[#allocation3 + $0x48] sm:$0xf] %v734_v53  ;;  %v1507_v1 = vrot.slane %v1506_v48, 4  ;;  %v1524_v4 = vrot.slane %v1522_v51, 6  ;;  %v1010_v19 = vshrl.u32 %v685_v60, 16 }
  0x87   : > { %v1515_v44 = vor.u32 %v1514_v55, %v1511_v49  ;;  %v1013_v7 = vshll.u32 %v685_v60, 16  ;;  %v1150_v17 = vld [vmem:[#allocation2 + $0x20] sm:$0x1]  ;;  %v11755_v25 = vrot.slane %v1148_v52, 9  ;;  %v1253_v21 = vrot.slane %v1149_v12, 5  ;;  %v397_v16 = vld [vmem:[%s14575_s10 + $0xd8] sm:$0xff] }
  0x88   : > { %v12236_v13 = vld [vmem:[#allocation3 + $0x360] sm:$0xf]  ;;  %v744_v14 = vsel %vm14634_vm2, %v739_v62, %v743_v45  ;;  %v1525_v3 = vor.u32 %v1524_v4, %v1521_v0  ;;  %v1012_v20 = vrot.slane %v1010_v19, 4  ;;  %v7220_v31 = vld [vmem:[#allocation2 + $0xc] sm:$0xe]  ;;  %v1256_v41 = vrot.slane %v1150_v17, 5 }
  0x89   : > { %v13776_v22 = vld [vmem:[#allocation3 + $0x380] sm:$0xf0]  ;;  %1116 = vst [vmem:[#allocation3 + $0x6c] sm:$0xf] %v744_v14  ;;  %v7155_v24 = vld [vmem:[#allocation2 + $0xc] sm:$0xf]  ;;  %v1516_v56 = vsel %vm14693_vm7, %v1507_v1, %v1515_v44  ;;  %v1254_v36 = vsel %vm14718_vm13, %v11755_v25, %v1253_v21  ;;  %v7598_v1 = vsel %vm14736_vm14, %v12683_v11, %v7597_v58  ;;  %v7601_v14 = vsel %vm14736_vm14, %v14773_v15, %v7600_v57 }
  0x8a   : > { %v1517_v27 = vrot.slane %v1515_v44, 4  ;;  %v1015_v32 = vrot.slane %v1013_v7, 5  ;;  %v12237_v34 = vor.u32 %v13776_v22, %v12236_v13  ;;  %1953 = vst [vmem:[#allocation3 + $0x50] sm:$0xf] %v1516_v56  ;;  %v686_v35 = vld [vmem:[#allocation2 + $0xac] sm:$0xf]  ;;  %v429_v13 = vpack.c.bf16 %v397_v16, %v397_v16 }
  0x8b   : > { %v1255_v39 = vrot.slane %v1253_v21, 4  ;;  %v687_v38 = vld [vmem:[#allocation2 + $0xb0] sm:$0x1]  ;;  %v1019_v63 = vshll.u32 %v686_v35, 16  ;;  %v1023_v47 = vshrl.u32 %v686_v35, 16  ;;  %v12667_v52 = vrot.slane %v7220_v31, 9 }
  0x8c   : > { %v1526_v43 = vsel %vm14693_vm7, %v1517_v27, %v1525_v3  ;;  %v1016_v45 = vor.u32 %v1015_v32, %v1012_v20  ;;  %1390 = vst [vmem:[#allocation3 + $0x4c] sm:$0xf] %v1254_v36  ;;  %6180 = vmatmul.bf16.vlgmr.msra.gmra.mxu3 %v12237_v34  ;;  %v1029_v48 = vshll.u32 %v687_v38, 16  ;;  %v7221_v51 = vld [vmem:[#allocation2 + $0x10] sm:$0xf]  ;;  %v534_v12 = vrot.slane %v428_v33, 7 }
  0x8d   : > { %1954 = vst [vmem:[#allocation3 + $0x74] sm:$0xf] %v1526_v43  ;;  %v1257_v49 = vsel %vm14718_vm13, %v1255_v39, %v1256_v41  ;;  %v11840_v53 = vld [vmem:[#allocation3 + $0x48] sm:$0xf]  ;;  %v1021_v0 = vrot.slane %v1019_v63, 5  ;;  %v1025_v60 = vrot.slane %v1023_v47, 4  ;;  %14121 = vmatpush.bf16.msra.mxu3 %v14595_v2 }
  0x8e   : > { %v1017_v55 = vrot.slane %v1016_v45, 4  ;;  %v7322_v61 = vrot.slane %v7221_v51, 5  ;;  %v7156_v62 = vld [vmem:[#allocation2 + $0x10] sm:$0xf]  ;;  %7187 = vst [vmem:[#allocation3 + $0x48] sm:$0xf] %v7155_v24 }
  0x8f   : > { %v7222_v4 = vld [vmem:[#allocation2 + $0x14] sm:$0x1]  ;;  %v1026_v44 = vor.u32 %v1025_v60, %v1021_v0  ;;  %v1031_v7 = vrot.slane %v1029_v48, 5  ;;  %1391 = vst [vmem:[#allocation3 + $0x70] sm:$0xf] %v1257_v49  ;;  %v375_v20 = vld [vmem:[%s14575_s10 + $0x28] sm:$0xff] }
  0x90   : > { %v1022_v19 = vsel %vm14634_vm2, %v1017_v55, %v1021_v0  ;;  %v374_v17 = vld [vmem:[%s14575_s10 + $0x20] sm:$0xff]  ;;  %v13677_v2 = vld [vmem:[#allocation3 + $0x68] sm:$0xf0]  ;;  %v7323_v28 = vsel %vm14718_vm13, %v12667_v52, %v7322_v61  ;;  %v7324_v9 = vrot.slane %v7322_v61, 4  ;;  %v7325_v25 = vrot.slane %v7222_v4, 5  ;;  %v376_v45 = vld [vmem:[%s14575_s10 + $0x30] sm:$0xff] }
  0x91   : > { %1139 = vst [vmem:[#allocation3 + $0x3a8] sm:$0xf] %v1022_v19  ;;  %v11841_v58 = vor.u32 %v13677_v2, %v11840_v53  ;;  %v11848_v11 = vld [vmem:[#allocation3 + $0x50] sm:$0xf]  ;;  %v1027_v3 = vrot.slane %v1026_v44, 4  ;;  %14122 = vmatpush.bf16.msra.mxu3 %v14602_v5  ;;  %v398_v31 = vld [vmem:[%s14575_s10 + $0xe0] sm:$0xff]  ;;  %v406_v6 = vpack.c.bf16 %v374_v17, %v374_v17  ;;  %v407_v32 = vpack.c.bf16 %v375_v20, %v375_v20 }
  0x92   : > { %7188 = vst [vmem:[#allocation3 + $0x6c] sm:$0xf] %v7156_v62  ;;  %v535_v56 = vrot.slane %v534_v12, 4  ;;  %v7326_v15 = vsel %vm14718_vm13, %v7324_v9, %v7325_v25  ;;  %v536_v57 = vrot.slane %v429_v13, 7  ;;  %v477_v5 = vsel %vm14710_vm10, %v475_v50, %v14766_v59  ;;  %v399_v36 = vld [vmem:[%s14575_s10 + $0xe8] sm:$0xff]  ;;  %v13846_v63 = vld [vmem:[#allocation8 + $0x130] sm:$0xff] }
  0x93   : > { %7734 = vst [vmem:[#allocation3 + $0x50] sm:$0xf] %v7598_v1  ;;  %v13673_v21 = vld [vmem:[#allocation3 + $0x4c] sm:$0xf]  ;;  %6125 = vmatmul.bf16.gmra.mxu0 %v11841_v58  ;;  %v1032_v24 = vsel %vm14634_vm2, %v1027_v3, %v1031_v7  ;;  %v478_v33 = vrot.slane %v14766_v59, 4  ;;  %v430_v34 = vpack.c.bf16 %v398_v31, %v398_v31  ;;  %v479_v41 = vrot.slane %v406_v6, 7 }
  0x94   : > { %v13678_v22 = vld [vmem:[#allocation3 + $0x70] sm:$0xf0]  ;;  %7459 = vst [vmem:[#allocation3 + $0x4c] sm:$0xf] %v7323_v28  ;;  %v537_v43 = vsel %vm14710_vm10, %v535_v56, %v536_v57  ;;  %v538_v38 = vrot.slane %v536_v57, 4  ;;  %v14838_v50 = vrot.slane %v407_v32, 7  ;;  %v431_v59 = vpack.c.bf16 %v399_v36, %v399_v36  ;;  %6469 = vmatpush.bf16.msrb.mxu0 %v13846_v63 }
  0x95   : > { %v11849_v27 = vor.u32 %v13678_v22, %v11848_v11  ;;  %7735 = vst [vmem:[#allocation3 + $0x74] sm:$0xf] %v7601_v14  ;;  %14123 = vmatpush.bf16.msra.mxu3 %v14612_v8  ;;  %v14840_v8 = vrot.slane %v430_v34, 7  ;;  %v480_v47 = vrot.slane %v479_v41, 4  ;;  %v408_v16 = vpack.c.bf16 %v376_v45, %v376_v45 }
  0x96   : > { %1140 = vst [vmem:[#allocation3 + $0x3cc] sm:$0xf] %v1032_v24  ;;  %v11842_v35 = vld [vmem:[#allocation3 + $0x6c] sm:$0xf0]  ;;  %v483_v49 = vrot.slane %v14838_v50, 4  ;;  %v14846_v0 = vrot.slane %v431_v59, 7 }
  0x97   : > { %6303 = vmatmul.bf16.gmra.mxu2 %v11849_v27  ;;  %600 = vst [vmem:[#allocation2 + $0x24] sm:$0xe] %v14752_v26  ;;  %v11845_v39 = vor.u32 %v13673_v21, %v11842_v35  ;;  %v540_v55 = vrot.slane %v14840_v8, 4  ;;  %v482_v19 = vsel %vm14710_vm10, %v480_v47, %v14838_v50  ;;  %v14853_v7 = vrot.slane %v408_v16, 7 }
  0x98   : > { %7460 = vst [vmem:[#allocation3 + $0x70] sm:$0xf] %v7326_v15  ;;  %v12272_v26 = vld [vmem:[#allocation3 + $0x3a8] sm:$0xf]  ;;  %v543_v44 = vrot.slane %v14846_v0, 4 }
  0x99   : > { %601 = vst [vmem:[#allocation2 + $0x28] sm:$0xf] %v477_v5  ;;  %6214 = vmatmul.bf16.gmra.mxu1 %v11845_v39  ;;  %14124 = vmatpush.bf16.msra.mxu3 %v14620_v18 }
  0x9a   : > { %602 = vst [vmem:[#allocation2 + $0x2c] sm:$0x1] %v478_v33 }
  0x9b   : > { %636 = vst [vmem:[#allocation2 + $0xb4] sm:$0xe] %v534_v12 }
  0x9c   : > { %637 = vst [vmem:[#allocation2 + $0xb8] sm:$0xf] %v537_v43 }
  0x9d   : > { %v13785_v48 = vld [vmem:[#allocation3 + $0x3c8] sm:$0xf0]  ;;  %638 = vst [vmem:[#allocation2 + $0xbc] sm:$0x1] %v538_v38  ;;  %14125 = vmatpush.bf16.msra.mxu3 %v14630_v29 }
  0x9e   : > { %v12273_v51 = vor.u32 %v13785_v48, %v12272_v26  ;;  %v652_v52 = vld [vmem:[#allocation2 + $0x24] sm:$0xf]  ;;  %603 = vst [vmem:[#allocation2 + $0x30] sm:$0xe] %v479_v41 }
  0x9f   : > { %v1426_v53 = vld [vmem:[#allocation2 + $0x24] sm:$0xe]  ;;  %v746_v18 = vshrl.u32 %v652_v52, 16  ;;  %v749_v60 = vshll.u32 %v652_v52, 16  ;;  %604 = vst [vmem:[#allocation2 + $0x34] sm:$0xf] %v482_v19 }
  0xa0   : > { %v1528_v61 = vshrl.u32 %v1426_v53, 16  ;;  %v1531_v62 = vshll.u32 %v1426_v53, 16  ;;  %6185 = vmatmul.bf16.gmra.mxu3 %v12273_v51  ;;  %v653_v1 = vld [vmem:[#allocation2 + $0x28] sm:$0xf]  ;;  %605 = vst [vmem:[#allocation2 + $0x38] sm:$0x1] %v483_v49 }
  0xa1   : > { %v1427_v4 = vld [vmem:[#allocation2 + $0x28] sm:$0xf]  ;;  %v654_v12 = vld [vmem:[#allocation2 + $0x2c] sm:$0x1]  ;;  %v748_v17 = vrot.slane %v746_v18, 4  ;;  %v751_v2 = vrot.slane %v749_v60, 5  ;;  %14126 = vmatpush.bf16.msra.mxu3 %v14650_v37 }
  0xa2   : > { %v755_v29 = vshll.u32 %v653_v1, 16  ;;  %v759_v28 = vshrl.u32 %v653_v1, 16  ;;  %v765_v9 = vshll.u32 %v654_v12, 16  ;;  %v1428_v25 = vld [vmem:[#allocation2 + $0x2c] sm:$0x3]  ;;  %v1530_v13 = vrot.slane %v1528_v61, 5 }
  0xa3   : > { %v1533_v58 = vrot.slane %v1531_v62, 6  ;;  %v1537_v11 = vshrl.u32 %v1427_v4, 16  ;;  %v752_v14 = vor.u32 %v751_v2, %v748_v17  ;;  %v1540_v21 = vshll.u32 %v1427_v4, 16  ;;  %v688_v31 = vld [vmem:[#allocation2 + $0xb4] sm:$0xf] }
  0xa4   : > { %v757_v3 = vrot.slane %v755_v29, 5  ;;  %v761_v20 = vrot.slane %v759_v28, 4  ;;  %v767_v22 = vrot.slane %v765_v9, 5  ;;  %v1547_v6 = vshrl.u32 %v1428_v25, 16  ;;  %v689_v27 = vld [vmem:[#allocation2 + $0xb8] sm:$0xf] }
  0xa5   : > { %v1534_v24 = vor.u32 %v1533_v58, %v1530_v13  ;;  %v1539_v56 = vrot.slane %v1537_v11, 5  ;;  %v753_v15 = vrot.slane %v752_v14, 4  ;;  %v1542_v32 = vrot.slane %v1540_v21, 6  ;;  %v690_v33 = vld [vmem:[#allocation2 + $0xbc] sm:$0x1]  ;;  %14127 = vmatpush.bf16.msra.mxu3 %v14656_v40 }
  0xa6   : > { %v762_v57 = vor.u32 %v761_v20, %v757_v3  ;;  %v1550_v5 = vshll.u32 %v1428_v25, 16  ;;  %v1549_v35 = vrot.slane %v1547_v6, 5  ;;  %v1034_v36 = vshrl.u32 %v688_v31, 16  ;;  %v1151_v37 = vld [vmem:[#allocation2 + $0x24] sm:$0xe] }
  0xa7   : > { %v1535_v34 = vrot.slane %v1534_v24, 4  ;;  %v1037_v39 = vshll.u32 %v688_v31, 16  ;;  %v1152_v41 = vld [vmem:[#allocation2 + $0x28] sm:$0xf]  ;;  %v1153_v43 = vld [vmem:[#allocation2 + $0x2c] sm:$0x1]  ;;  %v758_v38 = vsel %vm14634_vm2, %v753_v15, %v757_v3  ;;  %v1543_v45 = vor.u32 %v1542_v32, %v1539_v56 }
  0xa8   : > { %v763_v59 = vrot.slane %v762_v57, 4  ;;  %v1552_v26 = vrot.slane %v1550_v5, 6  ;;  %v655_v63 = vld [vmem:[#allocation2 + $0x30] sm:$0xf]  ;;  %1117 = vst [vmem:[#allocation3 + $0x90] sm:$0xf] %v758_v38 }
  0xa9   : > { %v1036_v47 = vrot.slane %v1034_v36, 4  ;;  %v1039_v16 = vrot.slane %v1037_v39, 5  ;;  %v1043_v48 = vshll.u32 %v689_v27, 16  ;;  %v1047_v51 = vshrl.u32 %v689_v27, 16  ;;  %v1429_v60 = vld [vmem:[#allocation2 + $0x30] sm:$0xe]  ;;  %14128 = vmatpush.bf16.msra.mxu3 %v14669_v54 }
  0xaa   : > { %v768_v52 = vsel %vm14634_vm2, %v763_v59, %v767_v22  ;;  %v1544_v53 = vsel %vm14693_vm7, %v1535_v34, %v1543_v45  ;;  %v1545_v40 = vrot.slane %v1543_v45, 4  ;;  %v1553_v18 = vor.u32 %v1552_v26, %v1549_v35  ;;  %639 = vst [vmem:[#allocation2 + $0xc0] sm:$0xe] %v14840_v8  ;;  %v656_v14 = vld [vmem:[#allocation2 + $0x34] sm:$0xf]  ;;  %v14883_v34 = vld [vmem:[%s14575_s10 + $0x38] sm:$0xff] }
  0xab   : > { %1118 = vst [vmem:[#allocation3 + $0xb4] sm:$0xf] %v768_v52  ;;  %v1040_v61 = vor.u32 %v1039_v16, %v1036_v47  ;;  %v1045_v62 = vrot.slane %v1043_v48, 5  ;;  %v1049_v1 = vrot.slane %v1047_v51, 4  ;;  %v1053_v4 = vshll.u32 %v690_v33, 16 }
  0xac   : > { %v1554_v19 = vsel %vm14693_vm7, %v1545_v40, %v1553_v18  ;;  %1955 = vst [vmem:[#allocation3 + $0x98] sm:$0xf] %v1544_v53  ;;  %v11756_v12 = vrot.slane %v1151_v37, 9  ;;  %v1260_v17 = vrot.slane %v1152_v41, 5  ;;  %v1263_v2 = vrot.slane %v1153_v43, 5  ;;  %v13845_v40 = vld [vmem:[#allocation8 + $0x128] sm:$0xff] }
  0xad   : > { %1956 = vst [vmem:[#allocation3 + $0xbc] sm:$0xf] %v1554_v19  ;;  %v1041_v29 = vrot.slane %v1040_v61, 4  ;;  %v1050_v28 = vor.u32 %v1049_v1, %v1045_v62  ;;  %v1055_v50 = vrot.slane %v1053_v4, 5  ;;  %v770_v49 = vshrl.u32 %v655_v63, 16  ;;  %v378_v18 = vld [vmem:[%s14575_s10 + $0x40] sm:$0xff]  ;;  %6470 = vmatpush.bf16.msrb.mxu0 %v13845_v40 }
  0xae   : > { %v1261_v9 = vsel %vm14718_vm13, %v11756_v12, %v1260_v17  ;;  %v1262_v25 = vrot.slane %v1260_v17, 4  ;;  %v773_v13 = vshll.u32 %v655_v63, 16  ;;  %v1556_v58 = vshrl.u32 %v1429_v60, 16  ;;  %v657_v56 = vld [vmem:[#allocation2 + $0x38] sm:$0x1] }
  0xaf   : > { %v1046_v54 = vsel %vm14634_vm2, %v1041_v29, %v1045_v62  ;;  %v1051_v11 = vrot.slane %v1050_v28, 4  ;;  %1392 = vst [vmem:[#allocation3 + $0x94] sm:$0xf] %v1261_v9  ;;  %v772_v3 = vrot.slane %v770_v49, 4  ;;  %v11876_v20 = vld [vmem:[#allocation3 + $0x90] sm:$0xf]  ;;  %v542_v33 = vsel %vm14710_vm10, %v540_v55, %v14846_v0 }
  0xb0   : > { %1141 = vst [vmem:[#allocation3 + $0x3f0] sm:$0xf] %v1046_v54  ;;  %v1264_v21 = vsel %vm14718_vm13, %v1262_v25, %v1263_v2  ;;  %v775_v31 = vrot.slane %v773_v13, 5  ;;  %v779_v22 = vshll.u32 %v656_v14, 16  ;;  %v783_v6 = vshrl.u32 %v656_v14, 16 }
  0xb1   : > { %v1056_v24 = vsel %vm14634_vm2, %v1051_v11, %v1055_v50  ;;  %1393 = vst [vmem:[#allocation3 + $0xb8] sm:$0xf] %v1264_v21  ;;  %v1558_v27 = vrot.slane %v1556_v58, 5  ;;  %v789_v5 = vshll.u32 %v657_v56, 16  ;;  %v1430_v37 = vld [vmem:[#allocation2 + $0x34] sm:$0xf]  ;;  %v409_v4 = vpack.c.bf16 %v14883_v34, %v14883_v34 }
  0xb2   : > { %v13686_v15 = vld [vmem:[#allocation3 + $0xb0] sm:$0xf0]  ;;  %1142 = vst [vmem:[#allocation3 + $0x414] sm:$0xf] %v1056_v24  ;;  %v776_v57 = vor.u32 %v775_v31, %v772_v3  ;;  %v781_v32 = vrot.slane %v779_v22, 5  ;;  %v785_v39 = vrot.slane %v783_v6, 4  ;;  %v410_v24 = vpack.c.bf16 %v378_v18, %v378_v18 }
  0xb3   : > { %v11877_v35 = vor.u32 %v13686_v15, %v11876_v20  ;;  %v11884_v36 = vld [vmem:[#allocation3 + $0x98] sm:$0xf]  ;;  %v1559_v41 = vshll.u32 %v1429_v60, 16  ;;  %v791_v59 = vrot.slane %v789_v5, 5  ;;  %v1431_v45 = vld [vmem:[#allocation2 + $0x38] sm:$0x3] }
  0xb4   : > { %v13687_v43 = vld [vmem:[#allocation3 + $0xb8] sm:$0xf0]  ;;  %v777_v38 = vrot.slane %v776_v57, 4  ;;  %v786_v63 = vor.u32 %v785_v39, %v781_v32  ;;  %v1565_v8 = vshrl.u32 %v1430_v37, 16  ;;  %640 = vst [vmem:[#allocation2 + $0xc4] sm:$0xf] %v542_v33 }
  0xb5   : > { %6130 = vmatmul.bf16.gmra.mxu0 %v11877_v35  ;;  %v11885_v26 = vor.u32 %v13687_v43, %v11884_v36  ;;  %v1561_v47 = vrot.slane %v1559_v41, 6  ;;  %v691_v16 = vld [vmem:[#allocation2 + $0xc0] sm:$0xf]  ;;  %v1568_v51 = vshll.u32 %v1430_v37, 16  ;;  %v1575_v52 = vshrl.u32 %v1431_v45, 16  ;;  %v379_v3 = vld [vmem:[%s14575_s10 + $0x48] sm:$0xff] }
  0xb6   : > { %v13682_v55 = vld [vmem:[#allocation3 + $0x94] sm:$0xf]  ;;  %v782_v48 = vsel %vm14634_vm2, %v777_v38, %v781_v32  ;;  %v1578_v53 = vshll.u32 %v1431_v45, 16  ;;  %v787_v61 = vrot.slane %v786_v63, 4  ;;  %v1567_v1 = vrot.slane %v1565_v8, 5 }
  0xb7   : > { %6308 = vmatmul.bf16.gmra.mxu2 %v11885_v26  ;;  %v12308_v60 = vld [vmem:[#allocation3 + $0x3f0] sm:$0xf]  ;;  %1119 = vst [vmem:[#allocation3 + $0xd8] sm:$0xf] %v782_v48  ;;  %v1562_v62 = vor.u32 %v1561_v47, %v1558_v27  ;;  %v1570_v12 = vrot.slane %v1568_v51, 6  ;;  %v1577_v17 = vrot.slane %v1575_v52, 5  ;;  %v411_v56 = vpack.c.bf16 %v379_v3, %v379_v3 }
  0xb8   : > { %v11878_v19 = vld [vmem:[#allocation3 + $0xb4] sm:$0xf0]  ;;  %v1580_v2 = vrot.slane %v1578_v53, 6  ;;  %v1058_v29 = vshrl.u32 %v691_v16, 16  ;;  %v792_v49 = vsel %vm14634_vm2, %v787_v61, %v791_v59  ;;  %641 = vst [vmem:[#allocation2 + $0xc8] sm:$0x1] %v543_v44 }
  0xb9   : > { %v13794_v28 = vld [vmem:[#allocation3 + $0x410] sm:$0xf0]  ;;  %v11881_v50 = vor.u32 %v13682_v55, %v11878_v19  ;;  %v1563_v9 = vrot.slane %v1562_v62, 4  ;;  %v1061_v25 = vshll.u32 %v691_v16, 16  ;;  %1120 = vst [vmem:[#allocation3 + $0xfc] sm:$0xf] %v792_v49  ;;  %v1571_v58 = vor.u32 %v1570_v12, %v1567_v1 }
  0xba   : > { %v12309_v13 = vor.u32 %v13794_v28, %v12308_v60  ;;  %v1581_v54 = vor.u32 %v1580_v2, %v1577_v17  ;;  %v1060_v11 = vrot.slane %v1058_v29, 4  ;;  %v1154_v14 = vld [vmem:[#allocation2 + $0x30] sm:$0xe]  ;;  %v1155_v21 = vld [vmem:[#allocation2 + $0x34] sm:$0xf]  ;;  %v485_v33 = vrot.slane %v14853_v7, 4 }
  0xbb   : > { %6219 = vmatmul.bf16.gmra.mxu1 %v11881_v50  ;;  %v1063_v20 = vrot.slane %v1061_v25, 5  ;;  %v1156_v31 = vld [vmem:[#allocation2 + $0x38] sm:$0x1]  ;;  %v11757_v22 = vrot.slane %v1154_v14, 9  ;;  %v1572_v0 = vsel %vm14693_vm7, %v1563_v9, %v1571_v58  ;;  %v1573_v44 = vrot.slane %v1571_v58, 4 }
  0xbc   : > { %6190 = vmatmul.bf16.gmra.mxu3 %v12309_v13  ;;  %v692_v6 = vld [vmem:[#allocation2 + $0xc4] sm:$0xf]  ;;  %v1267_v27 = vrot.slane %v1155_v21, 5  ;;  %v1270_v15 = vrot.slane %v1156_v31, 5  ;;  %1957 = vst [vmem:[#allocation3 + $0xe0] sm:$0xf] %v1572_v0 }
  0xbd   : > { %v1064_v57 = vor.u32 %v1063_v20, %v1060_v11  ;;  %v1067_v32 = vshll.u32 %v692_v6, 16  ;;  %v1071_v5 = vshrl.u32 %v692_v6, 16  ;;  %v1582_v35 = vsel %vm14693_vm7, %v1573_v44, %v1581_v54  ;;  %606 = vst [vmem:[#allocation2 + $0x3c] sm:$0xe] %v14853_v7  ;;  %v1181_v53 = vld [vmem:[#allocation2 + $0x9c] sm:$0xe] }
  0xbe   : > { %v11912_v34 = vld [vmem:[#allocation3 + $0xd8] sm:$0xf]  ;;  %v1268_v36 = vsel %vm14718_vm13, %v11757_v22, %v1267_v27  ;;  %v1269_v39 = vrot.slane %v1267_v27, 4  ;;  %v486_v37 = vrot.slane %v409_v4, 7  ;;  %1958 = vst [vmem:[#allocation3 + $0x104] sm:$0xf] %v1582_v35 }
  0xbf   : > { %v1065_v41 = vrot.slane %v1064_v57, 4  ;;  %v1069_v43 = vrot.slane %v1067_v32, 5  ;;  %v1073_v38 = vrot.slane %v1071_v5, 4  ;;  %v14903_v59 = vrot.slane %v410_v24, 7  ;;  %v693_v45 = vld [vmem:[#allocation2 + $0xc8] sm:$0x1] }
  0xc0   : > { %v1271_v26 = vsel %vm14718_vm13, %v1269_v39, %v1270_v15  ;;  %1394 = vst [vmem:[#allocation3 + $0xdc] sm:$0xf] %v1268_v36  ;;  %v487_v63 = vsel %vm14710_vm10, %v485_v33, %v486_v37  ;;  %v488_v47 = vrot.slane %v486_v37, 4  ;;  %v14909_v8 = vrot.slane %v411_v56, 7  ;;  %v13695_v16 = vld [vmem:[#allocation3 + $0xf8] sm:$0xf0] }
  0xc1   : > { %v1070_v7 = vsel %vm14634_vm2, %v1065_v41, %v1069_v43  ;;  %v1074_v55 = vor.u32 %v1073_v38, %v1069_v43  ;;  %v1077_v48 = vshll.u32 %v693_v45, 16  ;;  %1395 = vst [vmem:[#allocation3 + $0x100] sm:$0xf] %v1271_v26  ;;  %v490_v51 = vrot.slane %v14903_v59, 4  ;;  %v1182_v40 = vld [vmem:[#allocation2 + $0xa0] sm:$0xf] }
  0xc2   : > { %v11913_v52 = vor.u32 %v13695_v16, %v11912_v34  ;;  %1143 = vst [vmem:[#allocation3 + $0x438] sm:$0xf] %v1070_v7  ;;  %v1183_v61 = vld [vmem:[#allocation2 + $0xa4] sm:$0x1]  ;;  %v11766_v1 = vrot.slane %v1181_v53, 9  ;;  %v1330_v4 = vrot.slane %v1182_v40, 5 }
  0xc3   : > { %v1075_v18 = vrot.slane %v1074_v55, 4  ;;  %v1079_v60 = vrot.slane %v1077_v48, 5  ;;  %607 = vst [vmem:[#allocation2 + $0x40] sm:$0xf] %v487_v63  ;;  %v11920_v62 = vld [vmem:[#allocation3 + $0xe0] sm:$0xf]  ;;  %v492_v27 = vsel %vm14710_vm10, %v490_v51, %v14909_v8 }
  0xc4   : > { %608 = vst [vmem:[#allocation2 + $0x44] sm:$0x1] %v488_v47  ;;  %v658_v12 = vld [vmem:[#allocation2 + $0x3c] sm:$0xf]  ;;  %v1331_v49 = vsel %vm14718_vm13, %v11766_v1, %v1330_v4  ;;  %v1332_v3 = vrot.slane %v1330_v4, 4  ;;  %v1333_v20 = vrot.slane %v1183_v61, 5 }
  0xc5   : > { %6135 = vmatmul.bf16.gmra.mxu0 %v11913_v52  ;;  %v1080_v19 = vsel %vm14634_vm2, %v1075_v18, %v1079_v60  ;;  %v1432_v17 = vld [vmem:[#allocation2 + $0x3c] sm:$0xe]  ;;  %v13696_v29 = vld [vmem:[#allocation3 + $0x100] sm:$0xf0]  ;;  %v794_v28 = vshrl.u32 %v658_v12, 16  ;;  %v797_v50 = vshll.u32 %v658_v12, 16 }
  0xc6   : > { %v14916_v2 = vld [vmem:[#allocation2 + $0x3c] sm:$0xe]  ;;  %1144 = vst [vmem:[#allocation3 + $0x45c] sm:$0xf] %v1080_v19  ;;  %v11921_v9 = vor.u32 %v13696_v29, %v11920_v62  ;;  %v1584_v13 = vshrl.u32 %v1432_v17, 16  ;;  %v1587_v58 = vshll.u32 %v1432_v17, 16  ;;  %v1334_v35 = vsel %vm14718_vm13, %v1332_v3, %v1333_v20 }
  0xc7   : > { %v13691_v25 = vld [vmem:[#allocation3 + $0xdc] sm:$0xf]  ;;  %v796_v11 = vrot.slane %v794_v28, 4  ;;  %v799_v14 = vrot.slane %v797_v50, 5  ;;  %v11758_v24 = vrot.slane %v14916_v2, 9  ;;  %v380_v36 = vld [vmem:[%s14575_s10 + $0x50] sm:$0xff] }
  0xc8   : > { %v11914_v54 = vld [vmem:[#allocation3 + $0xfc] sm:$0xf0]  ;;  %6313 = vmatmul.bf16.gmra.mxu2 %v11921_v9  ;;  %v1586_v31 = vrot.slane %v1584_v13, 5  ;;  %v1589_v22 = vrot.slane %v1587_v58, 6  ;;  %1412 = vst [vmem:[#allocation3 + $0x364] sm:$0xf] %v1331_v49  ;;  %v412_v4 = vpack.c.bf16 %v380_v36, %v380_v36 }
  0xc9   : > { %v11917_v21 = vor.u32 %v13691_v25, %v11914_v54  ;;  %v12344_v56 = vld [vmem:[#allocation3 + $0x438] sm:$0xf]  ;;  %v800_v44 = vor.u32 %v799_v14, %v796_v11  ;;  %1413 = vst [vmem:[#allocation3 + $0x388] sm:$0xf] %v1334_v35  ;;  %v1186_v9 = vld [vmem:[#allocation2 + $0xb0] sm:$0x1] }
  0xca   : > { %v659_v0 = vld [vmem:[#allocation2 + $0x40] sm:$0xf]  ;;  %v1590_v33 = vor.u32 %v1589_v22, %v1586_v31  ;;  %v381_v52 = vld [vmem:[%s14575_s10 + $0x58] sm:$0xff]  ;;  %609 = vst [vmem:[#allocation2 + $0x48] sm:$0xe] %v14903_v59  ;;  %v493_v54 = vrot.slane %v14909_v8, 4 }
  0xcb   : > { %v1433_v6 = vld [vmem:[#allocation2 + $0x40] sm:$0xf]  ;;  %6224 = vmatmul.bf16.gmra.mxu1 %v11917_v21  ;;  %v660_v15 = vld [vmem:[#allocation2 + $0x44] sm:$0x1]  ;;  %v803_v57 = vshll.u32 %v659_v0, 16  ;;  %v807_v32 = vshrl.u32 %v659_v0, 16  ;;  %v413_v2 = vpack.c.bf16 %v381_v52, %v381_v52 }
  0xcc   : > { %v1434_v5 = vld [vmem:[#allocation2 + $0x44] sm:$0x3]  ;;  %v1158_v34 = vld [vmem:[#allocation2 + $0x40] sm:$0xf]  ;;  %v801_v39 = vrot.slane %v800_v44, 4  ;;  %v813_v37 = vshll.u32 %v660_v15, 16 }
  0xcd   : > { %v1593_v41 = vshrl.u32 %v1433_v6, 16  ;;  %v1596_v43 = vshll.u32 %v1433_v6, 16  ;;  %v1159_v38 = vld [vmem:[#allocation2 + $0x44] sm:$0x1]  ;;  %v13803_v45 = vld [vmem:[#allocation3 + $0x458] sm:$0xf0] }
  0xce   : > { %v805_v26 = vrot.slane %v803_v57, 5  ;;  %v809_v63 = vrot.slane %v807_v32, 4  ;;  %v1591_v47 = vrot.slane %v1590_v33, 4  ;;  %v1603_v16 = vshrl.u32 %v1434_v5, 16  ;;  %610 = vst [vmem:[#allocation2 + $0x4c] sm:$0xf] %v492_v27 }
  0xcf   : > { %v12345_v7 = vor.u32 %v13803_v45, %v12344_v56  ;;  %v815_v55 = vrot.slane %v813_v37, 5  ;;  %v1595_v48 = vrot.slane %v1593_v41, 5  ;;  %v1598_v51 = vrot.slane %v1596_v43, 6  ;;  %v1184_v17 = vld [vmem:[#allocation2 + $0xa8] sm:$0xe]  ;;  %v13844_v14 = vld [vmem:[#allocation8 + $0x120] sm:$0xff] }
  0xd0   : > { %v806_v53 = vsel %vm14634_vm2, %v801_v39, %v805_v26  ;;  %v810_v40 = vor.u32 %v809_v63, %v805_v26  ;;  %v1605_v18 = vrot.slane %v1603_v16, 5  ;;  %v1606_v60 = vshll.u32 %v1434_v5, 16  ;;  %v1185_v59 = vld [vmem:[#allocation2 + $0xac] sm:$0xf]  ;;  %v14937_v58 = vld [vmem:[#allocation3 + $0x364] sm:$0xf]  ;;  %6471 = vmatpush.bf16.msrb.mxu0 %v13844_v14 }
  0xd1   : > { %6195 = vmatmul.bf16.gmra.mxu3 %v12345_v7  ;;  %1121 = vst [vmem:[#allocation3 + $0x120] sm:$0xf] %v806_v53  ;;  %v1599_v61 = vor.u32 %v1598_v51, %v1595_v48  ;;  %v1274_v62 = vrot.slane %v1158_v34, 5  ;;  %v1277_v1 = vrot.slane %v1159_v38, 5  ;;  %v1337_v11 = vrot.slane %v1185_v59, 5 }
  0xd2   : > { %v811_v19 = vrot.slane %v810_v40, 4  ;;  %v1608_v12 = vrot.slane %v1606_v60, 6  ;;  %v11767_v20 = vrot.slane %v1184_v17, 9  ;;  %v1340_v21 = vrot.slane %v1186_v9, 5  ;;  %v661_v8 = vld [vmem:[#allocation2 + $0x48] sm:$0xf] }
  0xd3   : > { %v1600_v29 = vsel %vm14693_vm7, %v1591_v47, %v1599_v61  ;;  %v1601_v28 = vrot.slane %v1599_v61, 4  ;;  %v1275_v50 = vsel %vm14718_vm13, %v11758_v24, %v1274_v62  ;;  %v1276_v49 = vrot.slane %v1274_v62, 4  ;;  %v12238_v24 = vld [vmem:[#allocation3 + $0x384] sm:$0xf0]  ;;  %v1435_v44 = vld [vmem:[#allocation2 + $0x48] sm:$0xe] }
  0xd4   : > { %v816_v25 = vsel %vm14634_vm2, %v811_v19, %v815_v55  ;;  %v1609_v13 = vor.u32 %v1608_v12, %v1605_v18  ;;  %1959 = vst [vmem:[#allocation3 + $0x128] sm:$0xf] %v1600_v29  ;;  %v14942_v31 = vrot.slane %v412_v4, 7  ;;  %v1339_v56 = vrot.slane %v1337_v11, 4  ;;  %v1160_v37 = vld [vmem:[#allocation2 + $0x48] sm:$0xe] }
  0xd5   : > { %1122 = vst [vmem:[#allocation3 + $0x144] sm:$0xf] %v816_v25  ;;  %v1278_v3 = vsel %vm14718_vm13, %v1276_v49, %v1277_v1  ;;  %v14946_v0 = vrot.slane %v413_v2, 7  ;;  %v818_v27 = vshrl.u32 %v661_v8, 16  ;;  %v821_v15 = vshll.u32 %v661_v8, 16  ;;  %v382_v19 = vld [vmem:[%s14575_s10 + $0x60] sm:$0xff] }
  0xd6   : > { %v1610_v22 = vsel %vm14693_vm7, %v1601_v28, %v1609_v13  ;;  %1396 = vst [vmem:[#allocation3 + $0x124] sm:$0xf] %v1275_v50  ;;  %v12241_v57 = vor.u32 %v14937_v58, %v12238_v24  ;;  %v662_v32 = vld [vmem:[#allocation2 + $0x4c] sm:$0xf]  ;;  %v1338_v33 = vsel %vm14718_vm13, %v11767_v20, %v1337_v11  ;;  %v1612_v43 = vshrl.u32 %v1435_v44, 16  ;;  %v383_v58 = vld [vmem:[%s14575_s10 + $0x68] sm:$0xff] }
  0xd7   : > { %1960 = vst [vmem:[#allocation3 + $0x14c] sm:$0xf] %v1610_v22  ;;  %v1436_v5 = vld [vmem:[#allocation2 + $0x4c] sm:$0xf]  ;;  %v820_v34 = vrot.slane %v818_v27, 4  ;;  %v823_v35 = vrot.slane %v821_v15, 5  ;;  %v1341_v48 = vsel %vm14718_vm13, %v1339_v56, %v1340_v21  ;;  %v414_v56 = vpack.c.bf16 %v382_v19, %v382_v19 }
  0xd8   : > { %v11948_v6 = vld [vmem:[#allocation3 + $0x120] sm:$0xf]  ;;  %1397 = vst [vmem:[#allocation3 + $0x148] sm:$0xf] %v1278_v3  ;;  %v827_v36 = vshll.u32 %v662_v32, 16  ;;  %v831_v39 = vshrl.u32 %v662_v32, 16 }
  0xd9   : > { %611 = vst [vmem:[#allocation2 + $0x50] sm:$0x1] %v493_v54  ;;  %v1615_v38 = vshll.u32 %v1435_v44, 16  ;;  %v1621_v45 = vshrl.u32 %v1436_v5, 16  ;;  %v1624_v26 = vshll.u32 %v1436_v5, 16  ;;  %v824_v47 = vor.u32 %v823_v35, %v820_v34 }
  0xda   : > { %v829_v16 = vrot.slane %v827_v36, 5  ;;  %v833_v7 = vrot.slane %v831_v39, 4  ;;  %v1161_v55 = vld [vmem:[#allocation2 + $0x4c] sm:$0xf]  ;;  %v1614_v53 = vrot.slane %v1612_v43, 5  ;;  %v11759_v4 = vrot.slane %v1160_v37, 9 }
  0xdb   : > { %v11956_v41 = vld [vmem:[#allocation3 + $0x128] sm:$0xf]  ;;  %v1617_v40 = vrot.slane %v1615_v38, 6  ;;  %v1623_v18 = vrot.slane %v1621_v45, 5  ;;  %v825_v61 = vrot.slane %v824_v47, 4  ;;  %v1626_v1 = vrot.slane %v1624_v26, 6 }
  0xdc   : > { %v13704_v63 = vld [vmem:[#allocation3 + $0x140] sm:$0xf0]  ;;  %v834_v62 = vor.u32 %v833_v7, %v829_v16  ;;  %v1281_v29 = vrot.slane %v1161_v55, 5  ;;  %1414 = vst [vmem:[#allocation3 + $0x3ac] sm:$0xf] %v1338_v33  ;;  %v495_v28 = vrot.slane %v14942_v31, 4  ;;  %v415_v36 = vpack.c.bf16 %v383_v58, %v383_v58 }
  0xdd   : > { %v11949_v51 = vor.u32 %v13704_v63, %v11948_v6  ;;  %v13700_v52 = vld [vmem:[#allocation3 + $0x124] sm:$0xf]  ;;  %v1618_v2 = vor.u32 %v1617_v40, %v1614_v53  ;;  %v830_v59 = vsel %vm14634_vm2, %v825_v61, %v829_v16  ;;  %v1627_v13 = vor.u32 %v1626_v1, %v1623_v18  ;;  %1415 = vst [vmem:[#allocation3 + $0x3d0] sm:$0xf] %v1341_v48  ;;  %v1188_v34 = vld [vmem:[#allocation2 + $0xb8] sm:$0xf] }
  0xde   : > { %v13705_v60 = vld [vmem:[#allocation3 + $0x148] sm:$0xf0]  ;;  %v835_v9 = vrot.slane %v834_v62, 4  ;;  %1123 = vst [vmem:[#allocation3 + $0x168] sm:$0xf] %v830_v59  ;;  %v1282_v22 = vsel %vm14718_vm13, %v11759_v4, %v1281_v29  ;;  %v1283_v24 = vrot.slane %v1281_v29, 4  ;;  %v497_v33 = vsel %vm14710_vm10, %v495_v28, %v14946_v0 }
  0xdf   : > { %6140 = vmatmul.bf16.gmra.mxu0 %v11949_v51  ;;  %v11957_v12 = vor.u32 %v13705_v60, %v11956_v41  ;;  %v11950_v17 = vld [vmem:[#allocation3 + $0x144] sm:$0xf0]  ;;  %v1619_v11 = vrot.slane %v1618_v2, 4  ;;  %v1629_v20 = vrot.slane %v1627_v13, 4  ;;  %1398 = vst [vmem:[#allocation3 + $0x16c] sm:$0xf] %v1282_v22 }
  0xe0   : > { %v11953_v50 = vor.u32 %v13700_v52, %v11950_v17  ;;  %v663_v49 = vld [vmem:[#allocation2 + $0x50] sm:$0x1]  ;;  %612 = vst [vmem:[#allocation2 + $0x54] sm:$0xe] %v14942_v31  ;;  %v1189_v35 = vld [vmem:[#allocation2 + $0xbc] sm:$0x1] }
  0xe1   : > { %v1437_v25 = vld [vmem:[#allocation2 + $0x50] sm:$0x3]  ;;  %6318 = vmatmul.bf16.gmra.mxu2 %v11957_v12  ;;  %6269 = vmatmul.bf16.vlgmr.msrb.gmra.mxu3 %v12241_v57  ;;  %v837_v54 = vshll.u32 %v663_v49, 16  ;;  %v1628_v44 = vsel %vm14693_vm7, %v1619_v11, %v1627_v13  ;;  %v1187_v57 = vld [vmem:[#allocation2 + $0xb4] sm:$0xe]  ;;  %v498_v37 = vrot.slane %v14946_v0, 4 }
  0xe2   : > { %v1631_v14 = vshrl.u32 %v1437_v25, 16  ;;  %v1634_v3 = vshll.u32 %v1437_v25, 16  ;;  %6229 = vmatmul.bf16.gmra.mxu1 %v11953_v50  ;;  %v1162_v21 = vld [vmem:[#allocation2 + $0x50] sm:$0x1]  ;;  %1961 = vst [vmem:[#allocation3 + $0x170] sm:$0xf] %v1628_v44 }
  0xe3   : > { %v839_v8 = vrot.slane %v837_v54, 5  ;;  %v1284_v15 = vrot.slane %v1162_v21, 5  ;;  %v11768_v41 = vrot.slane %v1187_v57, 9  ;;  %v1344_v43 = vrot.slane %v1188_v34, 5  ;;  %v13843_v26 = vld [vmem:[#allocation8 + $0x118] sm:$0xff]  ;;  %v14983_v40 = vld [vmem:[%s14575_s10 + $0x70] sm:$0xff] }
  0xe4   : > { %v1633_v6 = vrot.slane %v1631_v14, 5  ;;  %v1636_v27 = vrot.slane %v1634_v3, 6  ;;  %v1347_v45 = vrot.slane %v1189_v35, 5  ;;  %v14973_v63 = vrot.slane %v414_v56, 7  ;;  %v13781_v16 = vld [vmem:[#allocation3 + $0x3ac] sm:$0xf]  ;;  %6472 = vmatpush.bf16.msrb.mxu0 %v13843_v26 }
  0xe5   : > { %v840_v32 = vsel %vm14634_vm2, %v835_v9, %v839_v8  ;;  %v1285_v39 = vsel %vm14718_vm13, %v1283_v24, %v1284_v15  ;;  %v1345_v31 = vsel %vm14718_vm13, %v11768_v41, %v1344_v43  ;;  %v1346_v47 = vrot.slane %v1344_v43, 4  ;;  %v12274_v7 = vld [vmem:[#allocation3 + $0x3cc] sm:$0xf0]  ;;  %613 = vst [vmem:[#allocation2 + $0x58] sm:$0xf] %v497_v33 }
  0xe6   : > { %v1637_v5 = vor.u32 %v1636_v27, %v1633_v6  ;;  %1124 = vst [vmem:[#allocation3 + $0x18c] sm:$0xf] %v840_v32  ;;  %v11984_v0 = vld [vmem:[#allocation3 + $0x168] sm:$0xf]  ;;  %v500_v55 = vrot.slane %v14973_v63, 4  ;;  %v14978_v48 = vrot.slane %v415_v36, 7  ;;  %v12277_v18 = vor.u32 %v13781_v16, %v12274_v7 }
  0xe7   : > { %1399 = vst [vmem:[#allocation3 + $0x190] sm:$0xf] %v1285_v39  ;;  %v13709_v52 = vld [vmem:[#allocation3 + $0x16c] sm:$0xf]  ;;  %v1348_v53 = vsel %vm14718_vm13, %v1346_v47, %v1347_v45  ;;  %v664_v60 = vld [vmem:[#allocation2 + $0x54] sm:$0xf]  ;;  %v416_v3 = vpack.c.bf16 %v14983_v40, %v14983_v40 }
  0xe8   : > { %v1638_v38 = vsel %vm14693_vm7, %v1629_v20, %v1637_v5  ;;  %614 = vst [vmem:[#allocation2 + $0x5c] sm:$0x1] %v498_v37  ;;  %v1438_v61 = vld [vmem:[#allocation2 + $0x54] sm:$0xe]  ;;  %v842_v4 = vshrl.u32 %v664_v60, 16  ;;  %v845_v19 = vshll.u32 %v664_v60, 16  ;;  %v502_v8 = vsel %vm14710_vm10, %v500_v55, %v14978_v48 }
  0xe9   : > { %1962 = vst [vmem:[#allocation3 + $0x194] sm:$0xf] %v1638_v38  ;;  %v11992_v51 = vld [vmem:[#allocation3 + $0x170] sm:$0xf]  ;;  %v14985_v62 = vld [vmem:[#allocation2 + $0x54] sm:$0xe] }
  0xea   : > { %1416 = vst [vmem:[#allocation3 + $0x3f4] sm:$0xf] %v1345_v31  ;;  %v1640_v12 = vshrl.u32 %v1438_v61, 16  ;;  %v1643_v17 = vshll.u32 %v1438_v61, 16  ;;  %v503_v28 = vrot.slane %v14978_v48, 4  ;;  %v844_v59 = vrot.slane %v842_v4, 4 }
  0xeb   : > { %1417 = vst [vmem:[#allocation3 + $0x418] sm:$0xf] %v1348_v53  ;;  %v847_v9 = vrot.slane %v845_v19, 5  ;;  %v11760_v14 = vrot.slane %v14985_v62, 9  ;;  %v14994_v44 = vld [vmem:[#allocation2 + $0xc4] sm:$0xf] }
  0xec   : > { %v1642_v25 = vrot.slane %v1640_v12, 5  ;;  %v665_v58 = vld [vmem:[#allocation2 + $0x58] sm:$0xf]  ;;  %v1645_v11 = vrot.slane %v1643_v17, 6  ;;  %v385_v38 = vld [vmem:[%s14575_s10 + $0x78] sm:$0xff]  ;;  %v1351_v48 = vrot.slane %v14994_v44, 5 }
  0xed   : > { %v13713_v1 = vld [vmem:[#allocation3 + $0x188] sm:$0xf0]  ;;  %v1439_v54 = vld [vmem:[#allocation2 + $0x58] sm:$0xf]  ;;  %v848_v21 = vor.u32 %v847_v9, %v844_v59  ;;  %v851_v22 = vshll.u32 %v665_v58, 16  ;;  %v855_v24 = vshrl.u32 %v665_v58, 16  ;;  %v417_v40 = vpack.c.bf16 %v385_v38, %v385_v38 }
  0xee   : > { %v11985_v2 = vor.u32 %v13713_v1, %v11984_v0  ;;  %v11986_v29 = vld [vmem:[#allocation3 + $0x18c] sm:$0xf0]  ;;  %v1646_v27 = vor.u32 %v1645_v11, %v1642_v25  ;;  %v1649_v15 = vshrl.u32 %v1439_v54, 16  ;;  %v1652_v57 = vshll.u32 %v1439_v54, 16  ;;  %v1164_v32 = vld [vmem:[#allocation2 + $0x58] sm:$0xf] }
  0xef   : > { %v11989_v49 = vor.u32 %v13709_v52, %v11986_v29  ;;  %v666_v20 = vld [vmem:[#allocation2 + $0x5c] sm:$0x1]  ;;  %v849_v5 = vrot.slane %v848_v21, 4  ;;  %v853_v33 = vrot.slane %v851_v22, 5  ;;  %v857_v34 = vrot.slane %v855_v24, 4  ;;  %v15017_v9 = vld [vmem:[%s14575_s10 + $0x80] sm:$0xff] }
  0xf0   : > { %v13714_v50 = vld [vmem:[#allocation3 + $0x190] sm:$0xf0]  ;;  %6145 = vmatmul.bf16.gmra.mxu0 %v11985_v2  ;;  %v1440_v56 = vld [vmem:[#allocation2 + $0x5c] sm:$0x3]  ;;  %v861_v6 = vshll.u32 %v666_v20, 16  ;;  %v1647_v37 = vrot.slane %v1646_v27, 4 }
  0xf1   : > { %v11993_v13 = vor.u32 %v13714_v50, %v11992_v51  ;;  %6274 = vmatmul.bf16.gmra.mxu3 %v12277_v18  ;;  %v1659_v35 = vshrl.u32 %v1440_v56, 16  ;;  %v1165_v36 = vld [vmem:[#allocation2 + $0x5c] sm:$0x1]  ;;  %v1651_v41 = vrot.slane %v1649_v15, 5  ;;  %v1654_v43 = vrot.slane %v1652_v57, 6  ;;  %v6121_v57 = vpop.f32.mrf.mxu0 }
  0xf2   : > { %6234 = vmatmul.bf16.gmra.mxu1 %v11989_v49  ;;  %v863_v39 = vrot.slane %v861_v6, 5  ;;  %v854_v45 = vsel %vm14634_vm2, %v849_v5, %v853_v33  ;;  %v858_v26 = vor.u32 %v857_v34, %v853_v33  ;;  %v1662_v47 = vshll.u32 %v1440_v56, 16  ;;  %615 = vst [vmem:[#allocation2 + $0x60] sm:$0xe] %v14973_v63  ;;  %v1190_v16 = vld [vmem:[#allocation2 + $0xc0] sm:$0xe] }
  0xf3   : > { %6323 = vmatmul.bf16.gmra.mxu2 %v11993_v13  ;;  %v1661_v31 = vrot.slane %v1659_v35, 5  ;;  %1125 = vst [vmem:[#allocation3 + $0x1b0] sm:$0xf] %v854_v45  ;;  %v1655_v7 = vor.u32 %v1654_v43, %v1651_v41  ;;  %v1288_v0 = vrot.slane %v1164_v32, 5  ;;  %v1291_v55 = vrot.slane %v1165_v36, 5 }
  0xf4   : > { %v859_v51 = vrot.slane %v858_v26, 4  ;;  %v1664_v52 = vrot.slane %v1662_v47, 6  ;;  %616 = vst [vmem:[#allocation2 + $0x64] sm:$0xf] %v502_v8  ;;  %v1192_v53 = vld [vmem:[#allocation2 + $0xc8] sm:$0x1] }
  0xf5   : > { %v1656_v18 = vsel %vm14693_vm7, %v1647_v37, %v1655_v7  ;;  %v1657_v60 = vrot.slane %v1655_v7, 4  ;;  %v1289_v61 = vsel %vm14718_vm13, %v11760_v14, %v1288_v0  ;;  %v1290_v63 = vrot.slane %v1288_v0, 4  ;;  %617 = vst [vmem:[#allocation2 + $0x68] sm:$0x1] %v503_v28  ;;  %v13790_v4 = vld [vmem:[#allocation3 + $0x3f4] sm:$0xf] }
  0xf6   : > { %v864_v62 = vsel %vm14634_vm2, %v859_v51, %v863_v39  ;;  %v1665_v1 = vor.u32 %v1664_v52, %v1661_v31  ;;  %1963 = vst [vmem:[#allocation3 + $0x1b8] sm:$0xf] %v1656_v18  ;;  %v11769_v19 = vrot.slane %v1190_v16, 9  ;;  %v15007_v12 = vrot.slane %v416_v3, 7  ;;  %v12310_v2 = vld [vmem:[#allocation3 + $0x414] sm:$0xf0] }
  0xf7   : > { %1126 = vst [vmem:[#allocation3 + $0x1d4] sm:$0xf] %v864_v62  ;;  %v1292_v17 = vsel %vm14718_vm13, %v1290_v63, %v1291_v55  ;;  %v1353_v29 = vrot.slane %v1351_v48, 4  ;;  %v1354_v50 = vrot.slane %v1192_v53, 5  ;;  %v15014_v59 = vrot.slane %v417_v40, 7 }
  0xf8   : > { %v1666_v28 = vsel %vm14693_vm7, %v1657_v60, %v1665_v1  ;;  %1400 = vst [vmem:[#allocation3 + $0x1b4] sm:$0xf] %v1289_v61  ;;  %v505_v49 = vrot.slane %v15007_v12, 4  ;;  %v12313_v54 = vor.u32 %v13790_v4, %v12310_v2  ;;  %v1352_v24 = vsel %vm14718_vm13, %v11769_v19, %v1351_v48  ;;  %v1456_v40 = vld [vmem:[#allocation2 + $0x9c] sm:$0xe] }
  0xf9   : > { %1964 = vst [vmem:[#allocation3 + $0x1dc] sm:$0xf] %v1666_v28  ;;  %v667_v25 = vld [vmem:[#allocation2 + $0x60] sm:$0xf]  ;;  %v15023_v56 = vsel %vm14718_vm13, %v1353_v29, %v1354_v50  ;;  %v418_v39 = vpack.c.bf16 %v15017_v9, %v15017_v9  ;;  %v2487_v10 = vld [vmem:[#allocation2 + $0x38] sm:$0x1] }
  0xfa   : > { %v1441_v13 = vld [vmem:[#allocation2 + $0x60] sm:$0xe]  ;;  %1401 = vst [vmem:[#allocation3 + $0x1d8] sm:$0xf] %v1292_v17  ;;  %v866_v11 = vshrl.u32 %v667_v25, 16  ;;  %v869_v14 = vshll.u32 %v667_v25, 16 }
  0xfb   : > { %v12020_v58 = vld [vmem:[#allocation3 + $0x1b0] sm:$0xf]  ;;  %v668_v3 = vld [vmem:[#allocation2 + $0x64] sm:$0xf]  ;;  %v1668_v21 = vshrl.u32 %v1441_v13, 16  ;;  %v1671_v22 = vshll.u32 %v1441_v13, 16  ;;  %v6210_v32 = vpop.f32.mrf.mxu1 }
  0xfc   : > { %v1442_v20 = vld [vmem:[#allocation2 + $0x64] sm:$0xf]  ;;  %v669_v8 = vld [vmem:[#allocation2 + $0x68] sm:$0x1]  ;;  %v868_v44 = vrot.slane %v866_v11, 4  ;;  %v871_v6 = vrot.slane %v869_v14, 5  ;;  %v15025_v36 = vadd.f32 %v6210_v32, %v6121_v57 }
  0xfd   : > { %v875_v27 = vshll.u32 %v668_v3, 16  ;;  %v879_v15 = vshrl.u32 %v668_v3, 16  ;;  %v12028_v5 = vld [vmem:[#allocation3 + $0x1b8] sm:$0xf]  ;;  %v885_v33 = vshll.u32 %v669_v8, 16  ;;  %v1670_v35 = vrot.slane %v1668_v21, 5 }
  0xfe   : > { %v1443_v34 = vld [vmem:[#allocation2 + $0x68] sm:$0x3]  ;;  %v13722_v37 = vld [vmem:[#allocation3 + $0x1d0] sm:$0xf0]  ;;  %v872_v41 = vor.u32 %v871_v6, %v868_v44  ;;  %v1673_v45 = vrot.slane %v1671_v22, 6  ;;  %v1677_v16 = vshrl.u32 %v1442_v20, 16  ;;  %v507_v3 = vsel %vm14710_vm10, %v505_v49, %v15014_v59 }
  0xff   : > { %v877_v43 = vrot.slane %v875_v27, 5  ;;  %v881_v38 = vrot.slane %v879_v15, 4  ;;  %v12021_v26 = vor.u32 %v13722_v37, %v12020_v58  ;;  %v13718_v31 = vld [vmem:[#allocation3 + $0x1b4] sm:$0xf]  ;;  %v887_v47 = vrot.slane %v885_v33, 5  ;;  %v387_v58 = vld [vmem:[%s14575_s10 + $0x88] sm:$0xff] }
 0x100   : > { %v1680_v7 = vshll.u32 %v1442_v20, 16  ;;  %v13723_v0 = vld [vmem:[#allocation3 + $0x1d8] sm:$0xf0]  ;;  %v873_v55 = vrot.slane %v872_v41, 4  ;;  %v1674_v51 = vor.u32 %v1673_v45, %v1670_v35  ;;  %v1687_v52 = vshrl.u32 %v1443_v34, 16 }
 0x101   : > { %6279 = vmatmul.bf16.gmra.mxu3 %v12313_v54  ;;  %v882_v48 = vor.u32 %v881_v38, %v877_v43  ;;  %v1166_v53 = vld [vmem:[#allocation2 + $0x60] sm:$0xe]  ;;  %6150 = vmatmul.bf16.gmra.mxu0 %v12021_v26  ;;  %v12029_v18 = vor.u32 %v13723_v0, %v12028_v5  ;;  %v12022_v60 = vld [vmem:[#allocation3 + $0x1d4] sm:$0xf0]  ;;  %v1679_v61 = vrot.slane %v1677_v16, 5  ;;  %v1690_v62 = vshll.u32 %v1443_v34, 16 }
 0x102   : > { %v1682_v63 = vrot.slane %v1680_v7, 6  ;;  %v12025_v1 = vor.u32 %v13718_v31, %v12022_v60  ;;  %v878_v4 = vsel %vm14634_vm2, %v873_v55, %v877_v43  ;;  %v1675_v17 = vrot.slane %v1674_v51, 4  ;;  %v1167_v2 = vld [vmem:[#allocation2 + $0x64] sm:$0xf]  ;;  %v1168_v29 = vld [vmem:[#allocation2 + $0x68] sm:$0x1]  ;;  %v6299_v51 = vpop.f32.mrf.mxu2 }
 0x103   : > { %v883_v19 = vrot.slane %v882_v48, 4  ;;  %6328 = vmatmul.bf16.gmra.mxu2 %v12029_v18  ;;  %1127 = vst [vmem:[#allocation3 + $0x1f8] sm:$0xf] %v878_v4  ;;  %v1689_v28 = vrot.slane %v1687_v52, 5  ;;  %v1692_v25 = vrot.slane %v1690_v62, 6  ;;  %v11761_v13 = vrot.slane %v1166_v53, 9 }
 0x104   : > { %v1683_v50 = vor.u32 %v1682_v63, %v1679_v61  ;;  %6239 = vmatmul.bf16.gmra.mxu1 %v12025_v1  ;;  %v1295_v11 = vrot.slane %v1167_v2, 5  ;;  %v1298_v14 = vrot.slane %v1168_v29, 5  ;;  %1418 = vst [vmem:[#allocation3 + $0x43c] sm:$0xf] %v1352_v24  ;;  %v1457_v8 = vld [vmem:[#allocation2 + $0xa0] sm:$0xf]  ;;  %v419_v57 = vpack.c.bf16 %v387_v58, %v387_v58  ;;  %v15065_v58 = vpop.f32.mrf.mxu0 }
 0x105   : > { %v888_v54 = vsel %vm14634_vm2, %v883_v19, %v887_v47  ;;  %v1693_v22 = vor.u32 %v1692_v25, %v1689_v28  ;;  %v1808_v44 = vshrl.u32 %v1456_v40, 16  ;;  %v1458_v24 = vld [vmem:[#allocation2 + $0xa4] sm:$0x3]  ;;  %v1811_v15 = vshll.u32 %v1456_v40, 16  ;;  %1419 = vst [vmem:[#allocation3 + $0x460] sm:$0xf] %v15023_v56 }
 0x106   : > { %1128 = vst [vmem:[#allocation3 + $0x21c] sm:$0xf] %v888_v54  ;;  %v1684_v20 = vsel %vm14693_vm7, %v1675_v17, %v1683_v50  ;;  %v1685_v21 = vrot.slane %v1683_v50, 4  ;;  %v1296_v6 = vsel %vm14718_vm13, %v11761_v13, %v1295_v11  ;;  %v1297_v27 = vrot.slane %v1295_v11, 4  ;;  %v13839_v55 = vld [vmem:[#allocation8 + $0xf8] sm:$0xff]  ;;  %v13842_v48 = vld [vmem:[#allocation8 + $0x110] sm:$0xff]  ;;  %v15067_v54 = vpop.f32.mrf.mxu1 }
 0x107   : > { %1965 = vst [vmem:[#allocation3 + $0x200] sm:$0xf] %v1684_v20  ;;  %v1810_v49 = vrot.slane %v1808_v44, 5  ;;  %v1817_v5 = vshrl.u32 %v1457_v8, 16  ;;  %v1820_v33 = vshll.u32 %v1457_v8, 16  ;;  %v1813_v35 = vrot.slane %v1811_v15, 6  ;;  %6379 = vmatpush.bf16.msrb.mxu3 %v13839_v55  ;;  %6473 = vmatpush.bf16.msrb.mxu0 %v13842_v48 }
 0x108   : > { %v1694_v32 = vsel %vm14693_vm7, %v1685_v21, %v1693_v22  ;;  %1402 = vst [vmem:[#allocation3 + $0x1fc] sm:$0xf] %v1296_v6  ;;  %v1299_v34 = vsel %vm14718_vm13, %v1297_v27, %v1298_v14  ;;  %v1827_v37 = vshrl.u32 %v1458_v24, 16  ;;  %v1830_v41 = vshll.u32 %v1458_v24, 16 }
 0x109   : > { %1966 = vst [vmem:[#allocation3 + $0x224] sm:$0xf] %v1694_v32  ;;  %v508_v43 = vrot.slane %v15014_v59, 4  ;;  %v1819_v38 = vrot.slane %v1817_v5, 5  ;;  %v1822_v45 = vrot.slane %v1820_v33, 6  ;;  %v509_v26 = vrot.slane %v418_v39, 7 }
 0x10a   : > { %1403 = vst [vmem:[#allocation3 + $0x220] sm:$0xf] %v1299_v34  ;;  %v12056_v31 = vld [vmem:[#allocation3 + $0x1f8] sm:$0xf]  ;;  %v1814_v47 = vor.u32 %v1813_v35, %v1810_v49  ;;  %v1829_v16 = vrot.slane %v1827_v37, 5  ;;  %v1832_v7 = vrot.slane %v1830_v41, 6  ;;  %v15056_v9 = vadd.f32 %v6299_v51, %v15025_v36  ;;  %v15072_v49 = vpop.f32.mrf.mxu2 }
 0x10b   : > { %618 = vst [vmem:[#allocation2 + $0x6c] sm:$0xe] %v15007_v12  ;;  %v1823_v0 = vor.u32 %v1822_v45, %v1819_v38  ;;  %v15053_v52 = vrot.slane %v419_v57, 7  ;;  %v13855_v39 = vld [vmem:[#allocation8 + $0x178] sm:$0xff]  ;;  %v13838_v12 = vld [vmem:[#allocation8 + $0xf0] sm:$0xff]  ;;  %v510_v62 = vrot.slane %v509_v26, 4 }
 0x10c   : > { %619 = vst [vmem:[#allocation2 + $0x70] sm:$0xf] %v507_v3  ;;  %v1815_v53 = vrot.slane %v1814_v47, 4  ;;  %v1833_v40 = vor.u32 %v1832_v7, %v1829_v16  ;;  %6557 = vmatpush.bf16.msrb.mxu1 %v13855_v39  ;;  %v13799_v4 = vld [vmem:[#allocation3 + $0x43c] sm:$0xf]  ;;  %6380 = vmatpush.bf16.msrb.mxu3 %v13838_v12 }
 0x10d   : > { %v13731_v59 = vld [vmem:[#allocation3 + $0x218] sm:$0xf0]  ;;  %620 = vst [vmem:[#allocation2 + $0x74] sm:$0x1] %v508_v43  ;;  %v1825_v60 = vrot.slane %v1823_v0, 4  ;;  %v512_v2 = vsel %vm14710_vm10, %v510_v62, %v15053_v52  ;;  %v513_v44 = vrot.slane %v15053_v52, 4 }
 0x10e   : > { %v12057_v56 = vor.u32 %v13731_v59, %v12056_v31  ;;  %v12064_v18 = vld [vmem:[#allocation3 + $0x200] sm:$0xf]  ;;  %v1824_v63 = vsel %vm14693_vm7, %v1815_v53, %v1823_v0  ;;  %621 = vst [vmem:[#allocation2 + $0x78] sm:$0xe] %v509_v26 }
 0x10f   : > { %v13727_v61 = vld [vmem:[#allocation3 + $0x1fc] sm:$0xf]  ;;  %v1834_v36 = vsel %vm14693_vm7, %v1825_v60, %v1833_v40  ;;  %1975 = vst [vmem:[#allocation3 + $0x368] sm:$0xf] %v1824_v63  ;;  %v12346_v50 = vld [vmem:[#allocation3 + $0x45c] sm:$0xf0]  ;;  %v15070_v32 = vpop.f32.mrf.mxu3 }
 0x110   : > { %v13732_v1 = vld [vmem:[#allocation3 + $0x220] sm:$0xf0]  ;;  %1976 = vst [vmem:[#allocation3 + $0x38c] sm:$0xf] %v1834_v36  ;;  %v12349_v28 = vor.u32 %v13799_v4, %v12346_v50 }
 0x111   : > { %v12065_v19 = vor.u32 %v13732_v1, %v12064_v18  ;;  %v12058_v17 = vld [vmem:[#allocation3 + $0x21c] sm:$0xf0]  ;;  %6155 = vmatmul.bf16.gmra.mxu0 %v12057_v56  ;;  %622 = vst [vmem:[#allocation2 + $0x7c] sm:$0xf] %v512_v2 }
 0x112   : > { %v12061_v29 = vor.u32 %v13727_v61, %v12058_v17  ;;  %v670_v25 = vld [vmem:[#allocation2 + $0x6c] sm:$0xf]  ;;  %6284 = vmatmul.bf16.gmra.mxu3 %v12349_v28  ;;  %623 = vst [vmem:[#allocation2 + $0x80] sm:$0x1] %v513_v44  ;;  %v6126_v17 = vpop.f32.mrf.mxu0 }
 0x113   : > { %v1444_v13 = vld [vmem:[#allocation2 + $0x6c] sm:$0xe]  ;;  %6333 = vmatmul.bf16.gmra.mxu2 %v12065_v19  ;;  %v671_v11 = vld [vmem:[#allocation2 + $0x70] sm:$0xf]  ;;  %v890_v14 = vshrl.u32 %v670_v25, 16  ;;  %v893_v3 = vshll.u32 %v670_v25, 16 }
 0x114   : > { %v1445_v20 = vld [vmem:[#allocation2 + $0x70] sm:$0xf]  ;;  %6244 = vmatmul.bf16.gmra.mxu1 %v12061_v29  ;;  %v672_v21 = vld [vmem:[#allocation2 + $0x74] sm:$0x1]  ;;  %v899_v22 = vshll.u32 %v671_v11, 16  ;;  %v903_v8 = vshrl.u32 %v671_v11, 16 }
 0x115   : > { %v892_v6 = vrot.slane %v890_v14, 4  ;;  %v895_v27 = vrot.slane %v893_v3, 5  ;;  %v909_v24 = vshll.u32 %v672_v21, 16  ;;  %v1446_v15 = vld [vmem:[#allocation2 + $0x74] sm:$0x3]  ;;  %v1696_v57 = vshrl.u32 %v1444_v13, 16 }
 0x116   : > { %v901_v5 = vrot.slane %v899_v22, 5  ;;  %v905_v33 = vrot.slane %v903_v8, 4  ;;  %v1699_v34 = vshll.u32 %v1444_v13, 16  ;;  %v1705_v35 = vshrl.u32 %v1445_v20, 16  ;;  %v1169_v37 = vld [vmem:[#allocation2 + $0x6c] sm:$0xe]  ;;  %v6215_v2 = vpop.f32.mrf.mxu1 }
 0x117   : > { %v896_v41 = vor.u32 %v895_v27, %v892_v6  ;;  %v911_v43 = vrot.slane %v909_v24, 5  ;;  %v1698_v38 = vrot.slane %v1696_v57, 5  ;;  %v1708_v45 = vshll.u32 %v1445_v20, 16  ;;  %v1170_v26 = vld [vmem:[#allocation2 + $0x70] sm:$0xf]  ;;  %v15086_v8 = vpop.f32.mrf.mxu3  ;;  %v13837_v24 = vld [vmem:[#allocation8 + $0xe8] sm:$0xff] }
 0x118   : > { %v906_v31 = vor.u32 %v905_v33, %v901_v5  ;;  %v1701_v47 = vrot.slane %v1699_v34, 6  ;;  %v1707_v16 = vrot.slane %v1705_v35, 5  ;;  %v1715_v7 = vshrl.u32 %v1446_v15, 16  ;;  %v1171_v0 = vld [vmem:[#allocation2 + $0x74] sm:$0x1]  ;;  %17308 = vst [vmem:[#allocation19_spill] sm:$0xff] %v15086_v8  ;;  %6381 = vmatpush.bf16.msrb.mxu3 %v13837_v24 }
 0x119   : > { %v897_v55 = vrot.slane %v896_v41, 4  ;;  %v1710_v48 = vrot.slane %v1708_v45, 6  ;;  %v1718_v51 = vshll.u32 %v1446_v15, 16  ;;  %v11762_v52 = vrot.slane %v1169_v37, 9  ;;  %v12244_v61 = vld [vmem:[#allocation3 + $0x368] sm:$0xf] }
 0x11a   : > { %v907_v59 = vrot.slane %v906_v31, 4  ;;  %v1702_v53 = vor.u32 %v1701_v47, %v1698_v38  ;;  %v1717_v40 = vrot.slane %v1715_v7, 5  ;;  %v1302_v39 = vrot.slane %v1170_v26, 5  ;;  %v673_v63 = vld [vmem:[#allocation2 + $0x78] sm:$0xf]  ;;  %v6304_v15 = vpop.f32.mrf.mxu2  ;;  %v13870_v8 = vld [vmem:[#allocation8 + $0x1f0] sm:$0xff] }
 0x11b   : > { %v902_v56 = vsel %vm14634_vm2, %v897_v55, %v901_v5  ;;  %v1711_v18 = vor.u32 %v1710_v48, %v1707_v16  ;;  %v1720_v60 = vrot.slane %v1718_v51, 6  ;;  %v1305_v12 = vrot.slane %v1171_v0, 5  ;;  %v674_v62 = vld [vmem:[#allocation2 + $0x7c] sm:$0xf]  ;;  %v1447_v29 = vld [vmem:[#allocation2 + $0x78] sm:$0xe] }
 0x11c   : > { %v912_v1 = vsel %vm14634_vm2, %v907_v59, %v911_v43  ;;  %1129 = vst [vmem:[#allocation3 + $0x240] sm:$0xf] %v902_v56  ;;  %v1703_v4 = vrot.slane %v1702_v53, 4  ;;  %v1303_v36 = vsel %vm14718_vm13, %v11762_v52, %v1302_v39  ;;  %v1304_v19 = vrot.slane %v1302_v39, 4  ;;  %v13777_v25 = vld [vmem:[#allocation3 + $0x388] sm:$0xf0] }
 0x11d   : > { %1130 = vst [vmem:[#allocation3 + $0x264] sm:$0xf] %v912_v1  ;;  %v1713_v50 = vrot.slane %v1711_v18, 4  ;;  %v1721_v28 = vor.u32 %v1720_v60, %v1717_v40  ;;  %v6216_v13 = vadd.f32 %v6215_v2, %v6126_v17  ;;  %v914_v3 = vshrl.u32 %v673_v63, 16  ;;  %v1448_v21 = vld [vmem:[#allocation2 + $0x7c] sm:$0xf] }
 0x11e   : > { %v1712_v11 = vsel %vm14693_vm7, %v1703_v4, %v1711_v18  ;;  %v1306_v14 = vsel %vm14718_vm13, %v1304_v19, %v1305_v12  ;;  %1404 = vst [vmem:[#allocation3 + $0x244] sm:$0xf] %v1303_v36  ;;  %v917_v20 = vshll.u32 %v673_v63, 16  ;;  %v923_v44 = vshll.u32 %v674_v62, 16  ;;  %v675_v5 = vld [vmem:[#allocation2 + $0x80] sm:$0x1] }
 0x11f   : > { %v1722_v22 = vsel %vm14693_vm7, %v1713_v50, %v1721_v28  ;;  %1967 = vst [vmem:[#allocation3 + $0x248] sm:$0xf] %v1712_v11  ;;  %v927_v6 = vshrl.u32 %v674_v62, 16  ;;  %v1724_v27 = vshrl.u32 %v1447_v29, 16  ;;  %v12245_v57 = vor.u32 %v13777_v25, %v12244_v61  ;;  %v1172_v45 = vld [vmem:[#allocation2 + $0x78] sm:$0xe] }
 0x120   : > { %1968 = vst [vmem:[#allocation3 + $0x26c] sm:$0xf] %v1722_v22  ;;  %v916_v33 = vrot.slane %v914_v3, 4  ;;  %v919_v34 = vrot.slane %v917_v20, 5  ;;  %v15088_v35 = vadd.f32 %v6304_v15, %v6216_v13  ;;  %v925_v37 = vrot.slane %v923_v44, 5  ;;  %v13836_v55 = vld [vmem:[#allocation8 + $0xe0] sm:$0xff]  ;;  %v15094_v22 = vpop.f32.mrf.mxu0 }
 0x121   : > { %1405 = vst [vmem:[#allocation3 + $0x268] sm:$0xf] %v1306_v14  ;;  %v929_v41 = vrot.slane %v927_v6, 4  ;;  %v933_v43 = vshll.u32 %v675_v5, 16  ;;  %v1726_v38 = vrot.slane %v1724_v27, 5  ;;  %v1727_v47 = vshll.u32 %v1447_v29, 16  ;;  %6382 = vmatpush.bf16.msrb.mxu3 %v13836_v55 }
 0x122   : > { %v920_v26 = vor.u32 %v919_v34, %v916_v33  ;;  %v1449_v31 = vld [vmem:[#allocation2 + $0x80] sm:$0x3]  ;;  %v1733_v16 = vshrl.u32 %v1448_v21, 16  ;;  %v1736_v7 = vshll.u32 %v1448_v21, 16  ;;  %v1173_v0 = vld [vmem:[#allocation2 + $0x7c] sm:$0xf]  ;;  %6358 = vmatmul.bf16.vlgmr.msra.gmra.mxu3 %v12245_v57 }
 0x123   : > { %v12092_v48 = vld [vmem:[#allocation3 + $0x240] sm:$0xf]  ;;  %v930_v51 = vor.u32 %v929_v41, %v925_v37  ;;  %v935_v52 = vrot.slane %v933_v43, 5  ;;  %v1743_v59 = vshrl.u32 %v1449_v31, 16  ;;  %v1746_v53 = vshll.u32 %v1449_v31, 16  ;;  %v13841_v40 = vld [vmem:[#allocation8 + $0x108] sm:$0xff]  ;;  %v15098_v34 = vpop.f32.mrf.mxu3 }
 0x124   : > { %v13740_v39 = vld [vmem:[#allocation3 + $0x260] sm:$0xf0]  ;;  %v921_v56 = vrot.slane %v920_v26, 4  ;;  %v1729_v18 = vrot.slane %v1727_v47, 6  ;;  %v1735_v60 = vrot.slane %v1733_v16, 5  ;;  %v1738_v12 = vrot.slane %v1736_v7, 6  ;;  %6474 = vmatpush.bf16.msrb.mxu0 %v13841_v40 }
 0x125   : > { %v1459_v61 = vld [vmem:[#allocation2 + $0xa8] sm:$0xe]  ;;  %v12093_v63 = vor.u32 %v13740_v39, %v12092_v48  ;;  %v13736_v62 = vld [vmem:[#allocation3 + $0x244] sm:$0xf]  ;;  %v931_v1 = vrot.slane %v930_v51, 4  ;;  %v1745_v4 = vrot.slane %v1743_v59, 5  ;;  %v15108_v59 = vpop.f32.mrf.mxu1 }
 0x126   : > { %v1748_v36 = vrot.slane %v1746_v53, 6  ;;  %v1460_v19 = vld [vmem:[#allocation2 + $0xac] sm:$0xf]  ;;  %v12100_v17 = vld [vmem:[#allocation3 + $0x248] sm:$0xf]  ;;  %v926_v2 = vsel %vm14634_vm2, %v921_v56, %v925_v37  ;;  %v1730_v29 = vor.u32 %v1729_v18, %v1726_v38  ;;  %v1739_v50 = vor.u32 %v1738_v12, %v1735_v60  ;;  %17309 = vst [vmem:[#allocation20_spill] sm:$0xff] %v15094_v22 }
 0x127   : > { %v1174_v28 = vld [vmem:[#allocation2 + $0x80] sm:$0x1]  ;;  %v11763_v25 = vrot.slane %v1172_v45, 9  ;;  %v1461_v13 = vld [vmem:[#allocation2 + $0xb0] sm:$0x3]  ;;  %6160 = vmatmul.bf16.gmra.mxu0 %v12093_v63  ;;  %v936_v14 = vsel %vm14634_vm2, %v931_v1, %v935_v52  ;;  %v1309_v20 = vrot.slane %v1173_v0, 5 }
 0x128   : > { %v13741_v11 = vld [vmem:[#allocation3 + $0x268] sm:$0xf0]  ;;  %1131 = vst [vmem:[#allocation3 + $0x288] sm:$0xf] %v926_v2  ;;  %v1749_v3 = vor.u32 %v1748_v36, %v1745_v4  ;;  %v1312_v21 = vrot.slane %v1174_v28, 5  ;;  %v1731_v27 = vrot.slane %v1730_v29, 4 }
 0x129   : > { %v12101_v44 = vor.u32 %v13741_v11, %v12100_v17  ;;  %v12094_v6 = vld [vmem:[#allocation3 + $0x264] sm:$0xf0]  ;;  %1132 = vst [vmem:[#allocation3 + $0x2ac] sm:$0xf] %v936_v14  ;;  %v1741_v24 = vrot.slane %v1739_v50, 4  ;;  %v1310_v57 = vsel %vm14718_vm13, %v11763_v25, %v1309_v20  ;;  %v1311_v5 = vrot.slane %v1309_v20, 4 }
 0x12a   : > { %v12097_v15 = vor.u32 %v13736_v62, %v12094_v6  ;;  %v1836_v33 = vshrl.u32 %v1459_v61, 16  ;;  %v388_v37 = vld [vmem:[%s14575_s10 + $0x90] sm:$0xff]  ;;  %v389_v41 = vld [vmem:[%s14575_s10 + $0x98] sm:$0xff]  ;;  %v1462_v43 = vld [vmem:[#allocation2 + $0xb4] sm:$0xe]  ;;  %v1740_v38 = vsel %vm14693_vm7, %v1731_v27, %v1739_v50  ;;  %v1839_v26 = vshll.u32 %v1459_v61, 16  ;;  %v15110_v62 = vpop.f32.mrf.mxu2 }
 0x12b   : > { %6338 = vmatmul.bf16.gmra.mxu2 %v12101_v44  ;;  %v1750_v45 = vsel %vm14693_vm7, %v1741_v24, %v1749_v3  ;;  %1406 = vst [vmem:[#allocation3 + $0x28c] sm:$0xf] %v1310_v57  ;;  %v1845_v31 = vshrl.u32 %v1460_v19, 16  ;;  %v1463_v47 = vld [vmem:[#allocation2 + $0xb8] sm:$0xf]  ;;  %v1313_v16 = vsel %vm14718_vm13, %v1311_v5, %v1312_v21  ;;  %v1848_v0 = vshll.u32 %v1460_v19, 16 }
 0x12c   : > { %6249 = vmatmul.bf16.gmra.mxu1 %v12097_v15  ;;  %1969 = vst [vmem:[#allocation3 + $0x290] sm:$0xf] %v1740_v38  ;;  %v1838_v7 = vrot.slane %v1836_v33, 5  ;;  %v1855_v55 = vshrl.u32 %v1461_v13, 16  ;;  %v1841_v48 = vrot.slane %v1839_v26, 6  ;;  %v1858_v52 = vshll.u32 %v1461_v13, 16 }
 0x12d   : > { %1970 = vst [vmem:[#allocation3 + $0x2b4] sm:$0xf] %v1750_v45  ;;  %v1847_v51 = vrot.slane %v1845_v31, 5  ;;  %v420_v53 = vpack.c.bf16 %v388_v37, %v388_v37  ;;  %v1850_v40 = vrot.slane %v1848_v0, 6  ;;  %v421_v56 = vpack.c.bf16 %v389_v41, %v389_v41  ;;  %v1464_v18 = vld [vmem:[#allocation2 + $0xbc] sm:$0x3]  ;;  %v15120_v45 = vpop.f32.mrf.mxu3 }
 0x12e   : > { %17310 = vst [vmem:[#allocation21_spill] sm:$0xff] %v15108_v59  ;;  %v1857_v39 = vrot.slane %v1855_v55, 5  ;;  %v1864_v60 = vshrl.u32 %v1462_v43, 16  ;;  %v1842_v61 = vor.u32 %v1841_v48, %v1838_v7  ;;  %v1860_v63 = vrot.slane %v1858_v52, 6  ;;  %v390_v11 = vld [vmem:[%s14575_s10 + $0xa0] sm:$0xff]  ;;  %v391_v6 = vld [vmem:[%s14575_s10 + $0xa8] sm:$0xff] }
 0x12f   : > { %1407 = vst [vmem:[#allocation3 + $0x2b0] sm:$0xf] %v1313_v16  ;;  %v12128_v12 = vld [vmem:[#allocation3 + $0x288] sm:$0xf]  ;;  %v514_v1 = vrot.slane %v420_v53, 7  ;;  %v1867_v4 = vshll.u32 %v1462_v43, 16  ;;  %v1851_v19 = vor.u32 %v1850_v40, %v1847_v51  ;;  %v422_v7 = vpack.c.bf16 %v390_v11, %v390_v11 }
 0x130   : > { %17311 = vst [vmem:[#allocation22_spill] sm:$0xff] %v15110_v62  ;;  %v13749_v36 = vld [vmem:[#allocation3 + $0x2a8] sm:$0xf0]  ;;  %v516_v17 = vrot.slane %v421_v56, 7  ;;  %v1866_v2 = vrot.slane %v1864_v60, 5  ;;  %v1873_v29 = vshrl.u32 %v1463_v47, 16  ;;  %v1861_v25 = vor.u32 %v1860_v63, %v1857_v39 }
 0x131   : > { %v12129_v50 = vor.u32 %v13749_v36, %v12128_v12  ;;  %v1843_v28 = vrot.slane %v1842_v61, 4  ;;  %v515_v13 = vrot.slane %v514_v1, 4  ;;  %624 = vst [vmem:[#allocation2 + $0x84] sm:$0xe] %v514_v1  ;;  %v1853_v14 = vrot.slane %v1851_v19, 4  ;;  %v13854_v5 = vld [vmem:[#allocation8 + $0x170] sm:$0xff] }
 0x132   : > { %v6131_v3 = vpop.f32.mrf.mxu0  ;;  %v518_v20 = vrot.slane %v516_v17, 4  ;;  %v1869_v21 = vrot.slane %v1867_v4, 6  ;;  %v1875_v44 = vrot.slane %v1873_v29, 5  ;;  %v13745_v24 = vld [vmem:[#allocation3 + $0x28c] sm:$0xf]  ;;  %v1876_v33 = vshll.u32 %v1463_v47, 16  ;;  %6558 = vmatpush.bf16.msrb.mxu1 %v13854_v5 }
 0x133   : > { %v12136_v27 = vld [vmem:[#allocation3 + $0x290] sm:$0xf]  ;;  %v1852_v15 = vsel %vm14693_vm7, %v1843_v28, %v1851_v19  ;;  %v517_v57 = vsel %vm14710_vm10, %v515_v13, %v516_v17  ;;  %v1883_v37 = vshrl.u32 %v1464_v18, 16  ;;  %v13835_v41 = vld [vmem:[#allocation8 + $0xd8] sm:$0xff]  ;;  %v1862_v38 = vsel %vm14693_vm7, %v1853_v14, %v1861_v25 }
 0x134   : > { %v13750_v43 = vld [vmem:[#allocation3 + $0x2b0] sm:$0xf0]  ;;  %1977 = vst [vmem:[#allocation3 + $0x3b0] sm:$0xf] %v1852_v15  ;;  %v1870_v26 = vor.u32 %v1869_v21, %v1866_v2  ;;  %v1886_v31 = vshll.u32 %v1464_v18, 16  ;;  %v13863_v16 = vld [vmem:[#allocation8 + $0x1b8] sm:$0xff]  ;;  %6383 = vmatpush.bf16.msrb.mxu3 %v13835_v41  ;;  %v423_v47 = vpack.c.bf16 %v391_v6, %v391_v6 }
 0x135   : > { %1978 = vst [vmem:[#allocation3 + $0x3d4] sm:$0xf] %v1862_v38  ;;  %v1878_v55 = vrot.slane %v1876_v33, 6  ;;  %v1885_v48 = vrot.slane %v1883_v37, 5  ;;  %6646 = vmatpush.bf16.msrb.mxu2 %v13863_v16  ;;  %v13834_v53 = vld [vmem:[#allocation8 + $0xd0] sm:$0xff]  ;;  %v12137_v39 = vor.u32 %v13750_v43, %v12136_v27  ;;  %v519_v18 = vrot.slane %v422_v7, 7 }
 0x136   : > { %v12130_v0 = vld [vmem:[#allocation3 + $0x2ac] sm:$0xf0]  ;;  %625 = vst [vmem:[#allocation2 + $0x88] sm:$0xf] %v517_v57  ;;  %v1871_v51 = vrot.slane %v1870_v26, 4  ;;  %v1888_v52 = vrot.slane %v1886_v31, 6 }
 0x137   : > { %v13862_v40 = vld [vmem:[#allocation8 + $0x1b0] sm:$0xff]  ;;  %626 = vst [vmem:[#allocation2 + $0x8c] sm:$0x1] %v518_v20  ;;  %v1879_v60 = vor.u32 %v1878_v55, %v1875_v44  ;;  %v15122_v12 = vrot.slane %v423_v47, 7  ;;  %6165 = vmatmul.bf16.gmra.mxu0 %v12129_v50  ;;  %v12133_v61 = vor.u32 %v13745_v24, %v12130_v0  ;;  %v520_v15 = vrot.slane %v519_v18, 4 }
 0x138   : > { %v6220_v56 = vpop.f32.mrf.mxu1  ;;  %v676_v1 = vld [vmem:[#allocation2 + $0x84] sm:$0xf]  ;;  %v1889_v19 = vor.u32 %v1888_v52, %v1885_v48  ;;  %6384 = vmatpush.bf16.msrb.mxu3 %v13834_v53  ;;  %627 = vst [vmem:[#allocation2 + $0x90] sm:$0xe] %v519_v18 }
 0x139   : > { %v6221_v63 = vadd.f32 %v6220_v56, %v6131_v3  ;;  %v1450_v4 = vld [vmem:[#allocation2 + $0x84] sm:$0xe]  ;;  %v938_v17 = vshrl.u32 %v676_v1, 16  ;;  %v941_v2 = vshll.u32 %v676_v1, 16  ;;  %v1880_v11 = vsel %vm14693_vm7, %v1871_v51, %v1879_v60  ;;  %6647 = vmatpush.bf16.msrb.mxu2 %v13862_v40 }
 0x13a   : > { %v15124_v36 = vld [vmem:[#allocation2 + $0x84] sm:$0xe]  ;;  %v1752_v29 = vshrl.u32 %v1450_v4, 16  ;;  %v1755_v28 = vshll.u32 %v1450_v4, 16  ;;  %v6309_v25 = vpop.f32.mrf.mxu2  ;;  %v1881_v50 = vrot.slane %v1879_v60, 4  ;;  %v15131_v24 = vpop.f32.mrf.mxu0  ;;  %v523_v57 = vrot.slane %v15122_v12, 4 }
 0x13b   : > { %v11764_v13 = vrot.slane %v15124_v36, 9  ;;  %v15129_v14 = vadd.f32 %v6309_v25, %v6221_v63  ;;  %6343 = vmatmul.bf16.gmra.mxu2 %v12137_v39  ;;  %v12280_v3 = vld [vmem:[#allocation3 + $0x3b0] sm:$0xf]  ;;  %v940_v20 = vrot.slane %v938_v17, 4  ;;  %v943_v21 = vrot.slane %v941_v2, 5  ;;  %17312 = vst [vmem:[#allocation23_spill] sm:$0xff] %v15131_v24 }
 0x13c   : > { %v1754_v44 = vrot.slane %v1752_v29, 5  ;;  %v1757_v6 = vrot.slane %v1755_v28, 6  ;;  %6254 = vmatmul.bf16.gmra.mxu1 %v12133_v61  ;;  %v13786_v27 = vld [vmem:[#allocation3 + $0x3d0] sm:$0xf0]  ;;  %1979 = vst [vmem:[#allocation3 + $0x3f8] sm:$0xf] %v1880_v11  ;;  %v1890_v26 = vsel %vm14693_vm7, %v1881_v50, %v1889_v19  ;;  %v522_v48 = vsel %vm14710_vm10, %v520_v15, %v15122_v12 }
 0x13d   : > { %v12281_v5 = vor.u32 %v13786_v27, %v12280_v3  ;;  %v677_v33 = vld [vmem:[#allocation2 + $0x88] sm:$0xf]  ;;  %v944_v37 = vor.u32 %v943_v21, %v940_v20  ;;  %1980 = vst [vmem:[#allocation3 + $0x41c] sm:$0xf] %v1890_v26  ;;  %v15143_v19 = vld [vmem:[#allocation2 + $0xc0] sm:$0xe] }
 0x13e   : > { %v1451_v41 = vld [vmem:[#allocation2 + $0x88] sm:$0xf]  ;;  %v1758_v43 = vor.u32 %v1757_v6, %v1754_v44  ;;  %v678_v31 = vld [vmem:[#allocation2 + $0x8c] sm:$0x1]  ;;  %v947_v16 = vshll.u32 %v677_v33, 16  ;;  %v951_v7 = vshrl.u32 %v677_v33, 16 }
 0x13f   : > { %v1176_v38 = vld [vmem:[#allocation2 + $0x88] sm:$0xf]  ;;  %v1452_v0 = vld [vmem:[#allocation2 + $0x8c] sm:$0x3]  ;;  %v15136_v55 = vpop.f32.mrf.mxu3  ;;  %6363 = vmatmul.bf16.gmra.mxu3 %v12281_v5  ;;  %v945_v47 = vrot.slane %v944_v37, 4  ;;  %v957_v51 = vshll.u32 %v678_v31, 16 }
 0x140   : > { %v1759_v52 = vrot.slane %v1758_v43, 4  ;;  %v1761_v53 = vshrl.u32 %v1451_v41, 16  ;;  %v1177_v40 = vld [vmem:[#allocation2 + $0x8c] sm:$0x1]  ;;  %v15141_v39 = vpop.f32.mrf.mxu1  ;;  %v949_v56 = vrot.slane %v947_v16, 5  ;;  %v953_v60 = vrot.slane %v951_v7, 4 }
 0x141   : > { %17313 = vst [vmem:[#allocation24_spill] sm:$0xff] %v15141_v39  ;;  %v1764_v18 = vshll.u32 %v1451_v41, 16  ;;  %v1771_v61 = vshrl.u32 %v1452_v0, 16  ;;  %v959_v63 = vrot.slane %v957_v51, 5  ;;  %v1774_v4 = vshll.u32 %v1452_v0, 16  ;;  %v13861_v21 = vld [vmem:[#allocation8 + $0x1a8] sm:$0xff] }
 0x142   : > { %v1763_v1 = vrot.slane %v1761_v53, 5  ;;  %v1316_v36 = vrot.slane %v1176_v38, 5  ;;  %628 = vst [vmem:[#allocation2 + $0x94] sm:$0xf] %v522_v48  ;;  %v950_v12 = vsel %vm14634_vm2, %v945_v47, %v949_v56  ;;  %v954_v17 = vor.u32 %v953_v60, %v949_v56  ;;  %v679_v28 = vld [vmem:[#allocation2 + $0x90] sm:$0xf]  ;;  %v15149_v20 = vpop.f32.mrf.mxu2  ;;  %6648 = vmatpush.bf16.msrb.mxu2 %v13861_v21  ;;  %v6136_v43 = vpop.f32.mrf.mxu0 }
 0x143   : > { %v1766_v2 = vrot.slane %v1764_v18, 6  ;;  %v1773_v29 = vrot.slane %v1771_v61, 5  ;;  %629 = vst [vmem:[#allocation2 + $0x98] sm:$0x1] %v523_v57  ;;  %v1776_v25 = vrot.slane %v1774_v4, 6  ;;  %v1319_v3 = vrot.slane %v1177_v40, 5 }
 0x144   : > { %1133 = vst [vmem:[#allocation3 + $0x2d0] sm:$0xf] %v950_v12  ;;  %v1317_v11 = vsel %vm14718_vm13, %v11764_v13, %v1316_v36  ;;  %v1318_v50 = vrot.slane %v1316_v36, 4  ;;  %v955_v44 = vrot.slane %v954_v17, 4  ;;  %v962_v27 = vshrl.u32 %v679_v28, 16 }
 0x145   : > { %17314 = vst [vmem:[#allocation25_spill] sm:$0xff] %v15149_v20  ;;  %v1767_v6 = vor.u32 %v1766_v2, %v1763_v1  ;;  %v1777_v15 = vor.u32 %v1776_v25, %v1773_v29  ;;  %v12316_v57 = vld [vmem:[#allocation3 + $0x3f8] sm:$0xf]  ;;  %v965_v33 = vshll.u32 %v679_v28, 16  ;;  %v1453_v38 = vld [vmem:[#allocation2 + $0x90] sm:$0xe] }
 0x146   : > { %1408 = vst [vmem:[#allocation3 + $0x2d4] sm:$0xf] %v1317_v11  ;;  %v1320_v5 = vsel %vm14718_vm13, %v1318_v50, %v1319_v3  ;;  %v960_v37 = vsel %vm14634_vm2, %v955_v44, %v959_v63  ;;  %v1892_v26 = vshrl.u32 %v15143_v19, 16  ;;  %v13795_v31 = vld [vmem:[#allocation3 + $0x418] sm:$0xf0]  ;;  %v964_v7 = vrot.slane %v962_v27, 4 }
 0x147   : > { %v1768_v13 = vsel %vm14693_vm7, %v1759_v52, %v1767_v6  ;;  %v1769_v41 = vrot.slane %v1767_v6, 4  ;;  %1409 = vst [vmem:[#allocation3 + $0x2f8] sm:$0xf] %v1320_v5  ;;  %v967_v0 = vrot.slane %v965_v33, 5  ;;  %v15160_v47 = vpop.f32.mrf.mxu3  ;;  %v12317_v63 = vor.u32 %v13795_v31, %v12316_v57  ;;  %v1178_v25 = vld [vmem:[#allocation2 + $0x90] sm:$0xe] }
 0x148   : > { %1134 = vst [vmem:[#allocation3 + $0x2f4] sm:$0xf] %v960_v37  ;;  %v6225_v16 = vpop.f32.mrf.mxu1  ;;  %v1780_v36 = vshrl.u32 %v1453_v38, 16  ;;  %v1783_v28 = vshll.u32 %v1453_v38, 16  ;;  %v1466_v31 = vld [vmem:[#allocation2 + $0xc4] sm:$0xf] }
 0x149   : > { %v1778_v48 = vsel %vm14693_vm7, %v1769_v41, %v1777_v15  ;;  %1971 = vst [vmem:[#allocation3 + $0x2d8] sm:$0xf] %v1768_v13  ;;  %v6226_v51 = vadd.f32 %v6225_v16, %v6136_v43  ;;  %v680_v53 = vld [vmem:[#allocation2 + $0x94] sm:$0xf]  ;;  %v968_v56 = vor.u32 %v967_v0, %v964_v7  ;;  %v2004_v39 = vld [vmem:[#allocation2 + $0x6c] sm:$0xf] }
 0x14a   : > { %v1454_v52 = vld [vmem:[#allocation2 + $0x94] sm:$0xf]  ;;  %1972 = vst [vmem:[#allocation3 + $0x2fc] sm:$0xf] %v1778_v48  ;;  %v681_v40 = vld [vmem:[#allocation2 + $0x98] sm:$0x1] }
 0x14b   : > { %v971_v60 = vshll.u32 %v680_v53, 16  ;;  %v975_v18 = vshrl.u32 %v680_v53, 16  ;;  %v12164_v61 = vld [vmem:[#allocation3 + $0x2d0] sm:$0xf]  ;;  %v981_v1 = vshll.u32 %v681_v40, 16  ;;  %v969_v17 = vrot.slane %v968_v56, 4  ;;  %v6314_v37 = vpop.f32.mrf.mxu2 }
 0x14c   : > { %v1455_v4 = vld [vmem:[#allocation2 + $0x98] sm:$0x3]  ;;  %v1782_v50 = vrot.slane %v1780_v36, 5  ;;  %v1789_v3 = vshrl.u32 %v1454_v52, 16  ;;  %v1792_v21 = vshll.u32 %v1454_v52, 16  ;;  %v1785_v5 = vrot.slane %v1783_v28, 6 }
 0x14d   : > { %v13754_v12 = vld [vmem:[#allocation3 + $0x2d4] sm:$0xf]  ;;  %v973_v2 = vrot.slane %v971_v60, 5  ;;  %v977_v29 = vrot.slane %v975_v18, 4  ;;  %v983_v11 = vrot.slane %v981_v1, 5  ;;  %v1799_v57 = vshrl.u32 %v1455_v4, 16 }
 0x14e   : > { %v1179_v44 = vld [vmem:[#allocation2 + $0x94] sm:$0xf]  ;;  %v12166_v6 = vld [vmem:[#allocation3 + $0x2f4] sm:$0xf0]  ;;  %v1180_v33 = vld [vmem:[#allocation2 + $0x98] sm:$0x1]  ;;  %v15164_v16 = vadd.f32 %v6314_v37, %v6226_v51  ;;  %v1786_v53 = vor.u32 %v1785_v5, %v1782_v50 }
 0x14f   : > { %v974_v27 = vsel %vm14634_vm2, %v969_v17, %v973_v2  ;;  %v978_v15 = vor.u32 %v977_v29, %v973_v2  ;;  %v13758_v13 = vld [vmem:[#allocation3 + $0x2f0] sm:$0xf0]  ;;  %v12169_v41 = vor.u32 %v13754_v12, %v12166_v6  ;;  %v1791_v43 = vrot.slane %v1789_v3, 5  ;;  %6368 = vmatmul.bf16.gmra.mxu3 %v12317_v63  ;;  %v13833_v40 = vld [vmem:[#allocation8 + $0xc8] sm:$0xff]  ;;  %v13840_v56 = vld [vmem:[#allocation8 + $0x100] sm:$0xff]  ;;  %v15166_v2 = vpop.f32.mrf.mxu0 }
 0x150   : > { %1135 = vst [vmem:[#allocation3 + $0x318] sm:$0xf] %v974_v27  ;;  %v1794_v38 = vrot.slane %v1792_v21, 6  ;;  %v12165_v7 = vor.u32 %v13758_v13, %v12164_v61  ;;  %v12172_v0 = vld [vmem:[#allocation3 + $0x2d8] sm:$0xf]  ;;  %v1801_v52 = vrot.slane %v1799_v57, 5  ;;  %6385 = vmatpush.bf16.msrb.mxu3 %v13833_v40  ;;  %6475 = vmatpush.bf16.msrb.mxu0 %v13840_v56  ;;  %v15179_v37 = vpop.f32.mrf.mxu1 }
 0x151   : > { %v979_v48 = vrot.slane %v978_v15, 4  ;;  %v13759_v60 = vld [vmem:[#allocation3 + $0x2f8] sm:$0xf0]  ;;  %6259 = vmatmul.bf16.gmra.mxu1 %v12169_v41  ;;  %v1802_v1 = vshll.u32 %v1455_v4, 16  ;;  %v11765_v36 = vrot.slane %v1178_v25, 9  ;;  %v1323_v12 = vrot.slane %v1179_v44, 5 }
 0x152   : > { %v1795_v18 = vor.u32 %v1794_v38, %v1791_v43  ;;  %v13853_v17 = vld [vmem:[#allocation8 + $0x168] sm:$0xff]  ;;  %17315 = vst [vmem:[#allocation26_spill] sm:$0xff] %v15166_v2  ;;  %6170 = vmatmul.bf16.gmra.mxu0 %v12165_v7  ;;  %v12173_v51 = vor.u32 %v13759_v60, %v12172_v0  ;;  %v1787_v63 = vrot.slane %v1786_v53, 4  ;;  %v1326_v29 = vrot.slane %v1180_v33, 5  ;;  %v1467_v28 = vld [vmem:[#allocation2 + $0xc8] sm:$0x3] }
 0x153   : > { %v984_v61 = vsel %vm14634_vm2, %v979_v48, %v983_v11  ;;  %v13860_v50 = vld [vmem:[#allocation8 + $0x1a0] sm:$0xff]  ;;  %v1804_v6 = vrot.slane %v1802_v1, 6  ;;  %v1324_v4 = vsel %vm14718_vm13, %v11765_v36, %v1323_v12  ;;  %v1325_v25 = vrot.slane %v1323_v12, 4  ;;  %6559 = vmatpush.bf16.msrb.mxu1 %v13853_v17  ;;  %v2480_v15 = vld [vmem:[#allocation2 + $0x1c] sm:$0xf]  ;;  %17316 = vst [vmem:[#allocation27_spill] sm:$0xff] %v15179_v37 }
 0x154   : > { %v13852_v3 = vld [vmem:[#allocation8 + $0x160] sm:$0xff]  ;;  %1136 = vst [vmem:[#allocation3 + $0x33c] sm:$0xf] %v984_v61  ;;  %v1797_v21 = vrot.slane %v1795_v18, 4  ;;  %v15172_v44 = vpop.f32.mrf.mxu3  ;;  %6348 = vmatmul.bf16.gmra.mxu2 %v12173_v51  ;;  %v1796_v11 = vsel %vm14693_vm7, %v1787_v63, %v1795_v18  ;;  %v1894_v5 = vrot.slane %v1892_v26, 5  ;;  %v1895_v57 = vshll.u32 %v15143_v19, 16  ;;  %v15187_v61 = vpop.f32.mrf.mxu2 }
 0x155   : > { %v13832_v27 = vld [vmem:[#allocation8 + $0xc0] sm:$0xff]  ;;  %1410 = vst [vmem:[#allocation3 + $0x31c] sm:$0xf] %v1324_v4  ;;  %v1901_v33 = vshrl.u32 %v1466_v31, 16  ;;  %v1805_v13 = vor.u32 %v1804_v6, %v1801_v52  ;;  %v1327_v41 = vsel %vm14718_vm13, %v1325_v25, %v1326_v29  ;;  %v1904_v43 = vshll.u32 %v1466_v31, 16  ;;  %6649 = vmatpush.bf16.msrb.mxu2 %v13860_v50  ;;  %v13859_v7 = vld [vmem:[#allocation8 + $0x198] sm:$0xff] }
 0x156   : > { %1973 = vst [vmem:[#allocation3 + $0x320] sm:$0xf] %v1796_v11  ;;  %v1911_v38 = vshrl.u32 %v1467_v28, 16  ;;  %v1897_v0 = vrot.slane %v1895_v57, 6  ;;  %6386 = vmatpush.bf16.msrb.mxu3 %v13832_v27  ;;  %v13851_v53 = vld [vmem:[#allocation8 + $0x158] sm:$0xff]  ;;  %v1914_v56 = vshll.u32 %v1467_v28, 16 }
 0x157   : > { %1411 = vst [vmem:[#allocation3 + $0x340] sm:$0xf] %v1327_v41  ;;  %v1903_v48 = vrot.slane %v1901_v33, 5  ;;  %v1806_v19 = vsel %vm14693_vm7, %v1797_v21, %v1805_v13  ;;  %v1906_v26 = vrot.slane %v1904_v43, 6  ;;  %6560 = vmatpush.bf16.msrb.mxu1 %v13852_v3  ;;  %v13858_v52 = vld [vmem:[#allocation8 + $0x190] sm:$0xff]  ;;  %v2577_v12 = vrot.slane %v2480_v15, 5 }
 0x158   : > { %v1913_v40 = vrot.slane %v1911_v38, 5  ;;  %v2479_v60 = vld [vmem:[#allocation2 + $0x18] sm:$0xe]  ;;  %v15185_v18 = vld [vmem:[#allocation3 + $0x318] sm:$0xf]  ;;  %v1898_v31 = vor.u32 %v1897_v0, %v1894_v5  ;;  %v1916_v51 = vrot.slane %v1914_v56, 6 }
 0x159   : > { %1974 = vst [vmem:[#allocation3 + $0x344] sm:$0xf] %v1806_v19  ;;  %v2481_v1 = vld [vmem:[#allocation2 + $0x20] sm:$0x1]  ;;  %v11770_v36 = vrot.slane %v2479_v60, 9  ;;  %v1907_v17 = vor.u32 %v1906_v26, %v1903_v48  ;;  %6650 = vmatpush.bf16.msrb.mxu2 %v13859_v7  ;;  %v2579_v4 = vrot.slane %v2577_v12, 4 }
 0x15a   : > { %17317 = vst [vmem:[#allocation28_spill] sm:$0xff] %v15187_v61  ;;  %v2580_v63 = vrot.slane %v2481_v1, 5  ;;  %v13850_v29 = vld [vmem:[#allocation8 + $0x150] sm:$0xff]  ;;  %v1983_v50 = vld [vmem:[#allocation2 + $0x18] sm:$0xf]  ;;  %v1899_v3 = vrot.slane %v1898_v31, 4  ;;  %v1917_v5 = vor.u32 %v1916_v51, %v1913_v40 }
 0x15b   : > { %v1984_v21 = vld [vmem:[#allocation2 + $0x1c] sm:$0xf]  ;;  %v13767_v28 = vld [vmem:[#allocation3 + $0x338] sm:$0xf0]  ;;  %v2578_v6 = vsel %vm14718_vm13, %v11770_v36, %v2577_v12  ;;  %v1985_v25 = vld [vmem:[#allocation2 + $0x20] sm:$0x1]  ;;  %6561 = vmatpush.bf16.msrb.mxu1 %v13851_v53 }
 0x15c   : > { %v13763_v27 = vld [vmem:[#allocation3 + $0x31c] sm:$0xf]  ;;  %v1909_v11 = vrot.slane %v1907_v17, 4  ;;  %v15191_v15 = vpop.f32.mrf.mxu3  ;;  %v6141_v57 = vpop.f32.mrf.mxu0  ;;  %2719 = vst [vmem:[#allocation3 + $0x10] sm:$0xf] %v2578_v6  ;;  %v2032_v33 = vshrl.u32 %v1983_v50, 16  ;;  %v1908_v41 = vsel %vm14693_vm7, %v1899_v3, %v1907_v17  ;;  %v2581_v43 = vsel %vm14718_vm13, %v2579_v4, %v2580_v63 }
 0x15d   : > { %v12208_v13 = vld [vmem:[#allocation3 + $0x320] sm:$0xf]  ;;  %v13857_v38 = vld [vmem:[#allocation8 + $0x188] sm:$0xff]  ;;  %v2035_v7 = vshll.u32 %v1983_v50, 16  ;;  %v2041_v0 = vshll.u32 %v1984_v21, 16  ;;  %v13871_v48 = vld [vmem:[#allocation8 + $0x1f8] sm:$0xff]  ;;  %v12201_v19 = vor.u32 %v13767_v28, %v15185_v18  ;;  %6651 = vmatpush.bf16.msrb.mxu2 %v13858_v52 }
 0x15e   : > { %v12202_v26 = vld [vmem:[#allocation3 + $0x33c] sm:$0xf0]  ;;  %v1918_v53 = vsel %vm14693_vm7, %v1909_v11, %v1917_v5  ;;  %1981 = vst [vmem:[#allocation3 + $0x440] sm:$0xf] %v1908_v41  ;;  %v2034_v40 = vrot.slane %v2032_v33, 4  ;;  %v2045_v56 = vshrl.u32 %v1984_v21, 16  ;;  %6735 = vmatpush.bf16.msra.mxu3 %v13871_v48 }
 0x15f   : > { %v12205_v60 = vor.u32 %v13763_v27, %v12202_v26  ;;  %1982 = vst [vmem:[#allocation3 + $0x464] sm:$0xf] %v1918_v53  ;;  %v6230_v31 = vpop.f32.mrf.mxu1  ;;  %v2037_v1 = vrot.slane %v2035_v7, 5  ;;  %v2043_v36 = vrot.slane %v2041_v0, 5  ;;  %v2051_v12 = vshll.u32 %v1985_v25, 16  ;;  %6562 = vmatpush.bf16.msrb.mxu1 %v13850_v29  ;;  %v13849_v63 = vld [vmem:[#allocation8 + $0x148] sm:$0xff] }
 0x160   : > { %v13768_v17 = vld [vmem:[#allocation3 + $0x340] sm:$0xf0]  ;;  %v6231_v51 = vadd.f32 %v6230_v31, %v6141_v57  ;;  %2720 = vst [vmem:[#allocation3 + $0x34] sm:$0xf] %v2581_v43  ;;  %v2047_v18 = vrot.slane %v2045_v56, 4  ;;  %v13879_v4 = vld [vmem:[#allocation8 + $0x238] sm:$0xff] }
 0x161   : > { %v12209_v50 = vor.u32 %v13768_v17, %v12208_v13  ;;  %v2038_v28 = vor.u32 %v2037_v1, %v2034_v40  ;;  %v2053_v3 = vrot.slane %v2051_v12, 5  ;;  %v3312_v6 = vld [vmem:[#allocation2 + $0x24] sm:$0xf]  ;;  %v3313_v52 = vld [vmem:[#allocation2 + $0x28] sm:$0xf]  ;;  %6264 = vmatmul.bf16.gmra.mxu1 %v12205_v60  ;;  %6652 = vmatpush.bf16.msrb.mxu2 %v13857_v38  ;;  %v13856_v27 = vld [vmem:[#allocation8 + $0x180] sm:$0xff] }
 0x162   : > { %v2048_v21 = vor.u32 %v2047_v18, %v2043_v36  ;;  %v3314_v11 = vld [vmem:[#allocation2 + $0x2c] sm:$0x1]  ;;  %v3361_v5 = vshrl.u32 %v3312_v6, 16  ;;  %v3364_v25 = vshll.u32 %v3312_v6, 16  ;;  %v3370_v33 = vshll.u32 %v3313_v52, 16  ;;  %6175 = vmatmul.bf16.gmra.mxu0 %v12201_v19  ;;  %v13848_v43 = vld [vmem:[#allocation8 + $0x140] sm:$0xff]  ;;  %6736 = vmatpush.bf16.msra.mxu3 %v13870_v8 }
 0x163   : > { %v2039_v57 = vrot.slane %v2038_v28, 4  ;;  %v3374_v41 = vshrl.u32 %v3313_v52, 16  ;;  %v3380_v29 = vshll.u32 %v3314_v11, 16  ;;  %6563 = vmatpush.bf16.msrb.mxu1 %v13849_v63  ;;  %6824 = vmatpush.bf16.msra.mxu0 %v13879_v4  ;;  %v2751_v38 = vld [vmem:[#allocation2 + $0x18] sm:$0xe] }
 0x164   : > { %v2049_v7 = vrot.slane %v2048_v21, 4  ;;  %v6319_v13 = vpop.f32.mrf.mxu2  ;;  %v15200_v0 = vpop.f32.mrf.mxu3  ;;  %v3363_v48 = vrot.slane %v3361_v5, 4  ;;  %v3366_v26 = vrot.slane %v3364_v25, 5  ;;  %v3372_v53 = vrot.slane %v3370_v33, 5  ;;  %6353 = vmatmul.bf16.gmra.mxu2 %v12209_v50  ;;  %v2752_v1 = vld [vmem:[#allocation2 + $0x1c] sm:$0xf] }
 0x165   : > { %v12352_v40 = vld [vmem:[#allocation3 + $0x440] sm:$0xf]  ;;  %v2044_v56 = vsel %vm14634_vm2, %v2039_v57, %v2043_v36  ;;  %v15204_v19 = vadd.f32 %v6319_v13, %v6231_v51  ;;  %v15206_v60 = vpop.f32.mrf.mxu0  ;;  %v3376_v31 = vrot.slane %v3374_v41, 4  ;;  %6653 = vmatpush.bf16.msrb.mxu2 %v13856_v27  ;;  %v2800_v63 = vshrl.u32 %v2751_v38, 16  ;;  %v2753_v51 = vld [vmem:[#allocation2 + $0x20] sm:$0x3] }
 0x166   : > { %17318 = vst [vmem:[#allocation29_spill] sm:$0xff] %v15206_v60  ;;  %v13804_v12 = vld [vmem:[#allocation3 + $0x460] sm:$0xf0]  ;;  %v2054_v17 = vsel %vm14634_vm2, %v2049_v7, %v2053_v3  ;;  %v3367_v18 = vor.u32 %v3366_v26, %v3363_v48  ;;  %v3382_v36 = vrot.slane %v3380_v29, 5  ;;  %v2482_v21 = vld [vmem:[#allocation2 + $0x24] sm:$0xe] }
 0x167   : > { %2447 = vst [vmem:[#allocation3 + $0xc] sm:$0xf] %v2044_v56  ;;  %v12353_v28 = vor.u32 %v13804_v12, %v12352_v40  ;;  %v15210_v50 = vpop.f32.mrf.mxu1  ;;  %v3377_v6 = vor.u32 %v3376_v31, %v3372_v53  ;;  %6564 = vmatpush.bf16.msrb.mxu1 %v13848_v43  ;;  %v2802_v4 = vrot.slane %v2800_v63, 5  ;;  %v2483_v11 = vld [vmem:[#allocation2 + $0x28] sm:$0xf]  ;;  %v2803_v25 = vshll.u32 %v2751_v38, 16 }
 0x168   : > { %2448 = vst [vmem:[#allocation3 + $0x30] sm:$0xf] %v2054_v17  ;;  %v3368_v52 = vrot.slane %v3367_v18, 4  ;;  %v2809_v3 = vshrl.u32 %v2752_v1, 16  ;;  %v2812_v33 = vshll.u32 %v2752_v1, 16  ;;  %v2819_v13 = vshrl.u32 %v2753_v51, 16 }
 0x169   : > { %17319 = vst [vmem:[#allocation30_spill] sm:$0xff] %v15210_v50  ;;  %6373 = vmatmul.bf16.gmra.mxu3 %v12353_v28  ;;  %v3378_v5 = vrot.slane %v3377_v6, 4  ;;  %v2484_v27 = vld [vmem:[#allocation2 + $0x2c] sm:$0x1]  ;;  %v11820_v57 = vld [vmem:[#allocation3 + $0x10] sm:$0xf] }
 0x16a   : > { %v13670_v41 = vld [vmem:[#allocation3 + $0x30] sm:$0xf0]  ;;  %v3373_v7 = vsel %vm14634_vm2, %v3368_v52, %v3372_v53  ;;  %v2822_v48 = vshll.u32 %v2753_v51, 16  ;;  %v11771_v29 = vrot.slane %v2482_v21, 9  ;;  %v2805_v40 = vrot.slane %v2803_v25, 6  ;;  %v13877_v37 = vld [vmem:[#allocation8 + $0x228] sm:$0xff] }
 0x16b   : > { %v1986_v26 = vld [vmem:[#allocation2 + $0x24] sm:$0xf]  ;;  %v3383_v43 = vsel %vm14634_vm2, %v3378_v5, %v3382_v36  ;;  %3776 = vst [vmem:[#allocation3 + $0x18] sm:$0xf] %v3373_v7  ;;  %v2811_v56 = vrot.slane %v2809_v3, 5  ;;  %v2814_v31 = vrot.slane %v2812_v33, 6  ;;  %v11821_v3 = vor.u32 %v13670_v41, %v11820_v57 }
 0x16c   : > { %3777 = vst [vmem:[#allocation3 + $0x3c] sm:$0xf] %v3383_v43  ;;  %v15216_v38 = vpop.f32.mrf.mxu2  ;;  %v2821_v1 = vrot.slane %v2819_v13, 5  ;;  %v2824_v12 = vrot.slane %v2822_v48, 6  ;;  %v15218_v17 = vpop.f32.mrf.mxu3  ;;  %v2584_v18 = vrot.slane %v2483_v11, 5  ;;  %v2587_v53 = vrot.slane %v2484_v27, 5 }
 0x16d   : > { %17320 = vst [vmem:[#allocation31_spill] sm:$0xff] %v15216_v38  ;;  %v2806_v63 = vor.u32 %v2805_v40, %v2802_v4  ;;  %v2815_v28 = vor.u32 %v2814_v31, %v2811_v56  ;;  %v6146_v6 = vpop.f32.mrf.mxu0  ;;  %v1987_v51 = vld [vmem:[#allocation2 + $0x28] sm:$0xf]  ;;  %v1988_v5 = vld [vmem:[#allocation2 + $0x2c] sm:$0x1]  ;;  %v2056_v25 = vshrl.u32 %v1986_v26, 16 }
 0x16e   : > { %17321 = vst [vmem:[#allocation32_spill] sm:$0xff] %v15218_v17  ;;  %v2825_v52 = vor.u32 %v2824_v12, %v2821_v1  ;;  %v2585_v36 = vsel %vm14718_vm13, %v11771_v29, %v2584_v18  ;;  %v2586_v21 = vrot.slane %v2584_v18, 4  ;;  %v13665_v33 = vld [vmem:[#allocation3 + $0xc] sm:$0xf]  ;;  %v2059_v43 = vshll.u32 %v1986_v26, 16 }
 0x16f   : > { %v2807_v7 = vrot.slane %v2806_v63, 4  ;;  %v2817_v13 = vrot.slane %v2815_v28, 4  ;;  %v6235_v48 = vpop.f32.mrf.mxu1  ;;  %2721 = vst [vmem:[#allocation3 + $0x58] sm:$0xf] %v2585_v36  ;;  %v11814_v11 = vld [vmem:[#allocation3 + $0x2c] sm:$0xf0] }
 0x170   : > { %v6236_v27 = vadd.f32 %v6235_v48, %v6146_v6  ;;  %v2588_v4 = vsel %vm14718_vm13, %v2586_v21, %v2587_v53  ;;  %v2058_v40 = vrot.slane %v2056_v25, 4  ;;  %v2065_v56 = vshll.u32 %v1987_v51, 16  ;;  %v3315_v31 = vld [vmem:[#allocation2 + $0x30] sm:$0xf]  ;;  %v3316_v12 = vld [vmem:[#allocation2 + $0x34] sm:$0xf] }
 0x171   : > { %v2816_v29 = vsel %vm14693_vm7, %v2807_v7, %v2815_v28  ;;  %v2826_v57 = vsel %vm14693_vm7, %v2817_v13, %v2825_v52  ;;  %2722 = vst [vmem:[#allocation3 + $0x7c] sm:$0xf] %v2588_v4  ;;  %v2061_v41 = vrot.slane %v2059_v43, 5  ;;  %v2069_v1 = vshrl.u32 %v1987_v51, 16  ;;  %v3317_v7 = vld [vmem:[#allocation2 + $0x38] sm:$0x1] }
 0x172   : > { %v11828_v18 = vld [vmem:[#allocation3 + $0x18] sm:$0xf]  ;;  %3279 = vst [vmem:[#allocation3 + $0x14] sm:$0xf] %v2816_v29  ;;  %v2067_v26 = vrot.slane %v2065_v56, 5  ;;  %v2075_v63 = vshll.u32 %v1988_v5, 16  ;;  %6476 = vmatmul.bf16.vlgmr.msrb.gmra.mxu0 %v11821_v3  ;;  %v11817_v25 = vor.u32 %v13665_v33, %v11814_v11 }
 0x173   : > { %v13671_v6 = vld [vmem:[#allocation3 + $0x38] sm:$0xf0]  ;;  %3280 = vst [vmem:[#allocation3 + $0x38] sm:$0xf] %v2826_v57  ;;  %v2062_v53 = vor.u32 %v2061_v41, %v2058_v40  ;;  %v2071_v36 = vrot.slane %v2069_v1, 4  ;;  %v3385_v21 = vshrl.u32 %v3315_v31, 16 }
 0x174   : > { %v11829_v48 = vor.u32 %v13671_v6, %v11828_v18  ;;  %v15228_v28 = vpop.f32.mrf.mxu3  ;;  %v3388_v52 = vshll.u32 %v3315_v31, 16  ;;  %v3394_v13 = vshll.u32 %v3316_v12, 16  ;;  %v2754_v43 = vld [vmem:[#allocation2 + $0x24] sm:$0xe]  ;;  %v2077_v17 = vrot.slane %v2075_v63, 5 }
 0x175   : > { %v2063_v51 = vrot.slane %v2062_v53, 4  ;;  %v2072_v4 = vor.u32 %v2071_v36, %v2067_v26  ;;  %v3387_v56 = vrot.slane %v3385_v21, 4  ;;  %v3398_v57 = vshrl.u32 %v3316_v12, 16  ;;  %v15234_v41 = vpop.f32.mrf.mxu0  ;;  %v2755_v1 = vld [vmem:[#allocation2 + $0x28] sm:$0xf] }
 0x176   : > { %v6324_v29 = vpop.f32.mrf.mxu2  ;;  %6654 = vmatmul.bf16.vlgmr.msrb.gmra.mxu2 %v11829_v48  ;;  %v3390_v3 = vrot.slane %v3388_v52, 5  ;;  %v3396_v40 = vrot.slane %v3394_v13, 5  ;;  %17322 = vst [vmem:[#allocation33_spill] sm:$0xff] %v15234_v41  ;;  %v3404_v31 = vshll.u32 %v3317_v7, 16  ;;  %v2828_v18 = vshrl.u32 %v2754_v43, 16 }
 0x177   : > { %v15230_v5 = vadd.f32 %v6324_v29, %v6236_v27  ;;  %v2068_v33 = vsel %vm14634_vm2, %v2063_v51, %v2067_v26  ;;  %v2073_v11 = vrot.slane %v2072_v4, 4  ;;  %v3400_v63 = vrot.slane %v3398_v57, 4  ;;  %v2756_v53 = vld [vmem:[#allocation2 + $0x2c] sm:$0x3]  ;;  %v11856_v26 = vld [vmem:[#allocation3 + $0x58] sm:$0xf]  ;;  %v15238_v13 = vpop.f32.mrf.mxu1 }
 0x178   : > { %2449 = vst [vmem:[#allocation3 + $0x54] sm:$0xf] %v2068_v33  ;;  %v3391_v6 = vor.u32 %v3390_v3, %v3387_v56  ;;  %v2831_v36 = vshll.u32 %v2754_v43, 16  ;;  %v3406_v12 = vrot.slane %v3404_v31, 5  ;;  %v2830_v48 = vrot.slane %v2828_v18, 5 }
 0x179   : > { %6387 = vmatmul.bf16.vlgmr.msrb.gmra.mxu3 %v11817_v25  ;;  %v13666_v27 = vld [vmem:[#allocation3 + $0x14] sm:$0xf]  ;;  %v2078_v21 = vsel %vm14634_vm2, %v2073_v11, %v2077_v17  ;;  %17323 = vst [vmem:[#allocation34_spill] sm:$0xff] %v15238_v13  ;;  %v3401_v51 = vor.u32 %v3400_v63, %v3396_v40  ;;  %v2485_v29 = vld [vmem:[#allocation2 + $0x30] sm:$0xe]  ;;  %v2837_v43 = vshrl.u32 %v2755_v1, 16 }
 0x17a   : > { %v11822_v52 = vld [vmem:[#allocation3 + $0x34] sm:$0xf0]  ;;  %2450 = vst [vmem:[#allocation3 + $0x78] sm:$0xf] %v2078_v21  ;;  %v3392_v7 = vrot.slane %v3391_v6, 4  ;;  %v2833_v4 = vrot.slane %v2831_v36, 6 }
 0x17b   : > { %v2486_v56 = vld [vmem:[#allocation2 + $0x34] sm:$0xf]  ;;  %v11825_v3 = vor.u32 %v13666_v27, %v11822_v52  ;;  %v13679_v57 = vld [vmem:[#allocation3 + $0x78] sm:$0xf0]  ;;  %v2840_v25 = vshll.u32 %v2755_v1, 16  ;;  %v2847_v33 = vshrl.u32 %v2756_v53, 16 }
 0x17c   : > { %v3397_v17 = vsel %vm14634_vm2, %v3392_v7, %v3396_v40  ;;  %v3402_v11 = vrot.slane %v3401_v51, 4  ;;  %v2834_v31 = vor.u32 %v2833_v4, %v2830_v48  ;;  %v2850_v18 = vshll.u32 %v2756_v53, 16  ;;  %v15242_v21 = vpop.f32.mrf.mxu3  ;;  %v1989_v6 = vld [vmem:[#allocation2 + $0x30] sm:$0xf]  ;;  %v13878_v52 = vld [vmem:[#allocation8 + $0x230] sm:$0xff] }
 0x17d   : > { %6565 = vmatmul.bf16.vlgmr.msrb.gmra.mxu1 %v11825_v3  ;;  %3778 = vst [vmem:[#allocation3 + $0x60] sm:$0xf] %v3397_v17  ;;  %v2839_v63 = vrot.slane %v2837_v43, 5  ;;  %v2842_v36 = vrot.slane %v2840_v25, 6  ;;  %v2849_v27 = vrot.slane %v2847_v33, 5  ;;  %v11857_v7 = vor.u32 %v13679_v57, %v11856_v26  ;;  %6825 = vmatpush.bf16.msra.mxu0 %v13878_v52 }
 0x17e   : > { %v3407_v1 = vsel %vm14634_vm2, %v3402_v11, %v3406_v12  ;;  %v2835_v13 = vrot.slane %v2834_v31, 4  ;;  %v2852_v41 = vrot.slane %v2850_v18, 6  ;;  %v1990_v40 = vld [vmem:[#allocation2 + $0x34] sm:$0xf]  ;;  %v15246_v53 = vpop.f32.mrf.mxu2  ;;  %v11772_v51 = vrot.slane %v2485_v29, 9  ;;  %v6151_v26 = vpop.f32.mrf.mxu0 }
 0x17f   : > { %3779 = vst [vmem:[#allocation3 + $0x84] sm:$0xf] %v3407_v1  ;;  %v2843_v48 = vor.u32 %v2842_v36, %v2839_v63  ;;  %v2591_v4 = vrot.slane %v2486_v56, 5  ;;  %v1991_v3 = vld [vmem:[#allocation2 + $0x38] sm:$0x1]  ;;  %v2594_v25 = vrot.slane %v2487_v10, 5 }
 0x180   : > { %17324 = vst [vmem:[#allocation35_spill] sm:$0xff] %v15246_v53  ;;  %v2853_v43 = vor.u32 %v2852_v41, %v2849_v27  ;;  %v2080_v33 = vshrl.u32 %v1989_v6, 16  ;;  %v2083_v8 = vshll.u32 %v1989_v6, 16  ;;  %v3318_v17 = vld [vmem:[#allocation2 + $0x3c] sm:$0xf]  ;;  %v2089_v41 = vshll.u32 %v1990_v40, 16 }
 0x181   : > { %v13674_v38 = vld [vmem:[#allocation3 + $0x54] sm:$0xf]  ;;  %v11850_v50 = vld [vmem:[#allocation3 + $0x74] sm:$0xf0]  ;;  %v2844_v12 = vsel %vm14693_vm7, %v2835_v13, %v2843_v48  ;;  %v2845_v11 = vrot.slane %v2843_v48, 4  ;;  %v2592_v57 = vsel %vm14718_vm13, %v11772_v51, %v2591_v4  ;;  %v2593_v31 = vrot.slane %v2591_v4, 4  ;;  %v6240_v1 = vpop.f32.mrf.mxu1  ;;  %6826 = vmatpush.bf16.msra.mxu0 %v13877_v37 }
 0x182   : > { %v3319_v29 = vld [vmem:[#allocation2 + $0x40] sm:$0xf]  ;;  %3281 = vst [vmem:[#allocation3 + $0x5c] sm:$0xf] %v2844_v12  ;;  %v2082_v56 = vrot.slane %v2080_v33, 4  ;;  %v2085_v18 = vrot.slane %v2083_v8, 5  ;;  %6481 = vmatmul.bf16.gmra.mxu0 %v11857_v7  ;;  %v11853_v27 = vor.u32 %v13674_v38, %v11850_v50  ;;  %v6241_v8 = vadd.f32 %v6240_v1, %v6151_v26 }
 0x183   : > { %v2854_v10 = vsel %vm14693_vm7, %v2845_v11, %v2853_v43  ;;  %v2595_v6 = vsel %vm14718_vm13, %v2593_v31, %v2594_v25  ;;  %2723 = vst [vmem:[#allocation3 + $0xa0] sm:$0xf] %v2592_v57  ;;  %v2093_v13 = vshrl.u32 %v1990_v40, 16  ;;  %v2099_v63 = vshll.u32 %v1991_v3, 16  ;;  %v3320_v36 = vld [vmem:[#allocation2 + $0x44] sm:$0x1] }
 0x184   : > { %v11864_v52 = vld [vmem:[#allocation3 + $0x60] sm:$0xf]  ;;  %3282 = vst [vmem:[#allocation3 + $0x80] sm:$0xf] %v2854_v10  ;;  %v2086_v48 = vor.u32 %v2085_v18, %v2082_v56  ;;  %v2091_v51 = vrot.slane %v2089_v41, 5  ;;  %v6280_v4 = vpop.f32.mrf.mxu3  ;;  %v3409_v33 = vshrl.u32 %v3318_v17, 16 }
 0x185   : > { %2724 = vst [vmem:[#allocation3 + $0xc4] sm:$0xf] %v2595_v6  ;;  %v2095_v7 = vrot.slane %v2093_v13, 4  ;;  %v2101_v12 = vrot.slane %v2099_v63, 5  ;;  %v15257_v43 = vadd.f32 %v6280_v4, %v15136_v55  ;;  %v2757_v25 = vld [vmem:[#allocation2 + $0x30] sm:$0xe] }
 0x186   : > { %v13680_v11 = vld [vmem:[#allocation3 + $0x80] sm:$0xf0]  ;;  %v2087_v40 = vrot.slane %v2086_v48, 4  ;;  %v3411_v3 = vrot.slane %v3409_v33, 4  ;;  %v3412_v57 = vshll.u32 %v3318_v17, 16  ;;  %v3418_v50 = vshll.u32 %v3319_v29, 16  ;;  %v6329_v1 = vpop.f32.mrf.mxu2  ;;  %v15261_v48 = vpop.f32.mrf.mxu0 }
 0x187   : > { %v11865_v38 = vor.u32 %v13680_v11, %v11864_v52  ;;  %v2096_v31 = vor.u32 %v2095_v7, %v2091_v51  ;;  %v3422_v10 = vshrl.u32 %v3319_v29, 16  ;;  %v3428_v56 = vshll.u32 %v3320_v36, 16  ;;  %v2758_v6 = vld [vmem:[#allocation2 + $0x34] sm:$0xf]  ;;  %17325 = vst [vmem:[#allocation36_spill] sm:$0xff] %v15261_v48 }
 0x188   : > { %v2092_v18 = vsel %vm14634_vm2, %v2087_v40, %v2091_v51  ;;  %v3414_v26 = vrot.slane %v3412_v57, 5  ;;  %v3420_v41 = vrot.slane %v3418_v50, 5  ;;  %v2856_v13 = vshrl.u32 %v2757_v25, 16  ;;  %v2759_v4 = vld [vmem:[#allocation2 + $0x38] sm:$0x3] }
 0x189   : > { %6392 = vmatmul.bf16.gmra.mxu3 %v11853_v27  ;;  %6659 = vmatmul.bf16.gmra.mxu2 %v11865_v38  ;;  %v13675_v55 = vld [vmem:[#allocation3 + $0x5c] sm:$0xf]  ;;  %v2097_v63 = vrot.slane %v2096_v31, 4  ;;  %2451 = vst [vmem:[#allocation3 + $0x9c] sm:$0xf] %v2092_v18  ;;  %v3424_v17 = vrot.slane %v3422_v10, 4  ;;  %v15263_v52 = vadd.f32 %v6329_v1, %v6241_v8  ;;  %v15267_v31 = vpop.f32.mrf.mxu1 }
 0x18a   : > { %v3415_v29 = vor.u32 %v3414_v26, %v3411_v3  ;;  %v3430_v36 = vrot.slane %v3428_v56, 5  ;;  %v2858_v33 = vrot.slane %v2856_v13, 5  ;;  %v11892_v7 = vld [vmem:[#allocation3 + $0xa0] sm:$0xf]  ;;  %v2859_v40 = vshll.u32 %v2757_v25, 16  ;;  %17326 = vst [vmem:[#allocation37_spill] sm:$0xff] %v15267_v31 }
 0x18b   : > { %v11858_v51 = vld [vmem:[#allocation3 + $0x7c] sm:$0xf0]  ;;  %v2102_v11 = vsel %vm14634_vm2, %v2097_v63, %v2101_v12  ;;  %v3425_v27 = vor.u32 %v3424_v17, %v3420_v41  ;;  %v2865_v57 = vshrl.u32 %v2758_v6, 16  ;;  %v2868_v8 = vshll.u32 %v2758_v6, 16  ;;  %v2488_v56 = vld [vmem:[#allocation2 + $0x3c] sm:$0xe] }
 0x18c   : > { %v11861_v50 = vor.u32 %v13675_v55, %v11858_v51  ;;  %v13688_v38 = vld [vmem:[#allocation3 + $0xc0] sm:$0xf0]  ;;  %2452 = vst [vmem:[#allocation3 + $0xc0] sm:$0xf] %v2102_v11  ;;  %v3416_v10 = vrot.slane %v3415_v29, 4  ;;  %v2861_v3 = vrot.slane %v2859_v40, 6  ;;  %v15273_v40 = vpop.f32.mrf.mxu3 }
 0x18d   : > { %v3426_v18 = vrot.slane %v3425_v27, 4  ;;  %v2489_v26 = vld [vmem:[#allocation2 + $0x40] sm:$0xf]  ;;  %v2867_v1 = vrot.slane %v2865_v57, 5  ;;  %v2870_v12 = vrot.slane %v2868_v8, 6  ;;  %v2875_v63 = vshrl.u32 %v2759_v4, 16 }
 0x18e   : > { %6570 = vmatmul.bf16.gmra.mxu1 %v11861_v50  ;;  %v3421_v13 = vsel %vm14634_vm2, %v3416_v10, %v3420_v41  ;;  %v2490_v25 = vld [vmem:[#allocation2 + $0x44] sm:$0x1]  ;;  %v11893_v17 = vor.u32 %v13688_v38, %v11892_v7  ;;  %v2862_v51 = vor.u32 %v2861_v3, %v2858_v33  ;;  %v2878_v29 = vshll.u32 %v2759_v4, 16  ;;  %v1992_v6 = vld [vmem:[#allocation2 + $0x3c] sm:$0xf]  ;;  %v15275_v57 = vpop.f32.mrf.mxu2 }
 0x18f   : > { %v3431_v55 = vsel %vm14634_vm2, %v3426_v18, %v3430_v36  ;;  %3780 = vst [vmem:[#allocation3 + $0xa8] sm:$0xf] %v3421_v13  ;;  %v2871_v11 = vor.u32 %v2870_v12, %v2867_v1  ;;  %v2877_v27 = vrot.slane %v2875_v63, 5  ;;  %v11773_v50 = vrot.slane %v2488_v56, 9  ;;  %v1993_v31 = vld [vmem:[#allocation2 + $0x40] sm:$0xf]  ;;  %v6156_v1 = vpop.f32.mrf.mxu0 }
 0x190   : > { %3781 = vst [vmem:[#allocation3 + $0xcc] sm:$0xf] %v3431_v55  ;;  %v13683_v41 = vld [vmem:[#allocation3 + $0x9c] sm:$0xf]  ;;  %v2863_v10 = vrot.slane %v2862_v51, 4  ;;  %v2880_v8 = vrot.slane %v2878_v29, 6 }
 0x191   : > { %17327 = vst [vmem:[#allocation38_spill] sm:$0xff] %v15275_v57  ;;  %v2598_v7 = vrot.slane %v2489_v26, 5  ;;  %v2601_v38 = vrot.slane %v2490_v25, 5  ;;  %v2873_v48 = vrot.slane %v2871_v11, 4  ;;  %v1994_v36 = vld [vmem:[#allocation2 + $0x44] sm:$0x1]  ;;  %v6245_v26 = vpop.f32.mrf.mxu1 }
 0x192   : > { %v2104_v18 = vshrl.u32 %v1992_v6, 16  ;;  %v2107_v33 = vshll.u32 %v1992_v6, 16  ;;  %6486 = vmatmul.bf16.gmra.mxu0 %v11893_v17  ;;  %v2872_v3 = vsel %vm14693_vm7, %v2863_v10, %v2871_v11  ;;  %v2881_v13 = vor.u32 %v2880_v8, %v2877_v27  ;;  %v3321_v63 = vld [vmem:[#allocation2 + $0x48] sm:$0xf]  ;;  %v3322_v57 = vld [vmem:[#allocation2 + $0x4c] sm:$0xf] }
 0x193   : > { %v11886_v4 = vld [vmem:[#allocation3 + $0xbc] sm:$0xf0]  ;;  %v2599_v56 = vsel %vm14718_vm13, %v11773_v50, %v2598_v7  ;;  %v2600_v12 = vrot.slane %v2598_v7, 4  ;;  %3283 = vst [vmem:[#allocation3 + $0xa4] sm:$0xf] %v2872_v3  ;;  %v2113_v29 = vshll.u32 %v1993_v31, 16  ;;  %v6246_v6 = vadd.f32 %v6245_v26, %v6156_v1 }
 0x194   : > { %v11889_v55 = vor.u32 %v13683_v41, %v11886_v4  ;;  %v2106_v25 = vrot.slane %v2104_v18, 4  ;;  %v2109_v51 = vrot.slane %v2107_v33, 5  ;;  %v2882_v17 = vsel %vm14693_vm7, %v2873_v48, %v2881_v13  ;;  %2725 = vst [vmem:[#allocation3 + $0xe8] sm:$0xf] %v2599_v56  ;;  %v3323_v10 = vld [vmem:[#allocation2 + $0x50] sm:$0x1] }
 0x195   : > { %v2602_v11 = vsel %vm14718_vm13, %v2600_v12, %v2601_v38  ;;  %v2117_v27 = vshrl.u32 %v1993_v31, 16  ;;  %3284 = vst [vmem:[#allocation3 + $0xc8] sm:$0xf] %v2882_v17  ;;  %v2115_v41 = vrot.slane %v2113_v29, 5  ;;  %v2123_v7 = vshll.u32 %v1994_v36, 16  ;;  %v13869_v26 = vld [vmem:[#allocation8 + $0x1e8] sm:$0xff] }
 0x196   : > { %v11900_v50 = vld [vmem:[#allocation3 + $0xa8] sm:$0xf]  ;;  %v2110_v8 = vor.u32 %v2109_v51, %v2106_v25  ;;  %2726 = vst [vmem:[#allocation3 + $0x10c] sm:$0xf] %v2602_v11  ;;  %v3433_v33 = vshrl.u32 %v3321_v63, 16  ;;  %v3436_v48 = vshll.u32 %v3321_v63, 16  ;;  %v6334_v1 = vpop.f32.mrf.mxu2  ;;  %v6285_v51 = vpop.f32.mrf.mxu3  ;;  %6737 = vmatpush.bf16.msra.mxu3 %v13869_v26 }
 0x197   : > { %v13689_v4 = vld [vmem:[#allocation3 + $0xc8] sm:$0xf0]  ;;  %v2119_v18 = vrot.slane %v2117_v27, 4  ;;  %v2125_v60 = vrot.slane %v2123_v7, 5  ;;  %v3442_v56 = vshll.u32 %v3322_v57, 16  ;;  %v3446_v31 = vshrl.u32 %v3322_v57, 16 }
 0x198   : > { %v11901_v3 = vor.u32 %v13689_v4, %v11900_v50  ;;  %v2111_v53 = vrot.slane %v2110_v8, 4  ;;  %v3435_v38 = vrot.slane %v3433_v33, 4  ;;  %v2760_v12 = vld [vmem:[#allocation2 + $0x3c] sm:$0xe]  ;;  %v15287_v25 = vadd.f32 %v6334_v1, %v6246_v6  ;;  %v2761_v11 = vld [vmem:[#allocation2 + $0x40] sm:$0xf]  ;;  %v15294_v33 = vpop.f32.mrf.mxu0 }
 0x199   : > { %6397 = vmatmul.bf16.gmra.mxu3 %v11889_v55  ;;  %v2120_v13 = vor.u32 %v2119_v18, %v2115_v41  ;;  %v3438_v29 = vrot.slane %v3436_v48, 5  ;;  %v3452_v17 = vshll.u32 %v3323_v10, 16  ;;  %v15290_v55 = vadd.f32 %v6285_v51, %v15172_v44  ;;  %v2762_v57 = vld [vmem:[#allocation2 + $0x44] sm:$0x3]  ;;  %v2492_v6 = vld [vmem:[#allocation2 + $0x4c] sm:$0xf] }
 0x19a   : > { %6664 = vmatmul.bf16.gmra.mxu2 %v11901_v3  ;;  %v2116_v36 = vsel %vm14634_vm2, %v2111_v53, %v2115_v41  ;;  %v13684_v27 = vld [vmem:[#allocation3 + $0xa4] sm:$0xf]  ;;  %v3444_v50 = vrot.slane %v3442_v56, 5  ;;  %v3448_v4 = vrot.slane %v3446_v31, 4  ;;  %v2884_v18 = vshrl.u32 %v2760_v12, 16  ;;  %17328 = vst [vmem:[#allocation39_spill] sm:$0xff] %v15294_v33 }
 0x19b   : > { %v2121_v63 = vrot.slane %v2120_v13, 4  ;;  %2453 = vst [vmem:[#allocation3 + $0xe4] sm:$0xf] %v2116_v36  ;;  %v11928_v8 = vld [vmem:[#allocation3 + $0xe8] sm:$0xf]  ;;  %v3439_v7 = vor.u32 %v3438_v29, %v3435_v38  ;;  %v3454_v3 = vrot.slane %v3452_v17, 5 }
 0x19c   : > { %v2491_v53 = vld [vmem:[#allocation2 + $0x48] sm:$0xe]  ;;  %v11894_v41 = vld [vmem:[#allocation3 + $0xc4] sm:$0xf0]  ;;  %v2887_v48 = vshll.u32 %v2760_v12, 16  ;;  %v2893_v13 = vshrl.u32 %v2761_v11, 16  ;;  %v3449_v26 = vor.u32 %v3448_v4, %v3444_v50 }
 0x19d   : > { %v2126_v10 = vsel %vm14634_vm2, %v2121_v63, %v2125_v60  ;;  %v11897_v44 = vor.u32 %v13684_v27, %v11894_v41  ;;  %v13697_v1 = vld [vmem:[#allocation3 + $0x108] sm:$0xf0]  ;;  %v3440_v56 = vrot.slane %v3439_v7, 4  ;;  %v2886_v36 = vrot.slane %v2884_v18, 5  ;;  %v2493_v61 = vld [vmem:[#allocation2 + $0x50] sm:$0x1]  ;;  %v15298_v27 = vpop.f32.mrf.mxu1 }
 0x19e   : > { %2454 = vst [vmem:[#allocation3 + $0x108] sm:$0xf] %v2126_v10  ;;  %v11929_v38 = vor.u32 %v13697_v1, %v11928_v8  ;;  %v2889_v31 = vrot.slane %v2887_v48, 6  ;;  %v2895_v51 = vrot.slane %v2893_v13, 5  ;;  %v2896_v29 = vshll.u32 %v2761_v11, 16  ;;  %v15302_v48 = vpop.f32.mrf.mxu3 }
 0x19f   : > { %6575 = vmatmul.bf16.gmra.mxu1 %v11897_v44  ;;  %v3445_v60 = vsel %vm14634_vm2, %v3440_v56, %v3444_v50  ;;  %v3450_v63 = vrot.slane %v3449_v26, 4  ;;  %v2903_v17 = vshrl.u32 %v2762_v57, 16  ;;  %v2906_v12 = vshll.u32 %v2762_v57, 16  ;;  %v1995_v33 = vld [vmem:[#allocation2 + $0x48] sm:$0xf]  ;;  %17329 = vst [vmem:[#allocation40_spill] sm:$0xff] %v15298_v27 }
 0x1a0   : > { %3782 = vst [vmem:[#allocation3 + $0xf0] sm:$0xf] %v3445_v60  ;;  %v2890_v7 = vor.u32 %v2889_v31, %v2886_v36  ;;  %v2898_v4 = vrot.slane %v2896_v29, 6  ;;  %v11774_v18 = vrot.slane %v2491_v53, 9  ;;  %v2605_v8 = vrot.slane %v2492_v6, 5 }
 0x1a1   : > { %v3455_v11 = vsel %vm14634_vm2, %v3450_v63, %v3454_v3  ;;  %v2905_v41 = vrot.slane %v2903_v17, 5  ;;  %v2908_v10 = vrot.slane %v2906_v12, 6  ;;  %v1996_v50 = vld [vmem:[#allocation2 + $0x4c] sm:$0xf]  ;;  %v1997_v13 = vld [vmem:[#allocation2 + $0x50] sm:$0x1]  ;;  %v15308_v12 = vpop.f32.mrf.mxu2 }
 0x1a2   : > { %6491 = vmatmul.bf16.gmra.mxu0 %v11929_v38  ;;  %v13692_v57 = vld [vmem:[#allocation3 + $0xe4] sm:$0xf]  ;;  %3783 = vst [vmem:[#allocation3 + $0x114] sm:$0xf] %v3455_v11  ;;  %v2891_v44 = vrot.slane %v2890_v7, 4  ;;  %v2899_v1 = vor.u32 %v2898_v4, %v2895_v51  ;;  %v2606_v56 = vsel %vm14718_vm13, %v11774_v18, %v2605_v8  ;;  %v2607_v37 = vrot.slane %v2605_v8, 4 }
 0x1a3   : > { %v3324_v53 = vld [vmem:[#allocation2 + $0x54] sm:$0xf]  ;;  %v2909_v6 = vor.u32 %v2908_v10, %v2905_v41  ;;  %v2608_v26 = vrot.slane %v2493_v61, 5  ;;  %2727 = vst [vmem:[#allocation3 + $0x130] sm:$0xf] %v2606_v56  ;;  %v2128_v3 = vshrl.u32 %v1995_v33, 16 }
 0x1a4   : > { %v3325_v36 = vld [vmem:[#allocation2 + $0x58] sm:$0xf]  ;;  %v2900_v29 = vsel %vm14693_vm7, %v2891_v44, %v2899_v1  ;;  %v2901_v60 = vrot.slane %v2899_v1, 4  ;;  %v2131_v38 = vshll.u32 %v1995_v33, 16  ;;  %v2137_v63 = vshll.u32 %v1996_v50, 16  ;;  %17330 = vst [vmem:[#allocation41_spill] sm:$0xff] %v15308_v12  ;;  %v6161_v8 = vpop.f32.mrf.mxu0 }
 0x1a5   : > { %v11922_v31 = vld [vmem:[#allocation3 + $0x104] sm:$0xf0]  ;;  %3285 = vst [vmem:[#allocation3 + $0xec] sm:$0xf] %v2900_v29  ;;  %v2609_v51 = vsel %vm14718_vm13, %v2607_v37, %v2608_v26  ;;  %v2130_v7 = vrot.slane %v2128_v3, 4  ;;  %v2141_v4 = vshrl.u32 %v1996_v50, 16  ;;  %v6271_v33 = vadd.f32 %v15200_v0, %v15070_v32 }
 0x1a6   : > { %v11925_v17 = vor.u32 %v13692_v57, %v11922_v31  ;;  %v3326_v61 = vld [vmem:[#allocation2 + $0x5c] sm:$0x1]  ;;  %v2910_v18 = vsel %vm14693_vm7, %v2901_v60, %v2909_v6  ;;  %2728 = vst [vmem:[#allocation3 + $0x154] sm:$0xf] %v2609_v51  ;;  %v2133_v11 = vrot.slane %v2131_v38, 5  ;;  %v2139_v41 = vrot.slane %v2137_v63, 5  ;;  %v6359_v29 = vpop.f32.mrf.mxu3 }
 0x1a7   : > { %v2147_v10 = vshll.u32 %v1997_v13, 16  ;;  %v11936_v57 = vld [vmem:[#allocation3 + $0xf0] sm:$0xf]  ;;  %3286 = vst [vmem:[#allocation3 + $0x110] sm:$0xf] %v2910_v18  ;;  %v2143_v44 = vrot.slane %v2141_v4, 4  ;;  %v15316_v32 = vadd.f32 %v6359_v29, %v6271_v33 }
 0x1a8   : > { %v3457_v1 = vshrl.u32 %v3324_v53, 16  ;;  %v2134_v56 = vor.u32 %v2133_v11, %v2130_v7  ;;  %v3460_v50 = vshll.u32 %v3324_v53, 16  ;;  %v3466_v26 = vshll.u32 %v3325_v36, 16  ;;  %v2763_v3 = vld [vmem:[#allocation2 + $0x48] sm:$0xe] }
 0x1a9   : > { %6402 = vmatmul.bf16.gmra.mxu3 %v11925_v17  ;;  %v2149_v37 = vrot.slane %v2147_v10, 5  ;;  %v13698_v31 = vld [vmem:[#allocation3 + $0x110] sm:$0xf0]  ;;  %v2144_v6 = vor.u32 %v2143_v44, %v2139_v41  ;;  %v3470_v38 = vshrl.u32 %v3325_v36, 16  ;;  %v3476_v63 = vshll.u32 %v3326_v61, 16  ;;  %v6250_v51 = vpop.f32.mrf.mxu1 }
 0x1aa   : > { %v3459_v60 = vrot.slane %v3457_v1, 4  ;;  %v11937_v13 = vor.u32 %v13698_v31, %v11936_v57  ;;  %v2135_v12 = vrot.slane %v2134_v56, 4  ;;  %v3462_v0 = vrot.slane %v3460_v50, 5  ;;  %v2764_v4 = vld [vmem:[#allocation2 + $0x4c] sm:$0xf] }
 0x1ab   : > { %v6251_v18 = vadd.f32 %v6250_v51, %v6161_v8  ;;  %v11964_v17 = vld [vmem:[#allocation3 + $0x130] sm:$0xf]  ;;  %v2145_v7 = vrot.slane %v2144_v6, 4  ;;  %v3468_v11 = vrot.slane %v3466_v26, 5  ;;  %v3472_v53 = vrot.slane %v3470_v38, 4 }
 0x1ac   : > { %v2765_v10 = vld [vmem:[#allocation2 + $0x50] sm:$0x3]  ;;  %6669 = vmatmul.bf16.gmra.mxu2 %v11937_v13  ;;  %v13693_v27 = vld [vmem:[#allocation3 + $0xec] sm:$0xf]  ;;  %v2140_v44 = vsel %vm14634_vm2, %v2135_v12, %v2139_v41  ;;  %v3463_v36 = vor.u32 %v3462_v0, %v3459_v60  ;;  %v3478_v61 = vrot.slane %v3476_v63, 5  ;;  %v2912_v57 = vshrl.u32 %v2763_v3, 16  ;;  %v15324_v2 = vpop.f32.mrf.mxu0 }
 0x1ad   : > { %v2494_v1 = vld [vmem:[#allocation2 + $0x54] sm:$0xe]  ;;  %v13706_v56 = vld [vmem:[#allocation3 + $0x150] sm:$0xf0]  ;;  %v2150_v33 = vsel %vm14634_vm2, %v2145_v7, %v2149_v37  ;;  %2455 = vst [vmem:[#allocation3 + $0x12c] sm:$0xf] %v2140_v44  ;;  %v3473_v8 = vor.u32 %v3472_v53, %v3468_v11 }
 0x1ae   : > { %v2915_v50 = vshll.u32 %v2763_v3, 16  ;;  %v2921_v31 = vshrl.u32 %v2764_v4, 16  ;;  %v11930_v26 = vld [vmem:[#allocation3 + $0x10c] sm:$0xf0]  ;;  %v11965_v6 = vor.u32 %v13706_v56, %v11964_v17  ;;  %2456 = vst [vmem:[#allocation3 + $0x150] sm:$0xf] %v2150_v33  ;;  %v6339_v51 = vpop.f32.mrf.mxu2 }
 0x1af   : > { %v3464_v29 = vrot.slane %v3463_v36, 4  ;;  %v2914_v38 = vrot.slane %v2912_v57, 5  ;;  %v11933_v13 = vor.u32 %v13693_v27, %v11930_v26  ;;  %v3474_v12 = vrot.slane %v3473_v8, 4  ;;  %v2495_v63 = vld [vmem:[#allocation2 + $0x58] sm:$0xf]  ;;  %17331 = vst [vmem:[#allocation42_spill] sm:$0xff] %v15324_v2 }
 0x1b0   : > { %v2917_v41 = vrot.slane %v2915_v50, 6  ;;  %v2923_v60 = vrot.slane %v2921_v31, 5  ;;  %v15322_v0 = vadd.f32 %v6339_v51, %v6251_v18  ;;  %v2924_v3 = vshll.u32 %v2764_v4, 16  ;;  %v2496_v53 = vld [vmem:[#allocation2 + $0x5c] sm:$0x1] }
 0x1b1   : > { %v3469_v37 = vsel %vm14634_vm2, %v3464_v29, %v3468_v11  ;;  %v2931_v7 = vshrl.u32 %v2765_v10, 16  ;;  %v1998_v17 = vld [vmem:[#allocation2 + $0x54] sm:$0xf]  ;;  %6580 = vmatmul.bf16.gmra.mxu1 %v11933_v13  ;;  %v3479_v27 = vsel %vm14634_vm2, %v3474_v12, %v3478_v61  ;;  %v2934_v36 = vshll.u32 %v2765_v10, 16  ;;  %v1999_v56 = vld [vmem:[#allocation2 + $0x58] sm:$0xf]  ;;  %v15330_v18 = vpop.f32.mrf.mxu1 }
 0x1b2   : > { %3784 = vst [vmem:[#allocation3 + $0x138] sm:$0xf] %v3469_v37  ;;  %v2918_v44 = vor.u32 %v2917_v41, %v2914_v38  ;;  %v11775_v57 = vrot.slane %v2494_v1, 9  ;;  %6496 = vmatmul.bf16.gmra.mxu0 %v11965_v6  ;;  %v2926_v33 = vrot.slane %v2924_v3, 6  ;;  %v2612_v11 = vrot.slane %v2495_v63, 5 }
 0x1b3   : > { %17332 = vst [vmem:[#allocation43_spill] sm:$0xff] %v15330_v18  ;;  %v2933_v8 = vrot.slane %v2931_v7, 5  ;;  %v2936_v50 = vrot.slane %v2934_v36, 6  ;;  %v2615_v31 = vrot.slane %v2496_v53, 5  ;;  %v2000_v26 = vld [vmem:[#allocation2 + $0x5c] sm:$0x1] }
 0x1b4   : > { %3785 = vst [vmem:[#allocation3 + $0x15c] sm:$0xf] %v3479_v27  ;;  %v2919_v4 = vrot.slane %v2918_v44, 4  ;;  %v13701_v29 = vld [vmem:[#allocation3 + $0x12c] sm:$0xf]  ;;  %v2927_v13 = vor.u32 %v2926_v33, %v2923_v60  ;;  %v2613_v61 = vsel %vm14718_vm13, %v11775_v57, %v2612_v11  ;;  %v2614_v38 = vrot.slane %v2612_v11, 4 }
 0x1b5   : > { %v2152_v10 = vshrl.u32 %v1998_v17, 16  ;;  %v3327_v1 = vld [vmem:[#allocation2 + $0x60] sm:$0xf]  ;;  %v2937_v6 = vor.u32 %v2936_v50, %v2933_v8  ;;  %2729 = vst [vmem:[#allocation3 + $0x178] sm:$0xf] %v2613_v61  ;;  %v2155_v12 = vshll.u32 %v1998_v17, 16 }
 0x1b6   : > { %v11958_v51 = vld [vmem:[#allocation3 + $0x14c] sm:$0xf0]  ;;  %v2161_v41 = vshll.u32 %v1999_v56, 16  ;;  %v2928_v63 = vsel %vm14693_vm7, %v2919_v4, %v2927_v13  ;;  %v2929_v3 = vrot.slane %v2927_v13, 4  ;;  %v2616_v7 = vsel %vm14718_vm13, %v2614_v38, %v2615_v31  ;;  %v3328_v60 = vld [vmem:[#allocation2 + $0x64] sm:$0xf]  ;;  %v15338_v53 = vpop.f32.mrf.mxu2  ;;  %v15342_v31 = vpop.f32.mrf.mxu3 }
 0x1b7   : > { %v11961_v37 = vor.u32 %v13701_v29, %v11958_v51  ;;  %17333 = vst [vmem:[#allocation44_spill] sm:$0xff] %v15338_v53  ;;  %v2154_v27 = vrot.slane %v2152_v10, 4  ;;  %v2157_v44 = vrot.slane %v2155_v12, 5  ;;  %v2165_v57 = vshrl.u32 %v1999_v56, 16  ;;  %v3329_v33 = vld [vmem:[#allocation2 + $0x68] sm:$0x1]  ;;  %v6166_v51 = vpop.f32.mrf.mxu0 }
 0x1b8   : > { %3287 = vst [vmem:[#allocation3 + $0x134] sm:$0xf] %v2928_v63  ;;  %v2163_v36 = vrot.slane %v2161_v41, 5  ;;  %v2766_v8 = vld [vmem:[#allocation2 + $0x54] sm:$0xe]  ;;  %v2938_v11 = vsel %vm14693_vm7, %v2929_v3, %v2937_v6  ;;  %v2171_v4 = vshll.u32 %v2000_v26, 16 }
 0x1b9   : > { %6407 = vmatmul.bf16.gmra.mxu3 %v11961_v37  ;;  %v11972_v17 = vld [vmem:[#allocation3 + $0x138] sm:$0xf]  ;;  %2730 = vst [vmem:[#allocation3 + $0x19c] sm:$0xf] %v2616_v7  ;;  %v3481_v50 = vshrl.u32 %v3327_v1, 16  ;;  %v2158_v13 = vor.u32 %v2157_v44, %v2154_v27  ;;  %v2167_v61 = vrot.slane %v2165_v57, 4  ;;  %v6255_v56 = vpop.f32.mrf.mxu1 }
 0x1ba   : > { %3288 = vst [vmem:[#allocation3 + $0x158] sm:$0xf] %v2938_v11  ;;  %v3484_v38 = vshll.u32 %v3327_v1, 16  ;;  %v2173_v12 = vrot.slane %v2171_v4, 5  ;;  %v3490_v37 = vshll.u32 %v3328_v60, 16  ;;  %v6256_v63 = vadd.f32 %v6255_v56, %v6166_v51 }
 0x1bb   : > { %v13707_v29 = vld [vmem:[#allocation3 + $0x158] sm:$0xf0]  ;;  %17334 = vst [vmem:[#allocation45_spill] sm:$0xff] %v15342_v31  ;;  %v3483_v41 = vrot.slane %v3481_v50, 4  ;;  %v2159_v53 = vrot.slane %v2158_v13, 4  ;;  %v2168_v18 = vor.u32 %v2167_v61, %v2163_v36  ;;  %v3494_v3 = vshrl.u32 %v3328_v60, 16 }
 0x1bc   : > { %v11973_v10 = vor.u32 %v13707_v29, %v11972_v17  ;;  %v3486_v6 = vrot.slane %v3484_v38, 5  ;;  %v3492_v26 = vrot.slane %v3490_v37, 5  ;;  %v3500_v7 = vshll.u32 %v3329_v33, 16  ;;  %v2767_v11 = vld [vmem:[#allocation2 + $0x58] sm:$0xf]  ;;  %v13876_v37 = vld [vmem:[#allocation8 + $0x220] sm:$0xff] }
 0x1bd   : > { %v2940_v2 = vshrl.u32 %v2766_v8, 16  ;;  %v12000_v31 = vld [vmem:[#allocation3 + $0x178] sm:$0xf]  ;;  %v2164_v1 = vsel %vm14634_vm2, %v2159_v53, %v2163_v36  ;;  %v2169_v27 = vrot.slane %v2168_v18, 4  ;;  %v2768_v57 = vld [vmem:[#allocation2 + $0x5c] sm:$0x3]  ;;  %v6276_v4 = vadd.f32 %v15228_v28, %v15098_v34  ;;  %6827 = vmatpush.bf16.msra.mxu0 %v13876_v37 }
 0x1be   : > { %6674 = vmatmul.bf16.gmra.mxu2 %v11973_v10  ;;  %v3487_v44 = vor.u32 %v3486_v6, %v3483_v41  ;;  %v2943_v17 = vshll.u32 %v2766_v8, 16  ;;  %2457 = vst [vmem:[#allocation3 + $0x174] sm:$0xf] %v2164_v1  ;;  %v3496_v29 = vrot.slane %v3494_v3, 4  ;;  %v3502_v13 = vrot.slane %v3500_v7, 5  ;;  %v6344_v38 = vpop.f32.mrf.mxu2  ;;  %v13868_v18 = vld [vmem:[#allocation8 + $0x1e0] sm:$0xff] }
 0x1bf   : > { %v13702_v50 = vld [vmem:[#allocation3 + $0x134] sm:$0xf]  ;;  %v2497_v61 = vld [vmem:[#allocation2 + $0x60] sm:$0xe]  ;;  %v2174_v33 = vsel %vm14634_vm2, %v2169_v27, %v2173_v12  ;;  %v2942_v51 = vrot.slane %v2940_v2, 5  ;;  %v15350_v8 = vadd.f32 %v6344_v38, %v6256_v63  ;;  %v2949_v28 = vshrl.u32 %v2767_v11, 16  ;;  %6738 = vmatpush.bf16.msra.mxu3 %v13868_v18  ;;  %v15360_v18 = vpop.f32.mrf.mxu0 }
 0x1c0   : > { %v13715_v60 = vld [vmem:[#allocation3 + $0x198] sm:$0xf0]  ;;  %v3488_v10 = vrot.slane %v3487_v44, 4  ;;  %v2945_v53 = vrot.slane %v2943_v17, 6  ;;  %2458 = vst [vmem:[#allocation3 + $0x198] sm:$0xf] %v2174_v33  ;;  %v3497_v34 = vor.u32 %v3496_v29, %v3492_v26 }
 0x1c1   : > { %v11966_v36 = vld [vmem:[#allocation3 + $0x154] sm:$0xf0]  ;;  %v12001_v56 = vor.u32 %v13715_v60, %v12000_v31  ;;  %v2498_v41 = vld [vmem:[#allocation2 + $0x64] sm:$0xf]  ;;  %v2952_v12 = vshll.u32 %v2767_v11, 16  ;;  %v2951_v31 = vrot.slane %v2949_v28, 5 }
 0x1c2   : > { %v11969_v6 = vor.u32 %v13702_v50, %v11966_v36  ;;  %v3493_v3 = vsel %vm14634_vm2, %v3488_v10, %v3492_v26  ;;  %v2946_v7 = vor.u32 %v2945_v53, %v2942_v51  ;;  %v2499_v1 = vld [vmem:[#allocation2 + $0x68] sm:$0x1]  ;;  %v2001_v27 = vld [vmem:[#allocation2 + $0x60] sm:$0xf]  ;;  %v3498_v2 = vrot.slane %v3497_v34, 4  ;;  %v6364_v17 = vpop.f32.mrf.mxu3  ;;  %v15356_v26 = vpop.f32.mrf.mxu1  ;;  %17336 = vst [vmem:[#allocation47_spill] sm:$0xff] %v15360_v18 }
 0x1c3   : > { %6501 = vmatmul.bf16.gmra.mxu0 %v12001_v56  ;;  %3786 = vst [vmem:[#allocation3 + $0x180] sm:$0xf] %v3493_v3  ;;  %v2959_v44 = vshrl.u32 %v2768_v57, 16  ;;  %v2962_v63 = vshll.u32 %v2768_v57, 16  ;;  %v2954_v60 = vrot.slane %v2952_v12, 6  ;;  %v11776_v33 = vrot.slane %v2497_v61, 9 }
 0x1c4   : > { %6585 = vmatmul.bf16.gmra.mxu1 %v11969_v6  ;;  %v2947_v29 = vrot.slane %v2946_v7, 4  ;;  %v2002_v50 = vld [vmem:[#allocation2 + $0x64] sm:$0xf]  ;;  %v15354_v38 = vadd.f32 %v6364_v17, %v6276_v4  ;;  %17335 = vst [vmem:[#allocation46_spill] sm:$0xff] %v15356_v26  ;;  %v3503_v11 = vsel %vm14634_vm2, %v3498_v2, %v3502_v13  ;;  %v2619_v36 = vrot.slane %v2498_v41, 5 }
 0x1c5   : > { %v2961_v10 = vrot.slane %v2959_v44, 5  ;;  %v2964_v51 = vrot.slane %v2962_v63, 6  ;;  %v13710_v53 = vld [vmem:[#allocation3 + $0x174] sm:$0xf]  ;;  %3787 = vst [vmem:[#allocation3 + $0x1a4] sm:$0xf] %v3503_v11  ;;  %v2955_v57 = vor.u32 %v2954_v60, %v2951_v31 }
 0x1c6   : > { %v2622_v56 = vrot.slane %v2499_v1, 5  ;;  %v2003_v34 = vld [vmem:[#allocation2 + $0x68] sm:$0x1]  ;;  %v2176_v28 = vshrl.u32 %v2001_v27, 16  ;;  %v2179_v37 = vshll.u32 %v2001_v27, 16  ;;  %v2185_v4 = vshll.u32 %v2002_v50, 16 }
 0x1c7   : > { %v2965_v61 = vor.u32 %v2964_v51, %v2961_v10  ;;  %v3330_v6 = vld [vmem:[#allocation2 + $0x6c] sm:$0xf]  ;;  %v11994_v3 = vld [vmem:[#allocation3 + $0x194] sm:$0xf0]  ;;  %v2956_v7 = vsel %vm14693_vm7, %v2947_v29, %v2955_v57  ;;  %v2957_v13 = vrot.slane %v2955_v57, 4  ;;  %v2620_v12 = vsel %vm14718_vm13, %v11776_v33, %v2619_v36 }
 0x1c8   : > { %v2621_v2 = vrot.slane %v2619_v36, 4  ;;  %v3331_v44 = vld [vmem:[#allocation2 + $0x70] sm:$0xf]  ;;  %v11997_v63 = vor.u32 %v13710_v53, %v11994_v3  ;;  %3289 = vst [vmem:[#allocation3 + $0x17c] sm:$0xf] %v2956_v7  ;;  %v2178_v41 = vrot.slane %v2176_v28, 4 }
 0x1c9   : > { %v2181_v1 = vrot.slane %v2179_v37, 5  ;;  %v3332_v31 = vld [vmem:[#allocation2 + $0x74] sm:$0x1]  ;;  %v2966_v27 = vsel %vm14693_vm7, %v2957_v13, %v2965_v61  ;;  %2731 = vst [vmem:[#allocation3 + $0x1c0] sm:$0xf] %v2620_v12  ;;  %v2187_v29 = vrot.slane %v2185_v4, 5 }
 0x1ca   : > { %v12008_v17 = vld [vmem:[#allocation3 + $0x180] sm:$0xf]  ;;  %v2623_v60 = vsel %vm14718_vm13, %v2621_v2, %v2622_v56  ;;  %v2189_v11 = vshrl.u32 %v2002_v50, 16  ;;  %v2769_v10 = vld [vmem:[#allocation2 + $0x60] sm:$0xe]  ;;  %6412 = vmatmul.bf16.gmra.mxu3 %v11997_v63  ;;  %v2195_v51 = vshll.u32 %v2003_v34, 16  ;;  %v15370_v36 = vpop.f32.mrf.mxu3  ;;  %v15372_v50 = vpop.f32.mrf.mxu2 }
 0x1cb   : > { %3290 = vst [vmem:[#allocation3 + $0x1a0] sm:$0xf] %v2966_v27  ;;  %v2182_v33 = vor.u32 %v2181_v1, %v2178_v41  ;;  %v3505_v53 = vshrl.u32 %v3330_v6, 16  ;;  %v3508_v57 = vshll.u32 %v3330_v6, 16  ;;  %v3514_v37 = vshll.u32 %v3331_v44, 16 }
 0x1cc   : > { %2732 = vst [vmem:[#allocation3 + $0x1e4] sm:$0xf] %v2623_v60  ;;  %v2191_v28 = vrot.slane %v2189_v11, 4  ;;  %v3518_v3 = vshrl.u32 %v3331_v44, 16  ;;  %v3524_v61 = vshll.u32 %v3332_v31, 16  ;;  %v2197_v56 = vrot.slane %v2195_v51, 5 }
 0x1cd   : > { %v13716_v7 = vld [vmem:[#allocation3 + $0x1a0] sm:$0xf0]  ;;  %v2183_v13 = vrot.slane %v2182_v33, 4  ;;  %v3507_v12 = vrot.slane %v3505_v53, 4  ;;  %17337 = vst [vmem:[#allocation48_spill] sm:$0xff] %v15372_v50  ;;  %v3510_v63 = vrot.slane %v3508_v57, 5 }
 0x1ce   : > { %v12009_v4 = vor.u32 %v13716_v7, %v12008_v17  ;;  %v2192_v2 = vor.u32 %v2191_v28, %v2187_v29  ;;  %v3516_v41 = vrot.slane %v3514_v37, 5  ;;  %v2770_v34 = vld [vmem:[#allocation2 + $0x64] sm:$0xf]  ;;  %v6260_v1 = vpop.f32.mrf.mxu1  ;;  %v3520_v27 = vrot.slane %v3518_v3, 4  ;;  %v2771_v17 = vld [vmem:[#allocation2 + $0x68] sm:$0x3] }
 0x1cf   : > { %v2188_v6 = vsel %vm14634_vm2, %v2183_v13, %v2187_v29  ;;  %v3526_v60 = vrot.slane %v3524_v61, 5  ;;  %v2968_v11 = vshrl.u32 %v2769_v10, 16  ;;  %v13711_v44 = vld [vmem:[#allocation3 + $0x17c] sm:$0xf]  ;;  %v6171_v31 = vpop.f32.mrf.mxu0  ;;  %v3511_v51 = vor.u32 %v3510_v63, %v3507_v12  ;;  %v2501_v18 = vld [vmem:[#allocation2 + $0x70] sm:$0xf] }
 0x1d0   : > { %6679 = vmatmul.bf16.gmra.mxu2 %v12009_v4  ;;  %v2193_v33 = vrot.slane %v2192_v2, 4  ;;  %2459 = vst [vmem:[#allocation3 + $0x1bc] sm:$0xf] %v2188_v6  ;;  %v2971_v53 = vshll.u32 %v2769_v10, 16  ;;  %v6261_v7 = vadd.f32 %v6260_v1, %v6171_v31  ;;  %v12036_v28 = vld [vmem:[#allocation3 + $0x1c0] sm:$0xf]  ;;  %v3521_v57 = vor.u32 %v3520_v27, %v3516_v41 }
 0x1d1   : > { %v2970_v37 = vrot.slane %v2968_v11, 5  ;;  %v2977_v50 = vshrl.u32 %v2770_v34, 16  ;;  %v2500_v26 = vld [vmem:[#allocation2 + $0x6c] sm:$0xe]  ;;  %v3512_v3 = vrot.slane %v3511_v51, 4  ;;  %v2980_v13 = vshll.u32 %v2770_v34, 16 }
 0x1d2   : > { %v12002_v20 = vld [vmem:[#allocation3 + $0x19c] sm:$0xf0]  ;;  %v2198_v29 = vsel %vm14634_vm2, %v2193_v33, %v2197_v56  ;;  %v2973_v61 = vrot.slane %v2971_v53, 6  ;;  %v3522_v12 = vrot.slane %v3521_v57, 4  ;;  %v6369_v1 = vpop.f32.mrf.mxu3  ;;  %v2502_v31 = vld [vmem:[#allocation2 + $0x74] sm:$0x1] }
 0x1d3   : > { %v12005_v4 = vor.u32 %v13711_v44, %v12002_v20  ;;  %v13724_v2 = vld [vmem:[#allocation3 + $0x1e0] sm:$0xf0]  ;;  %2460 = vst [vmem:[#allocation3 + $0x1e0] sm:$0xf] %v2198_v29  ;;  %v2979_v63 = vrot.slane %v2977_v50, 5  ;;  %v3517_v6 = vsel %vm14634_vm2, %v3512_v3, %v3516_v41  ;;  %v2982_v11 = vrot.slane %v2980_v13, 6 }
 0x1d4   : > { %v12037_v10 = vor.u32 %v13724_v2, %v12036_v28  ;;  %v2974_v27 = vor.u32 %v2973_v61, %v2970_v37  ;;  %v15381_v56 = vadd.f32 %v6369_v1, %v15257_v43  ;;  %v3527_v20 = vsel %vm14634_vm2, %v3522_v12, %v3526_v60  ;;  %3788 = vst [vmem:[#allocation3 + $0x1c8] sm:$0xf] %v3517_v6  ;;  %v2005_v50 = vld [vmem:[#allocation2 + $0x70] sm:$0xf]  ;;  %v2006_v43 = vld [vmem:[#allocation2 + $0x74] sm:$0x1] }
 0x1d5   : > { %6590 = vmatmul.bf16.gmra.mxu1 %v12005_v4  ;;  %v2987_v34 = vshrl.u32 %v2771_v17, 16  ;;  %v2990_v44 = vshll.u32 %v2771_v17, 16  ;;  %3789 = vst [vmem:[#allocation3 + $0x1ec] sm:$0xf] %v3527_v20  ;;  %v2983_v51 = vor.u32 %v2982_v11, %v2979_v63  ;;  %v11777_v41 = vrot.slane %v2500_v26, 9 }
 0x1d6   : > { %6506 = vmatmul.bf16.gmra.mxu0 %v12037_v10  ;;  %v2975_v33 = vrot.slane %v2974_v27, 4  ;;  %v2626_v53 = vrot.slane %v2501_v18, 5  ;;  %v15385_v28 = vpop.f32.mrf.mxu1  ;;  %v2629_v29 = vrot.slane %v2502_v31, 5  ;;  %v2200_v3 = vshrl.u32 %v2004_v39, 16  ;;  %v3333_v18 = vld [vmem:[#allocation2 + $0x78] sm:$0xf] }
 0x1d7   : > { %17338 = vst [vmem:[#allocation49_spill] sm:$0xff] %v15385_v28  ;;  %v2989_v57 = vrot.slane %v2987_v34, 5  ;;  %v2992_v37 = vrot.slane %v2990_v44, 6  ;;  %v13719_v61 = vld [vmem:[#allocation3 + $0x1bc] sm:$0xf]  ;;  %v6349_v13 = vpop.f32.mrf.mxu2  ;;  %v15387_v60 = vpop.f32.mrf.mxu0  ;;  %v2985_v4 = vrot.slane %v2983_v51, 4 }
 0x1d8   : > { %17339 = vst [vmem:[#allocation50_spill] sm:$0xff] %v15387_v60  ;;  %v2984_v17 = vsel %vm14693_vm7, %v2975_v33, %v2983_v51  ;;  %v2627_v2 = vsel %vm14718_vm13, %v11777_v41, %v2626_v53  ;;  %v2628_v26 = vrot.slane %v2626_v53, 4  ;;  %v15393_v12 = vadd.f32 %v6349_v13, %v6261_v7  ;;  %v3334_v1 = vld [vmem:[#allocation2 + $0x7c] sm:$0xf]  ;;  %v3335_v20 = vld [vmem:[#allocation2 + $0x80] sm:$0x1] }
 0x1d9   : > { %v2993_v63 = vor.u32 %v2992_v37, %v2989_v57  ;;  %3291 = vst [vmem:[#allocation3 + $0x1c4] sm:$0xf] %v2984_v17  ;;  %v2202_v10 = vrot.slane %v2200_v3, 4  ;;  %v2203_v11 = vshll.u32 %v2004_v39, 16  ;;  %v2209_v31 = vshll.u32 %v2005_v50, 16 }
 0x1da   : > { %v12030_v6 = vld [vmem:[#allocation3 + $0x1dc] sm:$0xf0]  ;;  %v2630_v27 = vsel %vm14718_vm13, %v2628_v26, %v2629_v29  ;;  %2733 = vst [vmem:[#allocation3 + $0x208] sm:$0xf] %v2627_v2  ;;  %v2213_v33 = vshrl.u32 %v2005_v50, 16  ;;  %v2219_v7 = vshll.u32 %v2006_v43, 16 }
 0x1db   : > { %v12033_v34 = vor.u32 %v13719_v61, %v12030_v6  ;;  %v2994_v44 = vsel %vm14693_vm7, %v2985_v4, %v2993_v63  ;;  %2734 = vst [vmem:[#allocation3 + $0x22c] sm:$0xf] %v2630_v27  ;;  %v2772_v51 = vld [vmem:[#allocation2 + $0x6c] sm:$0xe]  ;;  %v12044_v41 = vld [vmem:[#allocation3 + $0x1c8] sm:$0xf] }
 0x1dc   : > { %3292 = vst [vmem:[#allocation3 + $0x1e8] sm:$0xf] %v2994_v44  ;;  %v2205_v53 = vrot.slane %v2203_v11, 5  ;;  %v2211_v57 = vrot.slane %v2209_v31, 5  ;;  %v13725_v37 = vld [vmem:[#allocation3 + $0x1e8] sm:$0xf0] }
 0x1dd   : > { %6417 = vmatmul.bf16.gmra.mxu3 %v12033_v34  ;;  %v2215_v3 = vrot.slane %v2213_v33, 4  ;;  %v2221_v29 = vrot.slane %v2219_v7, 5  ;;  %v3529_v13 = vshrl.u32 %v3333_v18, 16  ;;  %v12045_v39 = vor.u32 %v13725_v37, %v12044_v41  ;;  %v2773_v43 = vld [vmem:[#allocation2 + $0x70] sm:$0xf]  ;;  %v13867_v27 = vld [vmem:[#allocation8 + $0x1d8] sm:$0xff] }
 0x1de   : > { %v2206_v17 = vor.u32 %v2205_v53, %v2202_v10  ;;  %v3532_v2 = vshll.u32 %v3333_v18, 16  ;;  %v3538_v61 = vshll.u32 %v3334_v1, 16  ;;  %v6265_v26 = vpop.f32.mrf.mxu1  ;;  %v3542_v63 = vshrl.u32 %v3334_v1, 16  ;;  %v2774_v7 = vld [vmem:[#allocation2 + $0x74] sm:$0x3]  ;;  %6739 = vmatpush.bf16.msra.mxu3 %v13867_v27 }
 0x1df   : > { %v2216_v6 = vor.u32 %v2215_v3, %v2211_v57  ;;  %v3531_v4 = vrot.slane %v3529_v13, 4  ;;  %v3548_v50 = vshll.u32 %v3335_v20, 16  ;;  %v15399_v44 = vpop.f32.mrf.mxu2  ;;  %v6176_v11 = vpop.f32.mrf.mxu0  ;;  %v2996_v28 = vshrl.u32 %v2772_v51, 16  ;;  %v2505_v27 = vld [vmem:[#allocation2 + $0x80] sm:$0x1] }
 0x1e0   : > { %6684 = vmatmul.bf16.gmra.mxu2 %v12045_v39  ;;  %17340 = vst [vmem:[#allocation51_spill] sm:$0xff] %v15399_v44  ;;  %v2207_v31 = vrot.slane %v2206_v17, 4  ;;  %v3534_v34 = vrot.slane %v3532_v2, 5  ;;  %v3540_v33 = vrot.slane %v3538_v61, 5  ;;  %v13720_v41 = vld [vmem:[#allocation3 + $0x1c4] sm:$0xf]  ;;  %v6266_v10 = vadd.f32 %v6265_v26, %v6176_v11  ;;  %v15401_v3 = vpop.f32.mrf.mxu3 }
 0x1e1   : > { %v12072_v18 = vld [vmem:[#allocation3 + $0x208] sm:$0xf]  ;;  %v2217_v53 = vrot.slane %v2216_v6, 4  ;;  %v3544_v37 = vrot.slane %v3542_v63, 4  ;;  %v3550_v39 = vrot.slane %v3548_v50, 5  ;;  %v2998_v44 = vrot.slane %v2996_v28, 5 }
 0x1e2   : > { %v13733_v1 = vld [vmem:[#allocation3 + $0x228] sm:$0xf0]  ;;  %v2212_v20 = vsel %vm14634_vm2, %v2207_v31, %v2211_v57  ;;  %v3535_v13 = vor.u32 %v3534_v34, %v3531_v4  ;;  %v2503_v17 = vld [vmem:[#allocation2 + $0x78] sm:$0xe]  ;;  %v2999_v6 = vshll.u32 %v2772_v51, 16  ;;  %v14031_v11 = vld [vmem:[#allocation10 + $0x38] sm:$0xff] }
 0x1e3   : > { %v12038_v2 = vld [vmem:[#allocation3 + $0x1e4] sm:$0xf0]  ;;  %v12073_v61 = vor.u32 %v13733_v1, %v12072_v18  ;;  %v2222_v60 = vsel %vm14634_vm2, %v2217_v53, %v2221_v29  ;;  %2461 = vst [vmem:[#allocation3 + $0x204] sm:$0xf] %v2212_v20  ;;  %v3545_v26 = vor.u32 %v3544_v37, %v3540_v33  ;;  %v2504_v63 = vld [vmem:[#allocation2 + $0x7c] sm:$0xf]  ;;  %10453 = vmatpush.bf16.msra.mxu1 %v14031_v11 }
 0x1e4   : > { %v12041_v24 = vor.u32 %v13720_v41, %v12038_v2  ;;  %2462 = vst [vmem:[#allocation3 + $0x228] sm:$0xf] %v2222_v60  ;;  %v3536_v62 = vrot.slane %v3535_v13, 4  ;;  %v3005_v59 = vshrl.u32 %v2773_v43, 16  ;;  %v3008_v57 = vshll.u32 %v2773_v43, 16  ;;  %v13875_v4 = vld [vmem:[#allocation8 + $0x218] sm:$0xff] }
 0x1e5   : > { %v3546_v50 = vrot.slane %v3545_v26, 4  ;;  %v3001_v28 = vrot.slane %v2999_v6, 6  ;;  %v3015_v31 = vshrl.u32 %v2774_v7, 16  ;;  %v3018_v34 = vshll.u32 %v2774_v7, 16  ;;  %v2007_v18 = vld [vmem:[#allocation2 + $0x78] sm:$0xf]  ;;  %6828 = vmatpush.bf16.msra.mxu0 %v13875_v4 }
 0x1e6   : > { %6595 = vmatmul.bf16.gmra.mxu1 %v12041_v24  ;;  %6511 = vmatmul.bf16.gmra.mxu0 %v12073_v61  ;;  %v3541_v51 = vsel %vm14634_vm2, %v3536_v62, %v3540_v33  ;;  %v3007_v29 = vrot.slane %v3005_v59, 5  ;;  %v3010_v53 = vrot.slane %v3008_v57, 6  ;;  %v11778_v37 = vrot.slane %v2503_v17, 9  ;;  %v2008_v20 = vld [vmem:[#allocation2 + $0x7c] sm:$0xf] }
 0x1e7   : > { %v3551_v60 = vsel %vm14634_vm2, %v3546_v50, %v3550_v39  ;;  %3790 = vst [vmem:[#allocation3 + $0x210] sm:$0xf] %v3541_v51  ;;  %v3002_v43 = vor.u32 %v3001_v28, %v2998_v44  ;;  %v3017_v41 = vrot.slane %v3015_v31, 5  ;;  %v3020_v1 = vrot.slane %v3018_v34, 6  ;;  %v6354_v7 = vpop.f32.mrf.mxu2  ;;  %v15411_v13 = vpop.f32.mrf.mxu0  ;;  %v2009_v26 = vld [vmem:[#allocation2 + $0x80] sm:$0x1] }
 0x1e8   : > { %17341 = vst [vmem:[#allocation52_spill] sm:$0xff] %v15411_v13  ;;  %v3011_v24 = vor.u32 %v3010_v53, %v3007_v29  ;;  %v2633_v2 = vrot.slane %v2504_v63, 5  ;;  %v2636_v61 = vrot.slane %v2505_v27, 5  ;;  %v2224_v62 = vshrl.u32 %v2007_v18, 16  ;;  %v3336_v39 = vld [vmem:[#allocation2 + $0x84] sm:$0xf] }
 0x1e9   : > { %3791 = vst [vmem:[#allocation3 + $0x234] sm:$0xf] %v3551_v60  ;;  %v15413_v59 = vadd.f32 %v6354_v7, %v6266_v10  ;;  %v3003_v33 = vrot.slane %v3002_v43, 4  ;;  %v3021_v17 = vor.u32 %v3020_v1, %v3017_v41  ;;  %v2227_v63 = vshll.u32 %v2007_v18, 16  ;;  %v3337_v53 = vld [vmem:[#allocation2 + $0x88] sm:$0xf] }
 0x1ea   : > { %v13728_v6 = vld [vmem:[#allocation3 + $0x204] sm:$0xf]  ;;  %v3013_v44 = vrot.slane %v3011_v24, 4  ;;  %v2634_v11 = vsel %vm14718_vm13, %v11778_v37, %v2633_v2  ;;  %v2635_v57 = vrot.slane %v2633_v2, 4  ;;  %v2226_v4 = vrot.slane %v2224_v62, 4 }
 0x1eb   : > { %v12066_v50 = vld [vmem:[#allocation3 + $0x224] sm:$0xf0]  ;;  %v3012_v28 = vsel %vm14693_vm7, %v3003_v33, %v3011_v24  ;;  %2735 = vst [vmem:[#allocation3 + $0x250] sm:$0xf] %v2634_v11  ;;  %v2233_v27 = vshll.u32 %v2008_v20, 16  ;;  %v2237_v29 = vshrl.u32 %v2008_v20, 16 }
 0x1ec   : > { %v12069_v10 = vor.u32 %v13728_v6, %v12066_v50  ;;  %v6374_v31 = vpop.f32.mrf.mxu3  ;;  %v3022_v34 = vsel %vm14693_vm7, %v3013_v44, %v3021_v17  ;;  %3293 = vst [vmem:[#allocation3 + $0x20c] sm:$0xf] %v3012_v28  ;;  %v2637_v51 = vsel %vm14718_vm13, %v2635_v57, %v2636_v61  ;;  %v2229_v60 = vrot.slane %v2227_v63, 5  ;;  %v3338_v18 = vld [vmem:[#allocation2 + $0x8c] sm:$0x1] }
 0x1ed   : > { %v15424_v37 = vadd.f32 %v6374_v31, %v15290_v55  ;;  %3294 = vst [vmem:[#allocation3 + $0x230] sm:$0xf] %v3022_v34  ;;  %v2235_v43 = vrot.slane %v2233_v27, 5  ;;  %v2243_v41 = vshll.u32 %v2009_v26, 16  ;;  %v2775_v1 = vld [vmem:[#allocation2 + $0x78] sm:$0xe] }
 0x1ee   : > { %6422 = vmatmul.bf16.gmra.mxu3 %v12069_v10  ;;  %v12080_v7 = vld [vmem:[#allocation3 + $0x210] sm:$0xf]  ;;  %2736 = vst [vmem:[#allocation3 + $0x274] sm:$0xf] %v2637_v51  ;;  %v2239_v24 = vrot.slane %v2237_v29, 4  ;;  %v3553_v2 = vshrl.u32 %v3336_v39, 16  ;;  %v2230_v33 = vor.u32 %v2229_v60, %v2226_v4  ;;  %v15430_v10 = vpop.f32.mrf.mxu1 }
 0x1ef   : > { %v2245_v17 = vrot.slane %v2243_v41, 5  ;;  %v3556_v61 = vshll.u32 %v3336_v39, 16  ;;  %v3562_v20 = vshll.u32 %v3337_v53, 16  ;;  %v15426_v44 = vpop.f32.mrf.mxu0  ;;  %v3566_v57 = vshrl.u32 %v3337_v53, 16  ;;  %v2776_v50 = vld [vmem:[#allocation2 + $0x7c] sm:$0xf]  ;;  %v15428_v26 = vpop.f32.mrf.mxu2 }
 0x1f0   : > { %v13734_v62 = vld [vmem:[#allocation3 + $0x230] sm:$0xf0]  ;;  %v2240_v55 = vor.u32 %v2239_v24, %v2235_v43  ;;  %v3555_v11 = vrot.slane %v3553_v2, 4  ;;  %17342 = vst [vmem:[#allocation53_spill] sm:$0xff] %v15428_v26  ;;  %v2231_v28 = vrot.slane %v2230_v33, 4  ;;  %v3572_v39 = vshll.u32 %v3338_v18, 16 }
 0x1f1   : > { %v12081_v6 = vor.u32 %v13734_v62, %v12080_v7  ;;  %v3558_v63 = vrot.slane %v3556_v61, 5  ;;  %v3564_v27 = vrot.slane %v3562_v20, 5  ;;  %17343 = vst [vmem:[#allocation54_spill] sm:$0xff] %v15430_v10  ;;  %v3568_v34 = vrot.slane %v3566_v57, 4  ;;  %v2777_v51 = vld [vmem:[#allocation2 + $0x80] sm:$0x3] }
 0x1f2   : > { %v12108_v31 = vld [vmem:[#allocation3 + $0x250] sm:$0xf]  ;;  %v2241_v4 = vrot.slane %v2240_v55, 4  ;;  %v3024_v29 = vshrl.u32 %v2775_v1, 16  ;;  %v2236_v41 = vsel %vm14634_vm2, %v2231_v28, %v2235_v43  ;;  %v3027_v7 = vshll.u32 %v2775_v1, 16 }
 0x1f3   : > { %6689 = vmatmul.bf16.gmra.mxu2 %v12081_v6  ;;  %v13729_v60 = vld [vmem:[#allocation3 + $0x20c] sm:$0xf]  ;;  %v3559_v53 = vor.u32 %v3558_v63, %v3555_v11  ;;  %v3033_v24 = vshrl.u32 %v2776_v50, 16  ;;  %v2506_v2 = vld [vmem:[#allocation2 + $0x84] sm:$0xe]  ;;  %v3569_v6 = vor.u32 %v3568_v34, %v3564_v27  ;;  %v3574_v18 = vrot.slane %v3572_v39, 5 }
 0x1f4   : > { %v2507_v62 = vld [vmem:[#allocation2 + $0x88] sm:$0xf]  ;;  %v12074_v33 = vld [vmem:[#allocation3 + $0x22c] sm:$0xf0]  ;;  %v15434_v61 = vpop.f32.mrf.mxu3  ;;  %v2246_v20 = vsel %vm14634_vm2, %v2241_v4, %v2245_v17  ;;  %2463 = vst [vmem:[#allocation3 + $0x24c] sm:$0xf] %v2236_v41  ;;  %v6213_v57 = vadd.f32 %v15067_v54, %v15065_v58 }
 0x1f5   : > { %v3026_v55 = vrot.slane %v3024_v29, 5  ;;  %v12077_v26 = vor.u32 %v13729_v60, %v12074_v33  ;;  %v13742_v43 = vld [vmem:[#allocation3 + $0x270] sm:$0xf0]  ;;  %2464 = vst [vmem:[#allocation3 + $0x270] sm:$0xf] %v2246_v20  ;;  %v3560_v1 = vrot.slane %v3559_v53, 4 }
 0x1f6   : > { %v3029_v11 = vrot.slane %v3027_v7, 6  ;;  %v12109_v28 = vor.u32 %v13742_v43, %v12108_v31  ;;  %v3570_v63 = vrot.slane %v3569_v6, 4  ;;  %v3035_v10 = vrot.slane %v3033_v24, 5  ;;  %v2508_v22 = vld [vmem:[#allocation2 + $0x8c] sm:$0x1] }
 0x1f7   : > { %v3036_v13 = vshll.u32 %v2776_v50, 16  ;;  %6600 = vmatmul.bf16.gmra.mxu1 %v12077_v26  ;;  %v3565_v17 = vsel %vm14634_vm2, %v3560_v1, %v3564_v27  ;;  %v3043_v34 = vshrl.u32 %v2777_v51, 16  ;;  %v3046_v39 = vshll.u32 %v2777_v51, 16  ;;  %v2010_v29 = vld [vmem:[#allocation2 + $0x84] sm:$0xf]  ;;  %v15442_v58 = vpop.f32.mrf.mxu0 }
 0x1f8   : > { %v3030_v4 = vor.u32 %v3029_v11, %v3026_v55  ;;  %v2011_v41 = vld [vmem:[#allocation2 + $0x88] sm:$0xf]  ;;  %6516 = vmatmul.bf16.gmra.mxu0 %v12109_v28  ;;  %v3575_v54 = vsel %vm14634_vm2, %v3570_v63, %v3574_v18  ;;  %3792 = vst [vmem:[#allocation3 + $0x258] sm:$0xf] %v3565_v17  ;;  %v11779_v60 = vrot.slane %v2506_v2, 9  ;;  %v2640_v50 = vrot.slane %v2507_v62, 5 }
 0x1f9   : > { %v3038_v31 = vrot.slane %v3036_v13, 6  ;;  %3793 = vst [vmem:[#allocation3 + $0x27c] sm:$0xf] %v3575_v54  ;;  %v6655_v26 = vpop.f32.mrf.mxu2  ;;  %v3045_v7 = vrot.slane %v3043_v34, 5  ;;  %v3048_v27 = vrot.slane %v3046_v39, 6  ;;  %v2643_v24 = vrot.slane %v2508_v22, 5 }
 0x1fa   : > { %v3031_v53 = vrot.slane %v3030_v4, 4  ;;  %v6566_v33 = vpop.f32.mrf.mxu1  ;;  %v2641_v20 = vsel %vm14718_vm13, %v11779_v60, %v2640_v50  ;;  %v2642_v6 = vrot.slane %v2640_v50, 4  ;;  %v2012_v55 = vld [vmem:[#allocation2 + $0x8c] sm:$0x1]  ;;  %v2248_v43 = vshrl.u32 %v2010_v29, 16 }
 0x1fb   : > { %v3039_v51 = vor.u32 %v3038_v31, %v3035_v10  ;;  %v3339_v1 = vld [vmem:[#allocation2 + $0x90] sm:$0xf]  ;;  %v15449_v18 = vadd.f32 %v15072_v49, %v6213_v57  ;;  %v13737_v13 = vld [vmem:[#allocation3 + $0x24c] sm:$0xf]  ;;  %v3049_v2 = vor.u32 %v3048_v27, %v3045_v7  ;;  %2737 = vst [vmem:[#allocation3 + $0x298] sm:$0xf] %v2641_v20 }
 0x1fc   : > { %v2251_v62 = vshll.u32 %v2010_v29, 16  ;;  %v2257_v11 = vshll.u32 %v2011_v41, 16  ;;  %v12102_v28 = vld [vmem:[#allocation3 + $0x26c] sm:$0xf0]  ;;  %v6388_v63 = vpop.f32.mrf.mxu3  ;;  %v2644_v17 = vsel %vm14718_vm13, %v2642_v6, %v2643_v24  ;;  %v2250_v4 = vrot.slane %v2248_v43, 4 }
 0x1fd   : > { %v3040_v22 = vsel %vm14693_vm7, %v3031_v53, %v3039_v51  ;;  %v3041_v10 = vrot.slane %v3039_v51, 4  ;;  %v3340_v34 = vld [vmem:[#allocation2 + $0x94] sm:$0xf]  ;;  %v12105_v39 = vor.u32 %v13737_v13, %v12102_v28  ;;  %v6389_v49 = vadd.f32 %v6388_v63, %v15056_v9  ;;  %v3341_v31 = vld [vmem:[#allocation2 + $0x98] sm:$0x1] }
 0x1fe   : > { %3295 = vst [vmem:[#allocation3 + $0x254] sm:$0xf] %v3040_v22  ;;  %v2253_v57 = vrot.slane %v2251_v62, 5  ;;  %v2259_v54 = vrot.slane %v2257_v11, 5  ;;  %v2261_v60 = vshrl.u32 %v2011_v41, 16  ;;  %v2267_v50 = vshll.u32 %v2012_v55, 16 }
 0x1ff   : > { %v3050_v29 = vsel %vm14693_vm7, %v3041_v10, %v3049_v2  ;;  %2738 = vst [vmem:[#allocation3 + $0x2bc] sm:$0xf] %v2644_v17  ;;  %v3577_v53 = vshrl.u32 %v3339_v1, 16  ;;  %6427 = vmatmul.bf16.gmra.mxu3 %v12105_v39  ;;  %v12116_v7 = vld [vmem:[#allocation3 + $0x258] sm:$0xf]  ;;  %v6478_v27 = vadd.f32 %v15426_v44, %v6389_v49  ;;  %v3580_v51 = vshll.u32 %v3339_v1, 16  ;;  %v15459_v6 = vpop.f32.mrf.mxu0 }
 0x200   : > { %3296 = vst [vmem:[#allocation3 + $0x278] sm:$0xf] %v3050_v29  ;;  %v2254_v24 = vor.u32 %v2253_v57, %v2250_v4  ;;  %v3586_v20 = vshll.u32 %v3340_v34, 16  ;;  %v13743_v9 = vld [vmem:[#allocation3 + $0x278] sm:$0xf0]  ;;  %v2263_v43 = vrot.slane %v2261_v60, 4 }
 0x201   : > { %v2269_v13 = vrot.slane %v2267_v50, 5  ;;  %v3579_v62 = vrot.slane %v3577_v53, 4  ;;  %v3590_v11 = vshrl.u32 %v3340_v34, 16  ;;  %v12117_v2 = vor.u32 %v13743_v9, %v12116_v7  ;;  %v2778_v63 = vld [vmem:[#allocation2 + $0x84] sm:$0xe]  ;;  %v6657_v17 = vpop.f32.mrf.mxu2 }
 0x202   : > { %v6567_v28 = vadd.f32 %v6566_v33, %v6478_v27  ;;  %v2255_v41 = vrot.slane %v2254_v24, 4  ;;  %v3582_v55 = vrot.slane %v3580_v51, 5  ;;  %v6568_v22 = vpop.f32.mrf.mxu1  ;;  %v2264_v10 = vor.u32 %v2263_v43, %v2259_v54  ;;  %v2779_v1 = vld [vmem:[#allocation2 + $0x88] sm:$0xf]  ;;  %v2780_v60 = vld [vmem:[#allocation2 + $0x8c] sm:$0x3] }
 0x203   : > { %v3588_v44 = vrot.slane %v3586_v20, 5  ;;  %v3592_v39 = vrot.slane %v3590_v11, 4  ;;  %v3596_v4 = vshll.u32 %v3341_v31, 16  ;;  %6694 = vmatmul.bf16.gmra.mxu2 %v12117_v2  ;;  %v12144_v57 = vld [vmem:[#allocation3 + $0x298] sm:$0xf]  ;;  %v3052_v33 = vshrl.u32 %v2778_v63, 16 }
 0x204   : > { %v15461_v49 = vadd.f32 %v6655_v26, %v6567_v28  ;;  %v2260_v29 = vsel %vm14634_vm2, %v2255_v41, %v2259_v54  ;;  %v3583_v34 = vor.u32 %v3582_v55, %v3579_v62  ;;  %v13866_v50 = vld [vmem:[#allocation8 + $0x1d0] sm:$0xff]  ;;  %v6390_v7 = vpop.f32.mrf.mxu3  ;;  %v2265_v27 = vrot.slane %v2264_v10, 4  ;;  %v2509_v20 = vld [vmem:[#allocation2 + $0x90] sm:$0xe]  ;;  %v2510_v55 = vld [vmem:[#allocation2 + $0x94] sm:$0xf] }
 0x205   : > { %v13738_v53 = vld [vmem:[#allocation3 + $0x254] sm:$0xf]  ;;  %2465 = vst [vmem:[#allocation3 + $0x294] sm:$0xf] %v2260_v29  ;;  %v3593_v24 = vor.u32 %v3592_v39, %v3588_v44  ;;  %v3598_v51 = vrot.slane %v3596_v4, 5  ;;  %v6391_v31 = vadd.f32 %v6390_v7, %v15449_v18  ;;  %v3054_v43 = vrot.slane %v3052_v33, 5  ;;  %6740 = vmatpush.bf16.msra.mxu3 %v13866_v50 }
 0x206   : > { %v13751_v9 = vld [vmem:[#allocation3 + $0x2b8] sm:$0xf0]  ;;  %v3584_v26 = vrot.slane %v3583_v34, 4  ;;  %v3055_v11 = vshll.u32 %v2778_v63, 16  ;;  %v2270_v62 = vsel %vm14634_vm2, %v2265_v27, %v2269_v13  ;;  %v3061_v41 = vshrl.u32 %v2779_v1, 16  ;;  %v14030_v34 = vld [vmem:[#allocation10 + $0x30] sm:$0xff] }
 0x207   : > { %v12110_v2 = vld [vmem:[#allocation3 + $0x274] sm:$0xf0]  ;;  %v12145_v54 = vor.u32 %v13751_v9, %v12144_v57  ;;  %v3594_v28 = vrot.slane %v3593_v24, 4  ;;  %v6480_v39 = vadd.f32 %v15442_v58, %v6391_v31  ;;  %2466 = vst [vmem:[#allocation3 + $0x2b8] sm:$0xf] %v2270_v62  ;;  %v15471_v63 = vpop.f32.mrf.mxu0  ;;  %v3064_v33 = vshll.u32 %v2779_v1, 16  ;;  %10454 = vmatpush.bf16.msra.mxu1 %v14030_v34 }
 0x208   : > { %v12113_v10 = vor.u32 %v13738_v53, %v12110_v2  ;;  %v3589_v18 = vsel %vm14634_vm2, %v3584_v26, %v3588_v44  ;;  %v3057_v4 = vrot.slane %v3055_v11, 6  ;;  %v2511_v29 = vld [vmem:[#allocation2 + $0x98] sm:$0x1]  ;;  %v3063_v13 = vrot.slane %v3061_v41, 5  ;;  %v13874_v53 = vld [vmem:[#allocation8 + $0x210] sm:$0xff] }
 0x209   : > { %6521 = vmatmul.bf16.gmra.mxu0 %v12145_v54  ;;  %v3599_v57 = vsel %vm14634_vm2, %v3594_v28, %v3598_v51  ;;  %3794 = vst [vmem:[#allocation3 + $0x2a0] sm:$0xf] %v3589_v18  ;;  %v3071_v50 = vshrl.u32 %v2780_v60, 16  ;;  %v6569_v58 = vadd.f32 %v6568_v22, %v6480_v39  ;;  %v3074_v27 = vshll.u32 %v2780_v60, 16  ;;  %v2013_v24 = vld [vmem:[#allocation2 + $0x90] sm:$0xf] }
 0x20a   : > { %6605 = vmatmul.bf16.gmra.mxu1 %v12113_v10  ;;  %3795 = vst [vmem:[#allocation3 + $0x2c4] sm:$0xf] %v3599_v57  ;;  %v3058_v7 = vor.u32 %v3057_v4, %v3054_v43  ;;  %v11780_v44 = vrot.slane %v2509_v20, 9  ;;  %v3066_v31 = vrot.slane %v3064_v33, 6  ;;  %v2647_v26 = vrot.slane %v2510_v55, 5  ;;  %6829 = vmatpush.bf16.msra.mxu0 %v13874_v53 }
 0x20b   : > { %v3073_v9 = vrot.slane %v3071_v50, 5  ;;  %v2650_v11 = vrot.slane %v2511_v29, 5  ;;  %v2014_v2 = vld [vmem:[#allocation2 + $0x94] sm:$0xf]  ;;  %v15475_v51 = vadd.f32 %v6657_v17, %v6569_v58  ;;  %v6571_v54 = vpop.f32.mrf.mxu1  ;;  %v3076_v62 = vrot.slane %v3074_v27, 6 }
 0x20c   : > { %v3059_v1 = vrot.slane %v3058_v7, 4  ;;  %v13746_v28 = vld [vmem:[#allocation3 + $0x294] sm:$0xf]  ;;  %v6393_v41 = vpop.f32.mrf.mxu3  ;;  %v6660_v22 = vpop.f32.mrf.mxu2  ;;  %v3067_v10 = vor.u32 %v3066_v31, %v3063_v13  ;;  %v2648_v60 = vsel %vm14718_vm13, %v11780_v44, %v2647_v26  ;;  %v2649_v20 = vrot.slane %v2647_v26, 4  ;;  %v2015_v43 = vld [vmem:[#allocation2 + $0x98] sm:$0x1] }
 0x20d   : > { %v2272_v39 = vshrl.u32 %v2013_v24, 16  ;;  %v6394_v55 = vadd.f32 %v6393_v41, %v15088_v35  ;;  %v3077_v18 = vor.u32 %v3076_v62, %v3073_v9  ;;  %2739 = vst [vmem:[#allocation3 + $0x2e0] sm:$0xf] %v2648_v60  ;;  %v2275_v4 = vshll.u32 %v2013_v24, 16  ;;  %v3342_v29 = vld [vmem:[#allocation2 + $0x9c] sm:$0xf] }
 0x20e   : > { %v2281_v17 = vshll.u32 %v2014_v2, 16  ;;  %v12138_v34 = vld [vmem:[#allocation3 + $0x2b4] sm:$0xf0]  ;;  %v3068_v57 = vsel %vm14693_vm7, %v3059_v1, %v3067_v10  ;;  %v3069_v33 = vrot.slane %v3067_v10, 4  ;;  %v2651_v13 = vsel %vm14718_vm13, %v2649_v20, %v2650_v11  ;;  %v3343_v53 = vld [vmem:[#allocation2 + $0xa0] sm:$0xf] }
 0x20f   : > { %v2274_v50 = vrot.slane %v2272_v39, 4  ;;  %v12141_v58 = vor.u32 %v13746_v28, %v12138_v34  ;;  %v6483_v27 = vadd.f32 %v15459_v6, %v6394_v55  ;;  %3297 = vst [vmem:[#allocation3 + $0x29c] sm:$0xf] %v3068_v57  ;;  %v2277_v35 = vrot.slane %v2275_v4, 5  ;;  %v15487_v9 = vpop.f32.mrf.mxu0  ;;  %v3344_v41 = vld [vmem:[#allocation2 + $0xa4] sm:$0x1] }
 0x210   : > { %v12152_v7 = vld [vmem:[#allocation3 + $0x2a0] sm:$0xf]  ;;  %v2283_v44 = vrot.slane %v2281_v17, 5  ;;  %v3078_v31 = vsel %vm14693_vm7, %v3069_v33, %v3077_v18  ;;  %2740 = vst [vmem:[#allocation3 + $0x304] sm:$0xf] %v2651_v13  ;;  %v2285_v26 = vshrl.u32 %v2014_v2, 16 }
 0x211   : > { %v13752_v24 = vld [vmem:[#allocation3 + $0x2c0] sm:$0xf0]  ;;  %v2291_v1 = vshll.u32 %v2015_v43, 16  ;;  %6432 = vmatmul.bf16.gmra.mxu3 %v12141_v58  ;;  %v6572_v62 = vadd.f32 %v6571_v54, %v6483_v27  ;;  %3298 = vst [vmem:[#allocation3 + $0x2c0] sm:$0xf] %v3078_v31  ;;  %v2278_v28 = vor.u32 %v2277_v35, %v2274_v50  ;;  %v3601_v10 = vshrl.u32 %v3342_v29, 16 }
 0x212   : > { %v12153_v11 = vor.u32 %v13752_v24, %v12152_v7  ;;  %v2287_v6 = vrot.slane %v2285_v26, 4  ;;  %v3604_v20 = vshll.u32 %v3342_v29, 16  ;;  %v3610_v39 = vshll.u32 %v3343_v53, 16  ;;  %v2781_v55 = vld [vmem:[#allocation2 + $0x90] sm:$0xe] }
 0x213   : > { %v2293_v60 = vrot.slane %v2291_v1, 5  ;;  %v15489_v4 = vadd.f32 %v6660_v22, %v6572_v62  ;;  %v15491_v18 = vpop.f32.mrf.mxu1  ;;  %v2279_v17 = vrot.slane %v2278_v28, 4  ;;  %v3603_v2 = vrot.slane %v3601_v10, 4  ;;  %v2782_v58 = vld [vmem:[#allocation2 + $0x94] sm:$0xf] }
 0x214   : > { %6699 = vmatmul.bf16.gmra.mxu2 %v12153_v11  ;;  %v3614_v43 = vshrl.u32 %v3343_v53, 16  ;;  %v15493_v34 = vpop.f32.mrf.mxu3  ;;  %v2288_v54 = vor.u32 %v2287_v6, %v2283_v44  ;;  %v15495_v57 = vpop.f32.mrf.mxu2  ;;  %v3606_v33 = vrot.slane %v3604_v20, 5  ;;  %v3612_v13 = vrot.slane %v3610_v39, 5  ;;  %v12180_v29 = vld [vmem:[#allocation3 + $0x2e0] sm:$0xf] }
 0x215   : > { %17344 = vst [vmem:[#allocation55_spill] sm:$0xff] %v15495_v57  ;;  %v3620_v50 = vshll.u32 %v3344_v41, 16  ;;  %v2284_v7 = vsel %vm14634_vm2, %v2279_v17, %v2283_v44  ;;  %v2783_v27 = vld [vmem:[#allocation2 + $0x98] sm:$0x3]  ;;  %v3080_v35 = vshrl.u32 %v2781_v55, 16  ;;  %v3083_v28 = vshll.u32 %v2781_v55, 16 }
 0x216   : > { %v3616_v22 = vrot.slane %v3614_v43, 4  ;;  %v13747_v24 = vld [vmem:[#allocation3 + $0x29c] sm:$0xf]  ;;  %v2289_v31 = vrot.slane %v2288_v54, 4  ;;  %2467 = vst [vmem:[#allocation3 + $0x2dc] sm:$0xf] %v2284_v7  ;;  %v3607_v53 = vor.u32 %v3606_v33, %v3603_v2 }
 0x217   : > { %v13760_v26 = vld [vmem:[#allocation3 + $0x300] sm:$0xf0]  ;;  %v3622_v11 = vrot.slane %v3620_v50, 5  ;;  %v3082_v62 = vrot.slane %v3080_v35, 5  ;;  %v2512_v10 = vld [vmem:[#allocation2 + $0x9c] sm:$0xe]  ;;  %v15501_v39 = vpop.f32.mrf.mxu0 }
 0x218   : > { %v3617_v1 = vor.u32 %v3616_v22, %v3612_v13  ;;  %v12146_v6 = vld [vmem:[#allocation3 + $0x2bc] sm:$0xf0]  ;;  %v12181_v41 = vor.u32 %v13760_v26, %v12180_v29  ;;  %v2294_v20 = vsel %vm14634_vm2, %v2289_v31, %v2293_v60  ;;  %17345 = vst [vmem:[#allocation56_spill] sm:$0xff] %v15501_v39  ;;  %v3608_v44 = vrot.slane %v3607_v53, 4  ;;  %v2513_v43 = vld [vmem:[#allocation2 + $0xa0] sm:$0xf] }
 0x219   : > { %v3089_v17 = vshrl.u32 %v2782_v58, 16  ;;  %v12149_v57 = vor.u32 %v13747_v24, %v12146_v6  ;;  %2468 = vst [vmem:[#allocation3 + $0x300] sm:$0xf] %v2294_v20  ;;  %v3085_v2 = vrot.slane %v3083_v28, 6  ;;  %v2514_v33 = vld [vmem:[#allocation2 + $0xa4] sm:$0x1] }
 0x21a   : > { %v3618_v54 = vrot.slane %v3617_v1, 4  ;;  %6526 = vmatmul.bf16.gmra.mxu0 %v12181_v41  ;;  %v3613_v55 = vsel %vm14634_vm2, %v3608_v44, %v3612_v13  ;;  %v3092_v7 = vshll.u32 %v2782_v58, 16  ;;  %v3099_v29 = vshrl.u32 %v2783_v27, 16  ;;  %v2016_v22 = vld [vmem:[#allocation2 + $0x9c] sm:$0xf] }
 0x21b   : > { %v3091_v50 = vrot.slane %v3089_v17, 5  ;;  %6610 = vmatmul.bf16.gmra.mxu1 %v12149_v57  ;;  %3796 = vst [vmem:[#allocation3 + $0x2e8] sm:$0xf] %v3613_v55  ;;  %v3086_v35 = vor.u32 %v3085_v2, %v3082_v62  ;;  %v3102_v31 = vshll.u32 %v2783_v27, 16  ;;  %v2017_v24 = vld [vmem:[#allocation2 + $0xa0] sm:$0xf] }
 0x21c   : > { %v3623_v60 = vsel %vm14634_vm2, %v3618_v54, %v3622_v11  ;;  %v6398_v53 = vpop.f32.mrf.mxu3  ;;  %v3094_v26 = vrot.slane %v3092_v7, 6  ;;  %v3101_v1 = vrot.slane %v3099_v29, 5  ;;  %v11781_v28 = vrot.slane %v2512_v10, 9  ;;  %v6576_v41 = vpop.f32.mrf.mxu1  ;;  %v2018_v62 = vld [vmem:[#allocation2 + $0xa4] sm:$0x1] }
 0x21d   : > { %3797 = vst [vmem:[#allocation3 + $0x30c] sm:$0xf] %v3623_v60  ;;  %v2654_v6 = vrot.slane %v2513_v43, 5  ;;  %v6399_v13 = vadd.f32 %v6398_v53, %v15129_v14  ;;  %v6665_v58 = vpop.f32.mrf.mxu2  ;;  %v3087_v20 = vrot.slane %v3086_v35, 4  ;;  %v3104_v44 = vrot.slane %v3102_v31, 6 }
 0x21e   : > { %v2657_v57 = vrot.slane %v2514_v33, 5  ;;  %v13755_v17 = vld [vmem:[#allocation3 + $0x2dc] sm:$0xf]  ;;  %v3095_v39 = vor.u32 %v3094_v26, %v3091_v50  ;;  %v2296_v54 = vshrl.u32 %v2016_v22, 16  ;;  %v2299_v10 = vshll.u32 %v2016_v22, 16 }
 0x21f   : > { %v2655_v11 = vsel %vm14718_vm13, %v11781_v28, %v2654_v6  ;;  %v2656_v27 = vrot.slane %v2654_v6, 4  ;;  %v6488_v2 = vadd.f32 %v15487_v9, %v6399_v13  ;;  %v3105_v55 = vor.u32 %v3104_v44, %v3101_v1  ;;  %v3345_v14 = vld [vmem:[#allocation2 + $0xa8] sm:$0xf]  ;;  %v15513_v60 = vpop.f32.mrf.mxu0  ;;  %v3346_v31 = vld [vmem:[#allocation2 + $0xac] sm:$0xf] }
 0x220   : > { %2741 = vst [vmem:[#allocation3 + $0x328] sm:$0xf] %v2655_v11  ;;  %v2305_v43 = vshll.u32 %v2017_v24, 16  ;;  %v12174_v7 = vld [vmem:[#allocation3 + $0x2fc] sm:$0xf0]  ;;  %v3096_v29 = vsel %vm14693_vm7, %v3087_v20, %v3095_v39  ;;  %v3097_v33 = vrot.slane %v3095_v39, 4 }
 0x221   : > { %v2658_v50 = vsel %vm14718_vm13, %v2656_v27, %v2657_v57  ;;  %v2298_v35 = vrot.slane %v2296_v54, 4  ;;  %v12177_v53 = vor.u32 %v13755_v17, %v12174_v7  ;;  %v6577_v26 = vadd.f32 %v6576_v41, %v6488_v2  ;;  %3299 = vst [vmem:[#allocation3 + $0x2e4] sm:$0xf] %v3096_v29  ;;  %v3347_v22 = vld [vmem:[#allocation2 + $0xb0] sm:$0x1] }
 0x222   : > { %v2301_v9 = vrot.slane %v2299_v10, 5  ;;  %v2307_v1 = vrot.slane %v2305_v43, 5  ;;  %v12188_v28 = vld [vmem:[#allocation3 + $0x2e8] sm:$0xf]  ;;  %v3106_v6 = vsel %vm14693_vm7, %v3097_v33, %v3105_v55  ;;  %2742 = vst [vmem:[#allocation3 + $0x34c] sm:$0xf] %v2658_v50 }
 0x223   : > { %v2309_v13 = vshrl.u32 %v2017_v24, 16  ;;  %v2315_v39 = vshll.u32 %v2018_v62, 16  ;;  %6437 = vmatmul.bf16.gmra.mxu3 %v12177_v53  ;;  %v15519_v44 = vadd.f32 %v6665_v58, %v6577_v26  ;;  %3300 = vst [vmem:[#allocation3 + $0x308] sm:$0xf] %v3106_v6  ;;  %v3625_v11 = vshrl.u32 %v3345_v14, 16 }
 0x224   : > { %v13761_v20 = vld [vmem:[#allocation3 + $0x308] sm:$0xf0]  ;;  %v2302_v57 = vor.u32 %v2301_v9, %v2298_v35  ;;  %v3628_v17 = vshll.u32 %v3345_v14, 16  ;;  %v15521_v27 = vpop.f32.mrf.mxu3  ;;  %v3634_v2 = vshll.u32 %v3346_v31, 16  ;;  %v15523_v43 = vpop.f32.mrf.mxu1  ;;  %v3638_v50 = vshrl.u32 %v3346_v31, 16 }
 0x225   : > { %v12189_v41 = vor.u32 %v13761_v20, %v12188_v28  ;;  %v2311_v54 = vrot.slane %v2309_v13, 4  ;;  %v2784_v10 = vld [vmem:[#allocation2 + $0x9c] sm:$0xe]  ;;  %17346 = vst [vmem:[#allocation57_spill] sm:$0xff] %v15523_v43  ;;  %v2317_v7 = vrot.slane %v2315_v39, 5  ;;  %v3627_v24 = vrot.slane %v3625_v11, 4  ;;  %v15525_v58 = vpop.f32.mrf.mxu2 }
 0x226   : > { %v2303_v55 = vrot.slane %v2302_v57, 4  ;;  %v3630_v62 = vrot.slane %v3628_v17, 5  ;;  %17347 = vst [vmem:[#allocation58_spill] sm:$0xff] %v15525_v58  ;;  %v3636_v33 = vrot.slane %v3634_v2, 5  ;;  %v3644_v35 = vshll.u32 %v3347_v22, 16  ;;  %v13865_v13 = vld [vmem:[#allocation8 + $0x1c8] sm:$0xff] }
 0x227   : > { %6704 = vmatmul.bf16.gmra.mxu2 %v12189_v41  ;;  %v2312_v29 = vor.u32 %v2311_v54, %v2307_v1  ;;  %v2785_v14 = vld [vmem:[#allocation2 + $0xa0] sm:$0xf]  ;;  %v12216_v53 = vld [vmem:[#allocation3 + $0x328] sm:$0xf]  ;;  %v2786_v28 = vld [vmem:[#allocation2 + $0xa4] sm:$0x3]  ;;  %v15529_v57 = vpop.f32.mrf.mxu0  ;;  %6741 = vmatpush.bf16.msra.mxu3 %v13865_v13 }
 0x228   : > { %v2308_v26 = vsel %vm14634_vm2, %v2303_v55, %v2307_v1  ;;  %v3631_v9 = vor.u32 %v3630_v62, %v3627_v24  ;;  %v3108_v6 = vshrl.u32 %v2784_v10, 16  ;;  %v13756_v20 = vld [vmem:[#allocation3 + $0x2e4] sm:$0xf]  ;;  %17348 = vst [vmem:[#allocation59_spill] sm:$0xff] %v15529_v57  ;;  %v3640_v11 = vrot.slane %v3638_v50, 4  ;;  %v14029_v57 = vld [vmem:[#allocation10 + $0x28] sm:$0xff] }
 0x229   : > { %v2313_v39 = vrot.slane %v2312_v29, 4  ;;  %2469 = vst [vmem:[#allocation3 + $0x324] sm:$0xf] %v2308_v26  ;;  %v2515_v17 = vld [vmem:[#allocation2 + $0xa8] sm:$0xe]  ;;  %v3646_v31 = vrot.slane %v3644_v35, 5  ;;  %10455 = vmatpush.bf16.msra.mxu1 %v14029_v57 }
 0x22a   : > { %v13769_v41 = vld [vmem:[#allocation3 + $0x348] sm:$0xf0]  ;;  %v3632_v54 = vrot.slane %v3631_v9, 4  ;;  %v3110_v22 = vrot.slane %v3108_v6, 5  ;;  %v12182_v2 = vld [vmem:[#allocation3 + $0x304] sm:$0xf0]  ;;  %v3641_v55 = vor.u32 %v3640_v11, %v3636_v33 }
 0x22b   : > { %v12217_v58 = vor.u32 %v13769_v41, %v12216_v53  ;;  %v2318_v1 = vsel %vm14634_vm2, %v2313_v39, %v2317_v7  ;;  %v3111_v24 = vshll.u32 %v2784_v10, 16  ;;  %v2516_v62 = vld [vmem:[#allocation2 + $0xac] sm:$0xf]  ;;  %v12185_v43 = vor.u32 %v13756_v20, %v12182_v2  ;;  %v2517_v26 = vld [vmem:[#allocation2 + $0xb0] sm:$0x1]  ;;  %v13873_v41 = vld [vmem:[#allocation8 + $0x208] sm:$0xff] }
 0x22c   : > { %2470 = vst [vmem:[#allocation3 + $0x348] sm:$0xf] %v2318_v1  ;;  %v3637_v29 = vsel %vm14634_vm2, %v3632_v54, %v3636_v33  ;;  %v3117_v50 = vshrl.u32 %v2785_v14, 16  ;;  %v6403_v35 = vpop.f32.mrf.mxu3  ;;  %v3642_v9 = vrot.slane %v3641_v55, 4  ;;  %v3120_v53 = vshll.u32 %v2785_v14, 16  ;;  %6830 = vmatpush.bf16.msra.mxu0 %v13873_v41 }
 0x22d   : > { %6531 = vmatmul.bf16.gmra.mxu0 %v12217_v58  ;;  %3798 = vst [vmem:[#allocation3 + $0x330] sm:$0xf] %v3637_v29  ;;  %v3113_v6 = vrot.slane %v3111_v24, 6  ;;  %v3127_v13 = vshrl.u32 %v2786_v28, 16  ;;  %6615 = vmatmul.bf16.gmra.mxu1 %v12185_v43  ;;  %v6404_v7 = vadd.f32 %v6403_v35, %v15164_v16  ;;  %v3130_v39 = vshll.u32 %v2786_v28, 16 }
 0x22e   : > { %v3119_v10 = vrot.slane %v3117_v50, 5  ;;  %v11782_v20 = vrot.slane %v2515_v17, 9  ;;  %v2019_v11 = vld [vmem:[#allocation2 + $0xa8] sm:$0xf]  ;;  %v3647_v33 = vsel %vm14634_vm2, %v3642_v9, %v3646_v31  ;;  %v3122_v2 = vrot.slane %v3120_v53, 6  ;;  %v6581_v14 = vpop.f32.mrf.mxu1 }
 0x22f   : > { %v3114_v54 = vor.u32 %v3113_v6, %v3110_v22  ;;  %v3129_v58 = vrot.slane %v3127_v13, 5  ;;  %3799 = vst [vmem:[#allocation3 + $0x354] sm:$0xf] %v3647_v33  ;;  %v6493_v1 = vadd.f32 %v15513_v60, %v6404_v7  ;;  %v3132_v55 = vrot.slane %v3130_v39, 6  ;;  %v2020_v24 = vld [vmem:[#allocation2 + $0xac] sm:$0xf]  ;;  %v6670_v17 = vpop.f32.mrf.mxu2  ;;  %v15539_v35 = vpop.f32.mrf.mxu0 }
 0x230   : > { %v2661_v43 = vrot.slane %v2516_v62, 5  ;;  %v2021_v16 = vld [vmem:[#allocation2 + $0xb0] sm:$0x1]  ;;  %v13764_v28 = vld [vmem:[#allocation3 + $0x324] sm:$0xf]  ;;  %v3123_v50 = vor.u32 %v3122_v2, %v3119_v10  ;;  %v2664_v31 = vrot.slane %v2517_v26, 5 }
 0x231   : > { %v3115_v29 = vrot.slane %v3114_v54, 4  ;;  %v2320_v22 = vshrl.u32 %v2019_v11, 16  ;;  %v6582_v9 = vadd.f32 %v6581_v14, %v6493_v1  ;;  %v3133_v6 = vor.u32 %v3132_v55, %v3129_v58  ;;  %v3348_v53 = vld [vmem:[#allocation2 + $0xb4] sm:$0xf]  ;;  %v3349_v13 = vld [vmem:[#allocation2 + $0xb8] sm:$0xf] }
 0x232   : > { %v2662_v57 = vsel %vm14718_vm13, %v11782_v20, %v2661_v43  ;;  %v2663_v60 = vrot.slane %v2661_v43, 4  ;;  %v3125_v39 = vrot.slane %v3123_v50, 4  ;;  %v2323_v2 = vshll.u32 %v2019_v11, 16  ;;  %v3350_v43 = vld [vmem:[#allocation2 + $0xbc] sm:$0x1] }
 0x233   : > { %v12210_v62 = vld [vmem:[#allocation3 + $0x344] sm:$0xf0]  ;;  %v3124_v7 = vsel %vm14693_vm7, %v3115_v29, %v3123_v50  ;;  %2743 = vst [vmem:[#allocation3 + $0x370] sm:$0xf] %v2662_v57  ;;  %v2322_v41 = vrot.slane %v2320_v22, 4  ;;  %v15545_v54 = vadd.f32 %v6670_v17, %v6582_v9  ;;  %v2329_v1 = vshll.u32 %v2020_v24, 16 }
 0x234   : > { %v12213_v10 = vor.u32 %v13764_v28, %v12210_v62  ;;  %v12224_v33 = vld [vmem:[#allocation3 + $0x330] sm:$0xf]  ;;  %3301 = vst [vmem:[#allocation3 + $0x32c] sm:$0xf] %v3124_v7  ;;  %v2665_v26 = vsel %vm14718_vm13, %v2663_v60, %v2664_v31  ;;  %v3134_v20 = vsel %vm14693_vm7, %v3125_v39, %v3133_v6  ;;  %v15551_v58 = vpop.f32.mrf.mxu3  ;;  %v2333_v14 = vshrl.u32 %v2020_v24, 16 }
 0x235   : > { %17349 = vst [vmem:[#allocation60_spill] sm:$0xff] %v15545_v54  ;;  %v2339_v55 = vshll.u32 %v2021_v16, 16  ;;  %v2787_v29 = vld [vmem:[#allocation2 + $0xa8] sm:$0xe]  ;;  %v2325_v28 = vrot.slane %v2323_v2, 5  ;;  %v3649_v17 = vshrl.u32 %v3348_v53, 16 }
 0x236   : > { %17350 = vst [vmem:[#allocation61_spill] sm:$0xff] %v15551_v58  ;;  %6442 = vmatmul.bf16.gmra.mxu3 %v12213_v10  ;;  %v3652_v50 = vshll.u32 %v3348_v53, 16  ;;  %v13770_v22 = vld [vmem:[#allocation3 + $0x350] sm:$0xf0]  ;;  %v2331_v9 = vrot.slane %v2329_v1, 5  ;;  %v2335_v31 = vrot.slane %v2333_v14, 4  ;;  %v15553_v60 = vpop.f32.mrf.mxu1 }
 0x237   : > { %2744 = vst [vmem:[#allocation3 + $0x394] sm:$0xf] %v2665_v26  ;;  %v3658_v11 = vshll.u32 %v3349_v13, 16  ;;  %v12225_v57 = vor.u32 %v13770_v22, %v12224_v33  ;;  %v2326_v6 = vor.u32 %v2325_v28, %v2322_v41  ;;  %v2341_v62 = vrot.slane %v2339_v55, 5  ;;  %v15555_v24 = vpop.f32.mrf.mxu2  ;;  %v15557_v16 = vpop.f32.mrf.mxu0  ;;  %v2789_v54 = vld [vmem:[#allocation2 + $0xb0] sm:$0x3] }
 0x238   : > { %3302 = vst [vmem:[#allocation3 + $0x350] sm:$0xf] %v3134_v20  ;;  %v3651_v7 = vrot.slane %v3649_v17, 4  ;;  %v2336_v39 = vor.u32 %v2335_v31, %v2331_v9  ;;  %v3654_v10 = vrot.slane %v3652_v50, 5  ;;  %v3662_v2 = vshrl.u32 %v3349_v13, 16 }
 0x239   : > { %17351 = vst [vmem:[#allocation62_spill] sm:$0xff] %v15553_v60  ;;  %v3660_v26 = vrot.slane %v3658_v11, 5  ;;  %v2788_v20 = vld [vmem:[#allocation2 + $0xac] sm:$0xf]  ;;  %6709 = vmatmul.bf16.gmra.mxu2 %v12225_v57  ;;  %v2327_v1 = vrot.slane %v2326_v6, 4  ;;  %v3668_v14 = vshll.u32 %v3350_v43, 16 }
 0x23a   : > { %17352 = vst [vmem:[#allocation63_spill] sm:$0xff] %v15555_v24  ;;  %v12252_v53 = vld [vmem:[#allocation3 + $0x370] sm:$0xf]  ;;  %v3136_v33 = vshrl.u32 %v2787_v29, 16  ;;  %v2337_v60 = vrot.slane %v2336_v39, 4  ;;  %v3655_v41 = vor.u32 %v3654_v10, %v3651_v7  ;;  %v3664_v55 = vrot.slane %v3662_v2, 4 }
 0x23b   : > { %17353 = vst [vmem:[#allocation64_spill] sm:$0xff] %v15557_v16  ;;  %v13765_v22 = vld [vmem:[#allocation3 + $0x32c] sm:$0xf]  ;;  %v3139_v28 = vshll.u32 %v2787_v29, 16  ;;  %v2332_v31 = vsel %vm14634_vm2, %v2327_v1, %v2331_v9  ;;  %v3670_v16 = vrot.slane %v3668_v14, 5  ;;  %v3145_v10 = vshrl.u32 %v2788_v20, 16 }
 0x23c   : > { %v3138_v50 = vrot.slane %v3136_v33, 5  ;;  %v2518_v11 = vld [vmem:[#allocation2 + $0xb4] sm:$0xe]  ;;  %v2342_v57 = vsel %vm14634_vm2, %v2337_v60, %v2341_v62  ;;  %2471 = vst [vmem:[#allocation3 + $0x36c] sm:$0xf] %v2332_v31  ;;  %v6408_v43 = vpop.f32.mrf.mxu3  ;;  %v3656_v6 = vrot.slane %v3655_v41, 4  ;;  %v3665_v58 = vor.u32 %v3664_v55, %v3660_v26 }
 0x23d   : > { %2472 = vst [vmem:[#allocation3 + $0x390] sm:$0xf] %v2342_v57  ;;  %v6409_v29 = vadd.f32 %v6408_v43, %v15204_v19  ;;  %v3141_v7 = vrot.slane %v3139_v28, 6  ;;  %v2519_v2 = vld [vmem:[#allocation2 + $0xb8] sm:$0xf]  ;;  %v3155_v14 = vshrl.u32 %v2789_v54, 16 }
 0x23e   : > { %v13778_v17 = vld [vmem:[#allocation3 + $0x390] sm:$0xf0]  ;;  %v3661_v9 = vsel %vm14634_vm2, %v3656_v6, %v3660_v26  ;;  %v3666_v1 = vrot.slane %v3665_v58, 4  ;;  %v2520_v33 = vld [vmem:[#allocation2 + $0xbc] sm:$0x1]  ;;  %v3158_v41 = vshll.u32 %v2789_v54, 16 }
 0x23f   : > { %v12218_v13 = vld [vmem:[#allocation3 + $0x34c] sm:$0xf0]  ;;  %v12253_v24 = vor.u32 %v13778_v17, %v12252_v53  ;;  %v3148_v53 = vshll.u32 %v2788_v20, 16  ;;  %3800 = vst [vmem:[#allocation3 + $0x378] sm:$0xf] %v3661_v9  ;;  %v6498_v60 = vadd.f32 %v15539_v35, %v6409_v29  ;;  %v3142_v62 = vor.u32 %v3141_v7, %v3138_v50 }
 0x240   : > { %v12221_v39 = vor.u32 %v13765_v22, %v12218_v13  ;;  %v3147_v22 = vrot.slane %v3145_v10, 5  ;;  %v2022_v55 = vld [vmem:[#allocation2 + $0xb4] sm:$0xf]  ;;  %v3671_v19 = vsel %vm14634_vm2, %v3666_v1, %v3670_v16  ;;  %v3157_v17 = vrot.slane %v3155_v14, 5  ;;  %v15569_v31 = vpop.f32.mrf.mxu0  ;;  %v2023_v26 = vld [vmem:[#allocation2 + $0xb8] sm:$0xf] }
 0x241   : > { %6536 = vmatmul.bf16.gmra.mxu0 %v12253_v24  ;;  %v6675_v28 = vpop.f32.mrf.mxu2  ;;  %v3150_v24 = vrot.slane %v3148_v53, 6  ;;  %v11783_v58 = vrot.slane %v2518_v11, 9  ;;  %3801 = vst [vmem:[#allocation3 + $0x39c] sm:$0xf] %v3671_v19  ;;  %v6586_v20 = vpop.f32.mrf.mxu1  ;;  %v3143_v13 = vrot.slane %v3142_v62, 4  ;;  %v3160_v57 = vrot.slane %v3158_v41, 6 }
 0x242   : > { %6620 = vmatmul.bf16.gmra.mxu1 %v12221_v39  ;;  %v2668_v43 = vrot.slane %v2519_v2, 5  ;;  %v2671_v35 = vrot.slane %v2520_v33, 5  ;;  %v6587_v50 = vadd.f32 %v6586_v20, %v6498_v60  ;;  %v2024_v54 = vld [vmem:[#allocation2 + $0xbc] sm:$0x1]  ;;  %v2344_v39 = vshrl.u32 %v2022_v55, 16 }
 0x243   : > { %v3151_v6 = vor.u32 %v3150_v24, %v3147_v22  ;;  %v2347_v29 = vshll.u32 %v2022_v55, 16  ;;  %v13773_v7 = vld [vmem:[#allocation3 + $0x36c] sm:$0xf]  ;;  %v3161_v16 = vor.u32 %v3160_v57, %v3157_v17  ;;  %v2353_v11 = vshll.u32 %v2023_v26, 16  ;;  %v3351_v1 = vld [vmem:[#allocation2 + $0xc0] sm:$0xf] }
 0x244   : > { %v2669_v10 = vsel %vm14718_vm13, %v11783_v58, %v2668_v43  ;;  %v2670_v9 = vrot.slane %v2668_v43, 4  ;;  %v12246_v53 = vld [vmem:[#allocation3 + $0x38c] sm:$0xf0]  ;;  %v15573_v14 = vadd.f32 %v6675_v28, %v6587_v50  ;;  %v15577_v60 = vpop.f32.mrf.mxu3  ;;  %v2346_v62 = vrot.slane %v2344_v39, 4  ;;  %v3352_v19 = vld [vmem:[#allocation2 + $0xc4] sm:$0xf] }
 0x245   : > { %v3152_v2 = vsel %vm14693_vm7, %v3143_v13, %v3151_v6  ;;  %v3153_v33 = vrot.slane %v3151_v6, 4  ;;  %17355 = vst [vmem:[#allocation66_spill] sm:$0xff] %v15577_v60  ;;  %v12249_v22 = vor.u32 %v13773_v7, %v12246_v53  ;;  %v2349_v55 = vrot.slane %v2347_v29, 5  ;;  %v15582_v24 = vld [vmem:[%s14575_s10 + $0xf0] sm:$0xff]  ;;  %v3353_v13 = vld [vmem:[#allocation2 + $0xc8] sm:$0x1] }
 0x246   : > { %17354 = vst [vmem:[#allocation65_spill] sm:$0xff] %v15573_v14  ;;  %v2672_v41 = vsel %vm14718_vm13, %v2670_v9, %v2671_v35  ;;  %v12260_v17 = vld [vmem:[#allocation3 + $0x378] sm:$0xf]  ;;  %v2355_v58 = vrot.slane %v2353_v11, 5  ;;  %v2357_v20 = vshrl.u32 %v2023_v26, 16  ;;  %v2363_v43 = vshll.u32 %v2024_v54, 16 }
 0x247   : > { %2745 = vst [vmem:[#allocation3 + $0x3b8] sm:$0xf] %v2669_v10  ;;  %v3162_v28 = vsel %vm14693_vm7, %v3153_v33, %v3161_v16  ;;  %6447 = vmatmul.bf16.gmra.mxu3 %v12249_v22  ;;  %v2350_v57 = vor.u32 %v2349_v55, %v2346_v62  ;;  %v3673_v50 = vshrl.u32 %v3351_v1, 16  ;;  %v2790_v6 = vld [vmem:[#allocation2 + $0xb4] sm:$0xe]  ;;  %v3676_v7 = vshll.u32 %v3351_v1, 16 }
 0x248   : > { %3303 = vst [vmem:[#allocation3 + $0x374] sm:$0xf] %v3152_v2  ;;  %v13779_v35 = vld [vmem:[#allocation3 + $0x398] sm:$0xf0]  ;;  %v2359_v39 = vrot.slane %v2357_v20, 4  ;;  %v3682_v10 = vshll.u32 %v3352_v19, 16  ;;  %v15590_v26 = vpop.f32.mrf.mxu0 }
 0x249   : > { %2746 = vst [vmem:[#allocation3 + $0x3dc] sm:$0xf] %v2672_v41  ;;  %v15586_v29 = vpop.f32.mrf.mxu2  ;;  %v3686_v9 = vshrl.u32 %v3352_v19, 16  ;;  %v12261_v53 = vor.u32 %v13779_v35, %v12260_v17  ;;  %v15588_v16 = vpop.f32.mrf.mxu1  ;;  %v2351_v11 = vrot.slane %v2350_v57, 4  ;;  %v3675_v2 = vrot.slane %v3673_v50, 4  ;;  %v15593_v33 = vld [vmem:[%s14575_s10 + $0xf8] sm:$0xff] }
 0x24a   : > { %3304 = vst [vmem:[#allocation3 + $0x398] sm:$0xf] %v3162_v28  ;;  %v2360_v62 = vor.u32 %v2359_v39, %v2355_v58  ;;  %v2365_v22 = vrot.slane %v2363_v43, 5  ;;  %v3678_v41 = vrot.slane %v3676_v7, 5  ;;  %v3684_v55 = vrot.slane %v3682_v10, 5  ;;  %v13864_v50 = vld [vmem:[#allocation8 + $0x1c0] sm:$0xff] }
 0x24b   : > { %17356 = vst [vmem:[#allocation67_spill] sm:$0xff] %v15586_v29  ;;  %v2791_v28 = vld [vmem:[#allocation2 + $0xb8] sm:$0xf]  ;;  %6714 = vmatmul.bf16.gmra.mxu2 %v12261_v53  ;;  %v2356_v19 = vsel %vm14634_vm2, %v2351_v11, %v2355_v58  ;;  %v3688_v17 = vrot.slane %v3686_v9, 4  ;;  %v3692_v20 = vshll.u32 %v3353_v13, 16  ;;  %v3164_v35 = vshrl.u32 %v2790_v6, 16  ;;  %6742 = vmatpush.bf16.msra.mxu3 %v13864_v50 }
 0x24c   : > { %17357 = vst [vmem:[#allocation68_spill] sm:$0xff] %v15588_v16  ;;  %v2792_v57 = vld [vmem:[#allocation2 + $0xbc] sm:$0x3]  ;;  %v2361_v29 = vrot.slane %v2360_v62, 4  ;;  %v3679_v16 = vor.u32 %v3678_v41, %v3675_v2  ;;  %v3167_v54 = vshll.u32 %v2790_v6, 16  ;;  %v3173_v14 = vshrl.u32 %v2791_v28, 16 }
 0x24d   : > { %17358 = vst [vmem:[#allocation69_spill] sm:$0xff] %v15590_v26  ;;  %v3689_v7 = vor.u32 %v3688_v17, %v3684_v55  ;;  %v3694_v10 = vrot.slane %v3692_v20, 5  ;;  %v3166_v53 = vrot.slane %v3164_v35, 5  ;;  %v6413_v11 = vpop.f32.mrf.mxu3  ;;  %v2522_v17 = vld [vmem:[#allocation2 + $0xc4] sm:$0xf]  ;;  %v3183_v50 = vshrl.u32 %v2792_v57, 16 }
 0x24e   : > { %v12288_v1 = vld [vmem:[#allocation3 + $0x3b8] sm:$0xf]  ;;  %2473 = vst [vmem:[#allocation3 + $0x3b4] sm:$0xf] %v2356_v19  ;;  %v2366_v13 = vsel %vm14634_vm2, %v2361_v29, %v2365_v22  ;;  %v3680_v60 = vrot.slane %v3679_v16, 4  ;;  %v3169_v62 = vrot.slane %v3167_v54, 6  ;;  %v6414_v6 = vadd.f32 %v6413_v11, %v15230_v5 }
 0x24f   : > { %v13774_v26 = vld [vmem:[#allocation3 + $0x374] sm:$0xf]  ;;  %v2521_v19 = vld [vmem:[#allocation2 + $0xc0] sm:$0xe]  ;;  %2474 = vst [vmem:[#allocation3 + $0x3d8] sm:$0xf] %v2366_v13 }
 0x250   : > { %v13787_v39 = vld [vmem:[#allocation3 + $0x3d8] sm:$0xf0]  ;;  %v3690_v41 = vrot.slane %v3689_v7, 4  ;;  %v3175_v43 = vrot.slane %v3173_v14, 5  ;;  %v3685_v20 = vsel %vm14634_vm2, %v3680_v60, %v3684_v55  ;;  %v3170_v35 = vor.u32 %v3169_v62, %v3166_v53  ;;  %v2025_v29 = vld [vmem:[#allocation2 + $0xc0] sm:$0xf] }
 0x251   : > { %v12254_v58 = vld [vmem:[#allocation3 + $0x394] sm:$0xf0]  ;;  %v12289_v9 = vor.u32 %v13787_v39, %v12288_v1  ;;  %v3176_v1 = vshll.u32 %v2791_v28, 16  ;;  %3802 = vst [vmem:[#allocation3 + $0x3c0] sm:$0xf] %v3685_v20  ;;  %v3186_v5 = vshll.u32 %v2792_v57, 16 }
 0x252   : > { %v12257_v2 = vor.u32 %v13774_v26, %v12254_v58  ;;  %v2523_v39 = vld [vmem:[#allocation2 + $0xc8] sm:$0x1]  ;;  %v3695_v16 = vsel %vm14634_vm2, %v3690_v41, %v3694_v10  ;;  %v6503_v26 = vadd.f32 %v15569_v31, %v6414_v6  ;;  %v11784_v54 = vrot.slane %v2521_v19, 9  ;;  %v2026_v14 = vld [vmem:[#allocation2 + $0xc4] sm:$0xf]  ;;  %v6591_v22 = vpop.f32.mrf.mxu1 }
 0x253   : > { %6541 = vmatmul.bf16.gmra.mxu0 %v12289_v9  ;;  %3803 = vst [vmem:[#allocation3 + $0x3e4] sm:$0xf] %v3695_v16  ;;  %v3171_v7 = vrot.slane %v3170_v35, 4  ;;  %v3178_v58 = vrot.slane %v3176_v1, 6  ;;  %v3185_v60 = vrot.slane %v3183_v50, 5  ;;  %v2675_v55 = vrot.slane %v2522_v17, 5  ;;  %v6680_v53 = vpop.f32.mrf.mxu2  ;;  %v15609_v13 = vpop.f32.mrf.mxu0 }
 0x254   : > { %6625 = vmatmul.bf16.gmra.mxu1 %v12257_v2  ;;  %v6592_v28 = vadd.f32 %v6591_v22, %v6503_v26  ;;  %v3188_v9 = vrot.slane %v3186_v5, 6  ;;  %v2678_v11 = vrot.slane %v2523_v39, 5  ;;  %v2368_v62 = vshrl.u32 %v2025_v29, 16  ;;  %v2027_v20 = vld [vmem:[#allocation2 + $0xc8] sm:$0x1] }
 0x255   : > { %v13782_v10 = vld [vmem:[#allocation3 + $0x3b4] sm:$0xf]  ;;  %v3179_v2 = vor.u32 %v3178_v58, %v3175_v43  ;;  %v2676_v31 = vsel %vm14718_vm13, %v11784_v54, %v2675_v55  ;;  %v2677_v57 = vrot.slane %v2675_v55, 4  ;;  %v2371_v19 = vshll.u32 %v2025_v29, 16  ;;  %v15617_v16 = vpop.f32.mrf.mxu3  ;;  %v2793_v22 = vld [vmem:[#allocation2 + $0xc0] sm:$0xe] }
 0x256   : > { %v15613_v6 = vadd.f32 %v6680_v53, %v6592_v28  ;;  %v3189_v41 = vor.u32 %v3188_v9, %v3185_v60  ;;  %2747 = vst [vmem:[#allocation3 + $0x400] sm:$0xf] %v2676_v31  ;;  %v2370_v17 = vrot.slane %v2368_v62, 4  ;;  %v2377_v35 = vshll.u32 %v2026_v14, 16  ;;  %v12282_v1 = vld [vmem:[#allocation3 + $0x3d4] sm:$0xf0] }
 0x257   : > { %v3180_v50 = vsel %vm14693_vm7, %v3171_v7, %v3179_v2  ;;  %v3181_v39 = vrot.slane %v3179_v2, 4  ;;  %v2679_v43 = vsel %vm14718_vm13, %v2677_v57, %v2678_v11  ;;  %v2373_v26 = vrot.slane %v2371_v19, 5  ;;  %v2794_v9 = vld [vmem:[#allocation2 + $0xc4] sm:$0xf] }
 0x258   : > { %17359 = vst [vmem:[#allocation70_spill] sm:$0xff] %v15613_v6  ;;  %v12285_v5 = vor.u32 %v13782_v10, %v12282_v1  ;;  %v2379_v29 = vrot.slane %v2377_v35, 5  ;;  %v2381_v54 = vshrl.u32 %v2026_v14, 16  ;;  %v12296_v58 = vld [vmem:[#allocation3 + $0x3c0] sm:$0xf]  ;;  %v2387_v28 = vshll.u32 %v2027_v20, 16 }
 0x259   : > { %3305 = vst [vmem:[#allocation3 + $0x3bc] sm:$0xf] %v3180_v50  ;;  %v3190_v60 = vsel %vm14693_vm7, %v3181_v39, %v3189_v41  ;;  %v2374_v55 = vor.u32 %v2373_v26, %v2370_v17  ;;  %v17360_v7 = vpack.c.bf16 %v15582_v24, %v15582_v24  ;;  %v17361_v14 = vpack.c.bf16 %v15593_v33, %v15593_v33  ;;  %v14028_v41 = vld [vmem:[#allocation10 + $0x20] sm:$0xff] }
 0x25a   : > { %2748 = vst [vmem:[#allocation3 + $0x424] sm:$0xf] %v2679_v43  ;;  %6452 = vmatmul.bf16.gmra.mxu3 %v12285_v5  ;;  %v13788_v11 = vld [vmem:[#allocation3 + $0x3e0] sm:$0xf0]  ;;  %v2383_v62 = vrot.slane %v2381_v54, 4  ;;  %v15629_v31 = vpop.f32.mrf.mxu1  ;;  %v2389_v17 = vrot.slane %v2387_v28, 5  ;;  %10456 = vmatpush.bf16.msra.mxu1 %v14028_v41 }
 0x25b   : > { %v544_v53 = vrot.slane %v17360_v7, 7  ;;  %3306 = vst [vmem:[#allocation3 + $0x3e0] sm:$0xf] %v3190_v60  ;;  %v546_v10 = vrot.slane %v17361_v14, 7  ;;  %v12297_v2 = vor.u32 %v13788_v11, %v12296_v58  ;;  %v2375_v57 = vrot.slane %v2374_v55, 4  ;;  %v15631_v24 = vpop.f32.mrf.mxu0  ;;  %v13872_v1 = vld [vmem:[#allocation8 + $0x200] sm:$0xff] }
 0x25c   : > { %17362 = vst [vmem:[#allocation71_spill] sm:$0xff] %v15629_v31  ;;  %v2384_v20 = vor.u32 %v2383_v62, %v2379_v29  ;;  %v2795_v43 = vld [vmem:[#allocation2 + $0xc8] sm:$0x3]  ;;  %v3192_v26 = vshrl.u32 %v2793_v22, 16  ;;  %v3195_v5 = vshll.u32 %v2793_v22, 16  ;;  %6831 = vmatpush.bf16.msra.mxu0 %v13872_v1  ;;  %v3201_v58 = vshrl.u32 %v2794_v9, 16 }
 0x25d   : > { %v545_v19 = vrot.slane %v544_v53, 4  ;;  %642 = vst [vmem:[#allocation2 + $0xcc] sm:$0xe] %v544_v53  ;;  %v548_v35 = vrot.slane %v546_v10, 4  ;;  %6719 = vmatmul.bf16.gmra.mxu2 %v12297_v2  ;;  %v12324_v50 = vld [vmem:[#allocation3 + $0x400] sm:$0xf]  ;;  %v2380_v39 = vsel %vm14634_vm2, %v2375_v57, %v2379_v29 }
 0x25e   : > { %17363 = vst [vmem:[#allocation72_spill] sm:$0xff] %v15631_v24  ;;  %v2385_v54 = vrot.slane %v2384_v20, 4  ;;  %v3204_v60 = vshll.u32 %v2794_v9, 16  ;;  %v3194_v28 = vrot.slane %v3192_v26, 5  ;;  %v3197_v7 = vrot.slane %v3195_v5, 6 }
 0x25f   : > { %v547_v33 = vsel %vm14710_vm10, %v545_v19, %v546_v10  ;;  %2475 = vst [vmem:[#allocation3 + $0x3fc] sm:$0xf] %v2380_v39  ;;  %v3203_v11 = vrot.slane %v3201_v58, 5  ;;  %v3211_v57 = vshrl.u32 %v2795_v43, 16  ;;  %v3214_v19 = vshll.u32 %v2795_v43, 16 }
 0x260   : > { %v13783_v55 = vld [vmem:[#allocation3 + $0x3bc] sm:$0xf]  ;;  %643 = vst [vmem:[#allocation2 + $0xd0] sm:$0xf] %v547_v33  ;;  %v2390_v29 = vsel %vm14634_vm2, %v2385_v54, %v2389_v17  ;;  %v3206_v62 = vrot.slane %v3204_v60, 6  ;;  %v6418_v22 = vpop.f32.mrf.mxu3  ;;  %v3198_v2 = vor.u32 %v3197_v7, %v3194_v28 }
 0x261   : > { %v13796_v53 = vld [vmem:[#allocation3 + $0x420] sm:$0xf0]  ;;  %644 = vst [vmem:[#allocation2 + $0xd4] sm:$0x1] %v548_v35  ;;  %v6419_v9 = vadd.f32 %v6418_v22, %v15263_v52  ;;  %v3213_v5 = vrot.slane %v3211_v57, 5  ;;  %v3216_v60 = vrot.slane %v3214_v19, 6 }
 0x262   : > { %v12290_v14 = vld [vmem:[#allocation3 + $0x3dc] sm:$0xf0]  ;;  %v12325_v10 = vor.u32 %v13796_v53, %v12324_v50  ;;  %2476 = vst [vmem:[#allocation3 + $0x420] sm:$0xf] %v2390_v29  ;;  %v3207_v1 = vor.u32 %v3206_v62, %v3203_v11  ;;  %v3199_v26 = vrot.slane %v3198_v2, 4 }
 0x263   : > { %v12293_v41 = vor.u32 %v13783_v55, %v12290_v14  ;;  %v6508_v50 = vadd.f32 %v15609_v13, %v6419_v9  ;;  %v6596_v54 = vpop.f32.mrf.mxu1  ;;  %v15645_v53 = vpop.f32.mrf.mxu0  ;;  %v3217_v14 = vor.u32 %v3216_v60, %v3213_v5 }
 0x264   : > { %v3354_v20 = vld [vmem:[#allocation2 + $0xcc] sm:$0xf]  ;;  %6546 = vmatmul.bf16.gmra.mxu0 %v12325_v10  ;;  %v3209_v58 = vrot.slane %v3207_v1, 4  ;;  %v3208_v7 = vsel %vm14693_vm7, %v3199_v26, %v3207_v1 }
 0x265   : > { %v2524_v39 = vld [vmem:[#allocation2 + $0xcc] sm:$0xe]  ;;  %v3697_v17 = vshrl.u32 %v3354_v20, 16  ;;  %v3700_v35 = vshll.u32 %v3354_v20, 16  ;;  %6630 = vmatmul.bf16.gmra.mxu1 %v12293_v41  ;;  %v15648_v62 = vadd.f32 %v6596_v54, %v6508_v50  ;;  %3307 = vst [vmem:[#allocation3 + $0x404] sm:$0xf] %v3208_v7 }
 0x266   : > { %v15640_v33 = vld [vmem:[#allocation2 + $0xcc] sm:$0xf]  ;;  %v11785_v43 = vrot.slane %v2524_v39, 9  ;;  %v3218_v20 = vsel %vm14693_vm7, %v3209_v58, %v3217_v14 }
 0x267   : > { %v13791_v55 = vld [vmem:[#allocation3 + $0x3fc] sm:$0xf]  ;;  %v3699_v28 = vrot.slane %v3697_v17, 4  ;;  %v3702_v52 = vrot.slane %v3700_v35, 5  ;;  %v2392_v29 = vshrl.u32 %v15640_v33, 16  ;;  %17364 = vst [vmem:[#allocation73_spill] sm:$0xff] %v15648_v62 }
 0x268   : > { %v3355_v11 = vld [vmem:[#allocation2 + $0xd0] sm:$0xf]  ;;  %v3356_v10 = vld [vmem:[#allocation2 + $0xd4] sm:$0x1]  ;;  %3308 = vst [vmem:[#allocation3 + $0x428] sm:$0xf] %v3218_v20  ;;  %v15652_v5 = vpop.f32.mrf.mxu3 }
 0x269   : > { %v2525_v13 = vld [vmem:[#allocation2 + $0xd0] sm:$0xf]  ;;  %v3703_v22 = vor.u32 %v3702_v52, %v3699_v28  ;;  %v3706_v2 = vshll.u32 %v3355_v11, 16  ;;  %v3710_v57 = vshrl.u32 %v3355_v11, 16  ;;  %v2526_v19 = vld [vmem:[#allocation2 + $0xd4] sm:$0x1] }
 0x26a   : > { %v12318_v41 = vld [vmem:[#allocation3 + $0x41c] sm:$0xf0]  ;;  %v3716_v9 = vshll.u32 %v3356_v10, 16  ;;  %v2682_v1 = vrot.slane %v2525_v13, 5  ;;  %17365 = vst [vmem:[#allocation74_spill] sm:$0xff] %v15652_v5  ;;  %v2685_v14 = vrot.slane %v2526_v19, 5 }
 0x26b   : > { %v2029_v39 = vld [vmem:[#allocation2 + $0xd0] sm:$0xf]  ;;  %v12321_v17 = vor.u32 %v13791_v55, %v12318_v41  ;;  %v3704_v35 = vrot.slane %v3703_v22, 4  ;;  %v3708_v26 = vrot.slane %v3706_v2, 5  ;;  %v3712_v50 = vrot.slane %v3710_v57, 4  ;;  %v15658_v13 = vpop.f32.mrf.mxu1 }
 0x26c   : > { %v2683_v54 = vsel %vm14718_vm13, %v11785_v43, %v2682_v1  ;;  %v2684_v60 = vrot.slane %v2682_v1, 4  ;;  %v2030_v28 = vld [vmem:[#allocation2 + $0xd4] sm:$0x1]  ;;  %v3357_v52 = vld [vmem:[#allocation2 + $0xd8] sm:$0xf]  ;;  %v3718_v11 = vrot.slane %v3716_v9, 5 }
 0x26d   : > { %6457 = vmatmul.bf16.gmra.mxu3 %v12321_v17  ;;  %v3709_v7 = vsel %vm14634_vm2, %v3704_v35, %v3708_v26  ;;  %v3713_v58 = vor.u32 %v3712_v50, %v3708_v26  ;;  %2749 = vst [vmem:[#allocation3 + $0x448] sm:$0xf] %v2683_v54  ;;  %v3358_v55 = vld [vmem:[#allocation2 + $0xdc] sm:$0xf]  ;;  %v2394_v10 = vrot.slane %v2392_v29, 4  ;;  %v2395_v22 = vshll.u32 %v15640_v33, 16  ;;  %v15663_v35 = vpop.f32.mrf.mxu0 }
 0x26e   : > { %3804 = vst [vmem:[#allocation3 + $0x408] sm:$0xf] %v3709_v7  ;;  %v2401_v2 = vshll.u32 %v2029_v39, 16  ;;  %v2405_v43 = vshrl.u32 %v2029_v39, 16  ;;  %v3359_v57 = vld [vmem:[#allocation2 + $0xe0] sm:$0x1]  ;;  %v2686_v1 = vsel %vm14718_vm13, %v2684_v60, %v2685_v14 }
 0x26f   : > { %17366 = vst [vmem:[#allocation75_spill] sm:$0xff] %v15658_v13  ;;  %v3714_v41 = vrot.slane %v3713_v58, 4  ;;  %v13792_v20 = vld [vmem:[#allocation3 + $0x404] sm:$0xf]  ;;  %v2411_v17 = vshll.u32 %v2030_v28, 16  ;;  %v3721_v19 = vshrl.u32 %v3357_v52, 16 }
 0x270   : > { %17367 = vst [vmem:[#allocation76_spill] sm:$0xff] %v15663_v35  ;;  %v2397_v9 = vrot.slane %v2395_v22, 5  ;;  %v2403_v26 = vrot.slane %v2401_v2, 5  ;;  %v2407_v50 = vrot.slane %v2405_v43, 4  ;;  %v8401_v33 = vld [vmem:[#allocation2 + $0xd8] sm:$0xf] }
 0x271   : > { %2750 = vst [vmem:[#allocation3 + $0x46c] sm:$0xf] %v2686_v1  ;;  %v3719_v29 = vsel %vm14634_vm2, %v3714_v41, %v3718_v11  ;;  %v2413_v54 = vrot.slane %v2411_v17, 5  ;;  %v3723_v39 = vrot.slane %v3721_v19, 4  ;;  %v3724_v7 = vshll.u32 %v3357_v52, 16  ;;  %v14027_v14 = vld [vmem:[#allocation10 + $0x18] sm:$0xff]  ;;  %v6423_v31 = vpop.f32.mrf.mxu3 }
 0x272   : > { %v2796_v58 = vld [vmem:[#allocation2 + $0xcc] sm:$0xe]  ;;  %3805 = vst [vmem:[#allocation3 + $0x42c] sm:$0xf] %v3719_v29  ;;  %v12326_v13 = vld [vmem:[#allocation3 + $0x424] sm:$0xf0]  ;;  %v2398_v24 = vor.u32 %v2397_v9, %v2394_v10  ;;  %v2408_v60 = vor.u32 %v2407_v50, %v2403_v26  ;;  %10457 = vmatpush.bf16.msra.mxu1 %v14027_v14  ;;  %v6424_v10 = vadd.f32 %v6423_v31, %v15287_v25 }
 0x273   : > { %v3730_v28 = vshll.u32 %v3358_v55, 16  ;;  %v12329_v35 = vor.u32 %v13792_v20, %v12326_v13  ;;  %v3726_v62 = vrot.slane %v3724_v7, 5  ;;  %v3734_v1 = vshrl.u32 %v3358_v55, 16  ;;  %v2797_v2 = vld [vmem:[#allocation2 + $0xd0] sm:$0xf] }
 0x274   : > { %v3740_v22 = vshll.u32 %v3359_v57, 16  ;;  %v2399_v43 = vrot.slane %v2398_v24, 4  ;;  %v2409_v5 = vrot.slane %v2408_v60, 4  ;;  %v2798_v41 = vld [vmem:[#allocation2 + $0xd4] sm:$0x3]  ;;  %v3220_v17 = vshrl.u32 %v2796_v58, 16  ;;  %v6601_v31 = vpop.f32.mrf.mxu1 }
 0x275   : > { %v3732_v11 = vrot.slane %v3730_v28, 5  ;;  %v12332_v52 = vld [vmem:[#allocation3 + $0x408] sm:$0xf]  ;;  %v8402_v19 = vld [vmem:[#allocation2 + $0xdc] sm:$0xf]  ;;  %v3727_v9 = vor.u32 %v3726_v62, %v3723_v39  ;;  %v3736_v50 = vrot.slane %v3734_v1, 4  ;;  %6635 = vmatmul.bf16.gmra.mxu1 %v12329_v35  ;;  %v6513_v25 = vadd.f32 %v15645_v53, %v6424_v10 }
 0x276   : > { %v12360_v29 = vld [vmem:[#allocation3 + $0x448] sm:$0xf]  ;;  %v3742_v6 = vrot.slane %v3740_v22, 5  ;;  %8433 = vst [vmem:[#allocation3 + $0x408] sm:$0xf] %v8401_v33  ;;  %v2404_v55 = vsel %vm14634_vm2, %v2399_v43, %v2403_v26  ;;  %v2414_v24 = vsel %vm14634_vm2, %v2409_v5, %v2413_v54  ;;  %v3222_v13 = vrot.slane %v3220_v17, 5  ;;  %v15673_v26 = vpop.f32.mrf.mxu0 }
 0x277   : > { %v3223_v57 = vshll.u32 %v2796_v58, 16  ;;  %v4080_v20 = vld [vmem:[#allocation2 + $0x24] sm:$0xe]  ;;  %2477 = vst [vmem:[#allocation3 + $0x444] sm:$0xf] %v2404_v55  ;;  %v3728_v60 = vrot.slane %v3727_v9, 4  ;;  %v3737_v28 = vor.u32 %v3736_v50, %v3732_v11  ;;  %v15677_v58 = vadd.f32 %v6601_v31, %v6513_v25 }
 0x278   : > { %v13805_v7 = vld [vmem:[#allocation3 + $0x468] sm:$0xf0]  ;;  %v3229_v62 = vshrl.u32 %v2797_v2, 16  ;;  %2478 = vst [vmem:[#allocation3 + $0x468] sm:$0xf] %v2414_v24  ;;  %v3232_v33 = vshll.u32 %v2797_v2, 16 }
 0x279   : > { %v12361_v39 = vor.u32 %v13805_v7, %v12360_v29  ;;  %v3225_v35 = vrot.slane %v3223_v57, 6  ;;  %v3239_v14 = vshrl.u32 %v2798_v41, 16  ;;  %v13797_v1 = vld [vmem:[#allocation3 + $0x428] sm:$0xf0]  ;;  %v3733_v5 = vsel %vm14634_vm2, %v3728_v60, %v3732_v11  ;;  %v4081_v43 = vld [vmem:[#allocation2 + $0x28] sm:$0xf]  ;;  %v15681_v57 = vpop.f32.mrf.mxu3 }
 0x27a   : > { %v3738_v54 = vrot.slane %v3737_v28, 4  ;;  %v3231_v22 = vrot.slane %v3229_v62, 5  ;;  %v12333_v17 = vor.u32 %v13797_v1, %v12332_v52  ;;  %8434 = vst [vmem:[#allocation3 + $0x42c] sm:$0xf] %v8402_v19  ;;  %v3234_v29 = vrot.slane %v3232_v33, 6 }
 0x27b   : > { %6551 = vmatmul.bf16.gmra.mxu0 %v12361_v39  ;;  %v3226_v53 = vor.u32 %v3225_v35, %v3222_v13  ;;  %v4082_v10 = vld [vmem:[#allocation2 + $0x2c] sm:$0x3]  ;;  %3806 = vst [vmem:[#allocation3 + $0x450] sm:$0xf] %v3733_v5  ;;  %v3241_v9 = vrot.slane %v3239_v14, 5  ;;  %v3242_v50 = vshll.u32 %v2798_v41, 16 }
 0x27c   : > { %v3743_v2 = vsel %vm14634_vm2, %v3738_v54, %v3742_v6  ;;  %v4129_v55 = vshrl.u32 %v4080_v20, 16  ;;  %6724 = vmatmul.bf16.gmra.mxu2 %v12333_v17  ;;  %v3235_v24 = vor.u32 %v3234_v29, %v3231_v22  ;;  %v4132_v7 = vshll.u32 %v4080_v20, 16  ;;  %v3808_v28 = vld [vmem:[#allocation2 + $0x24] sm:$0xe]  ;;  %v8404_v35 = vld [vmem:[#allocation2 + $0xe8] sm:$0xf]  ;;  %v15685_v14 = vpop.f32.mrf.mxu1 }
 0x27d   : > { %3807 = vst [vmem:[#allocation3 + $0x474] sm:$0xf] %v3743_v2  ;;  %v3227_v11 = vrot.slane %v3226_v53, 4  ;;  %v4138_v52 = vshrl.u32 %v4081_v43, 16  ;;  %v3244_v19 = vrot.slane %v3242_v50, 6  ;;  %v4141_v13 = vshll.u32 %v4081_v43, 16 }
 0x27e   : > { %v4131_v60 = vrot.slane %v4129_v55, 5  ;;  %v13800_v25 = vld [vmem:[#allocation3 + $0x444] sm:$0xf]  ;;  %v8403_v31 = vld [vmem:[#allocation2 + $0xe4] sm:$0xf]  ;;  %v3237_v6 = vrot.slane %v3235_v24, 4  ;;  %v15687_v53 = vpop.f32.mrf.mxu0 }
 0x27f   : > { %v3236_v30 = vsel %vm14693_vm7, %v3227_v11, %v3235_v24  ;;  %v4134_v41 = vrot.slane %v4132_v7, 6  ;;  %v4140_v62 = vrot.slane %v4138_v52, 5  ;;  %v12354_v39 = vld [vmem:[#allocation3 + $0x464] sm:$0xf0]  ;;  %v3245_v33 = vor.u32 %v3244_v19, %v3241_v9  ;;  %v3809_v43 = vld [vmem:[#allocation2 + $0x28] sm:$0xf] }
 0x280   : > { %3309 = vst [vmem:[#allocation3 + $0x44c] sm:$0xf] %v3236_v30  ;;  %v4143_v20 = vrot.slane %v4141_v13, 6  ;;  %v4148_v1 = vshrl.u32 %v4082_v10, 16  ;;  %v12357_v5 = vor.u32 %v13800_v25, %v12354_v39  ;;  %v4151_v22 = vshll.u32 %v4082_v10, 16  ;;  %v14039_v39 = vld [vmem:[#allocation10 + $0x78] sm:$0xff] }
 0x281   : > { %v4135_v54 = vor.u32 %v4134_v41, %v4131_v60  ;;  %v3810_v17 = vld [vmem:[#allocation2 + $0x2c] sm:$0x1]  ;;  %v3246_v29 = vsel %vm14693_vm7, %v3237_v6, %v3245_v33  ;;  %v11786_v55 = vrot.slane %v3808_v28, 9  ;;  %v4083_v11 = vld [vmem:[#allocation2 + $0x30] sm:$0xe]  ;;  %v3906_v13 = vrot.slane %v3809_v43, 5  ;;  %10542 = vmatpush.bf16.msra.mxu2 %v14039_v39 }
 0x282   : > { %v4144_v2 = vor.u32 %v4143_v20, %v4140_v62  ;;  %v4150_v50 = vrot.slane %v4148_v1, 5  ;;  %v4084_v9 = vld [vmem:[#allocation2 + $0x34] sm:$0xf]  ;;  %6462 = vmatmul.bf16.gmra.mxu3 %v12357_v5  ;;  %v12368_v24 = vld [vmem:[#allocation3 + $0x450] sm:$0xf]  ;;  %v4153_v52 = vrot.slane %v4151_v22, 6  ;;  %v6428_v1 = vpop.f32.mrf.mxu3 }
 0x283   : > { %3310 = vst [vmem:[#allocation3 + $0x470] sm:$0xf] %v3246_v29  ;;  %v4136_v7 = vrot.slane %v4135_v54, 4  ;;  %v4085_v19 = vld [vmem:[#allocation2 + $0x38] sm:$0x3]  ;;  %v3909_v41 = vrot.slane %v3810_v17, 5  ;;  %v3907_v33 = vsel %vm14718_vm13, %v11786_v55, %v3906_v13  ;;  %v6429_v22 = vadd.f32 %v6428_v1, %v15322_v0 }
 0x284   : > { %v13806_v60 = vld [vmem:[#allocation3 + $0x470] sm:$0xf0]  ;;  %8435 = vst [vmem:[#allocation3 + $0x450] sm:$0xf] %v8403_v31  ;;  %v4146_v10 = vrot.slane %v4144_v2, 4  ;;  %v4154_v6 = vor.u32 %v4153_v52, %v4150_v50  ;;  %v3908_v20 = vrot.slane %v3906_v13, 4 }
 0x285   : > { %v12369_v25 = vor.u32 %v13806_v60, %v12368_v24  ;;  %8436 = vst [vmem:[#allocation3 + $0x474] sm:$0xf] %v8404_v35  ;;  %v4145_v30 = vsel %vm14693_vm7, %v4136_v7, %v4144_v2  ;;  %v3811_v28 = vld [vmem:[#allocation2 + $0x30] sm:$0xe]  ;;  %v3812_v62 = vld [vmem:[#allocation2 + $0x34] sm:$0xf] }
 0x286   : > { %4608 = vst [vmem:[#allocation3 + $0x20] sm:$0xf] %v4145_v30  ;;  %v4157_v5 = vshrl.u32 %v4083_v11, 16  ;;  %v4160_v31 = vshll.u32 %v4083_v11, 16  ;;  %v4155_v35 = vsel %vm14693_vm7, %v4146_v10, %v4154_v6  ;;  %v4166_v43 = vshrl.u32 %v4084_v9, 16  ;;  %v15701_v7 = vpop.f32.mrf.mxu0 }
 0x287   : > { %v13801_v54 = vld [vmem:[#allocation3 + $0x44c] sm:$0xf]  ;;  %4048 = vst [vmem:[#allocation3 + $0x1c] sm:$0xf] %v3907_v33  ;;  %v4169_v17 = vshll.u32 %v4084_v9, 16  ;;  %v3910_v2 = vsel %vm14718_vm13, %v3908_v20, %v3909_v41  ;;  %v4176_v24 = vshrl.u32 %v4085_v19, 16  ;;  %v6518_v11 = vadd.f32 %v15673_v26, %v6429_v22  ;;  %v6606_v13 = vpop.f32.mrf.mxu1 }
 0x288   : > { %v3813_v29 = vld [vmem:[#allocation2 + $0x38] sm:$0x1]  ;;  %4609 = vst [vmem:[#allocation3 + $0x44] sm:$0xf] %v4155_v35  ;;  %v4159_v50 = vrot.slane %v4157_v5, 5  ;;  %v4162_v55 = vrot.slane %v4160_v31, 6 }
 0x289   : > { %4049 = vst [vmem:[#allocation3 + $0x40] sm:$0xf] %v3910_v2  ;;  %v4168_v52 = vrot.slane %v4166_v43, 5  ;;  %v4171_v60 = vrot.slane %v4169_v17, 6  ;;  %v4179_v10 = vshll.u32 %v4085_v19, 16  ;;  %v4178_v30 = vrot.slane %v4176_v24, 5 }
 0x28a   : > { %v12362_v0 = vld [vmem:[#allocation3 + $0x46c] sm:$0xf0]  ;;  %v4163_v9 = vor.u32 %v4162_v55, %v4159_v50  ;;  %v11787_v6 = vrot.slane %v3811_v28, 9  ;;  %v3913_v39 = vrot.slane %v3812_v62, 5  ;;  %v15703_v1 = vadd.f32 %v6606_v13, %v6518_v11  ;;  %v4086_v5 = vld [vmem:[#allocation2 + $0x3c] sm:$0xe]  ;;  %v15707_v50 = vpop.f32.mrf.mxu3 }
 0x28b   : > { %v12365_v33 = vor.u32 %v13801_v54, %v12362_v0  ;;  %v4172_v41 = vor.u32 %v4171_v60, %v4168_v52  ;;  %v4181_v20 = vrot.slane %v4179_v10, 6  ;;  %v4087_v31 = vld [vmem:[#allocation2 + $0x40] sm:$0xf]  ;;  %v3916_v43 = vrot.slane %v3813_v29, 5  ;;  %v4088_v19 = vld [vmem:[#allocation2 + $0x44] sm:$0x3] }
 0x28c   : > { %v4164_v35 = vrot.slane %v4163_v9, 4  ;;  %v3914_v26 = vsel %vm14718_vm13, %v11787_v6, %v3913_v39  ;;  %v3915_v22 = vrot.slane %v3913_v39, 4  ;;  %6729 = vmatmul.bf16.gmra.mxu2 %v12369_v25  ;;  %v4185_v62 = vshrl.u32 %v4086_v5, 16  ;;  %v3814_v29 = vld [vmem:[#allocation2 + $0x3c] sm:$0xe] }
 0x28d   : > { %6640 = vmatmul.bf16.gmra.mxu1 %v12365_v33  ;;  %v11836_v17 = vld [vmem:[#allocation3 + $0x20] sm:$0xf]  ;;  %v4174_v2 = vrot.slane %v4172_v41, 4  ;;  %v4182_v28 = vor.u32 %v4181_v20, %v4178_v30  ;;  %4050 = vst [vmem:[#allocation3 + $0x64] sm:$0xf] %v3914_v26  ;;  %v4188_v11 = vshll.u32 %v4086_v5, 16 }
 0x28e   : > { %v13667_v54 = vld [vmem:[#allocation3 + $0x1c] sm:$0xf]  ;;  %v4173_v55 = vsel %vm14693_vm7, %v4164_v35, %v4172_v41  ;;  %v3917_v24 = vsel %vm14718_vm13, %v3915_v22, %v3916_v43  ;;  %v4194_v52 = vshrl.u32 %v4087_v31, 16  ;;  %v4187_v10 = vrot.slane %v4185_v62, 5  ;;  %v15715_v33 = vpop.f32.mrf.mxu0  ;;  %v3815_v5 = vld [vmem:[#allocation2 + $0x40] sm:$0xf] }
 0x28f   : > { %v13672_v60 = vld [vmem:[#allocation3 + $0x40] sm:$0xf0]  ;;  %v4183_v25 = vsel %vm14693_vm7, %v4174_v2, %v4182_v28  ;;  %4610 = vst [vmem:[#allocation3 + $0x68] sm:$0xf] %v4173_v55  ;;  %v4197_v0 = vshll.u32 %v4087_v31, 16  ;;  %v4190_v30 = vrot.slane %v4188_v11, 6  ;;  %v15717_v35 = vpop.f32.mrf.mxu1 }
 0x290   : > { %v11837_v13 = vor.u32 %v13672_v60, %v11836_v17  ;;  %v11830_v9 = vld [vmem:[#allocation3 + $0x3c] sm:$0xf0]  ;;  %4611 = vst [vmem:[#allocation3 + $0x8c] sm:$0xf] %v4183_v25  ;;  %v4196_v6 = vrot.slane %v4194_v52, 5  ;;  %v4204_v20 = vshrl.u32 %v4088_v19, 16 }
 0x291   : > { %v11833_v39 = vor.u32 %v13667_v54, %v11830_v9  ;;  %4051 = vst [vmem:[#allocation3 + $0x88] sm:$0xf] %v3917_v24  ;;  %v4199_v41 = vrot.slane %v4197_v0, 6  ;;  %v4191_v26 = vor.u32 %v4190_v30, %v4187_v10  ;;  %v4207_v22 = vshll.u32 %v4088_v19, 16  ;;  %v3816_v43 = vld [vmem:[#allocation2 + $0x44] sm:$0x1] }
 0x292   : > { %17368 = vst [vmem:[#allocation77_spill] sm:$0xff] %v15715_v33  ;;  %6832 = vmatmul.bf16.vlgmr.msra.gmra.mxu0 %v11837_v13  ;;  %v11788_v2 = vrot.slane %v3814_v29, 9  ;;  %v3920_v31 = vrot.slane %v3815_v5, 5  ;;  %v4206_v28 = vrot.slane %v4204_v20, 5  ;;  %v3923_v62 = vrot.slane %v3816_v43, 5  ;;  %v14026_v55 = vld [vmem:[#allocation10 + $0x10] sm:$0xff] }
 0x293   : > { %6743 = vmatmul.bf16.vlgmr.msra.gmra.mxu3 %v11833_v39  ;;  %v4200_v17 = vor.u32 %v4199_v41, %v4196_v6  ;;  %v4089_v54 = vld [vmem:[#allocation2 + $0x48] sm:$0xe]  ;;  %v4192_v24 = vrot.slane %v4191_v26, 4  ;;  %v4209_v11 = vrot.slane %v4207_v22, 6  ;;  %10458 = vmatpush.bf16.msra.mxu1 %v14026_v55  ;;  %v4090_v10 = vld [vmem:[#allocation2 + $0x4c] sm:$0xf] }
 0x294   : > { %v3921_v52 = vsel %vm14718_vm13, %v11788_v2, %v3920_v31  ;;  %v3922_v60 = vrot.slane %v3920_v31, 4  ;;  %v4213_v19 = vshrl.u32 %v4089_v54, 16  ;;  %v4091_v9 = vld [vmem:[#allocation2 + $0x50] sm:$0x3]  ;;  %v4216_v30 = vshll.u32 %v4089_v54, 16  ;;  %v6433_v41 = vpop.f32.mrf.mxu3 }
 0x295   : > { %v4202_v25 = vrot.slane %v4200_v17, 4  ;;  %4052 = vst [vmem:[#allocation3 + $0xac] sm:$0xf] %v3921_v52  ;;  %v4201_v29 = vsel %vm14693_vm7, %v4192_v24, %v4200_v17  ;;  %v4210_v0 = vor.u32 %v4209_v11, %v4206_v28  ;;  %v4222_v39 = vshrl.u32 %v4090_v10, 16  ;;  %v3817_v17 = vld [vmem:[#allocation2 + $0x48] sm:$0xe] }
 0x296   : > { %v3924_v13 = vsel %vm14718_vm13, %v3922_v60, %v3923_v62  ;;  %4612 = vst [vmem:[#allocation3 + $0xb0] sm:$0xf] %v4201_v29  ;;  %v4215_v6 = vrot.slane %v4213_v19, 5  ;;  %v4218_v5 = vrot.slane %v4216_v30, 6  ;;  %v4225_v26 = vshll.u32 %v4090_v10, 16 }
 0x297   : > { %v4211_v20 = vsel %vm14693_vm7, %v4202_v25, %v4210_v0  ;;  %4053 = vst [vmem:[#allocation3 + $0xd0] sm:$0xf] %v3924_v13  ;;  %v11872_v22 = vld [vmem:[#allocation3 + $0x68] sm:$0xf]  ;;  %v6434_v43 = vadd.f32 %v6433_v41, %v15350_v8  ;;  %v4224_v2 = vrot.slane %v4222_v39, 5  ;;  %v4232_v31 = vshrl.u32 %v4091_v9, 16  ;;  %v15729_v25 = vpop.f32.mrf.mxu0 }
 0x298   : > { %4613 = vst [vmem:[#allocation3 + $0xd4] sm:$0xf] %v4211_v20  ;;  %v13676_v28 = vld [vmem:[#allocation3 + $0x64] sm:$0xf]  ;;  %v4219_v62 = vor.u32 %v4218_v5, %v4215_v6  ;;  %v4227_v55 = vrot.slane %v4225_v26, 6  ;;  %v4235_v54 = vshll.u32 %v4091_v9, 16  ;;  %v6611_v8 = vpop.f32.mrf.mxu1 }
 0x299   : > { %v3818_v24 = vld [vmem:[#allocation2 + $0x4c] sm:$0xf]  ;;  %v3819_v11 = vld [vmem:[#allocation2 + $0x50] sm:$0x1]  ;;  %v13681_v52 = vld [vmem:[#allocation3 + $0x88] sm:$0xf0]  ;;  %v6523_v60 = vadd.f32 %v15701_v7, %v6434_v43 }
 0x29a   : > { %v4234_v19 = vrot.slane %v4232_v31, 5  ;;  %v11789_v10 = vrot.slane %v3817_v17, 9  ;;  %v3927_v29 = vrot.slane %v3818_v24, 5  ;;  %v11866_v0 = vld [vmem:[#allocation3 + $0x84] sm:$0xf0]  ;;  %v4220_v13 = vrot.slane %v4219_v62, 4 }
 0x29b   : > { %v4228_v30 = vor.u32 %v4227_v55, %v4224_v2  ;;  %v4237_v39 = vrot.slane %v4235_v54, 6  ;;  %v3930_v41 = vrot.slane %v3819_v11, 5  ;;  %v15731_v20 = vadd.f32 %v6611_v8, %v6523_v60  ;;  %v4092_v55 = vld [vmem:[#allocation2 + $0x54] sm:$0xe]  ;;  %v14038_v60 = vld [vmem:[#allocation10 + $0x70] sm:$0xff] }
 0x29c   : > { %v3928_v9 = vsel %vm14718_vm13, %v11789_v10, %v3927_v29  ;;  %v3929_v6 = vrot.slane %v3927_v29, 4  ;;  %v11873_v5 = vor.u32 %v13681_v52, %v11872_v22  ;;  %v11869_v31 = vor.u32 %v13676_v28, %v11866_v0  ;;  %v15739_v17 = vpop.f32.mrf.mxu3  ;;  %v4093_v22 = vld [vmem:[#allocation2 + $0x58] sm:$0xf]  ;;  %10543 = vmatpush.bf16.msra.mxu2 %v14038_v60  ;;  %v3833_v33 = vld [vmem:[#allocation2 + $0x88] sm:$0xf] }
 0x29d   : > { %v4229_v7 = vsel %vm14693_vm7, %v4220_v13, %v4228_v30  ;;  %v4230_v26 = vrot.slane %v4228_v30, 4  ;;  %v4238_v43 = vor.u32 %v4237_v39, %v4234_v19  ;;  %4054 = vst [vmem:[#allocation3 + $0xf4] sm:$0xf] %v3928_v9  ;;  %v4241_v54 = vshrl.u32 %v4092_v55, 16  ;;  %v4094_v19 = vld [vmem:[#allocation2 + $0x5c] sm:$0x3] }
 0x29e   : > { %4614 = vst [vmem:[#allocation3 + $0xf8] sm:$0xf] %v4229_v7  ;;  %v3931_v2 = vsel %vm14718_vm13, %v3929_v6, %v3930_v41  ;;  %v4244_v24 = vshll.u32 %v4092_v55, 16  ;;  %v4250_v11 = vshrl.u32 %v4093_v22, 16  ;;  %v4253_v52 = vshll.u32 %v4093_v22, 16  ;;  %v15747_v41 = vpop.f32.mrf.mxu2 }
 0x29f   : > { %v4239_v62 = vsel %vm14693_vm7, %v4230_v26, %v4238_v43  ;;  %4055 = vst [vmem:[#allocation3 + $0x118] sm:$0xf] %v3931_v2  ;;  %v15743_v28 = vpop.f32.mrf.mxu0  ;;  %v4243_v29 = vrot.slane %v4241_v54, 5  ;;  %v4260_v30 = vshrl.u32 %v4094_v19, 16  ;;  %v4263_v39 = vshll.u32 %v4094_v19, 16 }
 0x2a0   : > { %4615 = vst [vmem:[#allocation3 + $0x11c] sm:$0xf] %v4239_v62  ;;  %v15745_v10 = vpop.f32.mrf.mxu1  ;;  %v4246_v0 = vrot.slane %v4244_v24, 6  ;;  %v4252_v8 = vrot.slane %v4250_v11, 5  ;;  %v4255_v13 = vrot.slane %v4253_v52, 6 }
 0x2a1   : > { %17369 = vst [vmem:[#allocation78_spill] sm:$0xff] %v15743_v28  ;;  %v4265_v7 = vrot.slane %v4263_v39, 6  ;;  %v3821_v26 = vld [vmem:[#allocation2 + $0x58] sm:$0xf]  ;;  %v3820_v55 = vld [vmem:[#allocation2 + $0x54] sm:$0xe] }
 0x2a2   : > { %6837 = vmatmul.bf16.gmra.mxu0 %v11873_v5  ;;  %17370 = vst [vmem:[#allocation79_spill] sm:$0xff] %v15745_v10  ;;  %v4247_v9 = vor.u32 %v4246_v0, %v4243_v29  ;;  %v4256_v6 = vor.u32 %v4255_v13, %v4252_v8  ;;  %v4262_v5 = vrot.slane %v4260_v30, 5  ;;  %v3934_v2 = vrot.slane %v3821_v26, 5  ;;  %v3822_v22 = vld [vmem:[#allocation2 + $0x5c] sm:$0x1] }
 0x2a3   : > { %6748 = vmatmul.bf16.gmra.mxu3 %v11869_v31  ;;  %v11790_v11 = vrot.slane %v3820_v55, 9  ;;  %v3937_v60 = vrot.slane %v3822_v22, 5  ;;  %v11908_v19 = vld [vmem:[#allocation3 + $0xb0] sm:$0xf]  ;;  %v13690_v28 = vld [vmem:[#allocation3 + $0xd0] sm:$0xf0] }
 0x2a4   : > { %v4248_v43 = vrot.slane %v4247_v9, 4  ;;  %v4258_v31 = vrot.slane %v4256_v6, 4  ;;  %v4266_v62 = vor.u32 %v4265_v7, %v4262_v5  ;;  %v3936_v52 = vrot.slane %v3934_v2, 4  ;;  %v13685_v8 = vld [vmem:[#allocation3 + $0xac] sm:$0xf] }
 0x2a5   : > { %v11902_v13 = vld [vmem:[#allocation3 + $0xcc] sm:$0xf0]  ;;  %v3935_v30 = vsel %vm14718_vm13, %v11790_v11, %v3934_v2  ;;  %v11909_v5 = vor.u32 %v13690_v28, %v11908_v19  ;;  %v4097_v11 = vld [vmem:[#allocation2 + $0x68] sm:$0x3] }
 0x2a6   : > { %v6438_v54 = vpop.f32.mrf.mxu3  ;;  %v4257_v24 = vsel %vm14693_vm7, %v4248_v43, %v4256_v6  ;;  %v4267_v0 = vsel %vm14693_vm7, %v4258_v31, %v4266_v62  ;;  %v3938_v39 = vsel %vm14718_vm13, %v3936_v52, %v3937_v60  ;;  %4056 = vst [vmem:[#allocation3 + $0x13c] sm:$0xf] %v3935_v30  ;;  %v15761_v43 = vpop.f32.mrf.mxu2  ;;  %v4095_v31 = vld [vmem:[#allocation2 + $0x60] sm:$0xe]  ;;  %v4096_v62 = vld [vmem:[#allocation2 + $0x64] sm:$0xf] }
 0x2a7   : > { %v6439_v29 = vadd.f32 %v6438_v54, %v15393_v12  ;;  %4616 = vst [vmem:[#allocation3 + $0x140] sm:$0xf] %v4257_v24  ;;  %v11905_v12 = vor.u32 %v13685_v8, %v11902_v13  ;;  %v4269_v2 = vshrl.u32 %v4095_v31, 16  ;;  %v4272_v22 = vshll.u32 %v4095_v31, 16 }
 0x2a8   : > { %4617 = vst [vmem:[#allocation3 + $0x164] sm:$0xf] %v4267_v0  ;;  %v4278_v54 = vshrl.u32 %v4096_v62, 16  ;;  %v4281_v24 = vshll.u32 %v4096_v62, 16  ;;  %v4288_v0 = vshrl.u32 %v4097_v11, 16  ;;  %v4291_v8 = vshll.u32 %v4097_v11, 16 }
 0x2a9   : > { %v6528_v9 = vadd.f32 %v15729_v25, %v6439_v29  ;;  %4057 = vst [vmem:[#allocation3 + $0x160] sm:$0xf] %v3938_v39  ;;  %v14025_v25 = vld [vmem:[#allocation10 + $0x8] sm:$0xff]  ;;  %v4271_v28 = vrot.slane %v4269_v2, 5  ;;  %v4274_v52 = vrot.slane %v4272_v22, 6 }
 0x2aa   : > { %v6532_v6 = vpop.f32.mrf.mxu0  ;;  %v6616_v7 = vpop.f32.mrf.mxu1  ;;  %v4280_v60 = vrot.slane %v4278_v54, 5  ;;  %10459 = vmatpush.bf16.msra.mxu1 %v14025_v25  ;;  %v4283_v29 = vrot.slane %v4281_v24, 6  ;;  %v3823_v2 = vld [vmem:[#allocation2 + $0x60] sm:$0xe]  ;;  %v3825_v22 = vld [vmem:[#allocation2 + $0x68] sm:$0x1] }
 0x2ab   : > { %v15759_v26 = vadd.f32 %v6616_v7, %v6528_v9  ;;  %v4275_v30 = vor.u32 %v4274_v52, %v4271_v28  ;;  %v4290_v9 = vrot.slane %v4288_v0, 5  ;;  %v3824_v7 = vld [vmem:[#allocation2 + $0x64] sm:$0xf]  ;;  %v11791_v25 = vrot.slane %v3823_v2, 9  ;;  %v13699_v28 = vld [vmem:[#allocation3 + $0x118] sm:$0xf0] }
 0x2ac   : > { %v4284_v39 = vor.u32 %v4283_v29, %v4280_v60  ;;  %v13694_v60 = vld [vmem:[#allocation3 + $0xf4] sm:$0xf]  ;;  %v11938_v29 = vld [vmem:[#allocation3 + $0x114] sm:$0xf0]  ;;  %v4098_v2 = vld [vmem:[#allocation2 + $0x6c] sm:$0xe] }
 0x2ad   : > { %17371 = vst [vmem:[#allocation80_spill] sm:$0xff] %v15759_v26  ;;  %v4276_v31 = vrot.slane %v4275_v30, 4 }
 0x2ae   : > { %v15763_v55 = vpop.f32.mrf.mxu3  ;;  %v4286_v62 = vrot.slane %v4284_v39, 4  ;;  %v15769_v54 = vpop.f32.mrf.mxu2 }
 0x2af   : > { %17372 = vst [vmem:[#allocation81_spill] sm:$0xff] %v15763_v55  ;;  %v4285_v24 = vsel %vm14693_vm7, %v4276_v31, %v4284_v39 }
 0x2b0   : > { %4618 = vst [vmem:[#allocation3 + $0x188] sm:$0xf] %v4285_v24  ;;  %v4297_v24 = vshrl.u32 %v4098_v2, 16 }
 0x2b2   : > { %6842 = vmatmul.bf16.gmra.mxu0 %v11909_v5  ;;  %v15765_v19 = vpop.f32.mrf.mxu0  ;;  %v15767_v13 = vpop.f32.mrf.mxu1  ;;  %v4293_v5 = vrot.slane %v4291_v8, 6 }
 0x2b3   : > { %6753 = vmatmul.bf16.gmra.mxu3 %v11905_v12  ;;  %17373 = vst [vmem:[#allocation82_spill] sm:$0xff] %v15765_v19  ;;  %v3941_v12 = vrot.slane %v3824_v7, 5  ;;  %v3944_v19 = vrot.slane %v3825_v22, 5  ;;  %v4099_v22 = vld [vmem:[#allocation2 + $0x70] sm:$0xf] }
 0x2b4   : > { %17374 = vst [vmem:[#allocation83_spill] sm:$0xff] %v15767_v13  ;;  %v4294_v26 = vor.u32 %v4293_v5, %v4290_v9  ;;  %v11944_v13 = vld [vmem:[#allocation3 + $0xf8] sm:$0xf]  ;;  %v11941_v5 = vor.u32 %v13694_v60, %v11938_v29 }
 0x2b5   : > { %v3943_v11 = vrot.slane %v3941_v12, 4  ;;  %v3942_v8 = vsel %vm14718_vm13, %v11791_v25, %v3941_v12  ;;  %v11945_v9 = vor.u32 %v13699_v28, %v11944_v13  ;;  %v4306_v12 = vshrl.u32 %v4099_v22, 16 }
 0x2b6   : > { %v4295_v52 = vsel %vm14693_vm7, %v4286_v62, %v4294_v26  ;;  %4058 = vst [vmem:[#allocation3 + $0x184] sm:$0xf] %v3942_v8  ;;  %v4309_v25 = vshll.u32 %v4099_v22, 16  ;;  %v4299_v28 = vrot.slane %v4297_v24, 5  ;;  %v3826_v24 = vld [vmem:[#allocation2 + $0x6c] sm:$0xe] }
 0x2b7   : > { %4619 = vst [vmem:[#allocation3 + $0x1ac] sm:$0xf] %v4295_v52  ;;  %v3945_v30 = vsel %vm14718_vm13, %v3943_v11, %v3944_v19  ;;  %v4300_v52 = vshll.u32 %v4098_v2, 16  ;;  %v14037_v19 = vld [vmem:[#allocation10 + $0x68] sm:$0xff]  ;;  %v4100_v11 = vld [vmem:[#allocation2 + $0x74] sm:$0x3] }
 0x2b8   : > { %4059 = vst [vmem:[#allocation3 + $0x1a8] sm:$0xf] %v3945_v30  ;;  %v4308_v60 = vrot.slane %v4306_v12, 5  ;;  %10544 = vmatpush.bf16.msra.mxu2 %v14037_v19  ;;  %v4311_v29 = vrot.slane %v4309_v25, 6  ;;  %v4319_v8 = vshll.u32 %v4100_v11, 16  ;;  %v11792_v25 = vrot.slane %v3826_v24, 9 }
 0x2b9   : > { %v6443_v0 = vpop.f32.mrf.mxu3  ;;  %v4102_v24 = vld [vmem:[#allocation2 + $0x7c] sm:$0xf] }
 0x2ba   : > { %v6444_v39 = vadd.f32 %v6443_v0, %v15413_v59  ;;  %v15782_v59 = vpop.f32.mrf.mxu2  ;;  %v4316_v0 = vshrl.u32 %v4100_v11, 16 }
 0x2bc   : > { %v6533_v7 = vadd.f32 %v6532_v6, %v6444_v39  ;;  %v4302_v6 = vrot.slane %v4300_v52, 6  ;;  %v4312_v39 = vor.u32 %v4311_v29, %v4308_v60  ;;  %v3828_v52 = vld [vmem:[#allocation2 + $0x74] sm:$0x1]  ;;  %v13703_v29 = vld [vmem:[#allocation3 + $0x13c] sm:$0xf] }
 0x2bd   : > { %v3951_v11 = vrot.slane %v3828_v52, 5 }
 0x2be   : > { %v6537_v31 = vpop.f32.mrf.mxu0  ;;  %v4303_v30 = vor.u32 %v4302_v6, %v4299_v28  ;;  %v4314_v55 = vrot.slane %v4312_v39, 4  ;;  %v11980_v28 = vld [vmem:[#allocation3 + $0x140] sm:$0xf]  ;;  %v13708_v6 = vld [vmem:[#allocation3 + $0x160] sm:$0xf0] }
 0x2bf   : > { %v6621_v26 = vpop.f32.mrf.mxu1 }
 0x2c0   : > { %v15780_v62 = vadd.f32 %v6621_v26, %v6533_v7  ;;  %v4321_v7 = vrot.slane %v4319_v8, 6  ;;  %v3827_v26 = vld [vmem:[#allocation2 + $0x70] sm:$0xf] }
 0x2c1   : > { %v15784_v13 = vpop.f32.mrf.mxu3  ;;  %v3948_v22 = vrot.slane %v3827_v26, 5 }
 0x2c2   : > { %17375 = vst [vmem:[#allocation84_spill] sm:$0xff] %v15780_v62  ;;  %6847 = vmatmul.bf16.gmra.mxu0 %v11945_v9  ;;  %v4318_v9 = vrot.slane %v4316_v0, 5  ;;  %v11974_v0 = vld [vmem:[#allocation3 + $0x15c] sm:$0xf0] }
 0x2c3   : > { %6758 = vmatmul.bf16.gmra.mxu3 %v11941_v5  ;;  %17376 = vst [vmem:[#allocation85_spill] sm:$0xff] %v15784_v13  ;;  %v4304_v5 = vrot.slane %v4303_v30, 4  ;;  %v3950_v19 = vrot.slane %v3948_v22, 4  ;;  %v3949_v8 = vsel %vm14718_vm13, %v11792_v25, %v3948_v22  ;;  %v11977_v26 = vor.u32 %v13703_v29, %v11974_v0 }
 0x2c4   : > { %v4322_v13 = vor.u32 %v4321_v7, %v4318_v9  ;;  %4060 = vst [vmem:[#allocation3 + $0x1cc] sm:$0xf] %v3949_v8  ;;  %v11981_v9 = vor.u32 %v13708_v6, %v11980_v28  ;;  %v4334_v22 = vshrl.u32 %v4102_v24, 16  ;;  %v4337_v25 = vshll.u32 %v4102_v24, 16  ;;  %v14036_v8 = vld [vmem:[#allocation10 + $0x60] sm:$0xff] }
 0x2c5   : > { %v4313_v12 = vsel %vm14693_vm7, %v4304_v5, %v4312_v39  ;;  %v3952_v30 = vsel %vm14718_vm13, %v3950_v19, %v3951_v11  ;;  %v15798_v39 = vpop.f32.mrf.mxu2  ;;  %v4103_v28 = vld [vmem:[#allocation2 + $0x80] sm:$0x3]  ;;  %10545 = vmatpush.bf16.msra.mxu2 %v14036_v8 }
 0x2c6   : > { %v15788_v62 = vpop.f32.mrf.mxu0  ;;  %v4323_v60 = vsel %vm14693_vm7, %v4314_v55, %v4322_v13  ;;  %4620 = vst [vmem:[#allocation3 + $0x1d0] sm:$0xf] %v4313_v12  ;;  %v4101_v13 = vld [vmem:[#allocation2 + $0x78] sm:$0xe]  ;;  %v4336_v29 = vrot.slane %v4334_v22, 5  ;;  %v4347_v0 = vshll.u32 %v4103_v28, 16 }
 0x2c7   : > { %v15786_v2 = vpop.f32.mrf.mxu1  ;;  %17378 = vst [vmem:[#allocation87_spill] sm:$0xff] %v15788_v62  ;;  %v4325_v12 = vshrl.u32 %v4101_v13, 16  ;;  %v3829_v22 = vld [vmem:[#allocation2 + $0x78] sm:$0xe]  ;;  %v3831_v8 = vld [vmem:[#allocation2 + $0x80] sm:$0x1] }
 0x2c8   : > { %17377 = vst [vmem:[#allocation86_spill] sm:$0xff] %v15786_v2  ;;  %v4349_v24 = vrot.slane %v4347_v0, 6  ;;  %v13712_v0 = vld [vmem:[#allocation3 + $0x184] sm:$0xf] }
 0x2c9   : > { %4621 = vst [vmem:[#allocation3 + $0x1f4] sm:$0xf] %v4323_v60  ;;  %v4328_v60 = vshll.u32 %v4101_v13, 16  ;;  %v4327_v6 = vrot.slane %v4325_v12, 5 }
 0x2ca   : > { %v6448_v7 = vpop.f32.mrf.mxu3  ;;  %4061 = vst [vmem:[#allocation3 + $0x1f0] sm:$0xf] %v3952_v30 }
 0x2cb   : > { %v6449_v5 = vadd.f32 %v6448_v7, %v15316_v32  ;;  %v4330_v30 = vrot.slane %v4328_v60, 6  ;;  %v4339_v32 = vrot.slane %v4337_v25, 6 }
 0x2cd   : > { %v6538_v55 = vadd.f32 %v6537_v31, %v6449_v5  ;;  %v4344_v31 = vshrl.u32 %v4103_v28, 16  ;;  %v4331_v5 = vor.u32 %v4330_v30, %v4327_v6  ;;  %v4340_v13 = vor.u32 %v4339_v32, %v4336_v29  ;;  %v12016_v29 = vld [vmem:[#allocation3 + $0x188] sm:$0xf]  ;;  %v13717_v32 = vld [vmem:[#allocation3 + $0x1a8] sm:$0xf0] }
 0x2ce   : > { %v3958_v30 = vrot.slane %v3831_v8, 5 }
 0x2cf   : > { %v4346_v62 = vrot.slane %v4344_v31, 5  ;;  %v4342_v12 = vrot.slane %v4340_v13, 4 }
 0x2d0   : > { %v6542_v11 = vpop.f32.mrf.mxu0 }
 0x2d1   : > { %v6626_v52 = vpop.f32.mrf.mxu1  ;;  %v4350_v60 = vor.u32 %v4349_v24, %v4346_v62 }
 0x2d2   : > { %6852 = vmatmul.bf16.gmra.mxu0 %v11981_v9  ;;  %v15801_v19 = vadd.f32 %v6626_v52, %v6538_v55  ;;  %v15803_v7 = vpop.f32.mrf.mxu3  ;;  %v14024_v9 = vld [vmem:[#allocation10] sm:$0xff]  ;;  %v15805_v55 = vpop.f32.mrf.mxu2  ;;  %v4332_v52 = vrot.slane %v4331_v5, 4 }
 0x2d3   : > { %6763 = vmatmul.bf16.gmra.mxu3 %v11977_v26  ;;  %17380 = vst [vmem:[#allocation89_spill] sm:$0xff] %v15803_v7  ;;  %v3830_v26 = vld [vmem:[#allocation2 + $0x7c] sm:$0xf]  ;;  %10460 = vmatpush.bf16.msra.mxu1 %v14024_v9  ;;  %v11793_v7 = vrot.slane %v3829_v22, 9  ;;  %v4351_v31 = vsel %vm14693_vm7, %v4342_v12, %v4350_v60  ;;  %v12010_v9 = vld [vmem:[#allocation3 + $0x1a4] sm:$0xf0] }
 0x2d4   : > { %17379 = vst [vmem:[#allocation88_spill] sm:$0xff] %v15801_v19  ;;  %v3955_v19 = vrot.slane %v3830_v26, 5  ;;  %v4341_v28 = vsel %vm14693_vm7, %v4332_v52, %v4340_v13  ;;  %v12017_v13 = vor.u32 %v13717_v32, %v12016_v29  ;;  %v12013_v26 = vor.u32 %v13712_v0, %v12010_v9  ;;  %v14035_v52 = vld [vmem:[#allocation10 + $0x58] sm:$0xff]  ;;  %v14034_v12 = vld [vmem:[#allocation10 + $0x50] sm:$0xff] }
 0x2d5   : > { %4622 = vst [vmem:[#allocation3 + $0x218] sm:$0xf] %v4341_v28  ;;  %10546 = vmatpush.bf16.msra.mxu2 %v14035_v52  ;;  %v4104_v60 = vld [vmem:[#allocation2 + $0x84] sm:$0xe]  ;;  %v4105_v28 = vld [vmem:[#allocation2 + $0x88] sm:$0xf]  ;;  %v6278_v32 = vadd.f32 %v15242_v21, %v15120_v45 }
 0x2d6   : > { %v3957_v6 = vrot.slane %v3955_v19, 4  ;;  %4623 = vst [vmem:[#allocation3 + $0x23c] sm:$0xf] %v4351_v31  ;;  %v3956_v62 = vsel %vm14718_vm13, %v11793_v7, %v3955_v19  ;;  %v4353_v19 = vshrl.u32 %v4104_v60, 16  ;;  %v4356_v7 = vshll.u32 %v4104_v60, 16 }
 0x2d7   : > { %4062 = vst [vmem:[#allocation3 + $0x214] sm:$0xf] %v3956_v62  ;;  %v4106_v29 = vld [vmem:[#allocation2 + $0x8c] sm:$0x3]  ;;  %v6367_v60 = vadd.f32 %v15370_v36, %v6278_v32 }
 0x2d8   : > { %v3959_v5 = vsel %vm14718_vm13, %v3957_v6, %v3958_v30  ;;  %v6544_v24 = vpop.f32.mrf.mxu0  ;;  %v4365_v6 = vshll.u32 %v4105_v28, 16  ;;  %v4355_v9 = vrot.slane %v4353_v19, 5  ;;  %v3962_v19 = vrot.slane %v3833_v33, 5 }
 0x2d9   : > { %v15807_v25 = vpop.f32.mrf.mxu1  ;;  %4063 = vst [vmem:[#allocation3 + $0x238] sm:$0xf] %v3959_v5  ;;  %10547 = vmatpush.bf16.msra.mxu2 %v14034_v12 }
 0x2da   : > { %17381 = vst [vmem:[#allocation90_spill] sm:$0xff] %v15807_v25  ;;  %v15818_v31 = vpop.f32.mrf.mxu2  ;;  %v4362_v25 = vshrl.u32 %v4105_v28, 16  ;;  %v4367_v52 = vrot.slane %v4365_v6, 6  ;;  %v3832_v6 = vld [vmem:[#allocation2 + $0x84] sm:$0xe]  ;;  %v3964_v32 = vrot.slane %v3962_v19, 4 }
 0x2db   : > { %v11794_v36 = vrot.slane %v3832_v6, 9  ;;  %v4107_v6 = vld [vmem:[#allocation2 + $0x90] sm:$0xe] }
 0x2dc   : > { %v4364_v62 = vrot.slane %v4362_v25, 5  ;;  %v14032_v25 = vld [vmem:[#allocation10 + $0x40] sm:$0xff] }
 0x2dd   : > { %v6453_v22 = vpop.f32.mrf.mxu3 }
 0x2de   : > { %v6454_v8 = vadd.f32 %v6453_v22, %v15354_v38  ;;  %v4358_v38 = vrot.slane %v4356_v7, 6  ;;  %v4372_v22 = vshrl.u32 %v4106_v29, 16 }
 0x2e0   : > { %v6543_v30 = vadd.f32 %v6542_v11, %v6454_v8  ;;  %v4359_v2 = vor.u32 %v4358_v38, %v4355_v9  ;;  %v4368_v11 = vor.u32 %v4367_v52, %v4364_v62  ;;  %v4374_v8 = vrot.slane %v4372_v22, 5  ;;  %v12052_v62 = vld [vmem:[#allocation3 + $0x1d0] sm:$0xf]  ;;  %v13726_v52 = vld [vmem:[#allocation3 + $0x1f0] sm:$0xf0] }
 0x2e1   : > { %v6547_v28 = vpop.f32.mrf.mxu0 }
 0x2e2   : > { %6857 = vmatmul.bf16.gmra.mxu0 %v12017_v13  ;;  %v6631_v0 = vpop.f32.mrf.mxu1  ;;  %v4375_v13 = vshll.u32 %v4106_v29, 16  ;;  %v4360_v21 = vrot.slane %v4359_v2, 4  ;;  %v15831_v2 = vpop.f32.mrf.mxu2 }
 0x2e3   : > { %6768 = vmatmul.bf16.gmra.mxu3 %v12013_v26  ;;  %v15822_v5 = vadd.f32 %v6631_v0, %v6543_v30  ;;  %v14033_v26 = vld [vmem:[#allocation10 + $0x48] sm:$0xff]  ;;  %v4370_v30 = vrot.slane %v4368_v11, 4  ;;  %v3834_v0 = vld [vmem:[#allocation2 + $0x8c] sm:$0x1] }
 0x2e4   : > { %v4377_v10 = vrot.slane %v4375_v13, 6  ;;  %10548 = vmatpush.bf16.msra.mxu2 %v14033_v26  ;;  %v4369_v29 = vsel %vm14693_vm7, %v4360_v21, %v4368_v11  ;;  %v3965_v9 = vrot.slane %v3834_v0, 5  ;;  %v12046_v13 = vld [vmem:[#allocation3 + $0x1ec] sm:$0xf0]  ;;  %v13880_v26 = vld [vmem:[#allocation3 + $0x4] sm:$0xf] }
 0x2e5   : > { %17382 = vst [vmem:[#allocation91_spill] sm:$0xff] %v15822_v5  ;;  %v6455_v45 = vpop.f32.mrf.mxu3  ;;  %v12766_v11 = vld [vmem:[#allocation3 + $0x24] sm:$0xf0]  ;;  %v4108_v0 = vld [vmem:[#allocation2 + $0x94] sm:$0xf] }
 0x2e6   : > { %v6456_v7 = vadd.f32 %v6455_v45, %v6367_v60  ;;  %v4378_v12 = vor.u32 %v4377_v10, %v4374_v8  ;;  %4624 = vst [vmem:[#allocation3 + $0x260] sm:$0xf] %v4369_v29  ;;  %v13721_v10 = vld [vmem:[#allocation3 + $0x1cc] sm:$0xf]  ;;  %v3963_v60 = vsel %vm14718_vm13, %v11794_v36, %v3962_v19  ;;  %v12053_v8 = vor.u32 %v13726_v52, %v12052_v62 }
 0x2e7   : > { %4064 = vst [vmem:[#allocation3 + $0x25c] sm:$0xf] %v3963_v60  ;;  %v12769_v45 = vor.u32 %v13880_v26, %v12766_v11  ;;  %v12049_v21 = vor.u32 %v13721_v10, %v12046_v13  ;;  %v4381_v29 = vshrl.u32 %v4107_v6, 16  ;;  %v4384_v36 = vshll.u32 %v4107_v6, 16  ;;  %v4109_v10 = vld [vmem:[#allocation2 + $0x98] sm:$0x3] }
 0x2e8   : > { %v15827_v38 = vadd.f32 %v6544_v24, %v6456_v7  ;;  %v4379_v33 = vsel %vm14693_vm7, %v4370_v30, %v4378_v12  ;;  %v3966_v24 = vsel %vm14718_vm13, %v3964_v32, %v3965_v9  ;;  %10549 = vmatpush.bf16.msra.mxu2 %v14032_v25  ;;  %v14047_v12 = vld [vmem:[#allocation10 + $0xb8] sm:$0xff]  ;;  %v4390_v32 = vshrl.u32 %v4108_v0, 16  ;;  %v12764_v25 = vld [vmem:[#allocation3] sm:$0xf]  ;;  %v13884_v9 = vld [vmem:[#allocation3 + $0x20] sm:$0xf0] }
 0x2e9   : > { %4625 = vst [vmem:[#allocation3 + $0x284] sm:$0xf] %v4379_v33  ;;  %v6549_v30 = vpop.f32.mrf.mxu0  ;;  %10631 = vmatpush.bf16.msrb.mxu3 %v14047_v12  ;;  %v12765_v52 = vor.u32 %v13884_v9, %v12764_v25  ;;  %v4383_v13 = vrot.slane %v4381_v29, 5  ;;  %v4386_v60 = vrot.slane %v4384_v36, 6  ;;  %v4393_v26 = vshll.u32 %v4108_v0, 16 }
 0x2ea   : > { %17383 = vst [vmem:[#allocation92_spill] sm:$0xff] %v15827_v38  ;;  %v15833_v22 = vpop.f32.mrf.mxu1  ;;  %v4400_v11 = vshrl.u32 %v4109_v10, 16  ;;  %v3836_v12 = vld [vmem:[#allocation2 + $0x94] sm:$0xf]  ;;  %v3835_v9 = vld [vmem:[#allocation2 + $0x90] sm:$0xe] }
 0x2eb   : > { %17384 = vst [vmem:[#allocation93_spill] sm:$0xff] %v15833_v22  ;;  %10550 = vmatmul.bf16.vlgmr.msra.gmra.mxu2 %v12769_v45  ;;  %10461 = vmatmul.bf16.vlgmr.msra.gmra.mxu1 %v12765_v52  ;;  %v3969_v36 = vrot.slane %v3836_v12, 5  ;;  %v3837_v22 = vld [vmem:[#allocation2 + $0x98] sm:$0x1]  ;;  %v11795_v38 = vrot.slane %v3835_v9, 9 }
 0x2ec   : > { %4065 = vst [vmem:[#allocation3 + $0x280] sm:$0xf] %v3966_v24  ;;  %v4392_v24 = vrot.slane %v4390_v32, 5  ;;  %v4402_v6 = vrot.slane %v4400_v11, 5  ;;  %v12088_v52 = vld [vmem:[#allocation3 + $0x218] sm:$0xf] }
 0x2ed   : > { %v13730_v11 = vld [vmem:[#allocation3 + $0x214] sm:$0xf] }
 0x2f0   : > { %v6458_v7 = vpop.f32.mrf.mxu3 }
 0x2f1   : > { %v6459_v19 = vadd.f32 %v6458_v7, %v15381_v56  ;;  %v15842_v56 = vpop.f32.mrf.mxu2  ;;  %v4387_v7 = vor.u32 %v4386_v60, %v4383_v13 }
 0x2f2   : > { %6862 = vmatmul.bf16.gmra.mxu0 %v12053_v8  ;;  %v6636_v62 = vpop.f32.mrf.mxu1  ;;  %v6283_v8 = vadd.f32 %v15273_v40, %v15160_v47 }
 0x2f3   : > { %6773 = vmatmul.bf16.gmra.mxu3 %v12049_v21  ;;  %v6548_v33 = vadd.f32 %v6547_v28, %v6459_v19  ;;  %v4403_v21 = vshll.u32 %v4109_v10, 16  ;;  %v4395_v28 = vrot.slane %v4393_v26, 6  ;;  %v4388_v0 = vrot.slane %v4387_v7, 4  ;;  %v13735_v10 = vld [vmem:[#allocation3 + $0x238] sm:$0xf0] }
 0x2f4   : > { %v6372_v19 = vadd.f32 %v15401_v3, %v6283_v8  ;;  %v3972_v26 = vrot.slane %v3837_v22, 5  ;;  %v12082_v8 = vld [vmem:[#allocation3 + $0x234] sm:$0xf0]  ;;  %v12802_v7 = vld [vmem:[#allocation3 + $0x6c] sm:$0xf0]  ;;  %v12089_v12 = vor.u32 %v13735_v10, %v12088_v52 }
 0x2f5   : > { %v15844_v45 = vadd.f32 %v6636_v62, %v6548_v33  ;;  %v4405_v29 = vrot.slane %v4403_v21, 6  ;;  %v4396_v25 = vor.u32 %v4395_v28, %v4392_v24  ;;  %v3971_v33 = vrot.slane %v3969_v36, 4  ;;  %v13889_v21 = vld [vmem:[#allocation3 + $0x4c] sm:$0xf] }
 0x2f6   : > { %v3970_v24 = vsel %vm14718_vm13, %v11795_v38, %v3969_v36  ;;  %v12085_v22 = vor.u32 %v13730_v11, %v12082_v8  ;;  %v4110_v38 = vld [vmem:[#allocation2 + $0x9c] sm:$0xe]  ;;  %v4111_v36 = vld [vmem:[#allocation2 + $0xa0] sm:$0xf] }
 0x2f7   : > { %17385 = vst [vmem:[#allocation94_spill] sm:$0xff] %v15844_v45  ;;  %v4406_v40 = vor.u32 %v4405_v29, %v4402_v6  ;;  %v4397_v13 = vsel %vm14693_vm7, %v4388_v0, %v4396_v25  ;;  %v4398_v60 = vrot.slane %v4396_v25, 4  ;;  %v3973_v6 = vsel %vm14718_vm13, %v3971_v33, %v3972_v26  ;;  %v14063_v29 = vld [vmem:[#allocation10 + $0x138] sm:$0xff]  ;;  %v12800_v33 = vld [vmem:[#allocation3 + $0x48] sm:$0xf] }
 0x2f8   : > { %v6460_v32 = vpop.f32.mrf.mxu3  ;;  %v6552_v62 = vpop.f32.mrf.mxu0  ;;  %4626 = vst [vmem:[#allocation3 + $0x2a8] sm:$0xf] %v4397_v13  ;;  %10809 = vmatpush.bf16.msrb.mxu1 %v14063_v29  ;;  %v4409_v25 = vshrl.u32 %v4110_v38, 16  ;;  %v4412_v9 = vshll.u32 %v4110_v38, 16  ;;  %v13893_v52 = vld [vmem:[#allocation3 + $0x68] sm:$0xf0] }
 0x2f9   : > { %v6461_v47 = vadd.f32 %v6460_v32, %v6372_v19  ;;  %v4407_v28 = vsel %vm14693_vm7, %v4398_v60, %v4406_v40  ;;  %4066 = vst [vmem:[#allocation3 + $0x2a4] sm:$0xf] %v3970_v24  ;;  %v12805_v19 = vor.u32 %v13889_v21, %v12802_v7  ;;  %v15857_v32 = vpop.f32.mrf.mxu2  ;;  %v4421_v40 = vshll.u32 %v4111_v36, 16  ;;  %v4112_v13 = vld [vmem:[#allocation2 + $0xa4] sm:$0x3] }
 0x2fa   : > { %4627 = vst [vmem:[#allocation3 + $0x2cc] sm:$0xf] %v4407_v28  ;;  %v15859_v0 = vpop.f32.mrf.mxu1  ;;  %v12801_v10 = vor.u32 %v13893_v52, %v12800_v33  ;;  %v4411_v60 = vrot.slane %v4409_v25, 5  ;;  %v4414_v26 = vrot.slane %v4412_v9, 6  ;;  %v4428_v21 = vshrl.u32 %v4112_v13, 16 }
 0x2fb   : > { %v15849_v3 = vadd.f32 %v6549_v30, %v6461_v47  ;;  %v14055_v30 = vld [vmem:[#allocation10 + $0xf8] sm:$0xff]  ;;  %4067 = vst [vmem:[#allocation3 + $0x2c8] sm:$0xf] %v3973_v6  ;;  %10555 = vmatmul.bf16.gmra.mxu2 %v12805_v19  ;;  %v4418_v47 = vshrl.u32 %v4111_v36, 16  ;;  %v4423_v24 = vrot.slane %v4421_v40, 6  ;;  %v4431_v7 = vshll.u32 %v4112_v13, 16 }
 0x2fc   : > { %17387 = vst [vmem:[#allocation96_spill] sm:$0xff] %v15859_v0  ;;  %10720 = vmatpush.bf16.msrb.mxu0 %v14055_v30  ;;  %10466 = vmatmul.bf16.gmra.mxu1 %v12801_v10  ;;  %v4415_v6 = vor.u32 %v4414_v26, %v4411_v60  ;;  %v4430_v30 = vrot.slane %v4428_v21, 5  ;;  %v3839_v29 = vld [vmem:[#allocation2 + $0xa0] sm:$0xf]  ;;  %v3838_v25 = vld [vmem:[#allocation2 + $0x9c] sm:$0xe]  ;;  %v6288_v26 = vadd.f32 %v15302_v48, %v15191_v15 }
 0x2fd   : > { %17386 = vst [vmem:[#allocation95_spill] sm:$0xff] %v15849_v3  ;;  %v4420_v8 = vrot.slane %v4418_v47, 5  ;;  %v4433_v38 = vrot.slane %v4431_v7, 6  ;;  %v3976_v36 = vrot.slane %v3839_v29, 5  ;;  %v3840_v9 = vld [vmem:[#allocation2 + $0xa4] sm:$0x1] }
 0x2fe   : > { %v12124_v40 = vld [vmem:[#allocation3 + $0x260] sm:$0xf]  ;;  %v11796_v60 = vrot.slane %v3838_v25, 9  ;;  %v13739_v21 = vld [vmem:[#allocation3 + $0x25c] sm:$0xf] }
 0x2ff   : > { %v4424_v19 = vor.u32 %v4423_v24, %v4420_v8  ;;  %v4434_v13 = vor.u32 %v4433_v38, %v4430_v30  ;;  %v13744_v24 = vld [vmem:[#allocation3 + $0x280] sm:$0xf0]  ;;  %v12118_v7 = vld [vmem:[#allocation3 + $0x27c] sm:$0xf0]  ;;  %v17404_v3 = vld [vmem:[#allocation61_spill] sm:$0xff] }
 0x300   : > { %v6554_v11 = vpop.f32.mrf.mxu0  ;;  %v12125_v48 = vor.u32 %v13744_v24, %v12124_v40  ;;  %v3850_v45 = vld [vmem:[#allocation2 + $0xcc] sm:$0xe] }
 0x301   : > { %v4426_v52 = vrot.slane %v4424_v19, 4  ;;  %v15862_v0 = vpop.f32.mrf.mxu2 }
 0x302   : > { %6867 = vmatmul.bf16.gmra.mxu0 %v12089_v12 }
 0x303   : > { %6778 = vmatmul.bf16.gmra.mxu3 %v12085_v22  ;;  %v4416_v22 = vrot.slane %v4415_v6, 4  ;;  %v3977_v6 = vsel %vm14718_vm13, %v11796_v60, %v3976_v36 }
 0x304   : > { %4068 = vst [vmem:[#allocation3 + $0x2ec] sm:$0xf] %v3977_v6 }
 0x305   : > { %v6463_v28 = vpop.f32.mrf.mxu3  ;;  %v4425_v10 = vsel %vm14693_vm7, %v4416_v22, %v4424_v19  ;;  %v12121_v22 = vor.u32 %v13739_v21, %v12118_v7 }
 0x306   : > { %v6464_v12 = vadd.f32 %v6463_v28, %v15424_v37  ;;  %v3978_v37 = vrot.slane %v3976_v36, 4  ;;  %4628 = vst [vmem:[#allocation3 + $0x2f0] sm:$0xf] %v4425_v10  ;;  %v4435_v28 = vsel %vm14693_vm7, %v4426_v52, %v4434_v13  ;;  %v4114_v52 = vld [vmem:[#allocation2 + $0xac] sm:$0xf] }
 0x307   : > { %4629 = vst [vmem:[#allocation3 + $0x314] sm:$0xf] %v4435_v28 }
 0x308   : > { %v6553_v33 = vadd.f32 %v6552_v62, %v6464_v12  ;;  %v3979_v62 = vrot.slane %v3840_v9, 5  ;;  %v6377_v12 = vadd.f32 %v15434_v61, %v6288_v26  ;;  %v4446_v9 = vshrl.u32 %v4114_v52, 16 }
 0x309   : > { %v4449_v61 = vshll.u32 %v4114_v52, 16  ;;  %v15879_v10 = vpop.f32.mrf.mxu2 }
 0x30a   : > { %v6641_v47 = vpop.f32.mrf.mxu1  ;;  %v3980_v19 = vsel %vm14718_vm13, %v3978_v37, %v3979_v62  ;;  %v4448_v60 = vrot.slane %v4446_v9, 5 }
 0x30b   : > { %v15868_v8 = vadd.f32 %v6641_v47, %v6553_v33  ;;  %4069 = vst [vmem:[#allocation3 + $0x310] sm:$0xf] %v3980_v19  ;;  %v4113_v33 = vld [vmem:[#allocation2 + $0xa8] sm:$0xe]  ;;  %v4115_v47 = vld [vmem:[#allocation2 + $0xb0] sm:$0x3] }
 0x30c   : > { %v4437_v25 = vshrl.u32 %v4113_v33, 16  ;;  %v4440_v36 = vshll.u32 %v4113_v33, 16  ;;  %v4451_v37 = vrot.slane %v4449_v61, 6  ;;  %v4456_v26 = vshrl.u32 %v4115_v47, 16  ;;  %v3842_v19 = vld [vmem:[#allocation2 + $0xac] sm:$0xf] }
 0x30d   : > { %17388 = vst [vmem:[#allocation97_spill] sm:$0xff] %v15868_v8  ;;  %v6465_v15 = vpop.f32.mrf.mxu3  ;;  %v4459_v24 = vshll.u32 %v4115_v47, 16  ;;  %v14046_v33 = vld [vmem:[#allocation10 + $0xb0] sm:$0xff] }
 0x30e   : > { %v6466_v30 = vadd.f32 %v6465_v15, %v6377_v12  ;;  %v4439_v13 = vrot.slane %v4437_v25, 5  ;;  %v4442_v40 = vrot.slane %v4440_v36, 6  ;;  %v4452_v21 = vor.u32 %v4451_v37, %v4448_v60  ;;  %v3841_v25 = vld [vmem:[#allocation2 + $0xa8] sm:$0xe]  ;;  %v3843_v36 = vld [vmem:[#allocation2 + $0xb0] sm:$0x1]  ;;  %10632 = vmatpush.bf16.msrb.mxu3 %v14046_v33 }
 0x30f   : > { %v6833_v29 = vpop.f32.mrf.mxu0  ;;  %v4458_v6 = vrot.slane %v4456_v26, 5  ;;  %v4461_v12 = vrot.slane %v4459_v24, 6  ;;  %v11797_v61 = vrot.slane %v3841_v25, 9  ;;  %v12160_v26 = vld [vmem:[#allocation3 + $0x2a8] sm:$0xf] }
 0x310   : > { %v15877_v38 = vadd.f32 %v6554_v11, %v6466_v30  ;;  %v4443_v11 = vor.u32 %v4442_v40, %v4439_v13  ;;  %v3983_v30 = vrot.slane %v3842_v19, 5  ;;  %v3986_v13 = vrot.slane %v3843_v36, 5  ;;  %v17390_v40 = vld [vmem:[#allocation20_spill] sm:$0xff]  ;;  %v13753_v24 = vld [vmem:[#allocation3 + $0x2c8] sm:$0xf0] }
 0x311   : > { %v4462_v52 = vor.u32 %v4461_v12, %v4458_v6  ;;  %v17392_v6 = vld [vmem:[#allocation22_spill] sm:$0xff]  ;;  %v12161_v33 = vor.u32 %v13753_v24, %v12160_v26  ;;  %v4118_v24 = vld [vmem:[#allocation2 + $0xbc] sm:$0x3] }
 0x312   : > { %17389 = vst [vmem:[#allocation98_spill] sm:$0xff] %v15877_v38  ;;  %6872 = vmatmul.bf16.gmra.mxu0 %v12125_v48  ;;  %v4444_v15 = vrot.slane %v4443_v11, 4  ;;  %v4454_v48 = vrot.slane %v4452_v21, 4  ;;  %v3985_v47 = vrot.slane %v3983_v30, 4  ;;  %v12154_v11 = vld [vmem:[#allocation3 + $0x2c4] sm:$0xf0] }
 0x313   : > { %6783 = vmatmul.bf16.gmra.mxu3 %v12121_v22  ;;  %v14053_v38 = vld [vmem:[#allocation10 + $0xe8] sm:$0xff] }
 0x314   : > { %v4453_v9 = vsel %vm14693_vm7, %v4444_v15, %v4452_v21  ;;  %v3984_v21 = vsel %vm14718_vm13, %v11797_v61, %v3983_v30  ;;  %v15893_v15 = vpop.f32.mrf.mxu2  ;;  %v14054_v30 = vld [vmem:[#allocation10 + $0xf0] sm:$0xff] }
 0x315   : > { %4630 = vst [vmem:[#allocation3 + $0x338] sm:$0xf] %v4453_v9  ;;  %v14062_v9 = vld [vmem:[#allocation10 + $0x130] sm:$0xff]  ;;  %10721 = vmatpush.bf16.msrb.mxu0 %v14054_v30 }
 0x316   : > { %v6744_v62 = vpop.f32.mrf.mxu3  ;;  %4070 = vst [vmem:[#allocation3 + $0x334] sm:$0xf] %v3984_v21  ;;  %10810 = vmatpush.bf16.msrb.mxu1 %v14062_v9 }
 0x317   : > { %v6745_v7 = vadd.f32 %v6744_v62, %v15461_v49  ;;  %v6835_v28 = vpop.f32.mrf.mxu0  ;;  %v17391_v49 = vld [vmem:[#allocation21_spill] sm:$0xff]  ;;  %v13748_v62 = vld [vmem:[#allocation3 + $0x2a4] sm:$0xf] }
 0x318   : > { %v6218_v60 = vadd.f32 %v17391_v49, %v17390_v40  ;;  %v12157_v36 = vor.u32 %v13748_v62, %v12154_v11 }
 0x319   : > { %v6834_v22 = vadd.f32 %v6833_v29, %v6745_v7  ;;  %v4463_v29 = vsel %vm14693_vm7, %v4454_v48, %v4462_v52  ;;  %v3987_v7 = vsel %vm14718_vm13, %v3985_v47, %v3986_v13  ;;  %v4116_v47 = vld [vmem:[#allocation2 + $0xb4] sm:$0xe]  ;;  %v4117_v13 = vld [vmem:[#allocation2 + $0xb8] sm:$0xf]  ;;  %10722 = vmatpush.bf16.msrb.mxu0 %v14053_v38 }
 0x31a   : > { %4631 = vst [vmem:[#allocation3 + $0x35c] sm:$0xf] %v4463_v29  ;;  %v6307_v12 = vadd.f32 %v17392_v6, %v6218_v60  ;;  %v4465_v40 = vshrl.u32 %v4116_v47, 16  ;;  %v4468_v49 = vshll.u32 %v4116_v47, 16  ;;  %v4474_v60 = vshrl.u32 %v4117_v13, 16  ;;  %v17405_v38 = vld [vmem:[#allocation59_spill] sm:$0xff] }
 0x31b   : > { %v6913_v37 = vpack.c.bf16 %v6834_v22, %v6834_v22  ;;  %4071 = vst [vmem:[#allocation3 + $0x358] sm:$0xf] %v3987_v7  ;;  %v4484_v7 = vshrl.u32 %v4118_v24, 16  ;;  %v4487_v6 = vshll.u32 %v4118_v24, 16  ;;  %v12196_v24 = vld [vmem:[#allocation3 + $0x2f0] sm:$0xf] }
 0x31c   : > { %v6396_v48 = vadd.f32 %v15493_v34, %v6307_v12  ;;  %v4467_v29 = vrot.slane %v4465_v40, 5  ;;  %v4470_v62 = vrot.slane %v4468_v49, 6  ;;  %v4476_v11 = vrot.slane %v4474_v60, 5 }
 0x31d   : > { %v6977_v19 = vrot.slane %v6913_v37, 7  ;;  %v4477_v37 = vshll.u32 %v4117_v13, 16  ;;  %v4486_v13 = vrot.slane %v4484_v7, 5  ;;  %v4489_v40 = vrot.slane %v4487_v6, 6  ;;  %v17393_v7 = vld [vmem:[#allocation23_spill] sm:$0xff]  ;;  %v17394_v6 = vld [vmem:[#allocation24_spill] sm:$0xff] }
 0x31e   : > { %v6746_v22 = vpop.f32.mrf.mxu3  ;;  %v6485_v26 = vadd.f32 %v15471_v63, %v6396_v48 }
 0x31f   : > { %7105 = vst [vmem:[#allocation2 + $0x18] sm:$0xe] %v6977_v19  ;;  %v6747_v52 = vadd.f32 %v6746_v22, %v15475_v51  ;;  %v6838_v25 = vpop.f32.mrf.mxu0  ;;  %v6978_v51 = vrot.slane %v6977_v19, 4  ;;  %v3845_v19 = vld [vmem:[#allocation2 + $0xb8] sm:$0xf] }
 0x320   : > { %v6574_v49 = vadd.f32 %v15491_v18, %v6485_v26  ;;  %v6223_v18 = vadd.f32 %v17394_v6, %v17393_v7  ;;  %v13757_v26 = vld [vmem:[#allocation3 + $0x2ec] sm:$0xf] }
 0x321   : > { %v6836_v61 = vadd.f32 %v6835_v28, %v6747_v52  ;;  %v4479_v28 = vrot.slane %v4477_v37, 6  ;;  %v3844_v37 = vld [vmem:[#allocation2 + $0xb4] sm:$0xe] }
 0x322   : > { %6877 = vmatmul.bf16.gmra.mxu0 %v12161_v33  ;;  %v4471_v33 = vor.u32 %v4470_v62, %v4467_v29  ;;  %v4490_v29 = vor.u32 %v4489_v40, %v4486_v13  ;;  %v11798_v62 = vrot.slane %v3844_v37, 9 }
 0x323   : > { %v6914_v34 = vpack.c.bf16 %v6836_v61, %v6836_v61  ;;  %6788 = vmatmul.bf16.gmra.mxu3 %v12157_v36  ;;  %v15901_v36 = vpop.f32.mrf.mxu2  ;;  %v4480_v47 = vor.u32 %v4479_v28, %v4476_v11  ;;  %v3990_v11 = vrot.slane %v3845_v19, 5 }
 0x324   : > { %v4472_v61 = vrot.slane %v4471_v33, 4 }
 0x325   : > { %v6979_v21 = vrot.slane %v6914_v34, 7  ;;  %v3846_v34 = vld [vmem:[#allocation2 + $0xbc] sm:$0x1] }
 0x326   : > { %v6749_v12 = vpop.f32.mrf.mxu3  ;;  %v7157_v22 = vld [vmem:[#allocation2 + $0x18] sm:$0xf]  ;;  %v3993_v28 = vrot.slane %v3846_v34, 5 }
 0x327   : > { %v7764_v52 = vld [vmem:[#allocation2 + $0x18] sm:$0xf]  ;;  %v6980_v30 = vsel %vm14710_vm10, %v6978_v51, %v6979_v21  ;;  %v6981_v9 = vrot.slane %v6979_v21, 4  ;;  %v6750_v63 = vadd.f32 %v6749_v12, %v15489_v4  ;;  %v6840_v48 = vpop.f32.mrf.mxu0  ;;  %7189 = vst [vmem:[#allocation3 + $0x90] sm:$0xf] %v7157_v22  ;;  %v4481_v4 = vsel %vm14693_vm7, %v4472_v61, %v4480_v47 }
 0x328   : > { %7106 = vst [vmem:[#allocation2 + $0x1c] sm:$0xf] %v6980_v30  ;;  %v4482_v51 = vrot.slane %v4480_v47, 4  ;;  %v13762_v12 = vld [vmem:[#allocation3 + $0x310] sm:$0xf0]  ;;  %v17395_v30 = vld [vmem:[#allocation55_spill] sm:$0xff] }
 0x329   : > { %7107 = vst [vmem:[#allocation2 + $0x20] sm:$0x1] %v6981_v9  ;;  %v6839_v60 = vadd.f32 %v6838_v25, %v6750_v63  ;;  %v12190_v25 = vld [vmem:[#allocation3 + $0x30c] sm:$0xf0]  ;;  %v7223_v22 = vld [vmem:[#allocation2 + $0x18] sm:$0xe]  ;;  %v6663_v9 = vadd.f32 %v17395_v30, %v6574_v49  ;;  %v12197_v40 = vor.u32 %v13762_v12, %v12196_v24 }
 0x32a   : > { %7796 = vst [vmem:[#allocation3 + $0xc] sm:$0xf] %v7764_v52  ;;  %v4491_v33 = vsel %vm14693_vm7, %v4482_v51, %v4490_v29  ;;  %v3991_v52 = vsel %vm14718_vm13, %v11798_v62, %v3990_v11  ;;  %v3992_v61 = vrot.slane %v3990_v11, 4  ;;  %v17396_v47 = vld [vmem:[#allocation25_spill] sm:$0xff]  ;;  %v12193_v34 = vor.u32 %v13757_v26, %v12190_v25  ;;  %v4119_v24 = vld [vmem:[#allocation2 + $0xc0] sm:$0xe] }
 0x32b   : > { %v6915_v21 = vpack.c.bf16 %v6839_v60, %v6839_v60  ;;  %4632 = vst [vmem:[#allocation3 + $0x380] sm:$0xf] %v4481_v4  ;;  %v6312_v19 = vadd.f32 %v17396_v47, %v6223_v18  ;;  %v12668_v7 = vrot.slane %v7223_v22, 9  ;;  %v15917_v12 = vpop.f32.mrf.mxu2  ;;  %v4120_v18 = vld [vmem:[#allocation2 + $0xc4] sm:$0xf]  ;;  %v4493_v26 = vshrl.u32 %v4119_v24, 16 }
 0x32c   : > { %4633 = vst [vmem:[#allocation3 + $0x3a4] sm:$0xf] %v4491_v33  ;;  %v3994_v49 = vsel %vm14718_vm13, %v3992_v61, %v3993_v28  ;;  %v4496_v25 = vshll.u32 %v4119_v24, 16  ;;  %v17397_v30 = vld [vmem:[#allocation56_spill] sm:$0xff]  ;;  %v4502_v61 = vshrl.u32 %v4120_v18, 16 }
 0x32d   : > { %v6982_v63 = vrot.slane %v6915_v21, 7  ;;  %4072 = vst [vmem:[#allocation3 + $0x37c] sm:$0xf] %v3991_v52  ;;  %v6401_v51 = vadd.f32 %v15521_v27, %v6312_v19 }
 0x32e   : > { %v6751_v13 = vpop.f32.mrf.mxu3  ;;  %4073 = vst [vmem:[#allocation3 + $0x3a0] sm:$0xf] %v3994_v49  ;;  %v4498_v52 = vrot.slane %v4496_v25, 6  ;;  %v4505_v25 = vshll.u32 %v4120_v18, 16 }
 0x32f   : > { %7108 = vst [vmem:[#allocation2 + $0x24] sm:$0xe] %v6982_v63  ;;  %v6752_v60 = vadd.f32 %v6751_v13, %v6663_v9  ;;  %v6843_v37 = vpop.f32.mrf.mxu0  ;;  %v7158_v4 = vld [vmem:[#allocation2 + $0x1c] sm:$0xf]  ;;  %v6490_v9 = vadd.f32 %v17397_v30, %v6401_v51  ;;  %v6983_v47 = vrot.slane %v6982_v63, 4  ;;  %v17398_v63 = vld [vmem:[#allocation57_spill] sm:$0xff] }
 0x330   : > { %7190 = vst [vmem:[#allocation3 + $0xb4] sm:$0xf] %v7158_v4  ;;  %v7224_v29 = vld [vmem:[#allocation2 + $0x1c] sm:$0xf]  ;;  %v7225_v62 = vld [vmem:[#allocation2 + $0x20] sm:$0x1] }
 0x331   : > { %v6841_v21 = vadd.f32 %v6840_v48, %v6752_v60  ;;  %v7329_v11 = vrot.slane %v7224_v29, 5  ;;  %v7332_v6 = vrot.slane %v7225_v62, 5  ;;  %v7765_v33 = vld [vmem:[#allocation2 + $0x1c] sm:$0xf]  ;;  %v4495_v48 = vrot.slane %v4493_v26, 5  ;;  %v17399_v30 = vld [vmem:[#allocation26_spill] sm:$0xff] }
 0x332   : > { %6882 = vmatmul.bf16.gmra.mxu0 %v12197_v40  ;;  %v12836_v13 = vld [vmem:[#allocation3 + $0x90] sm:$0xf]  ;;  %7797 = vst [vmem:[#allocation3 + $0x30] sm:$0xf] %v7765_v33  ;;  %v4121_v4 = vld [vmem:[#allocation2 + $0xc8] sm:$0x3] }
 0x333   : > { %v6916_v22 = vpack.c.bf16 %v6841_v21, %v6841_v21  ;;  %6793 = vmatmul.bf16.gmra.mxu3 %v12193_v34  ;;  %v7330_v28 = vsel %vm14718_vm13, %v12668_v7, %v7329_v11  ;;  %v7331_v27 = vrot.slane %v7329_v11, 4  ;;  %v4499_v7 = vor.u32 %v4498_v52, %v4495_v48  ;;  %v17400_v48 = vld [vmem:[#allocation27_spill] sm:$0xff] }
 0x334   : > { %7461 = vst [vmem:[#allocation3 + $0x94] sm:$0xf] %v7330_v28  ;;  %v6579_v11 = vadd.f32 %v17398_v63, %v6490_v9  ;;  %v4504_v26 = vrot.slane %v4502_v61, 5  ;;  %v14045_v28 = vld [vmem:[#allocation10 + $0xa8] sm:$0xff]  ;;  %v4515_v33 = vshll.u32 %v4121_v4, 16  ;;  %v6228_v52 = vadd.f32 %v17400_v48, %v17399_v30  ;;  %v17401_v61 = vld [vmem:[#allocation28_spill] sm:$0xff] }
 0x335   : > { %v6984_v19 = vrot.slane %v6916_v22, 7  ;;  %v7333_v40 = vsel %vm14718_vm13, %v7331_v27, %v7332_v6  ;;  %v12232_v6 = vld [vmem:[#allocation3 + $0x338] sm:$0xf]  ;;  %v4512_v27 = vshrl.u32 %v4121_v4, 16  ;;  %10633 = vmatpush.bf16.msrb.mxu3 %v14045_v28  ;;  %v13766_v4 = vld [vmem:[#allocation3 + $0x334] sm:$0xf] }
 0x336   : > { %v6754_v60 = vpop.f32.mrf.mxu3  ;;  %7462 = vst [vmem:[#allocation3 + $0xb8] sm:$0xf] %v7333_v40  ;;  %v7159_v34 = vld [vmem:[#allocation2 + $0x24] sm:$0xf]  ;;  %v4507_v40 = vrot.slane %v4505_v25, 6  ;;  %v6317_v18 = vadd.f32 %v17401_v61, %v6228_v52 }
 0x337   : > { %v6985_v49 = vsel %vm14710_vm10, %v6983_v47, %v6984_v19  ;;  %v6986_v51 = vrot.slane %v6984_v19, 4  ;;  %v6755_v29 = vadd.f32 %v6754_v60, %v15519_v44  ;;  %v6845_v62 = vpop.f32.mrf.mxu0  ;;  %v13902_v21 = vld [vmem:[#allocation3 + $0xb0] sm:$0xf0]  ;;  %7191 = vst [vmem:[#allocation3 + $0xd8] sm:$0xf] %v7159_v34  ;;  %v4500_v19 = vrot.slane %v4499_v7, 4 }
 0x338   : > { %7109 = vst [vmem:[#allocation2 + $0x28] sm:$0xf] %v6985_v49  ;;  %v12837_v24 = vor.u32 %v13902_v21, %v12836_v13  ;;  %v13771_v44 = vld [vmem:[#allocation3 + $0x358] sm:$0xf0]  ;;  %v7226_v47 = vld [vmem:[#allocation2 + $0x24] sm:$0xe]  ;;  %v4508_v21 = vor.u32 %v4507_v40, %v4504_v26 }
 0x339   : > { %7110 = vst [vmem:[#allocation2 + $0x2c] sm:$0x1] %v6986_v51  ;;  %v6844_v22 = vadd.f32 %v6843_v37, %v6755_v29  ;;  %v4514_v9 = vrot.slane %v4512_v27, 5  ;;  %v4517_v13 = vrot.slane %v4515_v33, 6  ;;  %v3847_v34 = vld [vmem:[#allocation2 + $0xc0] sm:$0xe]  ;;  %v15932_v51 = vpop.f32.mrf.mxu2  ;;  %v12233_v25 = vor.u32 %v13771_v44, %v12232_v6 }
 0x33a   : > { %10471 = vmatmul.bf16.gmra.mxu1 %v12837_v24  ;;  %v17402_v49 = vld [vmem:[#allocation58_spill] sm:$0xff]  ;;  %17403 = vst [vmem:[#allocation20_spill] sm:$0xff] %v15932_v51  ;;  %v12226_v29 = vld [vmem:[#allocation3 + $0x354] sm:$0xf0]  ;;  %v3848_v63 = vld [vmem:[#allocation2 + $0xc4] sm:$0xf]  ;;  %v4509_v48 = vsel %vm14693_vm7, %v4500_v19, %v4508_v21  ;;  %v6406_v6 = vadd.f32 %v17404_v3, %v6317_v18 }
 0x33b   : > { %v6917_v60 = vpack.c.bf16 %v6844_v22, %v6844_v22  ;;  %v6668_v37 = vadd.f32 %v17402_v49, %v6579_v11  ;;  %v13898_v30 = vld [vmem:[#allocation3 + $0x94] sm:$0xf]  ;;  %v12669_v22 = vrot.slane %v7226_v47, 9  ;;  %v4518_v28 = vor.u32 %v4517_v13, %v4514_v9  ;;  %v3849_v11 = vld [vmem:[#allocation2 + $0xc8] sm:$0x1] }
 0x33c   : > { %v4510_v52 = vrot.slane %v4508_v21, 4  ;;  %v11799_v61 = vrot.slane %v3847_v34, 9  ;;  %v12229_v40 = vor.u32 %v13766_v4, %v12226_v29  ;;  %v3997_v8 = vrot.slane %v3848_v63, 5  ;;  %v14061_v21 = vld [vmem:[#allocation10 + $0x128] sm:$0xff]  ;;  %4634 = vst [vmem:[#allocation3 + $0x3c8] sm:$0xf] %v4509_v48 }
 0x33d   : > { %v15934_v24 = vrot.slane %v6917_v60, 7  ;;  %v12838_v7 = vld [vmem:[#allocation3 + $0xb4] sm:$0xf0]  ;;  %v4122_v3 = vld [vmem:[#allocation2 + $0xcc] sm:$0xe]  ;;  %10811 = vmatpush.bf16.msrb.mxu1 %v14061_v21 }
 0x33e   : > { %v6756_v27 = vpop.f32.mrf.mxu3  ;;  %v12841_v33 = vor.u32 %v13898_v30, %v12838_v7  ;;  %v4519_v19 = vsel %vm14693_vm7, %v4510_v52, %v4518_v28  ;;  %v3998_v4 = vsel %vm14718_vm13, %v11799_v61, %v3997_v8  ;;  %v4123_v18 = vld [vmem:[#allocation2 + $0xd0] sm:$0xf]  ;;  %v4124_v7 = vld [vmem:[#allocation2 + $0xd4] sm:$0x3]  ;;  %v6495_v28 = vadd.f32 %v17405_v38, %v6406_v6  ;;  %v12872_v52 = vld [vmem:[#allocation3 + $0xd8] sm:$0xf] }
 0x33f   : > { %7111 = vst [vmem:[#allocation2 + $0x30] sm:$0xe] %v15934_v24  ;;  %v6757_v49 = vadd.f32 %v6756_v27, %v6668_v37  ;;  %v6848_v26 = vpop.f32.mrf.mxu0  ;;  %v7160_v60 = vld [vmem:[#allocation2 + $0x28] sm:$0xf]  ;;  %v4000_v37 = vrot.slane %v3849_v11, 5  ;;  %v6988_v27 = vrot.slane %v15934_v24, 4 }
 0x340   : > { %10560 = vmatmul.bf16.gmra.mxu2 %v12841_v33  ;;  %7192 = vst [vmem:[#allocation3 + $0xfc] sm:$0xf] %v7160_v60  ;;  %v7227_v44 = vld [vmem:[#allocation2 + $0x28] sm:$0xf]  ;;  %v7228_v47 = vld [vmem:[#allocation2 + $0x2c] sm:$0x1] }
 0x341   : > { %v6846_v9 = vadd.f32 %v6845_v62, %v6757_v49  ;;  %v7336_v13 = vrot.slane %v7227_v44, 5  ;;  %v7339_v34 = vrot.slane %v7228_v47, 5  ;;  %4635 = vst [vmem:[#allocation3 + $0x3ec] sm:$0xf] %v4519_v19  ;;  %v3999_v62 = vrot.slane %v3997_v8, 4  ;;  %v17407_v47 = vld [vmem:[#allocation60_spill] sm:$0xff] }
 0x342   : > { %6887 = vmatmul.bf16.gmra.mxu0 %v12233_v25  ;;  %v4521_v25 = vshrl.u32 %v4122_v3, 16  ;;  %v4524_v33 = vshll.u32 %v4122_v3, 16  ;;  %4074 = vst [vmem:[#allocation3 + $0x3c4] sm:$0xf] %v3998_v4  ;;  %v4530_v61 = vshrl.u32 %v4123_v18, 16  ;;  %v4533_v49 = vshll.u32 %v4123_v18, 16 }
 0x343   : > { %v6918_v29 = vpack.c.bf16 %v6846_v9, %v6846_v9  ;;  %6798 = vmatmul.bf16.gmra.mxu3 %v12229_v40  ;;  %v7337_v63 = vsel %vm14718_vm13, %v12669_v22, %v7336_v13  ;;  %v7338_v30 = vrot.slane %v7336_v13, 4  ;;  %v15950_v22 = vpop.f32.mrf.mxu2  ;;  %v4540_v60 = vshrl.u32 %v4124_v7, 16  ;;  %v17408_v21 = vld [vmem:[#allocation29_spill] sm:$0xff]  ;;  %v17409_v4 = vld [vmem:[#allocation30_spill] sm:$0xff] }
 0x344   : > { %7463 = vst [vmem:[#allocation3 + $0xdc] sm:$0xf] %v7337_v63  ;;  %v4543_v6 = vshll.u32 %v4124_v7, 16  ;;  %v6233_v3 = vadd.f32 %v17409_v4, %v17408_v21  ;;  %v4523_v63 = vrot.slane %v4521_v25, 5  ;;  %v17410_v7 = vld [vmem:[#allocation62_spill] sm:$0xff]  ;;  %v17411_v21 = vld [vmem:[#allocation31_spill] sm:$0xff] }
 0x345   : > { %v6989_v48 = vrot.slane %v6918_v29, 7  ;;  %v7340_v11 = vsel %vm14718_vm13, %v7338_v30, %v7339_v34  ;;  %17406 = vst [vmem:[#allocation21_spill] sm:$0xff] %v15950_v22  ;;  %v4001_v34 = vsel %vm14718_vm13, %v3999_v62, %v4000_v37  ;;  %v12268_v29 = vld [vmem:[#allocation3 + $0x380] sm:$0xf]  ;;  %v4526_v30 = vrot.slane %v4524_v33, 6 }
 0x346   : > { %v6759_v40 = vpop.f32.mrf.mxu3  ;;  %7464 = vst [vmem:[#allocation3 + $0x100] sm:$0xf] %v7340_v11  ;;  %v7161_v8 = vld [vmem:[#allocation2 + $0x30] sm:$0xf]  ;;  %v6584_v38 = vadd.f32 %v17410_v7, %v6495_v28  ;;  %v4532_v11 = vrot.slane %v4530_v61, 5  ;;  %v4542_v37 = vrot.slane %v4540_v60, 5 }
 0x347   : > { %v6990_v24 = vsel %vm14710_vm10, %v6988_v27, %v6989_v48  ;;  %v6991_v44 = vrot.slane %v6989_v48, 4  ;;  %v6760_v19 = vadd.f32 %v6759_v40, %v17407_v47  ;;  %v6850_v9 = vpop.f32.mrf.mxu0  ;;  %v13911_v13 = vld [vmem:[#allocation3 + $0xf8] sm:$0xf0]  ;;  %7193 = vst [vmem:[#allocation3 + $0x120] sm:$0xf] %v7161_v8  ;;  %v4535_v40 = vrot.slane %v4533_v49, 6 }
 0x348   : > { %7112 = vst [vmem:[#allocation2 + $0x34] sm:$0xf] %v6990_v24  ;;  %v12873_v18 = vor.u32 %v13911_v13, %v12872_v52  ;;  %v13780_v48 = vld [vmem:[#allocation3 + $0x3a0] sm:$0xf0]  ;;  %v13775_v8 = vld [vmem:[#allocation3 + $0x37c] sm:$0xf]  ;;  %v4527_v47 = vor.u32 %v4526_v30, %v4523_v63  ;;  %v6322_v24 = vadd.f32 %v17411_v21, %v6233_v3 }
 0x349   : > { %7113 = vst [vmem:[#allocation2 + $0x38] sm:$0x1] %v6991_v44  ;;  %v6849_v27 = vadd.f32 %v6848_v26, %v6760_v19  ;;  %v4545_v62 = vrot.slane %v4543_v6, 6  ;;  %v4536_v13 = vor.u32 %v4535_v40, %v4532_v11  ;;  %v3851_v25 = vld [vmem:[#allocation2 + $0xd0] sm:$0xf]  ;;  %v11800_v19 = vrot.slane %v3850_v45, 9 }
 0x34a   : > { %10476 = vmatmul.bf16.gmra.mxu1 %v12873_v18  ;;  %4075 = vst [vmem:[#allocation3 + $0x3e8] sm:$0xf] %v4001_v34  ;;  %v3852_v33 = vld [vmem:[#allocation2 + $0xd4] sm:$0x1]  ;;  %v7766_v4 = vld [vmem:[#allocation2 + $0x24] sm:$0xf]  ;;  %v12269_v60 = vor.u32 %v13780_v48, %v12268_v29 }
 0x34b   : > { %v6919_v52 = vpack.c.bf16 %v6849_v27, %v6849_v27  ;;  %v12262_v28 = vld [vmem:[#allocation3 + $0x39c] sm:$0xf0]  ;;  %v4528_v44 = vrot.slane %v4527_v47, 4  ;;  %v4546_v26 = vor.u32 %v4545_v62, %v4542_v37  ;;  %v4004_v61 = vrot.slane %v3851_v25, 5  ;;  %v17412_v49 = vld [vmem:[#allocation63_spill] sm:$0xff]  ;;  %v15967_v48 = vpop.f32.mrf.mxu2 }
 0x34c   : > { %v6673_v18 = vadd.f32 %v17412_v49, %v6584_v38  ;;  %v13907_v34 = vld [vmem:[#allocation3 + $0xdc] sm:$0xf]  ;;  %v4538_v6 = vrot.slane %v4536_v13, 4  ;;  %v7229_v3 = vld [vmem:[#allocation2 + $0x30] sm:$0xe]  ;;  %v4007_v40 = vrot.slane %v3852_v33, 5  ;;  %v12265_v37 = vor.u32 %v13775_v8, %v12262_v28 }
 0x34d   : > { %v6992_v7 = vrot.slane %v6919_v52, 7  ;;  %v12874_v63 = vld [vmem:[#allocation3 + $0xfc] sm:$0xf0]  ;;  %v4537_v27 = vsel %vm14693_vm7, %v4528_v44, %v4536_v13  ;;  %v4006_v11 = vrot.slane %v4004_v61, 4  ;;  %7798 = vst [vmem:[#allocation3 + $0x54] sm:$0xf] %v7766_v4  ;;  %v4005_v13 = vsel %vm14718_vm13, %v11800_v19, %v4004_v61 }
 0x34e   : > { %v6761_v30 = vpop.f32.mrf.mxu3  ;;  %v12877_v22 = vor.u32 %v13907_v34, %v12874_v63  ;;  %v4547_v38 = vsel %vm14693_vm7, %v4538_v6, %v4546_v26  ;;  %v17413_v21 = vld [vmem:[#allocation66_spill] sm:$0xff]  ;;  %17414 = vst [vmem:[#allocation22_spill] sm:$0xff] %v15967_v48  ;;  %v12670_v4 = vrot.slane %v7229_v3, 9 }
 0x34f   : > { %7114 = vst [vmem:[#allocation2 + $0x3c] sm:$0xe] %v6992_v7  ;;  %v6762_v47 = vadd.f32 %v6761_v30, %v6673_v18  ;;  %v6853_v45 = vpop.f32.mrf.mxu0  ;;  %v7162_v62 = vld [vmem:[#allocation2 + $0x34] sm:$0xf]  ;;  %v6411_v29 = vadd.f32 %v17413_v21, %v6322_v24  ;;  %v4008_v8 = vsel %vm14718_vm13, %v4006_v11, %v4007_v40  ;;  %v4125_v24 = vld [vmem:[#allocation2 + $0xd8] sm:$0xe] }
 0x350   : > { %10565 = vmatmul.bf16.gmra.mxu2 %v12877_v22  ;;  %7194 = vst [vmem:[#allocation3 + $0x144] sm:$0xf] %v7162_v62  ;;  %v7230_v52 = vld [vmem:[#allocation2 + $0x34] sm:$0xf]  ;;  %v7231_v25 = vld [vmem:[#allocation2 + $0x38] sm:$0x1] }
 0x351   : > { %v6851_v33 = vadd.f32 %v6850_v9, %v6762_v47  ;;  %v7343_v44 = vrot.slane %v7230_v52, 5  ;;  %v7346_v49 = vrot.slane %v7231_v25, 5  ;;  %4636 = vst [vmem:[#allocation3 + $0x410] sm:$0xf] %v4537_v27  ;;  %v6993_v18 = vrot.slane %v6992_v7, 4  ;;  %v17415_v9 = vld [vmem:[#allocation64_spill] sm:$0xff] }
 0x352   : > { %6892 = vmatmul.bf16.gmra.mxu0 %v12269_v60  ;;  %4637 = vst [vmem:[#allocation3 + $0x434] sm:$0xf] %v4547_v38  ;;  %v6500_v19 = vadd.f32 %v17415_v9, %v6411_v29  ;;  %v12908_v34 = vld [vmem:[#allocation3 + $0x120] sm:$0xf]  ;;  %v4126_v60 = vld [vmem:[#allocation2 + $0xdc] sm:$0xf] }
 0x353   : > { %v6920_v28 = vpack.c.bf16 %v6851_v33, %v6851_v33  ;;  %6803 = vmatmul.bf16.gmra.mxu3 %v12265_v37  ;;  %v7344_v22 = vsel %vm14718_vm13, %v12670_v4, %v7343_v44  ;;  %v7345_v26 = vrot.slane %v7343_v44, 4  ;;  %4076 = vst [vmem:[#allocation3 + $0x40c] sm:$0xf] %v4005_v13  ;;  %v4549_v6 = vshrl.u32 %v4125_v24, 16  ;;  %v15978_v27 = vld [vmem:[#allocation2 + $0xe0] sm:$0x3] }
 0x354   : > { %7465 = vst [vmem:[#allocation3 + $0x124] sm:$0xf] %v7344_v22  ;;  %v17416_v11 = vld [vmem:[#allocation33_spill] sm:$0xff]  ;;  %v17417_v40 = vld [vmem:[#allocation34_spill] sm:$0xff]  ;;  %v4552_v25 = vshll.u32 %v4125_v24, 16  ;;  %v4558_v13 = vshrl.u32 %v4126_v60, 16  ;;  %v15996_v24 = vpop.f32.mrf.mxu2 }
 0x355   : > { %v6994_v61 = vrot.slane %v6920_v28, 7  ;;  %v7347_v63 = vsel %vm14718_vm13, %v7345_v26, %v7346_v49  ;;  %4077 = vst [vmem:[#allocation3 + $0x430] sm:$0xf] %v4008_v8  ;;  %v6238_v47 = vadd.f32 %v17417_v40, %v17416_v11  ;;  %v17418_v62 = vld [vmem:[#allocation65_spill] sm:$0xff]  ;;  %v4561_v33 = vshll.u32 %v4126_v60, 16  ;;  %v17419_v4 = vld [vmem:[#allocation68_spill] sm:$0xff] }
 0x356   : > { %v6764_v30 = vpop.f32.mrf.mxu3  ;;  %7466 = vst [vmem:[#allocation3 + $0x148] sm:$0xf] %v7347_v63  ;;  %v7163_v3 = vld [vmem:[#allocation2 + $0x3c] sm:$0xf]  ;;  %v6589_v44 = vadd.f32 %v17419_v4, %v6500_v19  ;;  %v12304_v8 = vld [vmem:[#allocation3 + $0x3c8] sm:$0xf] }
 0x357   : > { %v6995_v7 = vsel %vm14710_vm10, %v6993_v18, %v6994_v61  ;;  %v6996_v37 = vrot.slane %v6994_v61, 4  ;;  %v6765_v38 = vadd.f32 %v6764_v30, %v17418_v62  ;;  %v15985_v21 = vpop.f32.mrf.mxu0  ;;  %v13920_v29 = vld [vmem:[#allocation3 + $0x140] sm:$0xf0]  ;;  %7195 = vst [vmem:[#allocation3 + $0x168] sm:$0xf] %v7163_v3  ;;  %v15992_v9 = vrot.slane %v4549_v6, 5 }
 0x358   : > { %7115 = vst [vmem:[#allocation2 + $0x40] sm:$0xf] %v6995_v7  ;;  %v12909_v52 = vor.u32 %v13920_v29, %v12908_v34  ;;  %v13789_v28 = vld [vmem:[#allocation3 + $0x3e8] sm:$0xf0]  ;;  %v15988_v22 = vld [vmem:[#allocation3 + $0x3c4] sm:$0xf] }
 0x359   : > { %7116 = vst [vmem:[#allocation2 + $0x44] sm:$0x1] %v6996_v37  ;;  %v6854_v49 = vadd.f32 %v6853_v45, %v6765_v38  ;;  %v15990_v26 = vld [vmem:[#allocation3 + $0x3e4] sm:$0xf0]  ;;  %v14044_v18 = vld [vmem:[#allocation10 + $0xa0] sm:$0xff]  ;;  %v4568_v61 = vshrl.u32 %v15978_v27, 16  ;;  %v12305_v5 = vor.u32 %v13789_v28, %v12304_v8 }
 0x35a   : > { %v17420_v63 = vld [vmem:[#allocation35_spill] sm:$0xff]  ;;  %17421 = vst [vmem:[#allocation23_spill] sm:$0xff] %v15996_v24  ;;  %10481 = vmatmul.bf16.gmra.mxu1 %v12909_v52  ;;  %v8753_v45 = vld [vmem:[#allocation2 + $0xe0] sm:$0x3]  ;;  %10634 = vmatpush.bf16.msrb.mxu3 %v14044_v18  ;;  %v4554_v62 = vrot.slane %v4552_v25, 6  ;;  %v4560_v38 = vrot.slane %v4558_v13, 5  ;;  %v12301_v25 = vor.u32 %v15988_v22, %v15990_v26 }
 0x35b   : > { %v6327_v34 = vadd.f32 %v17420_v63, %v6238_v47  ;;  %v7232_v60 = vld [vmem:[#allocation2 + $0x3c] sm:$0xe]  ;;  %v8751_v19 = vld [vmem:[#allocation2 + $0xd8] sm:$0xc]  ;;  %v6921_v3 = vpack.c.bf16 %v6854_v49, %v6854_v49  ;;  %v15998_v11 = vld [vmem:[#allocation3 + $0x410] sm:$0xf] }
 0x35c   : > { %v8752_v30 = vld [vmem:[#allocation2 + $0xdc] sm:$0xf]  ;;  %v12760_v40 = vrot.slane %v8751_v19, 10  ;;  %v8908_v37 = vrot.slane %v8753_v45, 6  ;;  %v8479_v6 = vld [vmem:[#allocation2 + $0xd8] sm:$0xe]  ;;  %v4555_v22 = vor.u32 %v4554_v62, %v15992_v9 }
 0x35d   : > { %v8905_v7 = vrot.slane %v8752_v30, 6  ;;  %v4563_v29 = vrot.slane %v4561_v33, 6  ;;  %v4571_v47 = vshll.u32 %v15978_v27, 16  ;;  %v17422_v4 = vld [vmem:[#allocation67_spill] sm:$0xff]  ;;  %v16002_v52 = vrot.slane %v6921_v3, 7 }
 0x35e   : > { %v6678_v63 = vadd.f32 %v17422_v4, %v6589_v44  ;;  %v13916_v24 = vld [vmem:[#allocation3 + $0x124] sm:$0xf]  ;;  %v12910_v48 = vld [vmem:[#allocation3 + $0x144] sm:$0xf0]  ;;  %v6416_v19 = vadd.f32 %v15617_v16, %v6327_v34  ;;  %v6766_v30 = vpop.f32.mrf.mxu3  ;;  %v16009_v13 = vld [vmem:[#allocation3 + $0x430] sm:$0xf0] }
 0x35f   : > { %v8906_v49 = vsel %vm14736_vm14, %v12760_v40, %v8905_v7  ;;  %v8907_v18 = vrot.slane %v8905_v7, 4  ;;  %v12913_v45 = vor.u32 %v13916_v24, %v12910_v48  ;;  %v8480_v27 = vld [vmem:[#allocation2 + $0xdc] sm:$0xf]  ;;  %v8481_v33 = vld [vmem:[#allocation2 + $0xe0] sm:$0x1]  ;;  %v16012_v3 = vpop.f32.mrf.mxu0  ;;  %v12671_v7 = vrot.slane %v7232_v60, 9 }
 0x360   : > { %8977 = vst [vmem:[#allocation3 + $0x410] sm:$0xf] %v8906_v49  ;;  %v6767_v44 = vadd.f32 %v6766_v30, %v6678_v63  ;;  %v7164_v40 = vld [vmem:[#allocation2 + $0x40] sm:$0xf]  ;;  %v12744_v48 = vrot.slane %v8479_v6, 9  ;;  %v16017_v26 = vor.u32 %v4563_v29, %v4560_v38  ;;  %v8633_v63 = vrot.slane %v8480_v27, 5  ;;  %v16027_v27 = vpop.f32.mrf.mxu2 }
 0x361   : > { %7117 = vst [vmem:[#allocation2 + $0x48] sm:$0xe] %v16002_v52  ;;  %v8909_v16 = vsel %vm14736_vm14, %v8907_v18, %v8908_v37  ;;  %10570 = vmatmul.bf16.gmra.mxu2 %v12913_v45  ;;  %v7233_v8 = vld [vmem:[#allocation2 + $0x40] sm:$0xf]  ;;  %v7234_v28 = vld [vmem:[#allocation2 + $0x44] sm:$0x1] }
 0x362   : > { %7196 = vst [vmem:[#allocation3 + $0x18c] sm:$0xf] %v7164_v40  ;;  %v6856_v34 = vadd.f32 %v15985_v21, %v6767_v44  ;;  %v7350_v24 = vrot.slane %v7233_v8, 5  ;;  %v7353_v4 = vrot.slane %v7234_v28, 5  ;;  %v14052_v49 = vld [vmem:[#allocation10 + $0xe0] sm:$0xff]  ;;  %v17424_v60 = vld [vmem:[#allocation69_spill] sm:$0xff]  ;;  %6897 = vmatmul.bf16.gmra.mxu0 %v12305_v5  ;;  %v8634_v21 = vsel %vm14718_vm13, %v12744_v48, %v8633_v63 }
 0x363   : > { %8978 = vst [vmem:[#allocation3 + $0x434] sm:$0xf] %v8909_v16  ;;  %v6505_v30 = vadd.f32 %v17424_v60, %v6416_v19  ;;  %v16021_v37 = vld [vmem:[#allocation3 + $0x40c] sm:$0xf]  ;;  %v8636_v6 = vrot.slane %v8481_v33, 5  ;;  %v14060_v18 = vld [vmem:[#allocation10 + $0x120] sm:$0xff]  ;;  %6808 = vmatmul.bf16.gmra.mxu3 %v12301_v25  ;;  %10723 = vmatpush.bf16.msrb.mxu0 %v14052_v49 }
 0x364   : > { %v4570_v45 = vrot.slane %v4568_v61, 5  ;;  %v6922_v40 = vpack.c.bf16 %v6856_v34, %v6856_v34  ;;  %v7351_v9 = vsel %vm14718_vm13, %v12671_v7, %v7350_v24  ;;  %v7352_v62 = vrot.slane %v7350_v24, 4  ;;  %v3853_v38 = vld [vmem:[#allocation2 + $0xd8] sm:$0xe]  ;;  %v3854_v29 = vld [vmem:[#allocation2 + $0xdc] sm:$0xf]  ;;  %10812 = vmatpush.bf16.msrb.mxu1 %v14060_v18 }
 0x365   : > { %v6998_v5 = vrot.slane %v16002_v52, 4  ;;  %7467 = vst [vmem:[#allocation3 + $0x16c] sm:$0xf] %v7351_v9  ;;  %v16030_v19 = vld [vmem:[#allocation3 + $0x42c] sm:$0xf0]  ;;  %v8635_v61 = vrot.slane %v8633_v63, 4 }
 0x366   : > { %v4556_v25 = vrot.slane %v4555_v22, 4  ;;  %v4573_v33 = vrot.slane %v4571_v47, 6  ;;  %v6999_v44 = vrot.slane %v6922_v40, 7  ;;  %v12944_v7 = vld [vmem:[#allocation3 + $0x168] sm:$0xf]  ;;  %v7354_v16 = vsel %vm14718_vm13, %v7352_v62, %v7353_v4  ;;  %v14051_v28 = vld [vmem:[#allocation10 + $0xd8] sm:$0xff]  ;;  %v6769_v34 = vpop.f32.mrf.mxu3 }
 0x367   : > { %8705 = vst [vmem:[#allocation3 + $0x40c] sm:$0xf] %v8634_v21  ;;  %v4566_v48 = vrot.slane %v16017_v26, 4  ;;  %v4011_v8 = vrot.slane %v3854_v29, 5  ;;  %v8637_v52 = vsel %vm14718_vm13, %v8635_v61, %v8636_v6  ;;  %v3855_v49 = vld [vmem:[#allocation2 + $0xe0] sm:$0x1]  ;;  %v16040_v40 = vpop.f32.mrf.mxu0  ;;  %10724 = vmatpush.bf16.msrb.mxu0 %v14051_v28 }
 0x368   : > { %7468 = vst [vmem:[#allocation3 + $0x190] sm:$0xf] %v7354_v16  ;;  %v7165_v24 = vld [vmem:[#allocation2 + $0x48] sm:$0xf]  ;;  %v4574_v63 = vor.u32 %v4573_v33, %v4570_v45  ;;  %v11801_v22 = vrot.slane %v3853_v38, 9  ;;  %v7000_v47 = vsel %vm14710_vm10, %v6998_v5, %v6999_v44  ;;  %v7001_v60 = vrot.slane %v6999_v44, 4 }
 0x369   : > { %v17425_v18 = vld [vmem:[#allocation70_spill] sm:$0xff]  ;;  %v13929_v9 = vld [vmem:[#allocation3 + $0x188] sm:$0xf0]  ;;  %8706 = vst [vmem:[#allocation3 + $0x430] sm:$0xf] %v8637_v52  ;;  %v4565_v6 = vsel %vm14693_vm7, %v4556_v25, %v16017_v26  ;;  %v4013_v45 = vrot.slane %v4011_v8, 4 }
 0x36a   : > { %v6770_v4 = vadd.f32 %v6769_v34, %v17425_v18  ;;  %7118 = vst [vmem:[#allocation2 + $0x4c] sm:$0xf] %v7000_v47  ;;  %v12945_v62 = vor.u32 %v13929_v9, %v12944_v7  ;;  %v14043_v21 = vld [vmem:[#allocation10 + $0x98] sm:$0xff]  ;;  %v14050_v38 = vld [vmem:[#allocation10 + $0xd0] sm:$0xff]  ;;  %v17426_v29 = vld [vmem:[#allocation71_spill] sm:$0xff]  ;;  %v4575_v33 = vsel %vm14693_vm7, %v4566_v48, %v4574_v63  ;;  %v4012_v26 = vsel %vm14718_vm13, %v11801_v22, %v4011_v8 }
 0x36b   : > { %v6594_v61 = vadd.f32 %v17426_v29, %v6505_v30  ;;  %7119 = vst [vmem:[#allocation2 + $0x50] sm:$0x1] %v7001_v60  ;;  %v8754_v44 = vld [vmem:[#allocation2 + $0xe4] sm:$0xc]  ;;  %v8755_v16 = vld [vmem:[#allocation2 + $0xe8] sm:$0xf]  ;;  %10635 = vmatpush.bf16.msrb.mxu3 %v14043_v21  ;;  %10725 = vmatpush.bf16.msrb.mxu0 %v14050_v38  ;;  %v16061_v21 = vpop.f32.mrf.mxu2 }
 0x36c   : > { %v6859_v5 = vadd.f32 %v16012_v3, %v6770_v4  ;;  %10486 = vmatmul.bf16.gmra.mxu1 %v12945_v62  ;;  %7197 = vst [vmem:[#allocation3 + $0x1b0] sm:$0xf] %v7165_v24  ;;  %v8756_v7 = vld [vmem:[#allocation2 + $0xec] sm:$0x3]  ;;  %v8912_v28 = vrot.slane %v8755_v16, 6  ;;  %v12761_v30 = vrot.slane %v8754_v44, 10  ;;  %v16054_v4 = vpop.f32.mrf.mxu1 }
 0x36d   : > { %v13925_v34 = vld [vmem:[#allocation3 + $0x16c] sm:$0xf]  ;;  %4638 = vst [vmem:[#allocation3 + $0x458] sm:$0xf] %v4565_v6  ;;  %v4014_v52 = vrot.slane %v3855_v49, 5  ;;  %v17427_v3 = vld [vmem:[#allocation36_spill] sm:$0xff]  ;;  %v6683_v18 = vadd.f32 %v15747_v41, %v6594_v61 }
 0x36e   : > { %v6923_v25 = vpack.c.bf16 %v6859_v5, %v6859_v5  ;;  %v17428_v47 = vld [vmem:[#allocation37_spill] sm:$0xff]  ;;  %4639 = vst [vmem:[#allocation3 + $0x47c] sm:$0xf] %v4575_v33  ;;  %v8915_v63 = vrot.slane %v8756_v7, 6  ;;  %v8482_v60 = vld [vmem:[#allocation2 + $0xe4] sm:$0xe]  ;;  %v6771_v38 = vpop.f32.mrf.mxu3  ;;  %v12341_v5 = vor.u32 %v16009_v13, %v15998_v11  ;;  %v8913_v13 = vsel %vm14736_vm14, %v12761_v30, %v8912_v28 }
 0x36f   : > { %v6243_v23 = vadd.f32 %v17428_v47, %v17427_v3  ;;  %v7235_v48 = vld [vmem:[#allocation2 + $0x48] sm:$0xe]  ;;  %v14042_v24 = vld [vmem:[#allocation10 + $0x90] sm:$0xff]  ;;  %v8914_v9 = vrot.slane %v8912_v28, 4  ;;  %v4015_v49 = vsel %vm14718_vm13, %v4013_v45, %v4014_v52  ;;  %4078 = vst [vmem:[#allocation3 + $0x454] sm:$0xf] %v4012_v26  ;;  %v6772_v33 = vadd.f32 %v6771_v38, %v6683_v18  ;;  %v6863_v44 = vpop.f32.mrf.mxu0 }
 0x370   : > { %v16056_v8 = vrot.slane %v6923_v25, 7  ;;  %v12946_v22 = vld [vmem:[#allocation3 + $0x18c] sm:$0xf0]  ;;  %v17429_v62 = vld [vmem:[#allocation38_spill] sm:$0xff]  ;;  %4079 = vst [vmem:[#allocation3 + $0x478] sm:$0xf] %v4015_v49  ;;  %10636 = vmatpush.bf16.msrb.mxu3 %v14042_v24  ;;  %v12337_v45 = vor.u32 %v16021_v37, %v16030_v19 }
 0x371   : > { %v6332_v6 = vadd.f32 %v17429_v62, %v6243_v23  ;;  %v12949_v29 = vor.u32 %v13925_v34, %v12946_v22  ;;  %v8483_v41 = vld [vmem:[#allocation2 + $0xe8] sm:$0xf]  ;;  %v8484_v61 = vld [vmem:[#allocation2 + $0xec] sm:$0x1]  ;;  %v12745_v7 = vrot.slane %v8482_v60, 9  ;;  %v17430_v25 = vld [vmem:[#allocation74_spill] sm:$0xff]  ;;  %v6861_v3 = vadd.f32 %v16040_v40, %v6772_v33 }
 0x372   : > { %7120 = vst [vmem:[#allocation2 + $0x54] sm:$0xe] %v16056_v8  ;;  %v7166_v16 = vld [vmem:[#allocation2 + $0x4c] sm:$0xf]  ;;  %v8640_v26 = vrot.slane %v8483_v41, 5  ;;  %v12672_v47 = vrot.slane %v7235_v48, 9  ;;  %6902 = vmatmul.bf16.gmra.mxu0 %v12341_v5  ;;  %v8916_v19 = vsel %vm14736_vm14, %v8914_v9, %v8915_v63 }
 0x373   : > { %v6421_v52 = vadd.f32 %v17430_v25, %v6332_v6  ;;  %10575 = vmatmul.bf16.gmra.mxu2 %v12949_v29  ;;  %7198 = vst [vmem:[#allocation3 + $0x1d4] sm:$0xf] %v7166_v16  ;;  %v7236_v34 = vld [vmem:[#allocation2 + $0x4c] sm:$0xf]  ;;  %v7237_v11 = vld [vmem:[#allocation2 + $0x50] sm:$0x1]  ;;  %v6924_v49 = vpack.c.bf16 %v6861_v3, %v6861_v3  ;;  %6813 = vmatmul.bf16.gmra.mxu3 %v12337_v45 }
 0x374   : > { %v7357_v23 = vrot.slane %v7236_v34, 5  ;;  %v7360_v24 = vrot.slane %v7237_v11, 5  ;;  %v14049_v18 = vld [vmem:[#allocation10 + $0xc8] sm:$0xff]  ;;  %v16072_v37 = vld [vmem:[#allocation3 + $0x458] sm:$0xf]  ;;  %v8642_v60 = vrot.slane %v8640_v26, 4  ;;  %v8641_v63 = vsel %vm14718_vm13, %v12745_v7, %v8640_v26  ;;  %v10462_v45 = vpop.f32.mrf.mxu1  ;;  %v10551_v34 = vpop.f32.mrf.mxu2 }
 0x375   : > { %v14041_v22 = vld [vmem:[#allocation10 + $0x88] sm:$0xff]  ;;  %8979 = vst [vmem:[#allocation3 + $0x458] sm:$0xf] %v8913_v13  ;;  %v8643_v40 = vrot.slane %v8484_v61, 5  ;;  %10726 = vmatpush.bf16.msrb.mxu0 %v14049_v18  ;;  %v14048_v30 = vld [vmem:[#allocation10 + $0xc0] sm:$0xff]  ;;  %v17431_v48 = vld [vmem:[#allocation73_spill] sm:$0xff] }
 0x376   : > { %v7358_v62 = vsel %vm14718_vm13, %v12672_v47, %v7357_v23  ;;  %v7359_v28 = vrot.slane %v7357_v23, 4  ;;  %v6686_v6 = vadd.f32 %v15761_v43, %v17431_v48  ;;  %v16080_v38 = vld [vmem:[#allocation3 + $0x478] sm:$0xf0]  ;;  %10637 = vmatpush.bf16.msrb.mxu3 %v14041_v22  ;;  %v14040_v9 = vld [vmem:[#allocation10 + $0x80] sm:$0xff]  ;;  %v17432_v29 = vld [vmem:[#allocation72_spill] sm:$0xff]  ;;  %v7003_v41 = vrot.slane %v16056_v8, 4  ;;  %v6774_v16 = vpop.f32.mrf.mxu3 }
 0x377   : > { %7469 = vst [vmem:[#allocation3 + $0x1b4] sm:$0xf] %v7358_v62  ;;  %v6510_v5 = vadd.f32 %v17432_v29, %v6421_v52  ;;  %v7004_v33 = vrot.slane %v6924_v49, 7  ;;  %v12980_v43 = vld [vmem:[#allocation3 + $0x1b0] sm:$0xf]  ;;  %v6865_v52 = vpop.f32.mrf.mxu0  ;;  %v8644_v8 = vsel %vm14718_vm13, %v8642_v60, %v8643_v40  ;;  %v17433_v18 = vld [vmem:[#allocation75_spill] sm:$0xff]  ;;  %v16095_v49 = vadd.f32 %v10551_v34, %v10462_v45 }
 0x378   : > { %v7361_v61 = vsel %vm14718_vm13, %v7359_v28, %v7360_v24  ;;  %8980 = vst [vmem:[#allocation3 + $0x47c] sm:$0xf] %v8916_v19  ;;  %v16088_v25 = vld [vmem:[#allocation3 + $0x454] sm:$0xf]  ;;  %v6775_v11 = vadd.f32 %v6774_v16, %v6686_v6  ;;  %v7767_v3 = vld [vmem:[#allocation2 + $0x28] sm:$0xf] }
 0x379   : > { %7470 = vst [vmem:[#allocation3 + $0x1d8] sm:$0xf] %v7361_v61  ;;  %v7005_v7 = vsel %vm14710_vm10, %v7003_v41, %v7004_v33  ;;  %v7006_v26 = vrot.slane %v7004_v33, 4  ;;  %10727 = vmatpush.bf16.msrb.mxu0 %v14048_v30  ;;  %v12370_v23 = vld [vmem:[#allocation3 + $0x474] sm:$0xf0]  ;;  %v6599_v22 = vadd.f32 %v17433_v18, %v6510_v5  ;;  %v17434_v5 = vld [vmem:[#allocation39_spill] sm:$0xff] }
 0x37a   : > { %v13938_v13 = vld [vmem:[#allocation3 + $0x1d0] sm:$0xf0]  ;;  %8707 = vst [vmem:[#allocation3 + $0x454] sm:$0xf] %v8641_v63  ;;  %v7167_v24 = vld [vmem:[#allocation2 + $0x54] sm:$0xf]  ;;  %10638 = vmatpush.bf16.msrb.mxu3 %v14040_v9  ;;  %v6864_v19 = vadd.f32 %v6863_v44, %v6775_v11 }
 0x37b   : > { %7121 = vst [vmem:[#allocation2 + $0x58] sm:$0xf] %v7005_v7  ;;  %v12981_v47 = vor.u32 %v13938_v13, %v12980_v43  ;;  %v7768_v62 = vld [vmem:[#allocation2 + $0x30] sm:$0xf]  ;;  %v7769_v28 = vld [vmem:[#allocation2 + $0x34] sm:$0xf]  ;;  %v6688_v61 = vadd.f32 %v15769_v54, %v6599_v22  ;;  %v12377_v7 = vor.u32 %v16080_v38, %v16072_v37  ;;  %v12373_v54 = vor.u32 %v16088_v25, %v12370_v23 }
 0x37c   : > { %7122 = vst [vmem:[#allocation2 + $0x5c] sm:$0x1] %v7006_v26  ;;  %v7238_v48 = vld [vmem:[#allocation2 + $0x54] sm:$0xe]  ;;  %v7495_v60 = vld [vmem:[#allocation2 + $0x18] sm:$0xc]  ;;  %v6925_v30 = vpack.c.bf16 %v6864_v19, %v6864_v19  ;;  %v16106_v22 = vpop.f32.mrf.mxu1 }
 0x37d   : > { %10491 = vmatmul.bf16.gmra.mxu1 %v12981_v47  ;;  %8708 = vst [vmem:[#allocation3 + $0x478] sm:$0xf] %v8644_v8  ;;  %v7496_v40 = vld [vmem:[#allocation2 + $0x1c] sm:$0xf]  ;;  %v7497_v63 = vld [vmem:[#allocation2 + $0x20] sm:$0x3] }
 0x37e   : > { %v13934_v6 = vld [vmem:[#allocation3 + $0x1b4] sm:$0xf]  ;;  %7199 = vst [vmem:[#allocation3 + $0x1f8] sm:$0xf] %v7167_v24  ;;  %v12684_v29 = vrot.slane %v7495_v60, 10  ;;  %v7604_v9 = vrot.slane %v7496_v40, 6  ;;  %v6776_v43 = vpop.f32.mrf.mxu3 }
 0x37f   : > { %7799 = vst [vmem:[#allocation3 + $0x78] sm:$0xf] %v7767_v3  ;;  %v7607_v41 = vrot.slane %v7497_v63, 6  ;;  %v17435_v33 = vld [vmem:[#allocation40_spill] sm:$0xff]  ;;  %v7007_v45 = vrot.slane %v6925_v30, 7  ;;  %v17436_v13 = vld [vmem:[#allocation41_spill] sm:$0xff]  ;;  %v6777_v3 = vadd.f32 %v6776_v43, %v6688_v61  ;;  %v6868_v47 = vpop.f32.mrf.mxu0 }
 0x380   : > { %v6248_v44 = vadd.f32 %v17435_v33, %v17434_v5  ;;  %v12982_v16 = vld [vmem:[#allocation3 + $0x1d4] sm:$0xf0]  ;;  %7800 = vst [vmem:[#allocation3 + $0x9c] sm:$0xf] %v7768_v62  ;;  %v7605_v26 = vsel %vm14736_vm14, %v12684_v29, %v7604_v9  ;;  %v7606_v11 = vrot.slane %v7604_v9, 4  ;;  %v12673_v18 = vrot.slane %v7238_v48, 9  ;;  %v16108_v62 = vpop.f32.mrf.mxu2 }
 0x381   : > { %v12985_v34 = vor.u32 %v13934_v6, %v12982_v16  ;;  %7801 = vst [vmem:[#allocation3 + $0xc0] sm:$0xf] %v7769_v28  ;;  %v14059_v19 = vld [vmem:[#allocation10 + $0x118] sm:$0xff]  ;;  %v6866_v40 = vadd.f32 %v6865_v52, %v6777_v3  ;;  %v7498_v23 = vld [vmem:[#allocation2 + $0x24] sm:$0xc] }
 0x382   : > { %v6337_v8 = vadd.f32 %v17436_v13, %v6248_v44  ;;  %7123 = vst [vmem:[#allocation2 + $0x60] sm:$0xe] %v7007_v45  ;;  %v7168_v24 = vld [vmem:[#allocation2 + $0x58] sm:$0xf]  ;;  %v7608_v28 = vsel %vm14736_vm14, %v7606_v11, %v7607_v41  ;;  %10813 = vmatpush.bf16.msrb.mxu1 %v14059_v19  ;;  %v7499_v25 = vld [vmem:[#allocation2 + $0x28] sm:$0xf]  ;;  %6907 = vmatmul.bf16.gmra.mxu0 %v12377_v7 }
 0x383   : > { %10580 = vmatmul.bf16.gmra.mxu2 %v12985_v34  ;;  %7200 = vst [vmem:[#allocation3 + $0x21c] sm:$0xf] %v7168_v24  ;;  %v7239_v37 = vld [vmem:[#allocation2 + $0x58] sm:$0xf]  ;;  %v7240_v38 = vld [vmem:[#allocation2 + $0x5c] sm:$0x1]  ;;  %v6926_v48 = vpack.c.bf16 %v6866_v40, %v6866_v40  ;;  %6818 = vmatmul.bf16.gmra.mxu3 %v12373_v54  ;;  %v6691_v41 = vadd.f32 %v15782_v59, %v15677_v58 }
 0x384   : > { %v6426_v60 = vadd.f32 %v15681_v57, %v6337_v8  ;;  %v7364_v30 = vrot.slane %v7239_v37, 5  ;;  %v7367_v6 = vrot.slane %v7240_v38, 5  ;;  %7736 = vst [vmem:[#allocation3 + $0x98] sm:$0xf] %v7605_v26  ;;  %v7500_v9 = vld [vmem:[#allocation2 + $0x2c] sm:$0x3] }
 0x385   : > { %7737 = vst [vmem:[#allocation3 + $0xbc] sm:$0xf] %v7608_v28  ;;  %v7008_v57 = vrot.slane %v7007_v45, 4  ;;  %v7611_v52 = vrot.slane %v7499_v25, 6  ;;  %v17437_v5 = vld [vmem:[#allocation76_spill] sm:$0xff]  ;;  %v7009_v44 = vrot.slane %v6926_v48, 7  ;;  %v10467_v28 = vpop.f32.mrf.mxu1 }
 0x386   : > { %v7365_v63 = vsel %vm14718_vm13, %v12673_v18, %v7364_v30  ;;  %v7366_v29 = vrot.slane %v7364_v30, 4  ;;  %v6515_v33 = vadd.f32 %v17437_v5, %v6426_v60  ;;  %v13016_v61 = vld [vmem:[#allocation3 + $0x1f8] sm:$0xf]  ;;  %v12685_v43 = vrot.slane %v7498_v23, 10  ;;  %v7501_v34 = vld [vmem:[#allocation2 + $0x30] sm:$0xc]  ;;  %v6779_v26 = vpop.f32.mrf.mxu3 }
 0x387   : > { %7471 = vst [vmem:[#allocation3 + $0x1fc] sm:$0xf] %v7365_v63  ;;  %v7502_v7 = vld [vmem:[#allocation2 + $0x34] sm:$0xf]  ;;  %v7614_v13 = vrot.slane %v7500_v9, 6  ;;  %v7010_v58 = vsel %vm14710_vm10, %v7008_v57, %v7009_v44  ;;  %v7011_v59 = vrot.slane %v7009_v44, 4  ;;  %v6780_v45 = vadd.f32 %v6779_v26, %v6691_v41  ;;  %v6870_v8 = vpop.f32.mrf.mxu0 }
 0x388   : > { %v7368_v16 = vsel %vm14718_vm13, %v7366_v29, %v7367_v6  ;;  %v7612_v54 = vsel %vm14736_vm14, %v12685_v43, %v7611_v52  ;;  %7124 = vst [vmem:[#allocation2 + $0x64] sm:$0xf] %v7010_v58  ;;  %v7613_v18 = vrot.slane %v7611_v52, 4  ;;  %v7618_v19 = vrot.slane %v7502_v7, 6  ;;  %v10556_v60 = vpop.f32.mrf.mxu2  ;;  %v12772_v30 = vld [vmem:[#allocation3 + $0x8] sm:$0xf] }
 0x389   : > { %7472 = vst [vmem:[#allocation3 + $0x220] sm:$0xf] %v7368_v16  ;;  %v7169_v11 = vld [vmem:[#allocation2 + $0x60] sm:$0xf]  ;;  %v6604_v37 = vadd.f32 %v15685_v14, %v6515_v33  ;;  %v6869_v38 = vadd.f32 %v6868_v47, %v6780_v45  ;;  %v12686_v40 = vrot.slane %v7501_v34, 10  ;;  %v16125_v25 = vadd.f32 %v10556_v60, %v10467_v28  ;;  %v14071_v48 = vld [vmem:[#allocation10 + $0x178] sm:$0xff] }
 0x38a   : > { %v13947_v3 = vld [vmem:[#allocation3 + $0x218] sm:$0xf0]  ;;  %7201 = vst [vmem:[#allocation3 + $0x240] sm:$0xf] %v7169_v11  ;;  %v13885_v6 = vld [vmem:[#allocation3 + $0x28] sm:$0xf0]  ;;  %v7615_v63 = vsel %vm14736_vm14, %v7613_v18, %v7614_v13  ;;  %10898 = vmatpush.bf16.msrb.mxu2 %v14071_v48 }
 0x38b   : > { %v13017_v24 = vor.u32 %v13947_v3, %v13016_v61  ;;  %7125 = vst [vmem:[#allocation2 + $0x68] sm:$0x1] %v7011_v59  ;;  %v7241_v23 = vld [vmem:[#allocation2 + $0x60] sm:$0xe]  ;;  %v6927_v29 = vpack.c.bf16 %v6869_v38, %v6869_v38  ;;  %v7770_v41 = vld [vmem:[#allocation2 + $0x3c] sm:$0xf]  ;;  %v7619_v14 = vsel %vm14736_vm14, %v12686_v40, %v7618_v19  ;;  %v6693_v61 = vadd.f32 %v15798_v39, %v6604_v37 }
 0x38c   : > { %7738 = vst [vmem:[#allocation3 + $0xe0] sm:$0xf] %v7612_v54  ;;  %v12774_v9 = vld [vmem:[#allocation3 + $0x2c] sm:$0xf0]  ;;  %v7620_v47 = vrot.slane %v7618_v19, 4  ;;  %v17438_v57 = vld [vmem:[#allocation42_spill] sm:$0xff]  ;;  %v12773_v3 = vor.u32 %v13885_v6, %v12772_v30 }
 0x38d   : > { %10496 = vmatmul.bf16.gmra.mxu1 %v13017_v24  ;;  %7739 = vst [vmem:[#allocation3 + $0x104] sm:$0xf] %v7615_v63  ;;  %v17439_v52 = vld [vmem:[#allocation43_spill] sm:$0xff]  ;;  %v7012_v16 = vrot.slane %v6927_v29, 7  ;;  %v17440_v7 = vld [vmem:[#allocation44_spill] sm:$0xff]  ;;  %v12674_v24 = vrot.slane %v7241_v23, 9 }
 0x38e   : > { %v6253_v5 = vadd.f32 %v17439_v52, %v17438_v57  ;;  %v13943_v33 = vld [vmem:[#allocation3 + $0x1fc] sm:$0xf]  ;;  %7802 = vst [vmem:[#allocation3 + $0xe4] sm:$0xf] %v7770_v41  ;;  %v7503_v44 = vld [vmem:[#allocation2 + $0x38] sm:$0x3]  ;;  %v6781_v11 = vpop.f32.mrf.mxu3 }
 0x38f   : > { %v7621_v34 = vrot.slane %v7503_v44, 6  ;;  %7740 = vst [vmem:[#allocation3 + $0x128] sm:$0xf] %v7619_v14  ;;  %v13881_v58 = vld [vmem:[#allocation3 + $0xc] sm:$0xf]  ;;  %v6782_v59 = vadd.f32 %v6781_v11, %v6693_v61  ;;  %v6873_v45 = vpop.f32.mrf.mxu0  ;;  %v7013_v29 = vrot.slane %v7012_v16, 4 }
 0x390   : > { %v13018_v43 = vld [vmem:[#allocation3 + $0x21c] sm:$0xf0]  ;;  %v6342_v26 = vadd.f32 %v17440_v7, %v6253_v5  ;;  %7126 = vst [vmem:[#allocation2 + $0x6c] sm:$0xe] %v7012_v16  ;;  %v7170_v54 = vld [vmem:[#allocation2 + $0x64] sm:$0xf]  ;;  %v12777_v19 = vor.u32 %v13881_v58, %v12774_v9 }
 0x391   : > { %v13021_v13 = vor.u32 %v13943_v33, %v13018_v43  ;;  %v7622_v18 = vsel %vm14736_vm14, %v7620_v47, %v7621_v34  ;;  %7202 = vst [vmem:[#allocation3 + $0x264] sm:$0xf] %v7170_v54  ;;  %v7242_v37 = vld [vmem:[#allocation2 + $0x64] sm:$0xf]  ;;  %v6871_v28 = vadd.f32 %v6870_v8, %v6782_v59  ;;  %v7504_v48 = vld [vmem:[#allocation2 + $0x3c] sm:$0xc]  ;;  %v6696_v8 = vadd.f32 %v15805_v55, %v15703_v1 }
 0x392   : > { %v6431_v39 = vadd.f32 %v15707_v50, %v6342_v26  ;;  %v7243_v38 = vld [vmem:[#allocation2 + $0x68] sm:$0x1]  ;;  %v7371_v60 = vrot.slane %v7242_v37, 5  ;;  %7741 = vst [vmem:[#allocation3 + $0x14c] sm:$0xf] %v7622_v18  ;;  %10728 = vmatmul.bf16.vlgmr.msrb.gmra.mxu0 %v12777_v19  ;;  %v12687_v41 = vrot.slane %v7504_v48, 10 }
 0x393   : > { %10585 = vmatmul.bf16.gmra.mxu2 %v13021_v13  ;;  %v7374_v40 = vrot.slane %v7243_v38, 5  ;;  %v7829_v63 = vld [vmem:[#allocation2 + $0x1c] sm:$0xf]  ;;  %v6928_v30 = vpack.c.bf16 %v6871_v28, %v6871_v28  ;;  %10639 = vmatmul.bf16.vlgmr.msrb.gmra.mxu3 %v12773_v3  ;;  %v7771_v9 = vld [vmem:[#allocation2 + $0x40] sm:$0xf] }
 0x394   : > { %v7372_v6 = vsel %vm14718_vm13, %v12674_v24, %v7371_v60  ;;  %v7373_v23 = vrot.slane %v7371_v60, 4  ;;  %v6520_v50 = vadd.f32 %v15687_v53, %v6431_v39  ;;  %v7828_v14 = vld [vmem:[#allocation2 + $0x18] sm:$0xe]  ;;  %v13052_v57 = vld [vmem:[#allocation3 + $0x240] sm:$0xf]  ;;  %v7926_v44 = vrot.slane %v7829_v63, 5 }
 0x395   : > { %7473 = vst [vmem:[#allocation3 + $0x244] sm:$0xf] %v7372_v6  ;;  %v7014_v47 = vrot.slane %v6928_v30, 7  ;;  %v7505_v5 = vld [vmem:[#allocation2 + $0x40] sm:$0xf]  ;;  %v12698_v24 = vrot.slane %v7828_v14, 9 }
 0x396   : > { %v7375_v52 = vsel %vm14718_vm13, %v7373_v23, %v7374_v40  ;;  %7803 = vst [vmem:[#allocation3 + $0x108] sm:$0xf] %v7771_v9  ;;  %v7830_v33 = vld [vmem:[#allocation2 + $0x20] sm:$0x1]  ;;  %v6784_v61 = vpop.f32.mrf.mxu3  ;;  %v7506_v16 = vld [vmem:[#allocation2 + $0x44] sm:$0x3]  ;;  %v6609_v11 = vadd.f32 %v15717_v35, %v6520_v50 }
 0x397   : > { %7474 = vst [vmem:[#allocation3 + $0x268] sm:$0xf] %v7375_v52  ;;  %v7171_v53 = vld [vmem:[#allocation2 + $0x6c] sm:$0xf]  ;;  %v7015_v43 = vsel %vm14710_vm10, %v7013_v29, %v7014_v47  ;;  %v7016_v34 = vrot.slane %v7014_v47, 4  ;;  %v6785_v7 = vadd.f32 %v6784_v61, %v6696_v8  ;;  %v6875_v26 = vpop.f32.mrf.mxu0  ;;  %v7625_v55 = vrot.slane %v7505_v5, 6 }
 0x398   : > { %v13956_v1 = vld [vmem:[#allocation3 + $0x260] sm:$0xf0]  ;;  %7203 = vst [vmem:[#allocation3 + $0x288] sm:$0xf] %v7171_v53  ;;  %v7628_v58 = vrot.slane %v7506_v16, 6  ;;  %v7928_v39 = vrot.slane %v7926_v44, 4  ;;  %v6698_v29 = vadd.f32 %v15818_v31, %v6609_v11 }
 0x399   : > { %7127 = vst [vmem:[#allocation2 + $0x70] sm:$0xf] %v7015_v43  ;;  %v13053_v13 = vor.u32 %v13956_v1, %v13052_v57  ;;  %v6874_v59 = vadd.f32 %v6873_v45, %v6785_v7  ;;  %v7626_v3 = vsel %vm14736_vm14, %v12687_v41, %v7625_v55  ;;  %v7627_v54 = vrot.slane %v7625_v55, 4  ;;  %v8100_v18 = vld [vmem:[#allocation2 + $0x18] sm:$0xc]  ;;  %v17442_v30 = vld [vmem:[#allocation46_spill] sm:$0xff] }
 0x39a   : > { %7128 = vst [vmem:[#allocation2 + $0x74] sm:$0x1] %v7016_v34  ;;  %v7929_v19 = vrot.slane %v7830_v33, 5  ;;  %v8101_v37 = vld [vmem:[#allocation2 + $0x1c] sm:$0xf]  ;;  %v7927_v45 = vsel %vm14718_vm13, %v12698_v24, %v7926_v44  ;;  %v12714_v50 = vrot.slane %v8100_v18, 10 }
 0x39b   : > { %7742 = vst [vmem:[#allocation3 + $0x170] sm:$0xf] %v7626_v3  ;;  %v6929_v38 = vpack.c.bf16 %v6874_v59, %v6874_v59  ;;  %v12810_v28 = vld [vmem:[#allocation3 + $0x74] sm:$0xf0]  ;;  %v12808_v60 = vld [vmem:[#allocation3 + $0x50] sm:$0xf]  ;;  %v7629_v48 = vsel %vm14736_vm14, %v7627_v54, %v7628_v58 }
 0x39c   : > { %v13894_v35 = vld [vmem:[#allocation3 + $0x70] sm:$0xf0]  ;;  %v7772_v40 = vld [vmem:[#allocation2 + $0x48] sm:$0xf]  ;;  %v17441_v63 = vld [vmem:[#allocation47_spill] sm:$0xff]  ;;  %v8198_v8 = vrot.slane %v8101_v37, 6  ;;  %v7930_v44 = vsel %vm14718_vm13, %v7928_v39, %v7929_v19  ;;  %v6701_v37 = vadd.f32 %v15831_v2, %v15731_v20 }
 0x39d   : > { %10501 = vmatmul.bf16.gmra.mxu1 %v13053_v13  ;;  %v6258_v6 = vadd.f32 %v17442_v30, %v17441_v63  ;;  %v13952_v23 = vld [vmem:[#allocation3 + $0x244] sm:$0xf]  ;;  %7804 = vst [vmem:[#allocation3 + $0x12c] sm:$0xf] %v7772_v40  ;;  %v7017_v9 = vrot.slane %v6929_v38, 7  ;;  %v17443_v47 = vld [vmem:[#allocation48_spill] sm:$0xff]  ;;  %v12809_v31 = vor.u32 %v13894_v35, %v12808_v60 }
 0x39e   : > { %v13054_v41 = vld [vmem:[#allocation3 + $0x264] sm:$0xf0]  ;;  %v13890_v14 = vld [vmem:[#allocation3 + $0x54] sm:$0xf]  ;;  %7743 = vst [vmem:[#allocation3 + $0x194] sm:$0xf] %v7629_v48  ;;  %v6786_v52 = vpop.f32.mrf.mxu3  ;;  %v8199_v7 = vsel %vm14736_vm14, %v12714_v50, %v8198_v8 }
 0x39f   : > { %v6347_v57 = vadd.f32 %v17443_v47, %v6258_v6  ;;  %v13057_v5 = vor.u32 %v13952_v23, %v13054_v41  ;;  %v7244_v33 = vld [vmem:[#allocation2 + $0x6c] sm:$0xe]  ;;  %v16158_v61 = vld [vmem:[#allocation2 + $0x48] sm:$0xc]  ;;  %8068 = vst [vmem:[#allocation3 + $0x10] sm:$0xf] %v7927_v45  ;;  %v6787_v53 = vadd.f32 %v6786_v52, %v6698_v29  ;;  %v6878_v16 = vpop.f32.mrf.mxu0  ;;  %v12813_v55 = vor.u32 %v13890_v14, %v12810_v28 }
 0x3a0   : > { %7129 = vst [vmem:[#allocation2 + $0x78] sm:$0xe] %v7017_v9  ;;  %v7172_v43 = vld [vmem:[#allocation2 + $0x70] sm:$0xf]  ;;  %v14058_v34 = vld [vmem:[#allocation10 + $0x110] sm:$0xff]  ;;  %v12675_v59 = vrot.slane %v7244_v33, 9 }
 0x3a1   : > { %v6436_v1 = vadd.f32 %v15739_v17, %v6347_v57  ;;  %7204 = vst [vmem:[#allocation3 + $0x2ac] sm:$0xf] %v7172_v43  ;;  %v7245_v11 = vld [vmem:[#allocation2 + $0x70] sm:$0xf]  ;;  %v7246_v13 = vld [vmem:[#allocation2 + $0x74] sm:$0x1]  ;;  %v6876_v58 = vadd.f32 %v6875_v26, %v6787_v53  ;;  %10814 = vmatpush.bf16.msrb.mxu1 %v14058_v34 }
 0x3a2   : > { %v7378_v3 = vrot.slane %v7245_v11, 5  ;;  %v7381_v54 = vrot.slane %v7246_v13, 5  ;;  %8069 = vst [vmem:[#allocation3 + $0x34] sm:$0xf] %v7930_v44  ;;  %10733 = vmatmul.bf16.gmra.mxu0 %v12813_v55  ;;  %v8102_v24 = vld [vmem:[#allocation2 + $0x20] sm:$0x3] }
 0x3a3   : > { %10590 = vmatmul.bf16.gmra.mxu2 %v13057_v5  ;;  %8340 = vst [vmem:[#allocation3 + $0x14] sm:$0xf] %v8199_v7  ;;  %v6930_v18 = vpack.c.bf16 %v6876_v58, %v6876_v58  ;;  %10644 = vmatmul.bf16.gmra.mxu3 %v12809_v31  ;;  %v12688_v19 = vrot.slane %v16158_v61, 10  ;;  %v7018_v26 = vrot.slane %v7017_v9, 4  ;;  %v7773_v38 = vld [vmem:[#allocation2 + $0x4c] sm:$0xf] }
 0x3a4   : > { %v7379_v39 = vsel %vm14718_vm13, %v12675_v59, %v7378_v3  ;;  %v7380_v17 = vrot.slane %v7378_v3, 4  ;;  %v8200_v28 = vrot.slane %v8198_v8, 4  ;;  %v17444_v60 = vld [vmem:[#allocation77_spill] sm:$0xff]  ;;  %v13088_v48 = vld [vmem:[#allocation3 + $0x288] sm:$0xf]  ;;  %v8201_v30 = vrot.slane %v8102_v24, 6 }
 0x3a5   : > { %7475 = vst [vmem:[#allocation3 + $0x28c] sm:$0xf] %v7379_v39  ;;  %v6525_v35 = vadd.f32 %v17444_v60, %v6436_v1  ;;  %v7019_v40 = vrot.slane %v6930_v18, 7  ;;  %v7508_v63 = vld [vmem:[#allocation2 + $0x4c] sm:$0xf]  ;;  %v17445_v52 = vld [vmem:[#allocation79_spill] sm:$0xff] }
 0x3a6   : > { %v7382_v45 = vsel %vm14718_vm13, %v7380_v17, %v7381_v54  ;;  %7805 = vst [vmem:[#allocation3 + $0x150] sm:$0xf] %v7773_v38  ;;  %v6789_v6 = vpop.f32.mrf.mxu3  ;;  %v7509_v50 = vld [vmem:[#allocation2 + $0x50] sm:$0x3]  ;;  %v7632_v14 = vrot.slane %v7508_v63, 6  ;;  %v14070_v61 = vld [vmem:[#allocation10 + $0x170] sm:$0xff]  ;;  %v8202_v55 = vsel %vm14736_vm14, %v8200_v28, %v8201_v30  ;;  %v16186_v28 = vpop.f32.mrf.mxu1 }
 0x3a7   : > { %7476 = vst [vmem:[#allocation3 + $0x2b0] sm:$0xf] %v7382_v45  ;;  %v7173_v23 = vld [vmem:[#allocation2 + $0x78] sm:$0xf]  ;;  %v7020_v20 = vsel %vm14710_vm10, %v7018_v26, %v7019_v40  ;;  %v7021_v2 = vrot.slane %v7019_v40, 4  ;;  %v6790_v29 = vadd.f32 %v6789_v6, %v6701_v37  ;;  %v6880_v9 = vpop.f32.mrf.mxu0  ;;  %v7635_v47 = vrot.slane %v7509_v50, 6  ;;  %10899 = vmatpush.bf16.msrb.mxu2 %v14070_v61 }
 0x3a8   : > { %v13965_v41 = vld [vmem:[#allocation3 + $0x2a8] sm:$0xf0]  ;;  %7205 = vst [vmem:[#allocation3 + $0x2d0] sm:$0xf] %v7173_v23  ;;  %v7832_v57 = vld [vmem:[#allocation2 + $0x28] sm:$0xf]  ;;  %v6614_v5 = vadd.f32 %v17445_v52, %v6525_v35  ;;  %v7633_v44 = vsel %vm14736_vm14, %v12688_v19, %v7632_v14 }
 0x3a9   : > { %7130 = vst [vmem:[#allocation2 + $0x7c] sm:$0xf] %v7020_v20  ;;  %v13089_v8 = vor.u32 %v13965_v41, %v13088_v48  ;;  %v6879_v33 = vadd.f32 %v6878_v16, %v6790_v29  ;;  %v7634_v53 = vrot.slane %v7632_v14, 4  ;;  %v7831_v31 = vld [vmem:[#allocation2 + $0x24] sm:$0xe]  ;;  %v7933_v11 = vrot.slane %v7832_v57, 5 }
 0x3aa   : > { %7131 = vst [vmem:[#allocation2 + $0x80] sm:$0x1] %v7021_v2  ;;  %v12846_v34 = vld [vmem:[#allocation3 + $0xbc] sm:$0xf0]  ;;  %v7774_v7 = vld [vmem:[#allocation2 + $0x54] sm:$0xf]  ;;  %v6703_v54 = vadd.f32 %v15842_v56, %v6614_v5 }
 0x3ab   : > { %7744 = vst [vmem:[#allocation3 + $0x1b8] sm:$0xf] %v7633_v44  ;;  %v6931_v43 = vpack.c.bf16 %v6879_v33, %v6879_v33  ;;  %v7636_v1 = vsel %vm14736_vm14, %v7634_v53, %v7635_v47  ;;  %v17446_v16 = vld [vmem:[#allocation50_spill] sm:$0xff]  ;;  %v17447_v13 = vld [vmem:[#allocation49_spill] sm:$0xff]  ;;  %v12699_v39 = vrot.slane %v7831_v31, 9  ;;  %v17448_v17 = vld [vmem:[#allocation51_spill] sm:$0xff] }
 0x3ac   : > { %v6263_v58 = vadd.f32 %v17447_v13, %v17446_v16  ;;  %v13961_v59 = vld [vmem:[#allocation3 + $0x28c] sm:$0xf]  ;;  %v13903_v3 = vld [vmem:[#allocation3 + $0xb8] sm:$0xf0]  ;;  %7806 = vst [vmem:[#allocation3 + $0x174] sm:$0xf] %v7774_v7 }
 0x3ad   : > { %10506 = vmatmul.bf16.gmra.mxu1 %v13089_v8  ;;  %v7022_v24 = vrot.slane %v6931_v43, 7  ;;  %7745 = vst [vmem:[#allocation3 + $0x1dc] sm:$0xf] %v7636_v1  ;;  %v13899_v38 = vld [vmem:[#allocation3 + $0x9c] sm:$0xf]  ;;  %v7934_v56 = vsel %vm14718_vm13, %v12699_v39, %v7933_v11  ;;  %v7935_v33 = vrot.slane %v7933_v11, 4 }
 0x3ae   : > { %v13090_v18 = vld [vmem:[#allocation3 + $0x2ac] sm:$0xf0]  ;;  %v6352_v19 = vadd.f32 %v17448_v17, %v6263_v58  ;;  %v6791_v37 = vpop.f32.mrf.mxu3  ;;  %v7247_v60 = vld [vmem:[#allocation2 + $0x78] sm:$0xe]  ;;  %8341 = vst [vmem:[#allocation3 + $0x38] sm:$0xf] %v8202_v55  ;;  %v12849_v6 = vor.u32 %v13899_v38, %v12846_v34 }
 0x3af   : > { %v13093_v26 = vor.u32 %v13961_v59, %v13090_v18  ;;  %7132 = vst [vmem:[#allocation2 + $0x84] sm:$0xe] %v7022_v24  ;;  %v6792_v35 = vadd.f32 %v6791_v37, %v6703_v54  ;;  %v6883_v40 = vpop.f32.mrf.mxu0  ;;  %v12844_v48 = vld [vmem:[#allocation3 + $0x98] sm:$0xf]  ;;  %v12676_v29 = vrot.slane %v7247_v60, 9  ;;  %v17450_v61 = vld [vmem:[#allocation80_spill] sm:$0xff] }
 0x3b0   : > { %v7174_v45 = vld [vmem:[#allocation2 + $0x7c] sm:$0xf]  ;;  %v17449_v63 = vld [vmem:[#allocation81_spill] sm:$0xff]  ;;  %v12845_v23 = vor.u32 %v13903_v3, %v12844_v48  ;;  %v7510_v8 = vld [vmem:[#allocation2 + $0x54] sm:$0xc]  ;;  %v6706_v44 = vadd.f32 %v15857_v32, %v17450_v61  ;;  %v7023_v53 = vrot.slane %v7022_v24, 4 }
 0x3b1   : > { %v6441_v30 = vadd.f32 %v17449_v63, %v6352_v19  ;;  %7206 = vst [vmem:[#allocation3 + $0x2f4] sm:$0xf] %v7174_v45  ;;  %v7248_v50 = vld [vmem:[#allocation2 + $0x7c] sm:$0xf]  ;;  %v7249_v20 = vld [vmem:[#allocation2 + $0x80] sm:$0x1]  ;;  %v6881_v2 = vadd.f32 %v6880_v9, %v6792_v35 }
 0x3b2   : > { %v7385_v41 = vrot.slane %v7248_v50, 5  ;;  %v7388_v14 = vrot.slane %v7249_v20, 5  ;;  %10738 = vmatmul.bf16.gmra.mxu0 %v12849_v6  ;;  %v7833_v47 = vld [vmem:[#allocation2 + $0x2c] sm:$0x1]  ;;  %8070 = vst [vmem:[#allocation3 + $0x58] sm:$0xf] %v7934_v56 }
 0x3b3   : > { %10595 = vmatmul.bf16.gmra.mxu2 %v13093_v26  ;;  %v6932_v57 = vpack.c.bf16 %v6881_v2, %v6881_v2  ;;  %10649 = vmatmul.bf16.gmra.mxu3 %v12845_v23  ;;  %v7775_v9 = vld [vmem:[#allocation2 + $0x58] sm:$0xf]  ;;  %v12689_v31 = vrot.slane %v7510_v8, 10  ;;  %v17451_v43 = vld [vmem:[#allocation78_spill] sm:$0xff]  ;;  %v13124_v1 = vld [vmem:[#allocation3 + $0x2d0] sm:$0xf]  ;;  %v16207_v23 = vpop.f32.mrf.mxu2 }
 0x3b4   : > { %v7386_v52 = vsel %vm14718_vm13, %v12676_v29, %v7385_v41  ;;  %v7387_v5 = vrot.slane %v7385_v41, 4  ;;  %v6530_v34 = vadd.f32 %v17451_v43, %v6441_v30  ;;  %7807 = vst [vmem:[#allocation3 + $0x198] sm:$0xf] %v7775_v9  ;;  %v7511_v16 = vld [vmem:[#allocation2 + $0x58] sm:$0xf]  ;;  %v7936_v13 = vrot.slane %v7833_v47, 5 }
 0x3b5   : > { %7477 = vst [vmem:[#allocation3 + $0x2d4] sm:$0xf] %v7386_v52  ;;  %v7024_v7 = vrot.slane %v6932_v57, 7  ;;  %v7512_v59 = vld [vmem:[#allocation2 + $0x5c] sm:$0x3]  ;;  %v7639_v17 = vrot.slane %v7511_v16, 6 }
 0x3b6   : > { %v7389_v55 = vsel %vm14718_vm13, %v7387_v5, %v7388_v14  ;;  %v6794_v58 = vpop.f32.mrf.mxu3  ;;  %v7175_v11 = vld [vmem:[#allocation2 + $0x84] sm:$0xf]  ;;  %v7642_v37 = vrot.slane %v7512_v59, 6  ;;  %v8104_v26 = vld [vmem:[#allocation2 + $0x28] sm:$0xf]  ;;  %v17452_v38 = vld [vmem:[#allocation83_spill] sm:$0xff] }
 0x3b7   : > { %7478 = vst [vmem:[#allocation3 + $0x2f8] sm:$0xf] %v7389_v55  ;;  %v7025_v32 = vsel %vm14710_vm10, %v7023_v53, %v7024_v7  ;;  %v7026_v3 = vrot.slane %v7024_v7, 4  ;;  %v6795_v54 = vadd.f32 %v6794_v58, %v6706_v44  ;;  %v6885_v24 = vpop.f32.mrf.mxu0  ;;  %v16200_v18 = vpop.f32.mrf.mxu1  ;;  %v6619_v60 = vadd.f32 %v17452_v38, %v6530_v34  ;;  %v17453_v56 = vld [vmem:[#allocation52_spill] sm:$0xff]  ;;  %v17454_v63 = vld [vmem:[#allocation54_spill] sm:$0xff]  ;;  %v17455_v8 = vld [vmem:[#allocation53_spill] sm:$0xff] }
 0x3b8   : > { %v13974_v39 = vld [vmem:[#allocation3 + $0x2f0] sm:$0xf0]  ;;  %7207 = vst [vmem:[#allocation3 + $0x318] sm:$0xf] %v7175_v11  ;;  %v7640_v48 = vsel %vm14736_vm14, %v12689_v31, %v7639_v17  ;;  %v7641_v45 = vrot.slane %v7639_v17, 4  ;;  %v6268_v30 = vadd.f32 %v17454_v63, %v17453_v56  ;;  %v8205_v14 = vrot.slane %v8104_v26, 6 }
 0x3b9   : > { %7133 = vst [vmem:[#allocation2 + $0x88] sm:$0xf] %v7025_v32  ;;  %v13125_v19 = vor.u32 %v13974_v39, %v13124_v1  ;;  %v6884_v35 = vadd.f32 %v6883_v40, %v6795_v54  ;;  %v8103_v6 = vld [vmem:[#allocation2 + $0x24] sm:$0xc]  ;;  %v12882_v20 = vld [vmem:[#allocation3 + $0x104] sm:$0xf0]  ;;  %v7937_v40 = vsel %vm14718_vm13, %v7935_v33, %v7936_v13  ;;  %v6708_v5 = vadd.f32 %v15862_v0, %v6619_v60 }
 0x3ba   : > { %7134 = vst [vmem:[#allocation2 + $0x8c] sm:$0x1] %v7026_v3  ;;  %v13912_v2 = vld [vmem:[#allocation3 + $0x100] sm:$0xf0]  ;;  %v7776_v29 = vld [vmem:[#allocation2 + $0x60] sm:$0xf]  ;;  %v7643_v41 = vsel %vm14736_vm14, %v7641_v45, %v7642_v37  ;;  %v6357_v47 = vadd.f32 %v17455_v8, %v6268_v30 }
 0x3bb   : > { %7746 = vst [vmem:[#allocation3 + $0x200] sm:$0xf] %v7640_v48  ;;  %v6933_v50 = vpack.c.bf16 %v6884_v35, %v6884_v35  ;;  %v7250_v52 = vld [vmem:[#allocation2 + $0x84] sm:$0xe]  ;;  %v13908_v53 = vld [vmem:[#allocation3 + $0xe4] sm:$0xf] }
 0x3bc   : > { %v13970_v57 = vld [vmem:[#allocation3 + $0x2d4] sm:$0xf]  ;;  %7808 = vst [vmem:[#allocation3 + $0x1bc] sm:$0xf] %v7776_v29  ;;  %v12880_v9 = vld [vmem:[#allocation3 + $0xe0] sm:$0xf]  ;;  %v12885_v32 = vor.u32 %v13908_v53, %v12882_v20 }
 0x3bd   : > { %10511 = vmatmul.bf16.gmra.mxu1 %v13125_v19  ;;  %v7027_v61 = vrot.slane %v6933_v50, 7  ;;  %7747 = vst [vmem:[#allocation3 + $0x224] sm:$0xf] %v7643_v41  ;;  %v12715_v31 = vrot.slane %v8103_v6, 10  ;;  %v17456_v43 = vld [vmem:[#allocation85_spill] sm:$0xff]  ;;  %v14057_v11 = vld [vmem:[#allocation10 + $0x108] sm:$0xff]  ;;  %v12881_v3 = vor.u32 %v13912_v2, %v12880_v9 }
 0x3be   : > { %v13126_v44 = vld [vmem:[#allocation3 + $0x2f4] sm:$0xf0]  ;;  %v6446_v34 = vadd.f32 %v17456_v43, %v6357_v47  ;;  %v6796_v7 = vpop.f32.mrf.mxu3  ;;  %v16216_v55 = vld [vmem:[#allocation2 + $0x60] sm:$0xc]  ;;  %8071 = vst [vmem:[#allocation3 + $0x7c] sm:$0xf] %v7937_v40  ;;  %10815 = vmatpush.bf16.msrb.mxu1 %v14057_v11 }
 0x3bf   : > { %v13129_v1 = vor.u32 %v13970_v57, %v13126_v44  ;;  %v8105_v33 = vld [vmem:[#allocation2 + $0x2c] sm:$0x3]  ;;  %7135 = vst [vmem:[#allocation2 + $0x90] sm:$0xe] %v7027_v61  ;;  %v6797_v16 = vadd.f32 %v6796_v7, %v6708_v5  ;;  %v6888_v13 = vpop.f32.mrf.mxu0  ;;  %v16218_v58 = vpop.f32.mrf.mxu1  ;;  %v8206_v59 = vsel %vm14736_vm14, %v12715_v31, %v8205_v14  ;;  %v12677_v19 = vrot.slane %v7250_v52, 9  ;;  %v17457_v38 = vld [vmem:[#allocation82_spill] sm:$0xff] }
 0x3c0   : > { %v7176_v0 = vld [vmem:[#allocation2 + $0x88] sm:$0xf]  ;;  %v6535_v60 = vadd.f32 %v17457_v38, %v6446_v34  ;;  %v12690_v35 = vrot.slane %v16216_v55, 10  ;;  %v8207_v48 = vrot.slane %v8205_v14, 4  ;;  %8342 = vst [vmem:[#allocation3 + $0x5c] sm:$0xf] %v8206_v59 }
 0x3c1   : > { %7208 = vst [vmem:[#allocation3 + $0x33c] sm:$0xf] %v7176_v0  ;;  %v7251_v54 = vld [vmem:[#allocation2 + $0x88] sm:$0xf]  ;;  %v7252_v39 = vld [vmem:[#allocation2 + $0x8c] sm:$0x1]  ;;  %v6886_v17 = vadd.f32 %v6885_v24, %v6797_v16 }
 0x3c2   : > { %v7392_v37 = vrot.slane %v7251_v54, 5  ;;  %v7395_v26 = vrot.slane %v7252_v39, 5  ;;  %10743 = vmatmul.bf16.gmra.mxu0 %v12885_v32  ;;  %v8208_v6 = vrot.slane %v8105_v33, 6  ;;  %v7777_v50 = vld [vmem:[#allocation2 + $0x64] sm:$0xf]  ;;  %v7028_v40 = vrot.slane %v7027_v61, 4 }
 0x3c3   : > { %10600 = vmatmul.bf16.gmra.mxu2 %v13129_v1  ;;  %v6934_v45 = vpack.c.bf16 %v6886_v17, %v6886_v17  ;;  %v10561_v56 = vpop.f32.mrf.mxu2  ;;  %10654 = vmatmul.bf16.gmra.mxu3 %v12881_v3  ;;  %v7834_v20 = vld [vmem:[#allocation2 + $0x30] sm:$0xe]  ;;  %v7835_v2 = vld [vmem:[#allocation2 + $0x34] sm:$0xf]  ;;  %v17458_v29 = vld [vmem:[#allocation84_spill] sm:$0xff] }
 0x3c4   : > { %v7393_v63 = vsel %vm14718_vm13, %v12677_v19, %v7392_v37  ;;  %v7394_v30 = vrot.slane %v7392_v37, 4  ;;  %v16227_v24 = vadd.f32 %v10561_v56, %v16200_v18  ;;  %v6711_v41 = vadd.f32 %v15879_v10, %v17458_v29  ;;  %v13160_v8 = vld [vmem:[#allocation3 + $0x318] sm:$0xf]  ;;  %7809 = vst [vmem:[#allocation3 + $0x1e0] sm:$0xf] %v7777_v50  ;;  %v17459_v52 = vld [vmem:[#allocation86_spill] sm:$0xff] }
 0x3c5   : > { %7479 = vst [vmem:[#allocation3 + $0x31c] sm:$0xf] %v7393_v63  ;;  %v7029_v14 = vrot.slane %v6934_v45, 7  ;;  %v7514_v57 = vld [vmem:[#allocation2 + $0x64] sm:$0xf]  ;;  %v6624_v5 = vadd.f32 %v17459_v52, %v6535_v60  ;;  %v8209_v33 = vsel %vm14736_vm14, %v8207_v48, %v8208_v6  ;;  %v7940_v0 = vrot.slane %v7835_v2, 5 }
 0x3c6   : > { %v7396_v47 = vsel %vm14718_vm13, %v7394_v30, %v7395_v26  ;;  %v6799_v44 = vpop.f32.mrf.mxu3  ;;  %v7177_v18 = vld [vmem:[#allocation2 + $0x90] sm:$0xf]  ;;  %v7515_v53 = vld [vmem:[#allocation2 + $0x68] sm:$0x3]  ;;  %v7646_v7 = vrot.slane %v7514_v57, 6  ;;  %v14069_v59 = vld [vmem:[#allocation10 + $0x168] sm:$0xff] }
 0x3c7   : > { %7480 = vst [vmem:[#allocation3 + $0x340] sm:$0xf] %v7396_v47  ;;  %v7030_v9 = vsel %vm14710_vm10, %v7028_v40, %v7029_v14  ;;  %v7031_v31 = vrot.slane %v7029_v14, 4  ;;  %v6800_v43 = vadd.f32 %v6799_v44, %v6711_v41  ;;  %v6890_v10 = vpop.f32.mrf.mxu0  ;;  %v16236_v61 = vpop.f32.mrf.mxu1  ;;  %v7649_v55 = vrot.slane %v7515_v53, 6  ;;  %v7836_v16 = vld [vmem:[#allocation2 + $0x38] sm:$0x1]  ;;  %10900 = vmatpush.bf16.msrb.mxu2 %v14069_v59 }
 0x3c8   : > { %v13983_v34 = vld [vmem:[#allocation3 + $0x338] sm:$0xf0]  ;;  %7209 = vst [vmem:[#allocation3 + $0x360] sm:$0xf] %v7177_v18  ;;  %v7647_v32 = vsel %vm14736_vm14, %v12690_v35, %v7646_v7  ;;  %v7648_v3 = vrot.slane %v7646_v7, 4  ;;  %v12700_v54 = vrot.slane %v7834_v20, 9  ;;  %v6713_v6 = vadd.f32 %v15893_v15, %v6624_v5 }
 0x3c9   : > { %7136 = vst [vmem:[#allocation2 + $0x94] sm:$0xf] %v7030_v9  ;;  %v13161_v1 = vor.u32 %v13983_v34, %v13160_v8  ;;  %v6889_v11 = vadd.f32 %v6888_v13, %v6800_v43  ;;  %v7942_v39 = vrot.slane %v7940_v0, 4  ;;  %v12918_v37 = vld [vmem:[#allocation3 + $0x14c] sm:$0xf0]  ;;  %v17460_v48 = vld [vmem:[#allocation19_spill] sm:$0xff] }
 0x3ca   : > { %7137 = vst [vmem:[#allocation2 + $0x98] sm:$0x1] %v7031_v31  ;;  %v7253_v26 = vld [vmem:[#allocation2 + $0x90] sm:$0xe]  ;;  %v7778_v38 = vld [vmem:[#allocation2 + $0x6c] sm:$0xf]  ;;  %v7650_v60 = vsel %vm14736_vm14, %v7648_v3, %v7649_v55  ;;  %v7941_v13 = vsel %vm14718_vm13, %v12700_v54, %v7940_v0 }
 0x3cb   : > { %7748 = vst [vmem:[#allocation3 + $0x248] sm:$0xf] %v7647_v32  ;;  %v6935_v17 = vpack.c.bf16 %v6889_v11, %v6889_v11  ;;  %v10563_v19 = vpop.f32.mrf.mxu2  ;;  %v17461_v35 = vld [vmem:[#allocation32_spill] sm:$0xff]  ;;  %v7943_v30 = vrot.slane %v7836_v16, 5  ;;  %v17462_v2 = vld [vmem:[#allocation45_spill] sm:$0xff]  ;;  %v12678_v5 = vrot.slane %v7253_v26, 9 }
 0x3cc   : > { %8343 = vst [vmem:[#allocation3 + $0x80] sm:$0xf] %v8209_v33  ;;  %v6273_v45 = vadd.f32 %v17461_v35, %v17460_v48  ;;  %v16249_v56 = vadd.f32 %v10563_v19, %v16218_v58  ;;  %v13979_v63 = vld [vmem:[#allocation3 + $0x31c] sm:$0xf]  ;;  %v13917_v14 = vld [vmem:[#allocation3 + $0x12c] sm:$0xf] }
 0x3cd   : > { %10516 = vmatmul.bf16.gmra.mxu1 %v13161_v1  ;;  %7810 = vst [vmem:[#allocation3 + $0x204] sm:$0xf] %v7778_v38  ;;  %v7032_v50 = vrot.slane %v6935_v17, 7  ;;  %v12916_v8 = vld [vmem:[#allocation3 + $0x128] sm:$0xf]  ;;  %v7944_v57 = vsel %vm14718_vm13, %v7942_v39, %v7943_v30  ;;  %v17463_v18 = vld [vmem:[#allocation89_spill] sm:$0xff]  ;;  %v12921_v9 = vor.u32 %v13917_v14, %v12918_v37 }
 0x3ce   : > { %v13162_v20 = vld [vmem:[#allocation3 + $0x33c] sm:$0xf0]  ;;  %7749 = vst [vmem:[#allocation3 + $0x26c] sm:$0xf] %v7650_v60  ;;  %v6362_v29 = vadd.f32 %v17462_v2, %v6273_v45  ;;  %v6801_v41 = vpop.f32.mrf.mxu3  ;;  %v13921_v47 = vld [vmem:[#allocation3 + $0x148] sm:$0xf0] }
 0x3cf   : > { %v13165_v40 = vor.u32 %v13979_v63, %v13162_v20  ;;  %8072 = vst [vmem:[#allocation3 + $0xa0] sm:$0xf] %v7941_v13  ;;  %v6802_v58 = vadd.f32 %v6801_v41, %v6713_v6  ;;  %v6893_v52 = vpop.f32.mrf.mxu0  ;;  %v16255_v44 = vpop.f32.mrf.mxu1  ;;  %v12917_v7 = vor.u32 %v13921_v47, %v12916_v8  ;;  %v8106_v33 = vld [vmem:[#allocation2 + $0x30] sm:$0xc]  ;;  %v8107_v16 = vld [vmem:[#allocation2 + $0x34] sm:$0xf] }
 0x3d0   : > { %7138 = vst [vmem:[#allocation2 + $0x9c] sm:$0xe] %v7032_v50  ;;  %v7178_v15 = vld [vmem:[#allocation2 + $0x94] sm:$0xf]  ;;  %v6451_v53 = vadd.f32 %v17463_v18, %v6362_v29  ;;  %v8108_v3 = vld [vmem:[#allocation2 + $0x38] sm:$0x3] }
 0x3d1   : > { %7210 = vst [vmem:[#allocation3 + $0x384] sm:$0xf] %v7178_v15  ;;  %v7254_v31 = vld [vmem:[#allocation2 + $0x94] sm:$0xf]  ;;  %v7255_v43 = vld [vmem:[#allocation2 + $0x98] sm:$0x1]  ;;  %v6891_v34 = vadd.f32 %v6890_v10, %v6802_v58 }
 0x3d2   : > { %v7399_v1 = vrot.slane %v7254_v31, 5  ;;  %v7402_v55 = vrot.slane %v7255_v43, 5  ;;  %8073 = vst [vmem:[#allocation3 + $0xc4] sm:$0xf] %v7944_v57  ;;  %10748 = vmatmul.bf16.gmra.mxu0 %v12921_v9  ;;  %v17464_v54 = vld [vmem:[#allocation88_spill] sm:$0xff]  ;;  %v7033_v17 = vrot.slane %v7032_v50, 4 }
 0x3d3   : > { %10605 = vmatmul.bf16.gmra.mxu2 %v13165_v40  ;;  %v6936_v0 = vpack.c.bf16 %v6891_v34, %v6891_v34  ;;  %v10566_v11 = vpop.f32.mrf.mxu2  ;;  %10659 = vmatmul.bf16.gmra.mxu3 %v12917_v7  ;;  %v6716_v39 = vadd.f32 %v15901_v36, %v17464_v54  ;;  %v7779_v19 = vld [vmem:[#allocation2 + $0x70] sm:$0xf]  ;;  %v12716_v37 = vrot.slane %v8106_v33, 10  ;;  %v17465_v26 = vld [vmem:[#allocation87_spill] sm:$0xff]  ;;  %v8212_v35 = vrot.slane %v8107_v16, 6 }
 0x3d4   : > { %v7400_v59 = vsel %vm14718_vm13, %v12678_v5, %v7399_v1  ;;  %v7401_v32 = vrot.slane %v7399_v1, 4  ;;  %v16263_v10 = vadd.f32 %v10566_v11, %v16236_v61  ;;  %v6540_v38 = vadd.f32 %v17465_v26, %v6451_v53  ;;  %v13196_v13 = vld [vmem:[#allocation3 + $0x360] sm:$0xf]  ;;  %7811 = vst [vmem:[#allocation3 + $0x228] sm:$0xf] %v7779_v19 }
 0x3d5   : > { %7481 = vst [vmem:[#allocation3 + $0x364] sm:$0xf] %v7400_v59  ;;  %v7034_v60 = vrot.slane %v6936_v0, 7  ;;  %v7837_v45 = vld [vmem:[#allocation2 + $0x3c] sm:$0xe]  ;;  %v8215_v30 = vrot.slane %v8108_v3, 6  ;;  %v8213_v41 = vsel %vm14736_vm14, %v12716_v37, %v8212_v35 }
 0x3d6   : > { %v7403_v48 = vsel %vm14718_vm13, %v7401_v32, %v7402_v55  ;;  %v6804_v63 = vpop.f32.mrf.mxu3  ;;  %v8214_v14 = vrot.slane %v8212_v35, 4  ;;  %v17466_v8 = vld [vmem:[#allocation90_spill] sm:$0xff]  ;;  %v7838_v58 = vld [vmem:[#allocation2 + $0x40] sm:$0xf]  ;;  %8344 = vst [vmem:[#allocation3 + $0xa4] sm:$0xf] %v8213_v41 }
 0x3d7   : > { %7482 = vst [vmem:[#allocation3 + $0x388] sm:$0xf] %v7403_v48  ;;  %v7179_v36 = vld [vmem:[#allocation2 + $0x9c] sm:$0xf]  ;;  %v7035_v61 = vsel %vm14710_vm10, %v7033_v17, %v7034_v60  ;;  %v7036_v6 = vrot.slane %v7034_v60, 4  ;;  %v6805_v50 = vadd.f32 %v6804_v63, %v6716_v39  ;;  %v6895_v20 = vpop.f32.mrf.mxu0  ;;  %v16270_v2 = vpop.f32.mrf.mxu1  ;;  %v6629_v47 = vadd.f32 %v17466_v8, %v6540_v38 }
 0x3d8   : > { %v13992_v29 = vld [vmem:[#allocation3 + $0x380] sm:$0xf0]  ;;  %7211 = vst [vmem:[#allocation3 + $0x3a8] sm:$0xf] %v7179_v36  ;;  %v8216_v15 = vsel %vm14736_vm14, %v8214_v14, %v8215_v30  ;;  %v7839_v5 = vld [vmem:[#allocation2 + $0x44] sm:$0x1] }
 0x3d9   : > { %7139 = vst [vmem:[#allocation2 + $0xa0] sm:$0xf] %v7035_v61  ;;  %v13197_v40 = vor.u32 %v13992_v29, %v13196_v13  ;;  %v6894_v57 = vadd.f32 %v6893_v52, %v6805_v50  ;;  %v12701_v18 = vrot.slane %v7837_v45, 9  ;;  %v7947_v53 = vrot.slane %v7838_v58, 5  ;;  %v12954_v43 = vld [vmem:[#allocation3 + $0x194] sm:$0xf0] }
 0x3da   : > { %7140 = vst [vmem:[#allocation2 + $0xa4] sm:$0x1] %v7036_v6  ;;  %v7256_v34 = vld [vmem:[#allocation2 + $0x9c] sm:$0xe]  ;;  %v7780_v7 = vld [vmem:[#allocation2 + $0x78] sm:$0xf]  ;;  %v6718_v0 = vadd.f32 %v15917_v12, %v6629_v47 }
 0x3db   : > { %v6937_v9 = vpack.c.bf16 %v6894_v57, %v6894_v57  ;;  %v10568_v31 = vpop.f32.mrf.mxu2  ;;  %8345 = vst [vmem:[#allocation3 + $0xc8] sm:$0xf] %v8216_v15  ;;  %v7948_v52 = vsel %vm14718_vm13, %v12701_v18, %v7947_v53  ;;  %v7949_v33 = vrot.slane %v7947_v53, 4  ;;  %v7950_v16 = vrot.slane %v7839_v5, 5  ;;  %v13926_v54 = vld [vmem:[#allocation3 + $0x174] sm:$0xf] }
 0x3dc   : > { %v16278_v1 = vadd.f32 %v10568_v31, %v16255_v44  ;;  %v13988_v55 = vld [vmem:[#allocation3 + $0x364] sm:$0xf]  ;;  %7812 = vst [vmem:[#allocation3 + $0x24c] sm:$0xf] %v7780_v7  ;;  %v12952_v39 = vld [vmem:[#allocation3 + $0x170] sm:$0xf]  ;;  %v12957_v48 = vor.u32 %v13926_v54, %v12954_v43 }
 0x3dd   : > { %10521 = vmatmul.bf16.gmra.mxu1 %v13197_v40  ;;  %v7037_v11 = vrot.slane %v6937_v9, 7  ;;  %8074 = vst [vmem:[#allocation3 + $0xe8] sm:$0xf] %v7948_v52  ;;  %v13930_v17 = vld [vmem:[#allocation3 + $0x190] sm:$0xf0]  ;;  %v7951_v44 = vsel %vm14718_vm13, %v7949_v33, %v7950_v16  ;;  %v12679_v13 = vrot.slane %v7256_v34, 9 }
 0x3de   : > { %v13198_v59 = vld [vmem:[#allocation3 + $0x384] sm:$0xf0]  ;;  %v6806_v32 = vpop.f32.mrf.mxu3  ;;  %v8110_v19 = vld [vmem:[#allocation2 + $0x40] sm:$0xf]  ;;  %v14056_v12 = vld [vmem:[#allocation10 + $0x100] sm:$0xff]  ;;  %v12953_v36 = vor.u32 %v13930_v17, %v12952_v39 }
 0x3df   : > { %v13201_v3 = vor.u32 %v13988_v55, %v13198_v59  ;;  %7141 = vst [vmem:[#allocation2 + $0xa8] sm:$0xe] %v7037_v11  ;;  %v6807_v37 = vadd.f32 %v6806_v32, %v6718_v0  ;;  %v6898_v26 = vpop.f32.mrf.mxu0  ;;  %v16285_v38 = vpop.f32.mrf.mxu1  ;;  %10816 = vmatpush.bf16.msrb.mxu1 %v14056_v12  ;;  %v8109_v6 = vld [vmem:[#allocation2 + $0x3c] sm:$0xc]  ;;  %v8111_v50 = vld [vmem:[#allocation2 + $0x44] sm:$0x3] }
 0x3e0   : > { %v7180_v60 = vld [vmem:[#allocation2 + $0xa0] sm:$0xf]  ;;  %8075 = vst [vmem:[#allocation3 + $0x10c] sm:$0xf] %v7951_v44  ;;  %v8219_v29 = vrot.slane %v8110_v19, 6  ;;  %v17467_v47 = vld [vmem:[#allocation91_spill] sm:$0xff] }
 0x3e1   : > { %7212 = vst [vmem:[#allocation3 + $0x3cc] sm:$0xf] %v7180_v60  ;;  %v7257_v35 = vld [vmem:[#allocation2 + $0xa0] sm:$0xf]  ;;  %v7258_v45 = vld [vmem:[#allocation2 + $0xa4] sm:$0x1]  ;;  %v6896_v63 = vadd.f32 %v6895_v20, %v6807_v37 }
 0x3e2   : > { %v7406_v30 = vrot.slane %v7257_v35, 5  ;;  %v7409_v61 = vrot.slane %v7258_v45, 5  ;;  %10753 = vmatmul.bf16.gmra.mxu0 %v12957_v48  ;;  %v17468_v57 = vld [vmem:[#allocation20_spill] sm:$0xff]  ;;  %v7038_v20 = vrot.slane %v7037_v11, 4  ;;  %v7781_v5 = vld [vmem:[#allocation2 + $0x7c] sm:$0xf] }
 0x3e3   : > { %10610 = vmatmul.bf16.gmra.mxu2 %v13201_v3  ;;  %v6938_v41 = vpack.c.bf16 %v6896_v63, %v6896_v63  ;;  %10664 = vmatmul.bf16.gmra.mxu3 %v12953_v36  ;;  %v6721_v58 = vadd.f32 %v17468_v57, %v17467_v47  ;;  %v12717_v18 = vrot.slane %v8109_v6, 10  ;;  %v13232_v9 = vld [vmem:[#allocation3 + $0x3a8] sm:$0xf]  ;;  %7813 = vst [vmem:[#allocation3 + $0x270] sm:$0xf] %v7781_v5  ;;  %v8221_v43 = vrot.slane %v8219_v29, 4 }
 0x3e4   : > { %v10571_v40 = vpop.f32.mrf.mxu2  ;;  %v7407_v14 = vsel %vm14718_vm13, %v12679_v13, %v7406_v30  ;;  %v7408_v8 = vrot.slane %v7406_v30, 4  ;;  %v8222_v34 = vrot.slane %v8111_v50, 6  ;;  %v7840_v7 = vld [vmem:[#allocation2 + $0x48] sm:$0xe]  ;;  %v7841_v33 = vld [vmem:[#allocation2 + $0x4c] sm:$0xf] }
 0x3e5   : > { %v16292_v15 = vadd.f32 %v10571_v40, %v16270_v2  ;;  %7483 = vst [vmem:[#allocation3 + $0x3ac] sm:$0xf] %v7407_v14  ;;  %v7039_v53 = vrot.slane %v6938_v41, 7  ;;  %v8220_v3 = vsel %vm14736_vm14, %v12717_v18, %v8219_v29  ;;  %v7842_v17 = vld [vmem:[#allocation2 + $0x50] sm:$0x1]  ;;  %v17469_v44 = vld [vmem:[#allocation92_spill] sm:$0xff] }
 0x3e6   : > { %v7410_v31 = vsel %vm14718_vm13, %v7408_v8, %v7409_v61  ;;  %v6809_v55 = vpop.f32.mrf.mxu3  ;;  %v7181_v52 = vld [vmem:[#allocation2 + $0xa8] sm:$0xf]  ;;  %v8223_v39 = vsel %vm14736_vm14, %v8221_v43, %v8222_v34  ;;  %v14068_v13 = vld [vmem:[#allocation10 + $0x160] sm:$0xff]  ;;  %8346 = vst [vmem:[#allocation3 + $0xec] sm:$0xf] %v8220_v3  ;;  %v12702_v12 = vrot.slane %v7840_v7, 9 }
 0x3e7   : > { %7484 = vst [vmem:[#allocation3 + $0x3d0] sm:$0xf] %v7410_v31  ;;  %v7040_v2 = vsel %vm14710_vm10, %v7038_v20, %v7039_v53  ;;  %v7041_v16 = vrot.slane %v7039_v53, 4  ;;  %v6810_v0 = vadd.f32 %v6809_v55, %v6721_v58  ;;  %v6900_v11 = vpop.f32.mrf.mxu0  ;;  %v17470_v19 = vld [vmem:[#allocation93_spill] sm:$0xff]  ;;  %v7954_v48 = vrot.slane %v7841_v33, 5  ;;  %10901 = vmatpush.bf16.msrb.mxu2 %v14068_v13 }
 0x3e8   : > { %v14001_v32 = vld [vmem:[#allocation3 + $0x3c8] sm:$0xf0]  ;;  %7213 = vst [vmem:[#allocation3 + $0x3f0] sm:$0xf] %v7181_v52  ;;  %v6634_v37 = vadd.f32 %v17470_v19, %v17469_v44  ;;  %v7957_v35 = vrot.slane %v7842_v17, 5  ;;  %v17471_v40 = vld [vmem:[#allocation21_spill] sm:$0xff] }
 0x3e9   : > { %v16298_v59 = vpop.f32.mrf.mxu1  ;;  %7142 = vst [vmem:[#allocation2 + $0xac] sm:$0xf] %v7040_v2  ;;  %v13233_v54 = vor.u32 %v14001_v32, %v13232_v9  ;;  %v6899_v60 = vadd.f32 %v6898_v26, %v6810_v0  ;;  %v12990_v36 = vld [vmem:[#allocation3 + $0x1dc] sm:$0xf0]  ;;  %v13939_v30 = vld [vmem:[#allocation3 + $0x1d8] sm:$0xf0]  ;;  %v7955_v26 = vsel %vm14718_vm13, %v12702_v12, %v7954_v48 }
 0x3ea   : > { %7143 = vst [vmem:[#allocation2 + $0xb0] sm:$0x1] %v7041_v16  ;;  %v8112_v61 = vld [vmem:[#allocation2 + $0x48] sm:$0xc]  ;;  %v7956_v29 = vrot.slane %v7954_v48, 4  ;;  %v6723_v14 = vadd.f32 %v17471_v40, %v6634_v37 }
 0x3eb   : > { %v6939_v45 = vpack.c.bf16 %v6899_v60, %v6899_v60  ;;  %8347 = vst [vmem:[#allocation3 + $0x110] sm:$0xf] %v8223_v39  ;;  %v8113_v41 = vld [vmem:[#allocation2 + $0x4c] sm:$0xf]  ;;  %v12988_v58 = vld [vmem:[#allocation3 + $0x1b8] sm:$0xf] }
 0x3ec   : > { %v10573_v63 = vpop.f32.mrf.mxu2  ;;  %v13997_v50 = vld [vmem:[#allocation3 + $0x3ac] sm:$0xf]  ;;  %v13935_v57 = vld [vmem:[#allocation3 + $0x1bc] sm:$0xf]  ;;  %8076 = vst [vmem:[#allocation3 + $0x130] sm:$0xf] %v7955_v26  ;;  %v12989_v2 = vor.u32 %v13939_v30, %v12988_v58 }
 0x3ed   : > { %10526 = vmatmul.bf16.gmra.mxu1 %v13233_v54  ;;  %v16307_v6 = vadd.f32 %v10573_v63, %v16285_v38  ;;  %v7042_v8 = vrot.slane %v6939_v45, 7  ;;  %v8226_v20 = vrot.slane %v8113_v41, 6  ;;  %v7259_v53 = vld [vmem:[#allocation2 + $0xa8] sm:$0xe]  ;;  %v7958_v38 = vsel %vm14718_vm13, %v7956_v29, %v7957_v35  ;;  %v8114_v9 = vld [vmem:[#allocation2 + $0x50] sm:$0x3] }
 0x3ee   : > { %v13234_v47 = vld [vmem:[#allocation3 + $0x3cc] sm:$0xf0]  ;;  %v6811_v5 = vpop.f32.mrf.mxu3  ;;  %v12718_v31 = vrot.slane %v8112_v61, 10  ;;  %v12993_v33 = vor.u32 %v13935_v57, %v12990_v36  ;;  %v12680_v54 = vrot.slane %v7259_v53, 9  ;;  %8077 = vst [vmem:[#allocation3 + $0x154] sm:$0xf] %v7958_v38 }
 0x3ef   : > { %v13237_v18 = vor.u32 %v13997_v50, %v13234_v47  ;;  %7144 = vst [vmem:[#allocation2 + $0xb4] sm:$0xe] %v7042_v8  ;;  %v6812_v43 = vadd.f32 %v6811_v5, %v6723_v14  ;;  %v6903_v34 = vpop.f32.mrf.mxu0  ;;  %v8228_v52 = vrot.slane %v8226_v20, 4  ;;  %v8229_v44 = vrot.slane %v8114_v9, 6  ;;  %v7843_v19 = vld [vmem:[#allocation2 + $0x54] sm:$0xe] }
 0x3f0   : > { %v7182_v55 = vld [vmem:[#allocation2 + $0xac] sm:$0xf]  ;;  %v8227_v32 = vsel %vm14736_vm14, %v12718_v31, %v8226_v20  ;;  %v7844_v48 = vld [vmem:[#allocation2 + $0x58] sm:$0xf]  ;;  %v17472_v35 = vld [vmem:[#allocation94_spill] sm:$0xff]  ;;  %v12703_v41 = vrot.slane %v7843_v19, 9 }
 0x3f1   : > { %v16314_v7 = vpop.f32.mrf.mxu1  ;;  %7214 = vst [vmem:[#allocation3 + $0x414] sm:$0xf] %v7182_v55  ;;  %v7260_v16 = vld [vmem:[#allocation2 + $0xac] sm:$0xf]  ;;  %v7261_v0 = vld [vmem:[#allocation2 + $0xb0] sm:$0x1]  ;;  %v6901_v3 = vadd.f32 %v6900_v11, %v6812_v43  ;;  %v8230_v30 = vsel %vm14736_vm14, %v8228_v52, %v8229_v44 }
 0x3f2   : > { %v7413_v39 = vrot.slane %v7260_v16, 5  ;;  %v7416_v17 = vrot.slane %v7261_v0, 5  ;;  %10758 = vmatmul.bf16.gmra.mxu0 %v12993_v33  ;;  %8348 = vst [vmem:[#allocation3 + $0x134] sm:$0xf] %v8227_v32  ;;  %v17473_v45 = vld [vmem:[#allocation22_spill] sm:$0xff]  ;;  %v7043_v11 = vrot.slane %v7042_v8, 4 }
 0x3f3   : > { %10615 = vmatmul.bf16.gmra.mxu2 %v13237_v18  ;;  %v6940_v37 = vpack.c.bf16 %v6901_v3, %v6901_v3  ;;  %10669 = vmatmul.bf16.gmra.mxu3 %v12989_v2  ;;  %v6726_v63 = vadd.f32 %v17473_v45, %v17472_v35  ;;  %v7845_v61 = vld [vmem:[#allocation2 + $0x5c] sm:$0x1]  ;;  %v13268_v26 = vld [vmem:[#allocation3 + $0x3f0] sm:$0xf]  ;;  %8349 = vst [vmem:[#allocation3 + $0x158] sm:$0xf] %v8230_v30 }
 0x3f4   : > { %v7414_v13 = vsel %vm14718_vm13, %v12680_v54, %v7413_v39  ;;  %v7415_v12 = vrot.slane %v7413_v39, 4  ;;  %v7961_v40 = vrot.slane %v7844_v48, 5  ;;  %v7964_v8 = vrot.slane %v7845_v61, 5  ;;  %v7516_v9 = vld [vmem:[#allocation2 + $0x6c] sm:$0xc]  ;;  %v17474_v43 = vld [vmem:[#allocation95_spill] sm:$0xff] }
 0x3f5   : > { %7485 = vst [vmem:[#allocation3 + $0x3f4] sm:$0xf] %v7414_v13  ;;  %v7044_v50 = vrot.slane %v6940_v37, 7  ;;  %v17475_v55 = vld [vmem:[#allocation96_spill] sm:$0xff]  ;;  %v14067_v2 = vld [vmem:[#allocation10 + $0x158] sm:$0xff]  ;;  %v12691_v19 = vrot.slane %v7516_v9, 10 }
 0x3f6   : > { %v10576_v60 = vpop.f32.mrf.mxu2  ;;  %v7417_v29 = vsel %vm14718_vm13, %v7415_v12, %v7416_v17  ;;  %v6814_v14 = vpop.f32.mrf.mxu3  ;;  %v7183_v47 = vld [vmem:[#allocation2 + $0xb4] sm:$0xf]  ;;  %v7962_v53 = vsel %vm14718_vm13, %v12703_v41, %v7961_v40  ;;  %v7963_v31 = vrot.slane %v7961_v40, 4  ;;  %v6639_v52 = vadd.f32 %v17475_v55, %v17474_v43  ;;  %v14079_v16 = vld [vmem:[#allocation10 + $0x1b8] sm:$0xff]  ;;  %v13026_v54 = vld [vmem:[#allocation3 + $0x224] sm:$0xf0]  ;;  %10902 = vmatpush.bf16.msrb.mxu2 %v14067_v2 }
 0x3f7   : > { %v16323_v36 = vadd.f32 %v10576_v60, %v16298_v59  ;;  %7486 = vst [vmem:[#allocation3 + $0x418] sm:$0xf] %v7417_v29  ;;  %v7045_v59 = vsel %vm14710_vm10, %v7043_v11, %v7044_v50  ;;  %v7046_v57 = vrot.slane %v7044_v50, 4  ;;  %v6815_v58 = vadd.f32 %v6814_v14, %v6726_v63  ;;  %v16331_v20 = vpop.f32.mrf.mxu0  ;;  %v14087_v0 = vld [vmem:[#allocation10 + $0x1f8] sm:$0xff]  ;;  %v13948_v39 = vld [vmem:[#allocation3 + $0x220] sm:$0xf0]  ;;  %10987 = vmatpush.bf16.msra.mxu3 %v14079_v16 }
 0x3f8   : > { %v14010_v18 = vld [vmem:[#allocation3 + $0x410] sm:$0xf0]  ;;  %7215 = vst [vmem:[#allocation3 + $0x438] sm:$0xf] %v7183_v47  ;;  %v7517_v44 = vld [vmem:[#allocation2 + $0x70] sm:$0xf]  ;;  %v7965_v37 = vsel %vm14718_vm13, %v7963_v31, %v7964_v8  ;;  %11076 = vmatpush.bf16.msra.mxu0 %v14087_v0 }
 0x3f9   : > { %7145 = vst [vmem:[#allocation2 + $0xb8] sm:$0xf] %v7045_v59  ;;  %v13269_v38 = vor.u32 %v14010_v18, %v13268_v26  ;;  %v6904_v33 = vadd.f32 %v6903_v34, %v6815_v58  ;;  %v14066_v17 = vld [vmem:[#allocation10 + $0x150] sm:$0xff]  ;;  %v14095_v34 = vld [vmem:[#allocation10 + $0x238] sm:$0xff]  ;;  %v7518_v13 = vld [vmem:[#allocation2 + $0x74] sm:$0x3] }
 0x3fa   : > { %v16333_v5 = vpop.f32.mrf.mxu1  ;;  %7146 = vst [vmem:[#allocation2 + $0xbc] sm:$0x1] %v7046_v57  ;;  %v7653_v12 = vrot.slane %v7517_v44, 6  ;;  %v16344_v48 = vld [vmem:[#allocation2 + $0x54] sm:$0xc]  ;;  %v17476_v35 = vld [vmem:[#allocation23_spill] sm:$0xff]  ;;  %11165 = vmatpush.bf16.msra.mxu1 %v14095_v34  ;;  %10903 = vmatpush.bf16.msrb.mxu2 %v14066_v17 }
 0x3fb   : > { %8078 = vst [vmem:[#allocation3 + $0x178] sm:$0xf] %v7962_v53  ;;  %v6941_v32 = vpack.c.bf16 %v6904_v33, %v6904_v33  ;;  %v6728_v45 = vadd.f32 %v17476_v35, %v6639_v52  ;;  %v13944_v61 = vld [vmem:[#allocation3 + $0x204] sm:$0xf]  ;;  %v13024_v50 = vld [vmem:[#allocation3 + $0x200] sm:$0xf] }
 0x3fc   : > { %v14006_v11 = vld [vmem:[#allocation3 + $0x3f4] sm:$0xf]  ;;  %v7656_v26 = vrot.slane %v7518_v13, 6  ;;  %v7262_v40 = vld [vmem:[#allocation2 + $0xb4] sm:$0xe]  ;;  %v7655_v14 = vrot.slane %v7653_v12, 4  ;;  %v13029_v53 = vor.u32 %v13944_v61, %v13026_v54 }
 0x3fd   : > { %10531 = vmatmul.bf16.gmra.mxu1 %v13269_v38  ;;  %v16347_v63 = vrot.slane %v6941_v32, 7  ;;  %8079 = vst [vmem:[#allocation3 + $0x19c] sm:$0xf] %v7965_v37  ;;  %v14065_v58 = vld [vmem:[#allocation10 + $0x148] sm:$0xff]  ;;  %v12719_v18 = vrot.slane %v16344_v48, 10  ;;  %v13025_v38 = vor.u32 %v13948_v39, %v13024_v50  ;;  %v12681_v52 = vrot.slane %v7262_v40, 9 }
 0x3fe   : > { %v10578_v3 = vpop.f32.mrf.mxu2  ;;  %v13270_v30 = vld [vmem:[#allocation3 + $0x414] sm:$0xf0]  ;;  %v6816_v29 = vpop.f32.mrf.mxu3  ;;  %v7657_v43 = vsel %vm14736_vm14, %v7655_v14, %v7656_v26  ;;  %v14064_v16 = vld [vmem:[#allocation10 + $0x140] sm:$0xff]  ;;  %v8116_v0 = vld [vmem:[#allocation2 + $0x58] sm:$0xf]  ;;  %10904 = vmatpush.bf16.msrb.mxu2 %v14065_v58 }
 0x3ff   : > { %v16342_v60 = vadd.f32 %v10578_v3, %v16314_v7  ;;  %v13273_v41 = vor.u32 %v14006_v11, %v13270_v30  ;;  %v7654_v7 = vsel %vm14736_vm14, %v12691_v19, %v7653_v12  ;;  %7147 = vst [vmem:[#allocation2 + $0xc0] sm:$0xe] %v16347_v63  ;;  %v6817_v47 = vadd.f32 %v6816_v29, %v6728_v45  ;;  %v16352_v8 = vpop.f32.mrf.mxu0  ;;  %v8117_v32 = vld [vmem:[#allocation2 + $0x5c] sm:$0x3]  ;;  %v7846_v19 = vld [vmem:[#allocation2 + $0x60] sm:$0xe] }
 0x400   : > { %v7184_v57 = vld [vmem:[#allocation2 + $0xb8] sm:$0xf]  ;;  %7750 = vst [vmem:[#allocation3 + $0x290] sm:$0xf] %v7654_v7  ;;  %v8233_v44 = vrot.slane %v8116_v0, 6  ;;  %v17477_v37 = vld [vmem:[#allocation97_spill] sm:$0xff] }
 0x401   : > { %7216 = vst [vmem:[#allocation3 + $0x45c] sm:$0xf] %v7184_v57  ;;  %v7263_v9 = vld [vmem:[#allocation2 + $0xb8] sm:$0xf]  ;;  %v7264_v31 = vld [vmem:[#allocation2 + $0xbc] sm:$0x1]  ;;  %v6906_v55 = vadd.f32 %v16331_v20, %v6817_v47  ;;  %v6731_v34 = vadd.f32 %v16027_v27, %v17477_v37 }
 0x402   : > { %v16354_v59 = vpop.f32.mrf.mxu1  ;;  %v7420_v33 = vrot.slane %v7263_v9, 5  ;;  %v7423_v2 = vrot.slane %v7264_v31, 5  ;;  %10763 = vmatmul.bf16.gmra.mxu0 %v13029_v53  ;;  %7751 = vst [vmem:[#allocation3 + $0x2b4] sm:$0xf] %v7657_v43  ;;  %v7847_v20 = vld [vmem:[#allocation2 + $0x64] sm:$0xf]  ;;  %v8234_v27 = vsel %vm14736_vm14, %v12719_v18, %v8233_v44  ;;  %10905 = vmatpush.bf16.msrb.mxu2 %v14064_v16 }
 0x403   : > { %10620 = vmatmul.bf16.gmra.mxu2 %v13273_v41  ;;  %v6942_v3 = vpack.c.bf16 %v6906_v55, %v6906_v55  ;;  %10674 = vmatmul.bf16.gmra.mxu3 %v13025_v38  ;;  %v7782_v12 = vld [vmem:[#allocation2 + $0x84] sm:$0xf]  ;;  %v7783_v48 = vld [vmem:[#allocation2 + $0x88] sm:$0xf]  ;;  %v7048_v35 = vrot.slane %v16347_v63, 4  ;;  %v8235_v61 = vrot.slane %v8233_v44, 4 }
 0x404   : > { %v7421_v39 = vsel %vm14718_vm13, %v12681_v52, %v7420_v33  ;;  %v7422_v17 = vrot.slane %v7420_v33, 4  ;;  %v13304_v11 = vld [vmem:[#allocation3 + $0x438] sm:$0xf]  ;;  %7814 = vst [vmem:[#allocation3 + $0x294] sm:$0xf] %v7782_v12  ;;  %v8236_v26 = vrot.slane %v8117_v32, 6 }
 0x405   : > { %7487 = vst [vmem:[#allocation3 + $0x43c] sm:$0xf] %v7421_v39  ;;  %v7049_v45 = vrot.slane %v6942_v3, 7  ;;  %v12704_v29 = vrot.slane %v7846_v19, 9  ;;  %v7968_v57 = vrot.slane %v7847_v20, 5  ;;  %v17478_v38 = vld [vmem:[#allocation98_spill] sm:$0xff] }
 0x406   : > { %v10581_v54 = vpop.f32.mrf.mxu2  ;;  %v7424_v30 = vsel %vm14718_vm13, %v7422_v17, %v7423_v2  ;;  %v6819_v50 = vpop.f32.mrf.mxu3  ;;  %7815 = vst [vmem:[#allocation3 + $0x2b8] sm:$0xf] %v7783_v48  ;;  %v8237_v18 = vsel %vm14736_vm14, %v8235_v61, %v8236_v26  ;;  %v6644_v9 = vadd.f32 %v16054_v4, %v17478_v38  ;;  %v8118_v52 = vld [vmem:[#allocation2 + $0x60] sm:$0xc]  ;;  %v8119_v0 = vld [vmem:[#allocation2 + $0x64] sm:$0xf] }
 0x407   : > { %v16365_v13 = vadd.f32 %v10581_v54, %v16333_v5  ;;  %7488 = vst [vmem:[#allocation3 + $0x460] sm:$0xf] %v7424_v30  ;;  %v7848_v5 = vld [vmem:[#allocation2 + $0x68] sm:$0x1]  ;;  %v7050_v41 = vsel %vm14710_vm10, %v7048_v35, %v7049_v45  ;;  %v7051_v40 = vrot.slane %v7049_v45, 4  ;;  %v6820_v63 = vadd.f32 %v6819_v50, %v6731_v34  ;;  %v6910_v7 = vpop.f32.mrf.mxu0  ;;  %v14078_v50 = vld [vmem:[#allocation10 + $0x1b0] sm:$0xff] }
 0x408   : > { %v14019_v47 = vld [vmem:[#allocation3 + $0x458] sm:$0xf0]  ;;  %7148 = vst [vmem:[#allocation2 + $0xc4] sm:$0xf] %v7050_v41  ;;  %v7971_v53 = vrot.slane %v7848_v5, 5  ;;  %v7969_v43 = vsel %vm14718_vm13, %v12704_v29, %v7968_v57  ;;  %v7970_v55 = vrot.slane %v7968_v57, 4  ;;  %v6733_v39 = vadd.f32 %v16061_v21, %v6644_v9  ;;  %10988 = vmatpush.bf16.msra.mxu3 %v14078_v50 }
 0x409   : > { %v13305_v58 = vor.u32 %v14019_v47, %v13304_v11  ;;  %7149 = vst [vmem:[#allocation2 + $0xc8] sm:$0x1] %v7051_v40  ;;  %v6909_v31 = vadd.f32 %v16352_v8, %v6820_v63  ;;  %v8120_v32 = vld [vmem:[#allocation2 + $0x68] sm:$0x3]  ;;  %v13062_v8 = vld [vmem:[#allocation3 + $0x26c] sm:$0xf0] }
 0x40a   : > { %v16374_v14 = vpop.f32.mrf.mxu1  ;;  %8350 = vst [vmem:[#allocation3 + $0x17c] sm:$0xf] %v8234_v27  ;;  %v7972_v16 = vsel %vm14718_vm13, %v7970_v55, %v7971_v53  ;;  %v13957_v54 = vld [vmem:[#allocation3 + $0x268] sm:$0xf0]  ;;  %v13060_v34 = vld [vmem:[#allocation3 + $0x248] sm:$0xf] }
 0x40b   : > { %v6943_v33 = vpack.c.bf16 %v6909_v31, %v6909_v31  ;;  %8351 = vst [vmem:[#allocation3 + $0x1a0] sm:$0xf] %v8237_v18  ;;  %v13953_v37 = vld [vmem:[#allocation3 + $0x24c] sm:$0xf]  ;;  %v12720_v12 = vrot.slane %v8118_v52, 10  ;;  %v8240_v48 = vrot.slane %v8119_v0, 6  ;;  %v13061_v40 = vor.u32 %v13957_v54, %v13060_v34 }
 0x40c   : > { %v14015_v3 = vld [vmem:[#allocation3 + $0x43c] sm:$0xf]  ;;  %8080 = vst [vmem:[#allocation3 + $0x1c0] sm:$0xf] %v7969_v43  ;;  %v8243_v35 = vrot.slane %v8120_v32, 6  ;;  %v13065_v21 = vor.u32 %v13953_v37, %v13062_v8  ;;  %v14086_v34 = vld [vmem:[#allocation10 + $0x1f0] sm:$0xff] }
 0x40d   : > { %10536 = vmatmul.bf16.gmra.mxu1 %v13305_v58  ;;  %v7052_v17 = vrot.slane %v6943_v33, 7  ;;  %8081 = vst [vmem:[#allocation3 + $0x1e4] sm:$0xf] %v7972_v16  ;;  %v7519_v30 = vld [vmem:[#allocation2 + $0x78] sm:$0xc]  ;;  %v8241_v27 = vsel %vm14736_vm14, %v12720_v12, %v8240_v48  ;;  %v8242_v26 = vrot.slane %v8240_v48, 4  ;;  %11077 = vmatpush.bf16.msra.mxu0 %v14086_v34 }
 0x40e   : > { %v10583_v2 = vpop.f32.mrf.mxu2  ;;  %v13306_v44 = vld [vmem:[#allocation3 + $0x45c] sm:$0xf0]  ;;  %v6821_v19 = vpop.f32.mrf.mxu3  ;;  %v7849_v61 = vld [vmem:[#allocation2 + $0x6c] sm:$0xe]  ;;  %v7851_v29 = vld [vmem:[#allocation2 + $0x74] sm:$0x1] }
 0x40f   : > { %v16386_v4 = vadd.f32 %v10583_v2, %v16354_v59  ;;  %v13309_v20 = vor.u32 %v14015_v3, %v13306_v44  ;;  %7150 = vst [vmem:[#allocation2 + $0xcc] sm:$0xe] %v7052_v17  ;;  %v6822_v45 = vadd.f32 %v6821_v19, %v6733_v39  ;;  %v16391_v11 = vpop.f32.mrf.mxu0  ;;  %v7850_v5 = vld [vmem:[#allocation2 + $0x70] sm:$0xf]  ;;  %v7053_v47 = vrot.slane %v7052_v17, 4 }
 0x410   : > { %8352 = vst [vmem:[#allocation3 + $0x1c4] sm:$0xf] %v8241_v27  ;;  %v7975_v63 = vrot.slane %v7850_v5, 5  ;;  %v12692_v57 = vrot.slane %v7519_v30, 10  ;;  %v8244_v58 = vsel %vm14736_vm14, %v8242_v26, %v8243_v35  ;;  %v12705_v18 = vrot.slane %v7849_v61, 9 }
 0x411   : > { %v6911_v41 = vadd.f32 %v6910_v7, %v6822_v45  ;;  %v13886_v9 = vld [vmem:[#allocation3 + $0x30] sm:$0xf0]  ;;  %8353 = vst [vmem:[#allocation3 + $0x1e8] sm:$0xf] %v8244_v58  ;;  %v7978_v43 = vrot.slane %v7851_v29, 5 }
 0x412   : > { %v16389_v59 = vpop.f32.mrf.mxu1  ;;  %10768 = vmatmul.bf16.gmra.mxu0 %v13065_v21  ;;  %v7977_v31 = vrot.slane %v7975_v63, 4  ;;  %v8121_v55 = vld [vmem:[#allocation2 + $0x6c] sm:$0xc]  ;;  %v7784_v52 = vld [vmem:[#allocation2 + $0x90] sm:$0xf]  ;;  %v7976_v16 = vsel %vm14718_vm13, %v12705_v18, %v7975_v63  ;;  %v14094_v18 = vld [vmem:[#allocation10 + $0x230] sm:$0xff] }
 0x413   : > { %10625 = vmatmul.bf16.gmra.mxu2 %v13309_v20  ;;  %v6944_v53 = vpack.c.bf16 %v6911_v41, %v6911_v41  ;;  %10679 = vmatmul.bf16.gmra.mxu3 %v13061_v40  ;;  %v7785_v33 = vld [vmem:[#allocation2 + $0x94] sm:$0xf]  ;;  %v7520_v2 = vld [vmem:[#allocation2 + $0x7c] sm:$0xf]  ;;  %7816 = vst [vmem:[#allocation3 + $0x2dc] sm:$0xf] %v7784_v52 }
 0x414   : > { %v7521_v32 = vld [vmem:[#allocation2 + $0x80] sm:$0x3]  ;;  %v7660_v3 = vrot.slane %v7520_v2, 6  ;;  %7817 = vst [vmem:[#allocation3 + $0x300] sm:$0xf] %v7785_v33  ;;  %v12721_v45 = vrot.slane %v8121_v55, 10  ;;  %11166 = vmatpush.bf16.msra.mxu1 %v14094_v18 }
 0x415   : > { %v7054_v0 = vrot.slane %v6944_v53, 7  ;;  %v12780_v54 = vld [vmem:[#allocation3 + $0x10] sm:$0xf]  ;;  %v7663_v39 = vrot.slane %v7521_v32, 6  ;;  %8082 = vst [vmem:[#allocation3 + $0x208] sm:$0xf] %v7976_v16 }
 0x416   : > { %v10586_v38 = vpop.f32.mrf.mxu2  ;;  %v10640_v8 = vpop.f32.mrf.mxu3  ;;  %v7661_v37 = vsel %vm14736_vm14, %v12692_v57, %v7660_v3  ;;  %v8122_v12 = vld [vmem:[#allocation2 + $0x70] sm:$0xf]  ;;  %v12781_v48 = vor.u32 %v13886_v9, %v12780_v54  ;;  %v7662_v35 = vrot.slane %v7660_v3, 4  ;;  %v12782_v30 = vld [vmem:[#allocation3 + $0x34] sm:$0xf0] }
 0x417   : > { %v16398_v7 = vadd.f32 %v10586_v38, %v16374_v14  ;;  %v7055_v17 = vsel %vm14710_vm10, %v7053_v47, %v7054_v0  ;;  %v7056_v44 = vrot.slane %v7054_v0, 4  ;;  %v16405_v14 = vadd.f32 %v10640_v8, %v16095_v49  ;;  %v16409_v20 = vpop.f32.mrf.mxu0  ;;  %v8123_v61 = vld [vmem:[#allocation2 + $0x74] sm:$0x3]  ;;  %7752 = vst [vmem:[#allocation3 + $0x2d8] sm:$0xf] %v7661_v37 }
 0x418   : > { %7151 = vst [vmem:[#allocation2 + $0xd0] sm:$0xf] %v7055_v17  ;;  %v8247_v42 = vrot.slane %v8122_v12, 6  ;;  %v7979_v49 = vsel %vm14718_vm13, %v7977_v31, %v7978_v43  ;;  %v7664_v21 = vsel %vm14736_vm14, %v7662_v35, %v7663_v39  ;;  %v8250_v26 = vrot.slane %v8123_v61, 6  ;;  %v8437_v5 = vld [vmem:[#allocation2 + $0x30] sm:$0xe] }
 0x419   : > { %7152 = vst [vmem:[#allocation2 + $0xd4] sm:$0x1] %v7056_v44  ;;  %v13882_v41 = vld [vmem:[#allocation3 + $0x14] sm:$0xf]  ;;  %v8438_v40 = vld [vmem:[#allocation2 + $0x34] sm:$0xf] }
 0x41a   : > { %v16407_v19 = vpop.f32.mrf.mxu1  ;;  %v8248_v50 = vsel %vm14736_vm14, %v12721_v45, %v8247_v42  ;;  %v8249_v27 = vrot.slane %v8247_v42, 4  ;;  %7753 = vst [vmem:[#allocation3 + $0x2fc] sm:$0xf] %v7664_v21  ;;  %v8439_v63 = vld [vmem:[#allocation2 + $0x38] sm:$0x1]  ;;  %v12730_v38 = vrot.slane %v8437_v5, 9  ;;  %v12785_v55 = vor.u32 %v13882_v41, %v12782_v30 }
 0x41b   : > { %v13098_v57 = vld [vmem:[#allocation3 + $0x2b4] sm:$0xf0]  ;;  %v13966_v58 = vld [vmem:[#allocation3 + $0x2b0] sm:$0xf0]  ;;  %8083 = vst [vmem:[#allocation3 + $0x22c] sm:$0xf] %v7979_v49 }
 0x41c   : > { %v8251_v53 = vsel %vm14736_vm14, %v8249_v27, %v8250_v26  ;;  %8354 = vst [vmem:[#allocation3 + $0x20c] sm:$0xf] %v8248_v50  ;;  %v8535_v9 = vrot.slane %v8438_v40, 5  ;;  %v8538_v31 = vrot.slane %v8439_v63, 5  ;;  %v13962_v52 = vld [vmem:[#allocation3 + $0x294] sm:$0xf] }
 0x41d   : > { %10817 = vmatmul.bf16.vlgmr.msrb.gmra.mxu1 %v12781_v48  ;;  %v13096_v33 = vld [vmem:[#allocation3 + $0x290] sm:$0xf]  ;;  %v7522_v2 = vld [vmem:[#allocation2 + $0x84] sm:$0xc]  ;;  %8355 = vst [vmem:[#allocation3 + $0x230] sm:$0xf] %v8251_v53  ;;  %v13101_v54 = vor.u32 %v13962_v52, %v13098_v57 }
 0x41e   : > { %v10588_v29 = vpop.f32.mrf.mxu2  ;;  %v16424_v43 = vpop.f32.mrf.mxu3  ;;  %v8536_v0 = vsel %vm14718_vm13, %v12730_v38, %v8535_v9  ;;  %v8537_v32 = vrot.slane %v8535_v9, 4  ;;  %v8373_v3 = vld [vmem:[#allocation2 + $0x30] sm:$0xf]  ;;  %v8374_v8 = vld [vmem:[#allocation2 + $0x34] sm:$0xf]  ;;  %v13097_v44 = vor.u32 %v13966_v58, %v13096_v33  ;;  %v12693_v45 = vrot.slane %v7522_v2, 10 }
 0x41f   : > { %v16420_v47 = vadd.f32 %v10588_v29, %v16389_v59  ;;  %v16426_v16 = vpop.f32.mrf.mxu0  ;;  %8677 = vst [vmem:[#allocation3 + $0x1c] sm:$0xf] %v8536_v0  ;;  %v8440_v39 = vld [vmem:[#allocation2 + $0x3c] sm:$0xe]  ;;  %v8441_v17 = vld [vmem:[#allocation2 + $0x40] sm:$0xf] }
 0x420   : > { %v8539_v37 = vsel %vm14718_vm13, %v8537_v32, %v8538_v31  ;;  %8405 = vst [vmem:[#allocation3 + $0x18] sm:$0xf] %v8373_v3  ;;  %v8442_v34 = vld [vmem:[#allocation2 + $0x44] sm:$0x1]  ;;  %v8542_v12 = vrot.slane %v8441_v17, 5  ;;  %v12731_v42 = vrot.slane %v8440_v39, 9 }
 0x421   : > { %8678 = vst [vmem:[#allocation3 + $0x40] sm:$0xf] %v8539_v37  ;;  %v13895_v35 = vld [vmem:[#allocation3 + $0x78] sm:$0xf0]  ;;  %v8545_v30 = vrot.slane %v8442_v34, 5 }
 0x422   : > { %v10504_v59 = vpop.f32.mrf.mxu1  ;;  %10773 = vmatmul.bf16.gmra.mxu0 %v13101_v54  ;;  %8406 = vst [vmem:[#allocation3 + $0x3c] sm:$0xf] %v8374_v8  ;;  %v7786_v61 = vld [vmem:[#allocation2 + $0x9c] sm:$0xf]  ;;  %v7787_v21 = vld [vmem:[#allocation2 + $0xa0] sm:$0xf]  ;;  %v8543_v40 = vsel %vm14718_vm13, %v12731_v42, %v8542_v12 }
 0x423   : > { %10906 = vmatmul.bf16.vlgmr.msrb.gmra.mxu2 %v12785_v55  ;;  %10684 = vmatmul.bf16.gmra.mxu3 %v13097_v44  ;;  %v7523_v50 = vld [vmem:[#allocation2 + $0x88] sm:$0xf]  ;;  %7818 = vst [vmem:[#allocation3 + $0x324] sm:$0xf] %v7786_v61  ;;  %v7524_v27 = vld [vmem:[#allocation2 + $0x8c] sm:$0x3] }
 0x424   : > { %v7667_v26 = vrot.slane %v7523_v50, 6  ;;  %v8544_v5 = vrot.slane %v8542_v12, 4  ;;  %7819 = vst [vmem:[#allocation3 + $0x348] sm:$0xf] %v7787_v21  ;;  %v7670_v41 = vrot.slane %v7524_v27, 6  ;;  %v14077_v27 = vld [vmem:[#allocation10 + $0x1a8] sm:$0xff] }
 0x425   : > { %v12818_v31 = vld [vmem:[#allocation3 + $0x7c] sm:$0xf0]  ;;  %8679 = vst [vmem:[#allocation3 + $0x64] sm:$0xf] %v8543_v40  ;;  %v8376_v52 = vld [vmem:[#allocation2 + $0x40] sm:$0xf]  ;;  %10989 = vmatpush.bf16.msra.mxu3 %v14077_v27 }
 0x426   : > { %v10591_v48 = vpop.f32.mrf.mxu2  ;;  %v10645_v29 = vpop.f32.mrf.mxu3  ;;  %v7668_v18 = vsel %vm14736_vm14, %v12693_v45, %v7667_v26  ;;  %v7669_v53 = vrot.slane %v7667_v26, 4  ;;  %v8546_v9 = vsel %vm14718_vm13, %v8544_v5, %v8545_v30  ;;  %v8443_v33 = vld [vmem:[#allocation2 + $0x48] sm:$0xe]  ;;  %v8444_v0 = vld [vmem:[#allocation2 + $0x4c] sm:$0xf] }
 0x427   : > { %v16433_v49 = vadd.f32 %v10591_v48, %v16407_v19  ;;  %v16438_v63 = vadd.f32 %v10645_v29, %v16125_v25  ;;  %v16440_v58 = vpop.f32.mrf.mxu0  ;;  %v12816_v19 = vld [vmem:[#allocation3 + $0x58] sm:$0xf]  ;;  %7754 = vst [vmem:[#allocation3 + $0x320] sm:$0xf] %v7668_v18  ;;  %v8375_v25 = vld [vmem:[#allocation2 + $0x3c] sm:$0xf] }
 0x428   : > { %v12817_v38 = vor.u32 %v13895_v35, %v12816_v19  ;;  %v7671_v55 = vsel %vm14736_vm14, %v7669_v53, %v7670_v41  ;;  %8680 = vst [vmem:[#allocation3 + $0x88] sm:$0xf] %v8546_v9  ;;  %v8445_v32 = vld [vmem:[#allocation2 + $0x50] sm:$0x1]  ;;  %v13891_v8 = vld [vmem:[#allocation3 + $0x5c] sm:$0xf] }
 0x429   : > { %7755 = vst [vmem:[#allocation3 + $0x344] sm:$0xf] %v7671_v55  ;;  %v12732_v54 = vrot.slane %v8443_v33, 9  ;;  %v8549_v39 = vrot.slane %v8444_v0, 5  ;;  %v13134_v17 = vld [vmem:[#allocation3 + $0x2fc] sm:$0xf0]  ;;  %v12821_v34 = vor.u32 %v13891_v8, %v12818_v31 }
 0x42a   : > { %v10507_v57 = vpop.f32.mrf.mxu1  ;;  %8407 = vst [vmem:[#allocation3 + $0x60] sm:$0xf] %v8375_v25  ;;  %v8552_v44 = vrot.slane %v8445_v32, 5  ;;  %v13975_v12 = vld [vmem:[#allocation3 + $0x2f8] sm:$0xf0] }
 0x42b   : > { %8408 = vst [vmem:[#allocation3 + $0x84] sm:$0xf] %v8376_v52  ;;  %v8550_v48 = vsel %vm14718_vm13, %v12732_v54, %v8549_v39  ;;  %v8551_v35 = vrot.slane %v8549_v39, 4  ;;  %v8377_v45 = vld [vmem:[#allocation2 + $0x48] sm:$0xf] }
 0x42c   : > { %8681 = vst [vmem:[#allocation3 + $0xac] sm:$0xf] %v8550_v48  ;;  %v8378_v61 = vld [vmem:[#allocation2 + $0x4c] sm:$0xf]  ;;  %v13132_v50 = vld [vmem:[#allocation3 + $0x2d8] sm:$0xf] }
 0x42d   : > { %10822 = vmatmul.bf16.gmra.mxu1 %v12817_v38  ;;  %v8553_v26 = vsel %vm14718_vm13, %v8551_v35, %v8552_v44  ;;  %8409 = vst [vmem:[#allocation3 + $0xa8] sm:$0xf] %v8377_v45  ;;  %v13133_v5 = vor.u32 %v13975_v12, %v13132_v50  ;;  %v7525_v29 = vld [vmem:[#allocation2 + $0x90] sm:$0xc]  ;;  %v13904_v40 = vld [vmem:[#allocation3 + $0xc0] sm:$0xf0] }
 0x42e   : > { %v10593_v2 = vpop.f32.mrf.mxu2  ;;  %v16450_v37 = vpop.f32.mrf.mxu3  ;;  %8682 = vst [vmem:[#allocation3 + $0xd0] sm:$0xf] %v8553_v26  ;;  %v7788_v18 = vld [vmem:[#allocation2 + $0xa8] sm:$0xf]  ;;  %v7789_v53 = vld [vmem:[#allocation2 + $0xac] sm:$0xf] }
 0x42f   : > { %v16448_v3 = vadd.f32 %v10593_v2, %v10504_v59  ;;  %v16454_v30 = vpop.f32.mrf.mxu0  ;;  %v13971_v59 = vld [vmem:[#allocation3 + $0x2dc] sm:$0xf]  ;;  %8410 = vst [vmem:[#allocation3 + $0xcc] sm:$0xf] %v8378_v61  ;;  %v7526_v38 = vld [vmem:[#allocation2 + $0x94] sm:$0xf] }
 0x430   : > { %v13137_v21 = vor.u32 %v13971_v59, %v13134_v17  ;;  %v8709_v9 = vld [vmem:[#allocation2 + $0x30] sm:$0xc]  ;;  %7820 = vst [vmem:[#allocation3 + $0x36c] sm:$0xf] %v7788_v18  ;;  %v7527_v31 = vld [vmem:[#allocation2 + $0x98] sm:$0x3] }
 0x431   : > { %v12694_v55 = vrot.slane %v7525_v29, 10  ;;  %v7674_v25 = vrot.slane %v7526_v38, 6  ;;  %7821 = vst [vmem:[#allocation3 + $0x390] sm:$0xf] %v7789_v53  ;;  %v7677_v33 = vrot.slane %v7527_v31, 6  ;;  %v14085_v17 = vld [vmem:[#allocation10 + $0x1e8] sm:$0xff] }
 0x432   : > { %v10509_v42 = vpop.f32.mrf.mxu1  ;;  %10778 = vmatmul.bf16.gmra.mxu0 %v13137_v21  ;;  %v8446_v2 = vld [vmem:[#allocation2 + $0x54] sm:$0xe]  ;;  %v12854_v48 = vld [vmem:[#allocation3 + $0xc4] sm:$0xf0]  ;;  %v12746_v61 = vrot.slane %v8709_v9, 10 }
 0x433   : > { %10911 = vmatmul.bf16.gmra.mxu2 %v12821_v34  ;;  %10689 = vmatmul.bf16.gmra.mxu3 %v13133_v5  ;;  %v7675_v54 = vsel %vm14736_vm14, %v12694_v55, %v7674_v25  ;;  %v7676_v39 = vrot.slane %v7674_v25, 4  ;;  %v8379_v34 = vld [vmem:[#allocation2 + $0x54] sm:$0xf]  ;;  %v12733_v45 = vrot.slane %v8446_v2, 9  ;;  %v8380_v59 = vld [vmem:[#allocation2 + $0x58] sm:$0xf] }
 0x434   : > { %7756 = vst [vmem:[#allocation3 + $0x368] sm:$0xf] %v7675_v54  ;;  %v8710_v12 = vld [vmem:[#allocation2 + $0x34] sm:$0xf]  ;;  %11078 = vmatpush.bf16.msra.mxu0 %v14085_v17  ;;  %v8448_v21 = vld [vmem:[#allocation2 + $0x5c] sm:$0x1] }
 0x435   : > { %v7678_v35 = vsel %vm14736_vm14, %v7676_v39, %v7677_v33  ;;  %v8807_v27 = vrot.slane %v8710_v12, 6  ;;  %v8559_v5 = vrot.slane %v8448_v21, 5  ;;  %8411 = vst [vmem:[#allocation3 + $0xf0] sm:$0xf] %v8379_v34  ;;  %v8711_v29 = vld [vmem:[#allocation2 + $0x38] sm:$0x3] }
 0x436   : > { %v10596_v41 = vpop.f32.mrf.mxu2  ;;  %v10650_v52 = vpop.f32.mrf.mxu3  ;;  %7757 = vst [vmem:[#allocation3 + $0x38c] sm:$0xf] %v7678_v35  ;;  %v14093_v18 = vld [vmem:[#allocation10 + $0x228] sm:$0xff]  ;;  %v8810_v25 = vrot.slane %v8711_v29, 6  ;;  %v13984_v2 = vld [vmem:[#allocation3 + $0x340] sm:$0xf0] }
 0x437   : > { %v16458_v19 = vadd.f32 %v10596_v41, %v10507_v57  ;;  %v16461_v0 = vadd.f32 %v10650_v52, %v16227_v24  ;;  %v16465_v8 = vpop.f32.mrf.mxu0  ;;  %v12852_v57 = vld [vmem:[#allocation3 + $0xa0] sm:$0xf]  ;;  %v8447_v24 = vld [vmem:[#allocation2 + $0x58] sm:$0xf]  ;;  %8412 = vst [vmem:[#allocation3 + $0x114] sm:$0xf] %v8380_v59  ;;  %v8808_v9 = vsel %vm14736_vm14, %v12746_v61, %v8807_v27  ;;  %11167 = vmatpush.bf16.msra.mxu1 %v14093_v18 }
 0x438   : > { %v12853_v44 = vor.u32 %v13904_v40, %v12852_v57  ;;  %v8556_v50 = vrot.slane %v8447_v24, 5  ;;  %v13900_v40 = vld [vmem:[#allocation3 + $0xa4] sm:$0xf]  ;;  %v13170_v31 = vld [vmem:[#allocation3 + $0x344] sm:$0xf0]  ;;  %v8809_v55 = vrot.slane %v8807_v27, 4 }
 0x439   : > { %v12857_v33 = vor.u32 %v13900_v40, %v12854_v48  ;;  %8949 = vst [vmem:[#allocation3 + $0x20] sm:$0xf] %v8808_v9  ;;  %v13980_v17 = vld [vmem:[#allocation3 + $0x324] sm:$0xf]  ;;  %v8381_v48 = vld [vmem:[#allocation2 + $0x60] sm:$0xf] }
 0x43a   : > { %v16463_v32 = vpop.f32.mrf.mxu1  ;;  %v8557_v53 = vsel %vm14718_vm13, %v12733_v45, %v8556_v50  ;;  %v8558_v38 = vrot.slane %v8556_v50, 4  ;;  %v8811_v34 = vsel %vm14736_vm14, %v8809_v55, %v8810_v25  ;;  %v13173_v12 = vor.u32 %v13980_v17, %v13170_v31  ;;  %v8713_v35 = vld [vmem:[#allocation2 + $0x40] sm:$0xf]  ;;  %v7528_v45 = vld [vmem:[#allocation2 + $0x9c] sm:$0xc] }
 0x43b   : > { %8683 = vst [vmem:[#allocation3 + $0xf4] sm:$0xf] %v8557_v53  ;;  %v13913_v59 = vld [vmem:[#allocation3 + $0x108] sm:$0xf0]  ;;  %v8714_v21 = vld [vmem:[#allocation2 + $0x44] sm:$0x3] }
 0x43c   : > { %8950 = vst [vmem:[#allocation3 + $0x44] sm:$0xf] %v8811_v34  ;;  %v8712_v61 = vld [vmem:[#allocation2 + $0x3c] sm:$0xc]  ;;  %v8814_v50 = vrot.slane %v8713_v35, 6  ;;  %v12695_v18 = vrot.slane %v7528_v45, 10 }
 0x43d   : > { %10827 = vmatmul.bf16.gmra.mxu1 %v12853_v44  ;;  %v13168_v44 = vld [vmem:[#allocation3 + $0x320] sm:$0xf]  ;;  %8413 = vst [vmem:[#allocation3 + $0x138] sm:$0xf] %v8381_v48  ;;  %v7529_v29 = vld [vmem:[#allocation2 + $0xa0] sm:$0xf] }
 0x43e   : > { %v10598_v26 = vpop.f32.mrf.mxu2  ;;  %v10652_v52 = vpop.f32.mrf.mxu3  ;;  %v13169_v24 = vor.u32 %v13984_v2, %v13168_v44  ;;  %v7530_v40 = vld [vmem:[#allocation2 + $0xa4] sm:$0x3]  ;;  %v7681_v53 = vrot.slane %v7529_v29, 6  ;;  %v12747_v31 = vrot.slane %v8712_v61, 10  ;;  %v8817_v55 = vrot.slane %v8714_v21, 6 }
 0x43f   : > { %v16471_v41 = vadd.f32 %v10598_v26, %v10509_v42  ;;  %v8560_v42 = vsel %vm14718_vm13, %v8558_v38, %v8559_v5  ;;  %v16480_v57 = vadd.f32 %v10652_v52, %v16249_v56  ;;  %v16482_v39 = vpop.f32.mrf.mxu0  ;;  %v7790_v26 = vld [vmem:[#allocation2 + $0xb4] sm:$0xf]  ;;  %v7791_v5 = vld [vmem:[#allocation2 + $0xb8] sm:$0xf]  ;;  %v7684_v9 = vrot.slane %v7530_v40, 6 }
 0x440   : > { %8684 = vst [vmem:[#allocation3 + $0x118] sm:$0xf] %v8560_v42  ;;  %v7682_v2 = vsel %vm14736_vm14, %v12695_v18, %v7681_v53  ;;  %v7683_v42 = vrot.slane %v7681_v53, 4  ;;  %v8449_v17 = vld [vmem:[#allocation2 + $0x60] sm:$0xe]  ;;  %v8816_v44 = vrot.slane %v8814_v50, 4 }
 0x441   : > { %7822 = vst [vmem:[#allocation3 + $0x3b4] sm:$0xf] %v7790_v26  ;;  %v8450_v35 = vld [vmem:[#allocation2 + $0x64] sm:$0xf]  ;;  %v8716_v45 = vld [vmem:[#allocation2 + $0x4c] sm:$0xf] }
 0x442   : > { %v10514_v54 = vpop.f32.mrf.mxu1  ;;  %10783 = vmatmul.bf16.gmra.mxu0 %v13173_v12  ;;  %7823 = vst [vmem:[#allocation3 + $0x3d8] sm:$0xf] %v7791_v5  ;;  %v12890_v12 = vld [vmem:[#allocation3 + $0x10c] sm:$0xf0]  ;;  %v7685_v48 = vsel %vm14736_vm14, %v7683_v42, %v7684_v9  ;;  %v12734_v61 = vrot.slane %v8449_v17, 9  ;;  %v8563_v21 = vrot.slane %v8450_v35, 5 }
 0x443   : > { %10916 = vmatmul.bf16.gmra.mxu2 %v12857_v33  ;;  %10694 = vmatmul.bf16.gmra.mxu3 %v13169_v24  ;;  %7758 = vst [vmem:[#allocation3 + $0x3b0] sm:$0xf] %v7682_v2  ;;  %v8815_v24 = vsel %vm14736_vm14, %v12747_v31, %v8814_v50  ;;  %v8715_v29 = vld [vmem:[#allocation2 + $0x48] sm:$0xc]  ;;  %v8821_v50 = vrot.slane %v8716_v45, 6 }
 0x444   : > { %7759 = vst [vmem:[#allocation3 + $0x3d4] sm:$0xf] %v7685_v48  ;;  %v8564_v18 = vsel %vm14718_vm13, %v12734_v61, %v8563_v21  ;;  %v8565_v53 = vrot.slane %v8563_v21, 4  ;;  %v13206_v9 = vld [vmem:[#allocation3 + $0x38c] sm:$0xf0] }
 0x445   : > { %8951 = vst [vmem:[#allocation3 + $0x68] sm:$0xf] %v8815_v24  ;;  %v13993_v2 = vld [vmem:[#allocation3 + $0x388] sm:$0xf0]  ;;  %v13204_v48 = vld [vmem:[#allocation3 + $0x368] sm:$0xf] }
 0x446   : > { %v10601_v56 = vpop.f32.mrf.mxu2  ;;  %v10655_v38 = vpop.f32.mrf.mxu3  ;;  %8685 = vst [vmem:[#allocation3 + $0x13c] sm:$0xf] %v8564_v18  ;;  %v8717_v24 = vld [vmem:[#allocation2 + $0x50] sm:$0x3]  ;;  %v13922_v21 = vld [vmem:[#allocation3 + $0x150] sm:$0xf0] }
 0x447   : > { %v16487_v27 = vadd.f32 %v10601_v56, %v16463_v32  ;;  %v16490_v25 = vadd.f32 %v10655_v38, %v16263_v10  ;;  %v16494_v33 = vpop.f32.mrf.mxu0  ;;  %v12888_v32 = vld [vmem:[#allocation3 + $0xe8] sm:$0xf]  ;;  %v8382_v10 = vld [vmem:[#allocation2 + $0x64] sm:$0xf]  ;;  %v8451_v56 = vld [vmem:[#allocation2 + $0x68] sm:$0x1] }
 0x448   : > { %17479 = vst [vmem:[#allocation24_spill] sm:$0xff] %v16494_v33  ;;  %v12889_v34 = vor.u32 %v13913_v59, %v12888_v32  ;;  %v8566_v5 = vrot.slane %v8451_v56, 5  ;;  %v8818_v59 = vsel %vm14736_vm14, %v8816_v44, %v8817_v55  ;;  %v13909_v38 = vld [vmem:[#allocation3 + $0xec] sm:$0xf]  ;;  %v12748_v55 = vrot.slane %v8715_v29, 10 }
 0x449   : > { %8414 = vst [vmem:[#allocation3 + $0x15c] sm:$0xf] %v8382_v10  ;;  %v12893_v32 = vor.u32 %v13909_v38, %v12890_v12  ;;  %v14076_v10 = vld [vmem:[#allocation10 + $0x1a0] sm:$0xff]  ;;  %v8383_v12 = vld [vmem:[#allocation2 + $0x6c] sm:$0xf]  ;;  %v13205_v56 = vor.u32 %v13993_v2, %v13204_v48 }
 0x44a   : > { %v16492_v52 = vpop.f32.mrf.mxu1  ;;  %v8567_v42 = vsel %vm14718_vm13, %v8565_v53, %v8566_v5  ;;  %8952 = vst [vmem:[#allocation3 + $0x8c] sm:$0xf] %v8818_v59  ;;  %v8822_v45 = vsel %vm14736_vm14, %v12748_v55, %v8821_v50  ;;  %10990 = vmatpush.bf16.msra.mxu3 %v14076_v10  ;;  %v8824_v5 = vrot.slane %v8717_v24, 6  ;;  %v16519_v59 = vld [vmem:[#allocation2 + $0x58] sm:$0xf] }
 0x44b   : > { %8686 = vst [vmem:[#allocation3 + $0x160] sm:$0xf] %v8567_v42  ;;  %v7792_v18 = vld [vmem:[#allocation2 + $0xc0] sm:$0xf]  ;;  %v7793_v53 = vld [vmem:[#allocation2 + $0xc4] sm:$0xf] }
 0x44c   : > { %8415 = vst [vmem:[#allocation3 + $0x180] sm:$0xf] %v8383_v12  ;;  %v7532_v38 = vld [vmem:[#allocation2 + $0xac] sm:$0xf]  ;;  %v14084_v12 = vld [vmem:[#allocation10 + $0x1e0] sm:$0xff] }
 0x44d   : > { %10832 = vmatmul.bf16.gmra.mxu1 %v12889_v34  ;;  %v13989_v34 = vld [vmem:[#allocation3 + $0x36c] sm:$0xf]  ;;  %8953 = vst [vmem:[#allocation3 + $0xb0] sm:$0xf] %v8822_v45  ;;  %v7688_v2 = vrot.slane %v7532_v38, 6  ;;  %11079 = vmatpush.bf16.msra.mxu0 %v14084_v12 }
 0x44e   : > { %v10603_v26 = vpop.f32.mrf.mxu2  ;;  %v10657_v31 = vpop.f32.mrf.mxu3  ;;  %v13209_v35 = vor.u32 %v13989_v34, %v13206_v9  ;;  %v12924_v9 = vld [vmem:[#allocation3 + $0x130] sm:$0xf]  ;;  %7824 = vst [vmem:[#allocation3 + $0x3fc] sm:$0xf] %v7792_v18  ;;  %v8718_v34 = vld [vmem:[#allocation2 + $0x54] sm:$0xc] }
 0x44f   : > { %v16504_v40 = vadd.f32 %v10603_v26, %v10514_v54  ;;  %v16511_v54 = vadd.f32 %v10657_v31, %v16278_v1  ;;  %v16515_v44 = vpop.f32.mrf.mxu0  ;;  %v7531_v1 = vld [vmem:[#allocation2 + $0xa8] sm:$0xc]  ;;  %v8823_v26 = vrot.slane %v8821_v50, 4  ;;  %v7533_v31 = vld [vmem:[#allocation2 + $0xb0] sm:$0x3]  ;;  %v7690_v10 = vrot.slane %v7688_v2, 4 }
 0x450   : > { %17480 = vst [vmem:[#allocation55_spill] sm:$0xff] %v16515_v44  ;;  %v7691_v55 = vrot.slane %v7533_v31, 6  ;;  %v8452_v24 = vld [vmem:[#allocation2 + $0x6c] sm:$0xe]  ;;  %v8454_v38 = vld [vmem:[#allocation2 + $0x74] sm:$0x1] }
 0x451   : > { %7825 = vst [vmem:[#allocation3 + $0x420] sm:$0xf] %v7793_v53  ;;  %v8825_v18 = vsel %vm14736_vm14, %v8823_v26, %v8824_v5  ;;  %v12749_v53 = vrot.slane %v8718_v34, 10  ;;  %v12735_v31 = vrot.slane %v8452_v24, 9  ;;  %v8573_v45 = vrot.slane %v8454_v38, 5 }
 0x452   : > { %v16513_v17 = vpop.f32.mrf.mxu1  ;;  %10788 = vmatmul.bf16.gmra.mxu0 %v13209_v35  ;;  %8954 = vst [vmem:[#allocation3 + $0xd4] sm:$0xf] %v8825_v18  ;;  %v13918_v34 = vld [vmem:[#allocation3 + $0x134] sm:$0xf]  ;;  %v13240_v38 = vld [vmem:[#allocation3 + $0x3b0] sm:$0xf] }
 0x453   : > { %10921 = vmatmul.bf16.gmra.mxu2 %v12893_v32  ;;  %10699 = vmatmul.bf16.gmra.mxu3 %v13205_v56  ;;  %v12696_v32 = vrot.slane %v7531_v1, 10  ;;  %v12925_v56 = vor.u32 %v13922_v21, %v12924_v9  ;;  %v7692_v1 = vsel %vm14736_vm14, %v7690_v10, %v7691_v55  ;;  %v17483_v21 = vrot.slane %v16519_v59, 6  ;;  %v13242_v10 = vld [vmem:[#allocation3 + $0x3d4] sm:$0xf0] }
 0x454   : > { %7761 = vst [vmem:[#allocation3 + $0x41c] sm:$0xf] %v7692_v1 }
 0x455   : > { %v8829_v9 = vsel %vm14736_vm14, %v12749_v53, %v17483_v21 }
 0x456   : > { %v10606_v61 = vpop.f32.mrf.mxu2  ;;  %v10660_v42 = vpop.f32.mrf.mxu3  ;;  %8955 = vst [vmem:[#allocation3 + $0xf8] sm:$0xf] %v8829_v9 }
 0x457   : > { %v16522_v29 = vadd.f32 %v10606_v61, %v16492_v52  ;;  %v16525_v50 = vadd.f32 %v10660_v42, %v16292_v15  ;;  %v16527_v35 = vpop.f32.mrf.mxu0  ;;  %v7689_v52 = vsel %vm14736_vm14, %v12696_v32, %v7688_v2  ;;  %v8453_v61 = vld [vmem:[#allocation2 + $0x70] sm:$0xf]  ;;  %v12926_v42 = vld [vmem:[#allocation3 + $0x154] sm:$0xf0] }
 0x458   : > { %17482 = vst [vmem:[#allocation56_spill] sm:$0xff] %v16527_v35  ;;  %v8384_v15 = vld [vmem:[#allocation2 + $0x70] sm:$0xf]  ;;  %v8570_v32 = vrot.slane %v8453_v61, 5  ;;  %v12929_v24 = vor.u32 %v13918_v34, %v12926_v42  ;;  %v8385_v42 = vld [vmem:[#allocation2 + $0x78] sm:$0xf] }
 0x459   : > { %17481 = vst [vmem:[#allocation25_spill] sm:$0xff] %v16525_v50  ;;  %v7795_v34 = vld [vmem:[#allocation2 + $0xd0] sm:$0xf]  ;;  %v16573_v35 = vld [vmem:[#allocation2 + $0x64] sm:$0xf] }
 0x45a   : > { %v10522_v48 = vpop.f32.mrf.mxu1  ;;  %7760 = vst [vmem:[#allocation3 + $0x3f8] sm:$0xf] %v7689_v52  ;;  %v14092_v52 = vld [vmem:[#allocation10 + $0x220] sm:$0xff]  ;;  %v8571_v26 = vsel %vm14718_vm13, %v12735_v31, %v8570_v32  ;;  %v8572_v5 = vrot.slane %v8570_v32, 4 }
 0x45b   : > { %8416 = vst [vmem:[#allocation3 + $0x1a4] sm:$0xf] %v8384_v15  ;;  %11168 = vmatpush.bf16.msra.mxu1 %v14092_v52  ;;  %v13998_v15 = vld [vmem:[#allocation3 + $0x3b4] sm:$0xf]  ;;  %v7534_v32 = vld [vmem:[#allocation2 + $0xb4] sm:$0xc] }
 0x45c   : > { %8687 = vst [vmem:[#allocation3 + $0x184] sm:$0xf] %v8571_v26  ;;  %v8574_v1 = vsel %vm14718_vm13, %v8572_v5, %v8573_v45  ;;  %v13245_v18 = vor.u32 %v13998_v15, %v13242_v10  ;;  %v16556_v45 = vld [vmem:[#allocation2 + $0x5c] sm:$0x3]  ;;  %v12697_v9 = vrot.slane %v7534_v32, 10 }
 0x45d   : > { %10837 = vmatmul.bf16.gmra.mxu1 %v12925_v56  ;;  %v14002_v56 = vld [vmem:[#allocation3 + $0x3d0] sm:$0xf0]  ;;  %8688 = vst [vmem:[#allocation3 + $0x1a8] sm:$0xf] %v8574_v1  ;;  %v8124_v52 = vld [vmem:[#allocation2 + $0x78] sm:$0xc] }
 0x45e   : > { %v10608_v2 = vpop.f32.mrf.mxu2  ;;  %v10662_v12 = vpop.f32.mrf.mxu3  ;;  %v13241_v31 = vor.u32 %v14002_v56, %v13240_v38  ;;  %8417 = vst [vmem:[#allocation3 + $0x1c8] sm:$0xf] %v8385_v42  ;;  %v7794_v5 = vld [vmem:[#allocation2 + $0xcc] sm:$0xf]  ;;  %v7535_v10 = vld [vmem:[#allocation2 + $0xb8] sm:$0xf] }
 0x45f   : > { %v16541_v55 = vadd.f32 %v10608_v2, %v16513_v17  ;;  %v16548_v17 = vadd.f32 %v10662_v12, %v16307_v6  ;;  %v16552_v53 = vpop.f32.mrf.mxu0  ;;  %v16554_v2 = vld [vmem:[#allocation2 + $0x78] sm:$0xe]  ;;  %v13931_v6 = vld [vmem:[#allocation3 + $0x198] sm:$0xf0]  ;;  %7826 = vst [vmem:[#allocation3 + $0x444] sm:$0xf] %v7794_v5 }
 0x460   : > { %17486 = vst [vmem:[#allocation27_spill] sm:$0xff] %v16552_v53  ;;  %v7536_v12 = vld [vmem:[#allocation2 + $0xbc] sm:$0x3]  ;;  %v14083_v56 = vld [vmem:[#allocation10 + $0x1d8] sm:$0xff]  ;;  %v17488_v38 = vrot.slane %v16519_v59, 6  ;;  %v14074_v59 = vld [vmem:[#allocation10 + $0x190] sm:$0xff] }
 0x461   : > { %17484 = vst [vmem:[#allocation57_spill] sm:$0xff] %v16541_v55  ;;  %v7698_v15 = vrot.slane %v7536_v12, 6  ;;  %11080 = vmatpush.bf16.msra.mxu0 %v14083_v56  ;;  %v12706_v12 = vrot.slane %v16554_v2, 9  ;;  %v8455_v32 = vld [vmem:[#allocation2 + $0x78] sm:$0xe] }
 0x462   : > { %17485 = vst [vmem:[#allocation26_spill] sm:$0xff] %v16548_v17  ;;  %v16550_v61 = vpop.f32.mrf.mxu1  ;;  %10793 = vmatmul.bf16.gmra.mxu0 %v13245_v18  ;;  %v14075_v18 = vld [vmem:[#allocation10 + $0x198] sm:$0xff]  ;;  %v8125_v17 = vld [vmem:[#allocation2 + $0x7c] sm:$0xf]  ;;  %v7854_v2 = vld [vmem:[#allocation2 + $0x80] sm:$0x1] }
 0x463   : > { %10926 = vmatmul.bf16.gmra.mxu2 %v12929_v24  ;;  %10704 = vmatmul.bf16.gmra.mxu3 %v13241_v31  ;;  %v7695_v24 = vrot.slane %v7535_v10, 6  ;;  %7827 = vst [vmem:[#allocation3 + $0x468] sm:$0xf] %v7795_v34  ;;  %v16562_v31 = vrot.slane %v17488_v38, 4  ;;  %v14082_v34 = vld [vmem:[#allocation10 + $0x1d0] sm:$0xff]  ;;  %v12722_v38 = vrot.slane %v8124_v52, 10 }
 0x464   : > { %10991 = vmatpush.bf16.msra.mxu3 %v14075_v18  ;;  %v8254_v56 = vrot.slane %v8125_v17, 6  ;;  %v7985_v52 = vrot.slane %v7854_v2, 5  ;;  %v14073_v55 = vld [vmem:[#allocation10 + $0x188] sm:$0xff] }
 0x465   : > { %v7696_v5 = vsel %vm14736_vm14, %v12697_v9, %v7695_v24  ;;  %v7697_v10 = vrot.slane %v7695_v24, 4  ;;  %v8456_v9 = vld [vmem:[#allocation2 + $0x7c] sm:$0xf]  ;;  %11081 = vmatpush.bf16.msra.mxu0 %v14082_v34 }
 0x466   : > { %v10611_v21 = vpop.f32.mrf.mxu2  ;;  %v10665_v1 = vpop.f32.mrf.mxu3  ;;  %7762 = vst [vmem:[#allocation3 + $0x440] sm:$0xf] %v7696_v5  ;;  %v8126_v5 = vld [vmem:[#allocation2 + $0x80] sm:$0x3]  ;;  %v8577_v44 = vrot.slane %v8456_v9, 5  ;;  %v8255_v17 = vsel %vm14736_vm14, %v12722_v38, %v8254_v56  ;;  %v8256_v34 = vrot.slane %v8254_v56, 4 }
 0x467   : > { %v16558_v26 = vadd.f32 %v10611_v21, %v10522_v48  ;;  %v16566_v48 = vadd.f32 %v10665_v1, %v16323_v36  ;;  %v12960_v21 = vld [vmem:[#allocation3 + $0x178] sm:$0xf]  ;;  %v12962_v36 = vld [vmem:[#allocation3 + $0x19c] sm:$0xf0]  ;;  %v7699_v1 = vsel %vm14736_vm14, %v7697_v10, %v7698_v15  ;;  %v16577_v24 = vpop.f32.mrf.mxu0  ;;  %v14081_v10 = vld [vmem:[#allocation10 + $0x1c8] sm:$0xff]  ;;  %v8257_v2 = vrot.slane %v8126_v5, 6 }
 0x468   : > { %v12961_v53 = vor.u32 %v13931_v6, %v12960_v21  ;;  %17490 = vst [vmem:[#allocation61_spill] sm:$0xff] %v16577_v24  ;;  %v13927_v21 = vld [vmem:[#allocation3 + $0x17c] sm:$0xf]  ;;  %v13278_v15 = vld [vmem:[#allocation3 + $0x41c] sm:$0xf0]  ;;  %10992 = vmatpush.bf16.msra.mxu3 %v14074_v59  ;;  %v12736_v24 = vrot.slane %v8455_v32, 9 }
 0x469   : > { %17487 = vst [vmem:[#allocation28_spill] sm:$0xff] %v16558_v26  ;;  %v8457_v26 = vld [vmem:[#allocation2 + $0x80] sm:$0x1]  ;;  %v8835_v9 = vrot.slane %v16573_v35, 6  ;;  %v8579_v33 = vrot.slane %v8577_v44, 4  ;;  %11082 = vmatpush.bf16.msra.mxu0 %v14081_v10  ;;  %v8258_v32 = vsel %vm14736_vm14, %v8256_v34, %v8257_v2  ;;  %v14072_v5 = vld [vmem:[#allocation10 + $0x180] sm:$0xff] }
 0x46a   : > { %17489 = vst [vmem:[#allocation58_spill] sm:$0xff] %v16566_v48  ;;  %v16568_v42 = vpop.f32.mrf.mxu1  ;;  %v7853_v48 = vld [vmem:[#allocation2 + $0x7c] sm:$0xf]  ;;  %v8578_v35 = vsel %vm14718_vm13, %v12736_v24, %v8577_v44  ;;  %v8723_v56 = vld [vmem:[#allocation2 + $0x68] sm:$0x3] }
 0x46b   : > { %7763 = vst [vmem:[#allocation3 + $0x464] sm:$0xf] %v7699_v1  ;;  %v7982_v6 = vrot.slane %v7853_v48, 5  ;;  %v14007_v48 = vld [vmem:[#allocation3 + $0x3fc] sm:$0xf]  ;;  %v8838_v34 = vrot.slane %v8723_v56, 6 }
 0x46c   : > { %8356 = vst [vmem:[#allocation3 + $0x254] sm:$0xf] %v8255_v17  ;;  %10993 = vmatpush.bf16.msra.mxu3 %v14073_v55  ;;  %v8387_v24 = vld [vmem:[#allocation2 + $0x84] sm:$0xf]  ;;  %v17492_v55 = vrot.slane %v16556_v45, 6 }
 0x46d   : > { %10842 = vmatmul.bf16.gmra.mxu1 %v12961_v53  ;;  %v7983_v53 = vsel %vm14718_vm13, %v12706_v12, %v7982_v6  ;;  %v7984_v1 = vrot.slane %v7982_v6, 4  ;;  %v8580_v12 = vrot.slane %v8457_v26, 5  ;;  %v14080_v26 = vld [vmem:[#allocation10 + $0x1c0] sm:$0xff]  ;;  %8357 = vst [vmem:[#allocation3 + $0x278] sm:$0xf] %v8258_v32 }
 0x46e   : > { %v10613_v18 = vpop.f32.mrf.mxu2  ;;  %8084 = vst [vmem:[#allocation3 + $0x250] sm:$0xf] %v7983_v53  ;;  %v8386_v53 = vld [vmem:[#allocation2 + $0x7c] sm:$0xf]  ;;  %11083 = vmatpush.bf16.msra.mxu0 %v14080_v26  ;;  %v13940_v2 = vld [vmem:[#allocation3 + $0x1e0] sm:$0xf0] }
 0x46f   : > { %v16580_v50 = vadd.f32 %v10613_v18, %v16550_v61  ;;  %v10667_v61 = vpop.f32.mrf.mxu3  ;;  %v12965_v18 = vor.u32 %v13927_v21, %v12962_v36  ;;  %v7986_v59 = vsel %vm14718_vm13, %v7984_v1, %v7985_v52  ;;  %v8721_v36 = vld [vmem:[#allocation2 + $0x60] sm:$0xc]  ;;  %v13281_v21 = vor.u32 %v14007_v48, %v13278_v15  ;;  %v13276_v52 = vld [vmem:[#allocation3 + $0x3f8] sm:$0xf]  ;;  %8689 = vst [vmem:[#allocation3 + $0x1cc] sm:$0xf] %v8578_v35  ;;  %v16605_v48 = vpop.f32.mrf.mxu0 }
 0x470   : > { %v16590_v6 = vadd.f32 %v10667_v61, %v16342_v60  ;;  %8085 = vst [vmem:[#allocation3 + $0x274] sm:$0xf] %v7986_v59  ;;  %v8581_v60 = vsel %vm14718_vm13, %v8579_v33, %v8580_v12  ;;  %v8837_v1 = vrot.slane %v8835_v9, 4  ;;  %v12750_v17 = vrot.slane %v8721_v36, 10  ;;  %10994 = vmatpush.bf16.msra.mxu3 %v14072_v5  ;;  %v8127_v59 = vld [vmem:[#allocation2 + $0x84] sm:$0xc] }
 0x471   : > { %17491 = vst [vmem:[#allocation59_spill] sm:$0xff] %v16580_v50  ;;  %v14011_v50 = vld [vmem:[#allocation3 + $0x418] sm:$0xf0]  ;;  %v8832_v15 = vsel %vm14736_vm14, %v16562_v31, %v17492_v55  ;;  %v8458_v35 = vld [vmem:[#allocation2 + $0x84] sm:$0xe]  ;;  %v12723_v26 = vrot.slane %v8127_v59, 10 }
 0x472   : > { %v16592_v38 = vpop.f32.mrf.mxu1  ;;  %v13277_v10 = vor.u32 %v14011_v50, %v13276_v52  ;;  %10798 = vmatmul.bf16.gmra.mxu0 %v13281_v21  ;;  %8690 = vst [vmem:[#allocation3 + $0x1f0] sm:$0xf] %v8581_v60  ;;  %v8836_v50 = vsel %vm14736_vm14, %v12750_v17, %v8835_v9  ;;  %v8839_v61 = vsel %vm14736_vm14, %v8837_v1, %v8838_v34  ;;  %v8725_v9 = vld [vmem:[#allocation2 + $0x70] sm:$0xf]  ;;  %v12998_v36 = vld [vmem:[#allocation3 + $0x1e4] sm:$0xf0] }
 0x473   : > { %10931 = vmatmul.bf16.gmra.mxu2 %v12965_v18  ;;  %17493 = vst [vmem:[#allocation60_spill] sm:$0xff] %v16605_v48  ;;  %v7855_v18 = vld [vmem:[#allocation2 + $0x84] sm:$0xe]  ;;  %v7856_v56 = vld [vmem:[#allocation2 + $0x88] sm:$0xf] }
 0x474   : > { %10709 = vmatmul.bf16.gmra.mxu3 %v13277_v10  ;;  %8418 = vst [vmem:[#allocation3 + $0x1ec] sm:$0xf] %v8386_v53  ;;  %v12707_v21 = vrot.slane %v7855_v18, 9  ;;  %v8128_v52 = vld [vmem:[#allocation2 + $0x88] sm:$0xf]  ;;  %v7989_v60 = vrot.slane %v7856_v56, 5 }
 0x475   : > { %8419 = vst [vmem:[#allocation3 + $0x210] sm:$0xf] %v8387_v24  ;;  %v7857_v5 = vld [vmem:[#allocation2 + $0x8c] sm:$0x1]  ;;  %v8261_v53 = vrot.slane %v8128_v52, 6  ;;  %v12737_v24 = vrot.slane %v8458_v35, 9 }
 0x476   : > { %v10616_v44 = vpop.f32.mrf.mxu2  ;;  %8956 = vst [vmem:[#allocation3 + $0x11c] sm:$0xf] %v8832_v15  ;;  %v8129_v10 = vld [vmem:[#allocation2 + $0x8c] sm:$0x3]  ;;  %v13936_v1 = vld [vmem:[#allocation3 + $0x1c4] sm:$0xf] }
 0x477   : > { %v16608_v33 = vadd.f32 %v10616_v44, %v16568_v42  ;;  %v10670_v45 = vpop.f32.mrf.mxu3  ;;  %v12996_v42 = vld [vmem:[#allocation3 + $0x1c0] sm:$0xf]  ;;  %8957 = vst [vmem:[#allocation3 + $0x140] sm:$0xf] %v8836_v50  ;;  %v13314_v17 = vld [vmem:[#allocation3 + $0x464] sm:$0xf0]  ;;  %v8262_v18 = vsel %vm14736_vm14, %v12723_v26, %v8261_v53 }
 0x478   : > { %v16615_v31 = vadd.f32 %v10670_v45, %v16365_v13  ;;  %v12997_v32 = vor.u32 %v13940_v2, %v12996_v42  ;;  %8958 = vst [vmem:[#allocation3 + $0x164] sm:$0xf] %v8839_v61  ;;  %v7992_v34 = vrot.slane %v7857_v5, 5  ;;  %v8264_v44 = vrot.slane %v8129_v10, 6  ;;  %v8726_v55 = vld [vmem:[#allocation2 + $0x74] sm:$0x3]  ;;  %v16626_v5 = vpop.f32.mrf.mxu0 }
 0x479   : > { %v8842_v15 = vrot.slane %v8725_v9, 6  ;;  %v14091_v2 = vld [vmem:[#allocation10 + $0x218] sm:$0xff]  ;;  %v7990_v61 = vsel %vm14718_vm13, %v12707_v21, %v7989_v60  ;;  %v7991_v45 = vrot.slane %v7989_v60, 4  ;;  %v8263_v56 = vrot.slane %v8261_v53, 4  ;;  %17494 = vst [vmem:[#allocation29_spill] sm:$0xff] %v16626_v5 }
 0x47a   : > { %v16617_v12 = vpop.f32.mrf.mxu1  ;;  %v8459_v59 = vld [vmem:[#allocation2 + $0x88] sm:$0xf]  ;;  %v8460_v42 = vld [vmem:[#allocation2 + $0x8c] sm:$0x1]  ;;  %8086 = vst [vmem:[#allocation3 + $0x298] sm:$0xf] %v7990_v61  ;;  %11169 = vmatpush.bf16.msra.mxu1 %v14091_v2 }
 0x47b   : > { %v8584_v52 = vrot.slane %v8459_v59, 5  ;;  %v8724_v35 = vld [vmem:[#allocation2 + $0x6c] sm:$0xc]  ;;  %v14020_v10 = vld [vmem:[#allocation3 + $0x460] sm:$0xf0]  ;;  %v7993_v21 = vsel %vm14718_vm13, %v7991_v45, %v7992_v34  ;;  %v8587_v60 = vrot.slane %v8460_v42, 5  ;;  %v8265_v53 = vsel %vm14736_vm14, %v8263_v56, %v8264_v44 }
 0x47c   : > { %8358 = vst [vmem:[#allocation3 + $0x29c] sm:$0xf] %v8262_v18  ;;  %v13312_v59 = vld [vmem:[#allocation3 + $0x440] sm:$0xf]  ;;  %v12751_v34 = vrot.slane %v8724_v35, 10  ;;  %v14103_v56 = vld [vmem:[#allocation11 + $0x38] sm:$0xff] }
 0x47d   : > { %10847 = vmatmul.bf16.gmra.mxu1 %v12997_v32  ;;  %v14016_v32 = vld [vmem:[#allocation3 + $0x444] sm:$0xf]  ;;  %8087 = vst [vmem:[#allocation3 + $0x2bc] sm:$0xf] %v7993_v21  ;;  %v8585_v61 = vsel %vm14718_vm13, %v12737_v24, %v8584_v52  ;;  %v13313_v45 = vor.u32 %v14020_v10, %v13312_v59  ;;  %v8130_v35 = vld [vmem:[#allocation2 + $0x90] sm:$0xc]  ;;  %11338 = vmatpush.bf16.msra.mxu2 %v14103_v56 }
 0x47e   : > { %v10618_v13 = vpop.f32.mrf.mxu2  ;;  %v13317_v2 = vor.u32 %v14016_v32, %v13314_v17  ;;  %8359 = vst [vmem:[#allocation3 + $0x2c0] sm:$0xf] %v8265_v53  ;;  %v8843_v18 = vsel %vm14736_vm14, %v12751_v34, %v8842_v15  ;;  %v13949_v32 = vld [vmem:[#allocation3 + $0x228] sm:$0xf0]  ;;  %v13032_v10 = vld [vmem:[#allocation3 + $0x208] sm:$0xf] }
 0x47f   : > { %v16620_v50 = vadd.f32 %v10618_v13, %v16592_v38  ;;  %v10672_v9 = vpop.f32.mrf.mxu3  ;;  %v13001_v38 = vor.u32 %v13936_v1, %v12998_v36  ;;  %v8845_v13 = vrot.slane %v8726_v55, 6  ;;  %v8388_v36 = vld [vmem:[#allocation2 + $0x88] sm:$0xf]  ;;  %v8844_v1 = vrot.slane %v8842_v15, 4  ;;  %8691 = vst [vmem:[#allocation3 + $0x214] sm:$0xf] %v8585_v61 }
 0x480   : > { %v16631_v26 = vadd.f32 %v10672_v9, %v16386_v4  ;;  %v8586_v55 = vrot.slane %v8584_v52, 4  ;;  %8420 = vst [vmem:[#allocation3 + $0x234] sm:$0xf] %v8388_v36  ;;  %v8389_v4 = vld [vmem:[#allocation2 + $0x90] sm:$0xf]  ;;  %v16651_v21 = vpop.f32.mrf.mxu0 }
 0x481   : > { %8421 = vst [vmem:[#allocation3 + $0x258] sm:$0xf] %v8389_v4  ;;  %v8846_v17 = vsel %vm14736_vm14, %v8844_v1, %v8845_v13  ;;  %v7858_v52 = vld [vmem:[#allocation2 + $0x90] sm:$0xe]  ;;  %v12724_v13 = vrot.slane %v8130_v35, 10 }
 0x482   : > { %17495 = vst [vmem:[#allocation30_spill] sm:$0xff] %v16631_v26  ;;  %v10534_v48 = vpop.f32.mrf.mxu1  ;;  %10803 = vmatmul.bf16.gmra.mxu0 %v13317_v2  ;;  %v8588_v24 = vsel %vm14718_vm13, %v8586_v55, %v8587_v60  ;;  %v13033_v60 = vor.u32 %v13949_v32, %v13032_v10  ;;  %v8461_v53 = vld [vmem:[#allocation2 + $0x90] sm:$0xe]  ;;  %v8728_v61 = vld [vmem:[#allocation2 + $0x7c] sm:$0xf] }
 0x483   : > { %10936 = vmatmul.bf16.gmra.mxu2 %v13001_v38  ;;  %8692 = vst [vmem:[#allocation3 + $0x238] sm:$0xf] %v8588_v24  ;;  %v13034_v36 = vld [vmem:[#allocation3 + $0x22c] sm:$0xf0]  ;;  %v7859_v1 = vld [vmem:[#allocation2 + $0x94] sm:$0xf] }
 0x484   : > { %10714 = vmatmul.bf16.gmra.mxu3 %v13313_v45  ;;  %8959 = vst [vmem:[#allocation3 + $0x188] sm:$0xf] %v8843_v18  ;;  %v8131_v2 = vld [vmem:[#allocation2 + $0x94] sm:$0xf]  ;;  %v8727_v59 = vld [vmem:[#allocation2 + $0x78] sm:$0xc] }
 0x485   : > { %8960 = vst [vmem:[#allocation3 + $0x1ac] sm:$0xf] %v8846_v17  ;;  %v8729_v34 = vld [vmem:[#allocation2 + $0x80] sm:$0x3]  ;;  %v7860_v45 = vld [vmem:[#allocation2 + $0x98] sm:$0x1] }
 0x486   : > { %v10621_v44 = vpop.f32.mrf.mxu2  ;;  %17497 = vst [vmem:[#allocation31_spill] sm:$0xff] %v16651_v21  ;;  %v7996_v55 = vrot.slane %v7859_v1, 5  ;;  %v8268_v4 = vrot.slane %v8131_v2, 6  ;;  %v7999_v24 = vrot.slane %v7860_v45, 5  ;;  %v8462_v56 = vld [vmem:[#allocation2 + $0x94] sm:$0xf] }
 0x487   : > { %v16644_v42 = vadd.f32 %v10621_v44, %v16617_v12  ;;  %v10675_v9 = vpop.f32.mrf.mxu3  ;;  %v12708_v12 = vrot.slane %v7858_v52, 9  ;;  %v13945_v44 = vld [vmem:[#allocation3 + $0x20c] sm:$0xf]  ;;  %v8849_v32 = vrot.slane %v8728_v61, 6  ;;  %v12790_v35 = vld [vmem:[#allocation3 + $0x3c] sm:$0xf0] }
 0x488   : > { %v16647_v15 = vadd.f32 %v10675_v9, %v16398_v7  ;;  %v8132_v7 = vld [vmem:[#allocation2 + $0x98] sm:$0x3]  ;;  %v7998_v10 = vrot.slane %v7996_v55, 4  ;;  %v13883_v1 = vld [vmem:[#allocation3 + $0x1c] sm:$0xf]  ;;  %v8270_v2 = vrot.slane %v8268_v4, 4 }
 0x489   : > { %v8271_v17 = vrot.slane %v8132_v7, 6  ;;  %v7997_v9 = vsel %vm14718_vm13, %v12708_v12, %v7996_v55  ;;  %v8463_v21 = vld [vmem:[#allocation2 + $0x98] sm:$0x1]  ;;  %v8591_v5 = vrot.slane %v8462_v56, 5  ;;  %v13037_v7 = vor.u32 %v13945_v44, %v13034_v36  ;;  %v13887_v26 = vld [vmem:[#allocation3 + $0x38] sm:$0xf0] }
 0x48a   : > { %17496 = vst [vmem:[#allocation62_spill] sm:$0xff] %v16647_v15  ;;  %v16649_v38 = vpop.f32.mrf.mxu1  ;;  %v12738_v15 = vrot.slane %v8461_v53, 9  ;;  %v12752_v61 = vrot.slane %v8727_v59, 10  ;;  %v8594_v36 = vrot.slane %v8463_v21, 5  ;;  %v12793_v44 = vor.u32 %v13883_v1, %v12790_v35 }
 0x48b   : > { %8088 = vst [vmem:[#allocation3 + $0x2e0] sm:$0xf] %v7997_v9  ;;  %v8593_v56 = vrot.slane %v8591_v5, 4  ;;  %v8851_v9 = vrot.slane %v8849_v32, 4 }
 0x48c   : > { %v8592_v53 = vsel %vm14718_vm13, %v12738_v15, %v8591_v5  ;;  %v8850_v59 = vsel %vm14736_vm14, %v12752_v61, %v8849_v32  ;;  %v10730_v61 = vadd.f32 %v16391_v11, %v16405_v14  ;;  %v8134_v11 = vld [vmem:[#allocation2 + $0xa0] sm:$0xf] }
 0x48d   : > { %10852 = vmatmul.bf16.gmra.mxu1 %v13033_v60  ;;  %v8269_v60 = vsel %vm14736_vm14, %v12724_v13, %v8268_v4  ;;  %v8272_v13 = vsel %vm14736_vm14, %v8270_v2, %v8271_v17  ;;  %v8390_v4 = vld [vmem:[#allocation2 + $0x94] sm:$0xf]  ;;  %8693 = vst [vmem:[#allocation3 + $0x25c] sm:$0xf] %v8592_v53  ;;  %v8731_v17 = vld [vmem:[#allocation2 + $0x88] sm:$0xf]  ;;  %v8595_v21 = vsel %vm14718_vm13, %v8593_v56, %v8594_v36 }
 0x48e   : > { %v10623_v18 = vpop.f32.mrf.mxu2  ;;  %8360 = vst [vmem:[#allocation3 + $0x2e4] sm:$0xf] %v8269_v60  ;;  %v8732_v60 = vld [vmem:[#allocation2 + $0x8c] sm:$0x3]  ;;  %v13958_v2 = vld [vmem:[#allocation3 + $0x270] sm:$0xf0] }
 0x48f   : > { %v16653_v52 = vadd.f32 %v10623_v18, %v10534_v48  ;;  %v10677_v45 = vpop.f32.mrf.mxu3  ;;  %v8000_v48 = vsel %vm14718_vm13, %v7998_v10, %v7999_v24  ;;  %v8852_v18 = vrot.slane %v8729_v34, 6  ;;  %v12788_v24 = vld [vmem:[#allocation3 + $0x18] sm:$0xf]  ;;  %8361 = vst [vmem:[#allocation3 + $0x308] sm:$0xf] %v8272_v13  ;;  %v16672_v10 = vpop.f32.mrf.mxu0  ;;  %v8859_v32 = vrot.slane %v8732_v60, 6 }
 0x490   : > { %v16662_v12 = vadd.f32 %v10677_v45, %v16420_v47  ;;  %8089 = vst [vmem:[#allocation3 + $0x304] sm:$0xf] %v8000_v48  ;;  %v8730_v47 = vld [vmem:[#allocation2 + $0x84] sm:$0xc]  ;;  %v12789_v34 = vor.u32 %v13887_v26, %v12788_v24  ;;  %v8856_v26 = vrot.slane %v8731_v17, 6 }
 0x491   : > { %8422 = vst [vmem:[#allocation3 + $0x27c] sm:$0xf] %v8390_v4  ;;  %v8853_v35 = vsel %vm14736_vm14, %v8851_v9, %v8852_v18  ;;  %v12753_v1 = vrot.slane %v8730_v47, 10  ;;  %v7861_v18 = vld [vmem:[#allocation2 + $0x9c] sm:$0xe] }
 0x492   : > { %v16664_v55 = vpop.f32.mrf.mxu1  ;;  %11084 = vmatmul.bf16.vlgmr.msra.gmra.mxu0 %v12793_v44  ;;  %8961 = vst [vmem:[#allocation3 + $0x1d0] sm:$0xf] %v8850_v59  ;;  %v8133_v13 = vld [vmem:[#allocation2 + $0x9c] sm:$0xc]  ;;  %v13068_v36 = vld [vmem:[#allocation3 + $0x250] sm:$0xf]  ;;  %v10554_v44 = vadd.f32 %v16108_v62, %v16106_v22 }
 0x493   : > { %10941 = vmatmul.bf16.gmra.mxu2 %v13037_v7  ;;  %8694 = vst [vmem:[#allocation3 + $0x280] sm:$0xf] %v8595_v21  ;;  %v8857_v45 = vsel %vm14736_vm14, %v12753_v1, %v8856_v26  ;;  %v8858_v7 = vrot.slane %v8856_v26, 4  ;;  %v13069_v59 = vor.u32 %v13958_v2, %v13068_v36  ;;  %v7862_v47 = vld [vmem:[#allocation2 + $0xa0] sm:$0xf]  ;;  %v12725_v14 = vrot.slane %v8133_v13, 10 }
 0x494   : > { %10995 = vmatmul.bf16.vlgmr.msra.gmra.mxu3 %v12789_v34  ;;  %8962 = vst [vmem:[#allocation3 + $0x1f4] sm:$0xf] %v8853_v35  ;;  %v12709_v34 = vrot.slane %v7861_v18, 9  ;;  %v10643_v56 = vadd.f32 %v16424_v43, %v10554_v44  ;;  %v8003_v9 = vrot.slane %v7862_v47, 5  ;;  %v8135_v17 = vld [vmem:[#allocation2 + $0xa4] sm:$0x3] }
 0x495   : > { %8963 = vst [vmem:[#allocation3 + $0x218] sm:$0xf] %v8857_v45  ;;  %v8860_v4 = vsel %vm14736_vm14, %v8858_v7, %v8859_v32  ;;  %v13070_v35 = vld [vmem:[#allocation3 + $0x274] sm:$0xf0]  ;;  %v8278_v1 = vrot.slane %v8135_v17, 6  ;;  %v14090_v32 = vld [vmem:[#allocation10 + $0x210] sm:$0xff] }
 0x496   : > { %v10626_v15 = vpop.f32.mrf.mxu2  ;;  %8964 = vst [vmem:[#allocation3 + $0x23c] sm:$0xf] %v8860_v4  ;;  %v12826_v62 = vld [vmem:[#allocation3 + $0x84] sm:$0xf0]  ;;  %v8004_v2 = vsel %vm14718_vm13, %v12709_v34, %v8003_v9  ;;  %v8005_v43 = vrot.slane %v8003_v9, 4  ;;  %v10732_v18 = vadd.f32 %v16409_v20, %v10643_v56  ;;  %11170 = vmatpush.bf16.msra.mxu1 %v14090_v32  ;;  %v10735_v32 = vadd.f32 %v16426_v16, %v16438_v63 }
 0x497   : > { %v16679_v5 = vadd.f32 %v10626_v15, %v16649_v38  ;;  %v10680_v48 = vpop.f32.mrf.mxu3  ;;  %v8275_v15 = vrot.slane %v8134_v11, 6  ;;  %v16693_v26 = vpop.f32.mrf.mxu0  ;;  %v13954_v7 = vld [vmem:[#allocation3 + $0x254] sm:$0xf]  ;;  %8090 = vst [vmem:[#allocation3 + $0x328] sm:$0xf] %v8004_v2 }
 0x498   : > { %v16686_v53 = vadd.f32 %v10680_v48, %v16433_v49  ;;  %v7863_v49 = vld [vmem:[#allocation2 + $0xa4] sm:$0x1]  ;;  %v13073_v13 = vor.u32 %v13954_v7, %v13070_v35  ;;  %v13892_v44 = vld [vmem:[#allocation3 + $0x64] sm:$0xf]  ;;  %v12824_v20 = vld [vmem:[#allocation3 + $0x60] sm:$0xf] }
 0x499   : > { %v8006_v60 = vrot.slane %v7863_v49, 5  ;;  %v8276_v45 = vsel %vm14736_vm14, %v12725_v14, %v8275_v15  ;;  %v8277_v48 = vrot.slane %v8275_v15, 4  ;;  %v12829_v34 = vor.u32 %v13892_v44, %v12826_v62  ;;  %v8733_v14 = vld [vmem:[#allocation2 + $0x90] sm:$0xc]  ;;  %v8734_v56 = vld [vmem:[#allocation2 + $0x94] sm:$0xf] }
 0x49a   : > { %v10818_v38 = vpop.f32.mrf.mxu1  ;;  %8362 = vst [vmem:[#allocation3 + $0x32c] sm:$0xf] %v8276_v45  ;;  %v8391_v9 = vld [vmem:[#allocation2 + $0x9c] sm:$0xf]  ;;  %v14102_v15 = vld [vmem:[#allocation11 + $0x30] sm:$0xff]  ;;  %v12754_v35 = vrot.slane %v8733_v14, 10 }
 0x49b   : > { %v10819_v24 = vadd.f32 %v10818_v38, %v10730_v61  ;;  %v13896_v38 = vld [vmem:[#allocation3 + $0x80] sm:$0xf0]  ;;  %8423 = vst [vmem:[#allocation3 + $0x2a0] sm:$0xf] %v8391_v9  ;;  %11339 = vmatpush.bf16.msra.mxu2 %v14102_v15  ;;  %v7864_v2 = vld [vmem:[#allocation2 + $0xa8] sm:$0xe] }
 0x49c   : > { %v12825_v11 = vor.u32 %v13896_v38, %v12824_v20  ;;  %v13106_v63 = vld [vmem:[#allocation3 + $0x2bc] sm:$0xf0]  ;;  %v12710_v44 = vrot.slane %v7864_v2, 9 }
 0x49d   : > { %10857 = vmatmul.bf16.gmra.mxu1 %v13069_v59  ;;  %v8279_v59 = vsel %vm14736_vm14, %v8277_v48, %v8278_v1  ;;  %v13104_v48 = vld [vmem:[#allocation3 + $0x298] sm:$0xf]  ;;  %v7866_v20 = vld [vmem:[#allocation2 + $0xb0] sm:$0x1] }
 0x49e   : > { %v10628_v21 = vpop.f32.mrf.mxu2  ;;  %8363 = vst [vmem:[#allocation3 + $0x350] sm:$0xf] %v8279_v59  ;;  %v8137_v59 = vld [vmem:[#allocation2 + $0xac] sm:$0xf]  ;;  %v8138_v14 = vld [vmem:[#allocation2 + $0xb0] sm:$0x3] }
 0x49f   : > { %v16696_v22 = vadd.f32 %v10628_v21, %v16664_v55  ;;  %v10682_v61 = vpop.f32.mrf.mxu3  ;;  %v8007_v55 = vsel %vm14718_vm13, %v8005_v43, %v8006_v60  ;;  %v13967_v21 = vld [vmem:[#allocation3 + $0x2b8] sm:$0xf0]  ;;  %v8863_v60 = vrot.slane %v8734_v56, 6  ;;  %v16712_v1 = vpop.f32.mrf.mxu0  ;;  %v8136_v43 = vld [vmem:[#allocation2 + $0xa8] sm:$0xc]  ;;  %v8282_v56 = vrot.slane %v8137_v59, 6 }
 0x4a0   : > { %v16706_v36 = vadd.f32 %v10682_v61, %v16448_v3  ;;  %8091 = vst [vmem:[#allocation3 + $0x34c] sm:$0xf] %v8007_v55  ;;  %v8735_v3 = vld [vmem:[#allocation2 + $0x98] sm:$0x3]  ;;  %v13105_v38 = vor.u32 %v13967_v21, %v13104_v48  ;;  %v8464_v55 = vld [vmem:[#allocation2 + $0x9c] sm:$0xe] }
 0x4a1   : > { %v8866_v45 = vrot.slane %v8735_v3, 6  ;;  %v8864_v61 = vsel %vm14736_vm14, %v12754_v35, %v8863_v60  ;;  %v8865_v16 = vrot.slane %v8863_v60, 4  ;;  %v8013_v9 = vrot.slane %v7866_v20, 5  ;;  %v13963_v35 = vld [vmem:[#allocation3 + $0x29c] sm:$0xf] }
 0x4a2   : > { %v10820_v4 = vpop.f32.mrf.mxu1  ;;  %11089 = vmatmul.bf16.gmra.mxu0 %v12829_v34  ;;  %8965 = vst [vmem:[#allocation3 + $0x260] sm:$0xf] %v8864_v61  ;;  %v8285_v3 = vrot.slane %v8138_v14, 6  ;;  %v12739_v15 = vrot.slane %v8464_v55, 9  ;;  %v8284_v2 = vrot.slane %v8282_v56, 4  ;;  %v13109_v61 = vor.u32 %v13963_v35, %v13106_v63 }
 0x4a3   : > { %v10821_v47 = vadd.f32 %v10820_v4, %v10732_v18  ;;  %10946 = vmatmul.bf16.gmra.mxu2 %v13073_v13  ;;  %v10559_v18 = vadd.f32 %v16207_v23, %v16186_v28  ;;  %v7865_v4 = vld [vmem:[#allocation2 + $0xac] sm:$0xf]  ;;  %v8867_v28 = vsel %vm14736_vm14, %v8865_v16, %v8866_v45  ;;  %v12860_v20 = vld [vmem:[#allocation3 + $0xa8] sm:$0xf]  ;;  %v8736_v14 = vld [vmem:[#allocation2 + $0x9c] sm:$0xc] }
 0x4a4   : > { %11000 = vmatmul.bf16.gmra.mxu3 %v12825_v11  ;;  %v8010_v11 = vrot.slane %v7865_v4, 5  ;;  %8966 = vst [vmem:[#allocation3 + $0x284] sm:$0xf] %v8867_v28  ;;  %v8286_v4 = vsel %vm14736_vm14, %v8284_v2, %v8285_v3  ;;  %v8738_v3 = vld [vmem:[#allocation2 + $0xa4] sm:$0x3] }
 0x4a5   : > { %v10648_v34 = vadd.f32 %v16450_v37, %v10559_v18  ;;  %v13901_v18 = vld [vmem:[#allocation3 + $0xac] sm:$0xf]  ;;  %8365 = vst [vmem:[#allocation3 + $0x398] sm:$0xf] %v8286_v4  ;;  %v7867_v2 = vld [vmem:[#allocation2 + $0xb4] sm:$0xe] }
 0x4a6   : > { %v10907_v49 = vpop.f32.mrf.mxu2  ;;  %v8011_v37 = vsel %vm14718_vm13, %v12710_v44, %v8010_v11  ;;  %v8012_v60 = vrot.slane %v8010_v11, 4  ;;  %v12711_v4 = vrot.slane %v7867_v2, 9  ;;  %v8469_v2 = vld [vmem:[#allocation2 + $0xb0] sm:$0x1] }
 0x4a7   : > { %v16710_v17 = vadd.f32 %v10907_v49, %v10819_v24  ;;  %v10685_v62 = vpop.f32.mrf.mxu3  ;;  %v12862_v49 = vld [vmem:[#allocation3 + $0xcc] sm:$0xf0]  ;;  %8092 = vst [vmem:[#allocation3 + $0x370] sm:$0xf] %v8011_v37  ;;  %v10737_v48 = vadd.f32 %v16440_v58, %v10648_v34  ;;  %v16744_v63 = vpop.f32.mrf.mxu0  ;;  %v13976_v37 = vld [vmem:[#allocation3 + $0x300] sm:$0xf0] }
 0x4a8   : > { %v16717_v7 = vadd.f32 %v10685_v62, %v16458_v19  ;;  %v12726_v19 = vrot.slane %v8136_v43, 10  ;;  %v8466_v43 = vld [vmem:[#allocation2 + $0xa4] sm:$0x1]  ;;  %v8392_v58 = vld [vmem:[#allocation2 + $0xa0] sm:$0xf]  ;;  %v12865_v34 = vor.u32 %v13901_v18, %v12862_v49  ;;  %v12755_v49 = vrot.slane %v8736_v14, 10 }
 0x4a9   : > { %v8601_v59 = vrot.slane %v8466_v43, 5  ;;  %8424 = vst [vmem:[#allocation3 + $0x2c4] sm:$0xf] %v8392_v58  ;;  %v8139_v43 = vld [vmem:[#allocation2 + $0xb4] sm:$0xc] }
 0x4aa   : > { %v10823_v24 = vpop.f32.mrf.mxu1  ;;  %v8283_v62 = vsel %vm14736_vm14, %v12726_v19, %v8282_v56  ;;  %v8737_v56 = vld [vmem:[#allocation2 + $0xa0] sm:$0xf]  ;;  %v12898_v14 = vld [vmem:[#allocation3 + $0x114] sm:$0xf0] }
 0x4ab   : > { %v16723_v13 = vadd.f32 %v10823_v24, %v10735_v32  ;;  %v8465_v32 = vld [vmem:[#allocation2 + $0xa0] sm:$0xf]  ;;  %8364 = vst [vmem:[#allocation3 + $0x374] sm:$0xf] %v8283_v62  ;;  %v8870_v35 = vrot.slane %v8737_v56, 6 }
 0x4ac   : > { %v8598_v45 = vrot.slane %v8465_v32, 5  ;;  %v10740_v32 = vadd.f32 %v16454_v30, %v16461_v0  ;;  %v13142_v30 = vld [vmem:[#allocation3 + $0x304] sm:$0xf0] }
 0x4ad   : > { %10862 = vmatmul.bf16.gmra.mxu1 %v13105_v38  ;;  %v8014_v38 = vsel %vm14718_vm13, %v8012_v60, %v8013_v9  ;;  %v8393_v9 = vld [vmem:[#allocation2 + $0xa8] sm:$0xf]  ;;  %v8873_v60 = vrot.slane %v8738_v3, 6  ;;  %v7868_v0 = vld [vmem:[#allocation2 + $0xb8] sm:$0xf] }
 0x4ae   : > { %v10909_v23 = vpop.f32.mrf.mxu2  ;;  %8093 = vst [vmem:[#allocation3 + $0x394] sm:$0xf] %v8014_v38  ;;  %v8599_v44 = vsel %vm14718_vm13, %v12739_v15, %v8598_v45  ;;  %v8467_v38 = vld [vmem:[#allocation2 + $0xa8] sm:$0xe]  ;;  %v13972_v3 = vld [vmem:[#allocation3 + $0x2e4] sm:$0xf] }
 0x4af   : > { %v16728_v21 = vadd.f32 %v10909_v23, %v10821_v47  ;;  %v10687_v24 = vpop.f32.mrf.mxu3  ;;  %v13905_v47 = vld [vmem:[#allocation3 + $0xc8] sm:$0xf0]  ;;  %8695 = vst [vmem:[#allocation3 + $0x2a4] sm:$0xf] %v8599_v44  ;;  %v8140_v44 = vld [vmem:[#allocation2 + $0xb8] sm:$0xf]  ;;  %v16762_v58 = vpop.f32.mrf.mxu0 }
 0x4b0   : > { %v16738_v55 = vadd.f32 %v10687_v24, %v16471_v41  ;;  %v12861_v11 = vor.u32 %v13905_v47, %v12860_v20  ;;  %v8600_v41 = vrot.slane %v8598_v45, 4  ;;  %8425 = vst [vmem:[#allocation3 + $0x2e8] sm:$0xf] %v8393_v9  ;;  %v8871_v45 = vsel %vm14736_vm14, %v12755_v49, %v8870_v35  ;;  %v8141_v20 = vld [vmem:[#allocation2 + $0xbc] sm:$0x3] }
 0x4b1   : > { %v8872_v24 = vrot.slane %v8870_v35, 4  ;;  %8967 = vst [vmem:[#allocation3 + $0x2a8] sm:$0xf] %v8871_v45  ;;  %v14089_v49 = vld [vmem:[#allocation10 + $0x208] sm:$0xff] }
 0x4b2   : > { %v10825_v16 = vpop.f32.mrf.mxu1  ;;  %11094 = vmatmul.bf16.gmra.mxu0 %v12865_v34  ;;  %v8602_v23 = vsel %vm14718_vm13, %v8600_v41, %v8601_v59  ;;  %v12727_v59 = vrot.slane %v8139_v43, 10  ;;  %v8017_v34 = vrot.slane %v7868_v0, 5  ;;  %11171 = vmatpush.bf16.msra.mxu1 %v14089_v49  ;;  %v13985_v49 = vld [vmem:[#allocation3 + $0x348] sm:$0xf0] }
 0x4b3   : > { %v10826_v19 = vadd.f32 %v10825_v16, %v10737_v48  ;;  %10951 = vmatmul.bf16.gmra.mxu2 %v13109_v61  ;;  %8696 = vst [vmem:[#allocation3 + $0x2c8] sm:$0xf] %v8602_v23  ;;  %v13140_v61 = vld [vmem:[#allocation3 + $0x2e0] sm:$0xf]  ;;  %v8874_v16 = vsel %vm14736_vm14, %v8872_v24, %v8873_v60  ;;  %v12740_v23 = vrot.slane %v8467_v38, 9  ;;  %v10742_v24 = vadd.f32 %v16465_v8, %v16480_v57 }
 0x4b4   : > { %11005 = vmatmul.bf16.gmra.mxu3 %v12861_v11  ;;  %v13141_v47 = vor.u32 %v13976_v37, %v13140_v61  ;;  %v8289_v11 = vrot.slane %v8140_v44, 6  ;;  %8968 = vst [vmem:[#allocation3 + $0x2cc] sm:$0xf] %v8874_v16  ;;  %v8018_v35 = vsel %vm14718_vm13, %v12711_v4, %v8017_v34  ;;  %v8019_v37 = vrot.slane %v8017_v34, 4  ;;  %v13914_v61 = vld [vmem:[#allocation3 + $0x110] sm:$0xf0] }
 0x4b5   : > { %8094 = vst [vmem:[#allocation3 + $0x3b8] sm:$0xf] %v8018_v35  ;;  %v8608_v8 = vrot.slane %v8469_v2, 5  ;;  %v8394_v57 = vld [vmem:[#allocation2 + $0xac] sm:$0xf] }
 0x4b6   : > { %v10912_v28 = vpop.f32.mrf.mxu2  ;;  %v8290_v60 = vsel %vm14736_vm14, %v12727_v59, %v8289_v11  ;;  %v12896_v59 = vld [vmem:[#allocation3 + $0xf0] sm:$0xf]  ;;  %8426 = vst [vmem:[#allocation3 + $0x30c] sm:$0xf] %v8394_v57  ;;  %v7872_v57 = vld [vmem:[#allocation2 + $0xc8] sm:$0x1] }
 0x4b7   : > { %v16749_v15 = vadd.f32 %v10912_v28, %v16723_v13  ;;  %v10690_v62 = vpop.f32.mrf.mxu3  ;;  %v8292_v28 = vrot.slane %v8141_v20, 6  ;;  %8366 = vst [vmem:[#allocation3 + $0x3bc] sm:$0xf] %v8290_v60  ;;  %v8740_v20 = vld [vmem:[#allocation2 + $0xac] sm:$0xf] }
 0x4b8   : > { %v16756_v48 = vadd.f32 %v10690_v62, %v16487_v27  ;;  %v7869_v27 = vld [vmem:[#allocation2 + $0xbc] sm:$0x1]  ;;  %v8468_v62 = vld [vmem:[#allocation2 + $0xac] sm:$0xf]  ;;  %v8142_v2 = vld [vmem:[#allocation2 + $0xc0] sm:$0xc] }
 0x4b9   : > { %v8020_v56 = vrot.slane %v7869_v27, 5  ;;  %v8605_v43 = vrot.slane %v8468_v62, 5  ;;  %v12897_v27 = vor.u32 %v13914_v61, %v12896_v59  ;;  %v10745_v62 = vadd.f32 %v16482_v39, %v16490_v25  ;;  %v7871_v39 = vld [vmem:[#allocation2 + $0xc4] sm:$0xf] }
 0x4ba   : > { %v10828_v13 = vpop.f32.mrf.mxu1 }
 0x4bb   : > { %v16758_v18 = vadd.f32 %v10828_v13, %v10740_v32  ;;  %v8291_v32 = vrot.slane %v8289_v11, 4  ;;  %v13910_v13 = vld [vmem:[#allocation3 + $0xf4] sm:$0xf]  ;;  %v8606_v4 = vsel %vm14718_vm13, %v12740_v23, %v8605_v43  ;;  %v8607_v34 = vrot.slane %v8605_v43, 4  ;;  %v16783_v23 = vpop.f32.mrf.mxu0 }
 0x4bc   : > { %v12901_v44 = vor.u32 %v13910_v13, %v12898_v14  ;;  %8697 = vst [vmem:[#allocation3 + $0x2ec] sm:$0xf] %v8606_v4  ;;  %v8143_v4 = vld [vmem:[#allocation2 + $0xc4] sm:$0xf] }
 0x4bd   : > { %10867 = vmatmul.bf16.gmra.mxu1 %v13141_v47  ;;  %v8021_v47 = vsel %vm14718_vm13, %v8019_v37, %v8020_v56  ;;  %v8293_v0 = vsel %vm14736_vm14, %v8291_v32, %v8292_v28  ;;  %v8395_v56 = vld [vmem:[#allocation2 + $0xb4] sm:$0xf]  ;;  %v8741_v28 = vld [vmem:[#allocation2 + $0xb0] sm:$0x3]  ;;  %v8877_v37 = vrot.slane %v8740_v20, 6  ;;  %v8296_v59 = vrot.slane %v8143_v4, 6 }
 0x4be   : > { %v10914_v41 = vpop.f32.mrf.mxu2  ;;  %8095 = vst [vmem:[#allocation3 + $0x3dc] sm:$0xf] %v8021_v47  ;;  %v7870_v32 = vld [vmem:[#allocation2 + $0xc0] sm:$0xe]  ;;  %v8880_v43 = vrot.slane %v8741_v28, 6  ;;  %v8027_v20 = vrot.slane %v7872_v57, 5 }
 0x4bf   : > { %v16764_v9 = vadd.f32 %v10914_v41, %v10826_v19  ;;  %v10692_v45 = vpop.f32.mrf.mxu3  ;;  %v13145_v19 = vor.u32 %v13972_v3, %v13142_v30  ;;  %8367 = vst [vmem:[#allocation3 + $0x3e0] sm:$0xf] %v8293_v0  ;;  %v8609_v41 = vsel %vm14718_vm13, %v8607_v34, %v8608_v8  ;;  %v14101_v3 = vld [vmem:[#allocation11 + $0x28] sm:$0xff]  ;;  %v8470_v47 = vld [vmem:[#allocation2 + $0xb4] sm:$0xe]  ;;  %v12712_v25 = vrot.slane %v7870_v32, 9 }
 0x4c0   : > { %v16775_v38 = vadd.f32 %v10692_v45, %v16504_v40  ;;  %v8739_v40 = vld [vmem:[#allocation2 + $0xa8] sm:$0xc]  ;;  %8698 = vst [vmem:[#allocation3 + $0x310] sm:$0xf] %v8609_v41  ;;  %11340 = vmatpush.bf16.msra.mxu2 %v14101_v3  ;;  %v13178_v0 = vld [vmem:[#allocation3 + $0x34c] sm:$0xf0] }
 0x4c1   : > { %8427 = vst [vmem:[#allocation3 + $0x330] sm:$0xf] %v8395_v56  ;;  %v12756_v35 = vrot.slane %v8739_v40, 10  ;;  %v12728_v8 = vrot.slane %v8142_v2, 10  ;;  %v12934_v40 = vld [vmem:[#allocation3 + $0x15c] sm:$0xf0] }
 0x4c2   : > { %v10830_v16 = vpop.f32.mrf.mxu1  ;;  %11099 = vmatmul.bf16.gmra.mxu0 %v12901_v44  ;;  %v8144_v44 = vld [vmem:[#allocation2 + $0xc8] sm:$0x3]  ;;  %v12741_v41 = vrot.slane %v8470_v47, 9  ;;  %v13981_v28 = vld [vmem:[#allocation3 + $0x32c] sm:$0xf] }
 0x4c3   : > { %v10831_v30 = vadd.f32 %v10830_v16, %v10742_v24  ;;  %10956 = vmatmul.bf16.gmra.mxu2 %v13145_v19  ;;  %v8878_v19 = vsel %vm14736_vm14, %v12756_v35, %v8877_v37  ;;  %v8879_v16 = vrot.slane %v8877_v37, 4  ;;  %v8297_v35 = vsel %vm14736_vm14, %v12728_v8, %v8296_v59  ;;  %v8471_v37 = vld [vmem:[#allocation2 + $0xb8] sm:$0xf]  ;;  %v16805_v2 = vpop.f32.mrf.mxu0 }
 0x4c4   : > { %11010 = vmatmul.bf16.gmra.mxu3 %v12897_v27  ;;  %8969 = vst [vmem:[#allocation3 + $0x2f0] sm:$0xf] %v8878_v19  ;;  %v8612_v32 = vrot.slane %v8471_v37, 5  ;;  %v13919_v19 = vld [vmem:[#allocation3 + $0x13c] sm:$0xf] }
 0x4c5   : > { %v8881_v27 = vsel %vm14736_vm14, %v8879_v16, %v8880_v43  ;;  %8368 = vst [vmem:[#allocation3 + $0x404] sm:$0xf] %v8297_v35  ;;  %v17499_v16 = vld [vmem:[#allocation57_spill] sm:$0xff]  ;;  %v13994_v37 = vld [vmem:[#allocation3 + $0x390] sm:$0xf0] }
 0x4c6   : > { %v10917_v11 = vpop.f32.mrf.mxu2  ;;  %8970 = vst [vmem:[#allocation3 + $0x314] sm:$0xf] %v8881_v27  ;;  %v8613_v8 = vsel %vm14718_vm13, %v12741_v41, %v8612_v32  ;;  %v8744_v41 = vld [vmem:[#allocation2 + $0xbc] sm:$0x3] }
 0x4c7   : > { %v16786_v14 = vadd.f32 %v10917_v11, %v16758_v18  ;;  %v10695_v60 = vpop.f32.mrf.mxu3  ;;  %v13176_v18 = vld [vmem:[#allocation3 + $0x328] sm:$0xf]  ;;  %v8299_v11 = vrot.slane %v8144_v44, 6  ;;  %v12932_v44 = vld [vmem:[#allocation3 + $0x138] sm:$0xf] }
 0x4c8   : > { %v16791_v45 = vadd.f32 %v10695_v60, %v16522_v29  ;;  %v13177_v61 = vor.u32 %v13985_v49, %v13176_v18  ;;  %v8024_v29 = vrot.slane %v7871_v39, 5  ;;  %v8298_v60 = vrot.slane %v8296_v59, 4  ;;  %v8742_v59 = vld [vmem:[#allocation2 + $0xb4] sm:$0xc]  ;;  %8699 = vst [vmem:[#allocation3 + $0x334] sm:$0xf] %v8613_v8 }
 0x4c9   : > { %v13181_v18 = vor.u32 %v13981_v28, %v13178_v0 }
 0x4ca   : > { %v10833_v24 = vpop.f32.mrf.mxu1  ;;  %v8025_v3 = vsel %vm14718_vm13, %v12712_v25, %v8024_v29  ;;  %v8026_v49 = vrot.slane %v8024_v29, 4  ;;  %v8300_v4 = vsel %vm14736_vm14, %v8298_v60, %v8299_v11  ;;  %v12937_v29 = vor.u32 %v13919_v19, %v12934_v40  ;;  %v8145_v19 = vld [vmem:[#allocation2 + $0xcc] sm:$0xc] }
 0x4cb   : > { %v16795_v13 = vadd.f32 %v10833_v24, %v10745_v62  ;;  %8096 = vst [vmem:[#allocation3 + $0x400] sm:$0xf] %v8025_v3  ;;  %v8472_v62 = vld [vmem:[#allocation2 + $0xbc] sm:$0x1]  ;;  %v17498_v24 = vld [vmem:[#allocation24_spill] sm:$0xff]  ;;  %v12757_v3 = vrot.slane %v8742_v59, 10 }
 0x4cc   : > { %v8028_v47 = vsel %vm14718_vm13, %v8026_v49, %v8027_v20  ;;  %v8615_v57 = vrot.slane %v8472_v62, 5  ;;  %8369 = vst [vmem:[#allocation3 + $0x428] sm:$0xf] %v8300_v4  ;;  %v8743_v20 = vld [vmem:[#allocation2 + $0xb8] sm:$0xf]  ;;  %v8887_v40 = vrot.slane %v8744_v41, 6  ;;  %v16832_v4 = vpop.f32.mrf.mxu0 }
 0x4cd   : > { %10872 = vmatmul.bf16.gmra.mxu1 %v13177_v61  ;;  %v13923_v61 = vld [vmem:[#allocation3 + $0x158] sm:$0xf0]  ;;  %8097 = vst [vmem:[#allocation3 + $0x424] sm:$0xf] %v8028_v47  ;;  %v8884_v49 = vrot.slane %v8743_v20, 6  ;;  %v12729_v59 = vrot.slane %v8145_v19, 10 }
 0x4ce   : > { %v10919_v34 = vpop.f32.mrf.mxu2  ;;  %v12933_v27 = vor.u32 %v13923_v61, %v12932_v44  ;;  %v17502_v61 = vld [vmem:[#allocation28_spill] sm:$0xff]  ;;  %v8146_v44 = vld [vmem:[#allocation2 + $0xd0] sm:$0xf]  ;;  %v8147_v20 = vld [vmem:[#allocation2 + $0xd4] sm:$0x3] }
 0x4cf   : > { %v16799_v56 = vadd.f32 %v10919_v34, %v10831_v30  ;;  %v10697_v43 = vpop.f32.mrf.mxu3  ;;  %v10747_v30 = vadd.f32 %v17498_v24, %v16511_v54  ;;  %v8396_v54 = vld [vmem:[#allocation2 + $0xb8] sm:$0xf]  ;;  %v8614_v34 = vrot.slane %v8612_v32, 4  ;;  %v8885_v60 = vsel %vm14736_vm14, %v12757_v3, %v8884_v49  ;;  %v13214_v41 = vld [vmem:[#allocation3 + $0x394] sm:$0xf0] }
 0x4d0   : > { %v16812_v39 = vadd.f32 %v10697_v43, %v17499_v16  ;;  %8428 = vst [vmem:[#allocation3 + $0x354] sm:$0xf] %v8396_v54  ;;  %v8886_v62 = vrot.slane %v8884_v49, 4  ;;  %v17500_v43 = vld [vmem:[#allocation25_spill] sm:$0xff]  ;;  %v17501_v24 = vld [vmem:[#allocation55_spill] sm:$0xff]  ;;  %v8306_v49 = vrot.slane %v8147_v20, 6 }
 0x4d1   : > { %v8616_v11 = vsel %vm14718_vm13, %v8614_v34, %v8615_v57  ;;  %8971 = vst [vmem:[#allocation3 + $0x338] sm:$0xf] %v8885_v60  ;;  %v7874_v54 = vld [vmem:[#allocation2 + $0xd0] sm:$0xf]  ;;  %v8473_v19 = vld [vmem:[#allocation2 + $0xc0] sm:$0xe] }
 0x4d2   : > { %v10835_v25 = vpop.f32.mrf.mxu1  ;;  %11104 = vmatmul.bf16.gmra.mxu0 %v12937_v29  ;;  %8700 = vst [vmem:[#allocation3 + $0x358] sm:$0xf] %v8616_v11  ;;  %v8031_v34 = vrot.slane %v7874_v54, 5  ;;  %v8397_v54 = vld [vmem:[#allocation2 + $0xc0] sm:$0xf] }
 0x4d3   : > { %v10836_v0 = vadd.f32 %v10835_v25, %v10747_v30  ;;  %10961 = vmatmul.bf16.gmra.mxu2 %v13181_v18  ;;  %v10750_v30 = vadd.f32 %v17501_v24, %v17500_v43  ;;  %v7873_v18 = vld [vmem:[#allocation2 + $0xcc] sm:$0xe]  ;;  %v8888_v25 = vsel %vm14736_vm14, %v8886_v62, %v8887_v40  ;;  %v13990_v40 = vld [vmem:[#allocation3 + $0x374] sm:$0xf]  ;;  %v12970_v62 = vld [vmem:[#allocation3 + $0x1a4] sm:$0xf0] }
 0x4d4   : > { %11015 = vmatmul.bf16.gmra.mxu3 %v12933_v27  ;;  %8972 = vst [vmem:[#allocation3 + $0x35c] sm:$0xf] %v8888_v25  ;;  %v12713_v29 = vrot.slane %v7873_v18, 9  ;;  %v7875_v27 = vld [vmem:[#allocation2 + $0xd4] sm:$0x1]  ;;  %v8033_v24 = vrot.slane %v8031_v34, 4 }
 0x4d5   : > { %v8034_v3 = vrot.slane %v7875_v27, 5  ;;  %8429 = vst [vmem:[#allocation3 + $0x378] sm:$0xf] %v8397_v54 }
 0x4d6   : > { %v10922_v28 = vpop.f32.mrf.mxu2  ;;  %v8032_v43 = vsel %vm14718_vm13, %v12713_v29, %v8031_v34  ;;  %v17505_v29 = vld [vmem:[#allocation59_spill] sm:$0xff] }
 0x4d7   : > { %v16821_v35 = vadd.f32 %v10922_v28, %v16795_v13  ;;  %v10700_v32 = vpop.f32.mrf.mxu3  ;;  %v13212_v13 = vld [vmem:[#allocation3 + $0x370] sm:$0xf]  ;;  %v8303_v28 = vrot.slane %v8146_v44, 6  ;;  %8098 = vst [vmem:[#allocation3 + $0x448] sm:$0xf] %v8032_v43  ;;  %v16851_v43 = vpop.f32.mrf.mxu0 }
 0x4d8   : > { %v16828_v47 = vadd.f32 %v10700_v32, %v17502_v61  ;;  %v13213_v57 = vor.u32 %v13994_v37, %v13212_v13  ;;  %v13932_v32 = vld [vmem:[#allocation3 + $0x1a0] sm:$0xf0]  ;;  %v17504_v13 = vld [vmem:[#allocation56_spill] sm:$0xff] }
 0x4d9   : > { %v14088_v37 = vld [vmem:[#allocation10 + $0x200] sm:$0xff]  ;;  %v8305_v18 = vrot.slane %v8303_v28, 4  ;;  %v8745_v44 = vld [vmem:[#allocation2 + $0xc0] sm:$0xc] }
 0x4da   : > { %v10838_v16 = vpop.f32.mrf.mxu1  ;;  %11172 = vmatpush.bf16.msra.mxu1 %v14088_v37  ;;  %v12758_v37 = vrot.slane %v8745_v44, 10 }
 0x4db   : > { %v10839_v8 = vadd.f32 %v10838_v16, %v10750_v30  ;;  %v8304_v30 = vsel %vm14736_vm14, %v12729_v59, %v8303_v28  ;;  %v17503_v16 = vld [vmem:[#allocation26_spill] sm:$0xff]  ;;  %v8307_v20 = vsel %vm14736_vm14, %v8305_v18, %v8306_v49 }
 0x4dc   : > { %v10752_v25 = vadd.f32 %v17504_v13, %v17503_v16  ;;  %8370 = vst [vmem:[#allocation3 + $0x44c] sm:$0xf] %v8304_v30  ;;  %v13928_v59 = vld [vmem:[#allocation3 + $0x184] sm:$0xf]  ;;  %v8398_v30 = vld [vmem:[#allocation2 + $0xc4] sm:$0xf] }
 0x4dd   : > { %10877 = vmatmul.bf16.gmra.mxu1 %v13213_v57  ;;  %v8035_v57 = vsel %vm14718_vm13, %v8033_v24, %v8034_v3  ;;  %8371 = vst [vmem:[#allocation3 + $0x470] sm:$0xf] %v8307_v20  ;;  %v12742_v3 = vrot.slane %v8473_v19, 9  ;;  %v8474_v24 = vld [vmem:[#allocation2 + $0xc4] sm:$0xf]  ;;  %v17507_v20 = vld [vmem:[#allocation27_spill] sm:$0xff] }
 0x4de   : > { %v10924_v11 = vpop.f32.mrf.mxu2  ;;  %8099 = vst [vmem:[#allocation3 + $0x46c] sm:$0xf] %v8035_v57  ;;  %v8475_v13 = vld [vmem:[#allocation2 + $0xc8] sm:$0x1]  ;;  %v8619_v49 = vrot.slane %v8474_v24, 5 }
 0x4df   : > { %v16834_v60 = vadd.f32 %v10924_v11, %v10836_v0  ;;  %v10702_v61 = vpop.f32.mrf.mxu3  ;;  %v13217_v0 = vor.u32 %v13990_v40, %v13214_v41  ;;  %v12973_v11 = vor.u32 %v13928_v59, %v12970_v62  ;;  %v12968_v41 = vld [vmem:[#allocation3 + $0x180] sm:$0xf]  ;;  %8430 = vst [vmem:[#allocation3 + $0x39c] sm:$0xf] %v8398_v30  ;;  %v14003_v19 = vld [vmem:[#allocation3 + $0x3d8] sm:$0xf0] }
 0x4e0   : > { %v16845_v27 = vadd.f32 %v10702_v61, %v17505_v29  ;;  %v12969_v40 = vor.u32 %v13932_v32, %v12968_v41  ;;  %v8746_v61 = vld [vmem:[#allocation2 + $0xc4] sm:$0xf]  ;;  %v14100_v62 = vld [vmem:[#allocation11 + $0x20] sm:$0xff]  ;;  %v8747_v32 = vld [vmem:[#allocation2 + $0xc8] sm:$0x3]  ;;  %v8620_v57 = vsel %vm14718_vm13, %v12742_v3, %v8619_v49  ;;  %v8621_v54 = vrot.slane %v8619_v49, 4  ;;  %v16870_v49 = vpop.f32.mrf.mxu0 }
 0x4e1   : > { %v8891_v18 = vrot.slane %v8746_v61, 6  ;;  %v17506_v59 = vld [vmem:[#allocation58_spill] sm:$0xff]  ;;  %11341 = vmatpush.bf16.msra.mxu2 %v14100_v62  ;;  %8701 = vst [vmem:[#allocation3 + $0x37c] sm:$0xf] %v8620_v57  ;;  %v13248_v24 = vld [vmem:[#allocation3 + $0x3b8] sm:$0xf] }
 0x4e2   : > { %v10840_v34 = vpop.f32.mrf.mxu1  ;;  %11109 = vmatmul.bf16.gmra.mxu0 %v12973_v11  ;;  %v10755_v11 = vadd.f32 %v17507_v20, %v17506_v59  ;;  %v13249_v61 = vor.u32 %v14003_v19, %v13248_v24  ;;  %v13006_v62 = vld [vmem:[#allocation3 + $0x1ec] sm:$0xf0]  ;;  %v13937_v20 = vld [vmem:[#allocation3 + $0x1cc] sm:$0xf] }
 0x4e3   : > { %v16849_v28 = vadd.f32 %v10840_v34, %v10752_v25  ;;  %10966 = vmatmul.bf16.gmra.mxu2 %v13217_v0  ;;  %v8622_v0 = vrot.slane %v8475_v13, 5  ;;  %v8892_v44 = vsel %vm14736_vm14, %v12758_v37, %v8891_v18  ;;  %v8893_v29 = vrot.slane %v8891_v18, 4  ;;  %v13999_v18 = vld [vmem:[#allocation3 + $0x3bc] sm:$0xf] }
 0x4e4   : > { %11020 = vmatmul.bf16.gmra.mxu3 %v12969_v40  ;;  %8973 = vst [vmem:[#allocation3 + $0x380] sm:$0xf] %v8892_v44  ;;  %v8476_v44 = vld [vmem:[#allocation2 + $0xcc] sm:$0xe] }
 0x4e5   : > { %v8623_v3 = vsel %vm14718_vm13, %v8621_v54, %v8622_v0  ;;  %v17508_v0 = vld [vmem:[#allocation61_spill] sm:$0xff]  ;;  %v13941_v54 = vld [vmem:[#allocation3 + $0x1e8] sm:$0xf0] }
 0x4e6   : > { %v10927_v16 = vpop.f32.mrf.mxu2  ;;  %8702 = vst [vmem:[#allocation3 + $0x3a0] sm:$0xf] %v8623_v3  ;;  %v10757_v57 = vadd.f32 %v17508_v0, %v16590_v6  ;;  %v12743_v3 = vrot.slane %v8476_v44, 9  ;;  %v8400_v6 = vld [vmem:[#allocation2 + $0xd0] sm:$0xf] }
 0x4e7   : > { %v16853_v25 = vadd.f32 %v10927_v16, %v10839_v8  ;;  %v10705_v34 = vpop.f32.mrf.mxu3  ;;  %v8894_v8 = vrot.slane %v8747_v32, 6  ;;  %v8399_v16 = vld [vmem:[#allocation2 + $0xcc] sm:$0xf]  ;;  %8432 = vst [vmem:[#allocation3 + $0x3e4] sm:$0xf] %v8400_v6 }
 0x4e8   : > { %v16862_v41 = vadd.f32 %v10705_v34, %v16608_v33  ;;  %8431 = vst [vmem:[#allocation3 + $0x3c0] sm:$0xf] %v8399_v16  ;;  %v13250_v33 = vld [vmem:[#allocation3 + $0x3dc] sm:$0xf0]  ;;  %v8748_v34 = vld [vmem:[#allocation2 + $0xcc] sm:$0xc] }
 0x4e9   : > { %v8895_v37 = vsel %vm14736_vm14, %v8893_v29, %v8894_v8  ;;  %v13253_v19 = vor.u32 %v13999_v18, %v13250_v33  ;;  %v13009_v8 = vor.u32 %v13937_v20, %v13006_v62  ;;  %v8749_v16 = vld [vmem:[#allocation2 + $0xd0] sm:$0xf]  ;;  %v8478_v18 = vld [vmem:[#allocation2 + $0xd4] sm:$0x1]  ;;  %v16885_v20 = vpop.f32.mrf.mxu0 }
 0x4ea   : > { %v10843_v40 = vpop.f32.mrf.mxu1  ;;  %8974 = vst [vmem:[#allocation3 + $0x3a4] sm:$0xf] %v8895_v37  ;;  %v8477_v37 = vld [vmem:[#allocation2 + $0xd0] sm:$0xf] }
 0x4eb   : > { %v10844_v30 = vadd.f32 %v10843_v40, %v10755_v11  ;;  %v13004_v40 = vld [vmem:[#allocation3 + $0x1c8] sm:$0xf]  ;;  %v8626_v0 = vrot.slane %v8477_v37, 5 }
 0x4ec   : > { %v13005_v24 = vor.u32 %v13941_v54, %v13004_v40  ;;  %v17509_v40 = vld [vmem:[#allocation60_spill] sm:$0xff] }
 0x4ed   : > { %10882 = vmatmul.bf16.gmra.mxu1 %v13249_v61  ;;  %v12759_v61 = vrot.slane %v8748_v34, 10  ;;  %v8627_v62 = vsel %vm14718_vm13, %v12743_v3, %v8626_v0  ;;  %v8628_v54 = vrot.slane %v8626_v0, 4  ;;  %v13286_v0 = vld [vmem:[#allocation3 + $0x424] sm:$0xf0] }
 0x4ee   : > { %v16868_v13 = vpop.f32.mrf.mxu2  ;;  %8703 = vst [vmem:[#allocation3 + $0x3c4] sm:$0xf] %v8627_v62  ;;  %v17510_v62 = vld [vmem:[#allocation30_spill] sm:$0xff] }
 0x4ef   : > { %v10707_v32 = vpop.f32.mrf.mxu3 }
 0x4f0   : > { %v16875_v29 = vadd.f32 %v10707_v32, %v16620_v50  ;;  %v8898_v50 = vrot.slane %v8749_v16, 6  ;;  %v13284_v16 = vld [vmem:[#allocation3 + $0x400] sm:$0xf] }
 0x4f1   : > { %v16903_v51 = vpop.f32.mrf.mxu0 }
 0x4f2   : > { %v10845_v59 = vpop.f32.mrf.mxu1  ;;  %11114 = vmatmul.bf16.gmra.mxu0 %v13009_v8  ;;  %v8899_v44 = vsel %vm14736_vm14, %v12759_v61, %v8898_v50  ;;  %v8900_v34 = vrot.slane %v8898_v50, 4  ;;  %v14008_v50 = vld [vmem:[#allocation3 + $0x404] sm:$0xf] }
 0x4f3   : > { %v16877_v11 = vadd.f32 %v10845_v59, %v10757_v57  ;;  %10971 = vmatmul.bf16.gmra.mxu2 %v13253_v19  ;;  %v8629_v57 = vrot.slane %v8478_v18, 5  ;;  %v8750_v59 = vld [vmem:[#allocation2 + $0xd4] sm:$0x3]  ;;  %8975 = vst [vmem:[#allocation3 + $0x3c8] sm:$0xf] %v8899_v44  ;;  %v13289_v46 = vor.u32 %v14008_v50, %v13286_v0  ;;  %v17514_v50 = vld [vmem:[#allocation31_spill] sm:$0xff] }
 0x4f4   : > { %11025 = vmatmul.bf16.gmra.mxu3 %v13005_v24  ;;  %v14012_v19 = vld [vmem:[#allocation3 + $0x420] sm:$0xf0]  ;;  %v10760_v24 = vadd.f32 %v17509_v40, %v16615_v31  ;;  %v13946_v44 = vld [vmem:[#allocation3 + $0x214] sm:$0xf] }
 0x4f5   : > { %v8630_v3 = vsel %vm14718_vm13, %v8628_v54, %v8629_v57  ;;  %v13285_v61 = vor.u32 %v14012_v19, %v13284_v16  ;;  %v13950_v57 = vld [vmem:[#allocation3 + $0x230] sm:$0xf0] }
 0x4f6   : > { %v10932_v33 = vpop.f32.mrf.mxu2  ;;  %8704 = vst [vmem:[#allocation3 + $0x3e8] sm:$0xf] %v8630_v3 }
 0x4f7   : > { %v16879_v32 = vadd.f32 %v10932_v33, %v10844_v30  ;;  %v10710_v8 = vpop.f32.mrf.mxu3  ;;  %v8901_v30 = vrot.slane %v8750_v59, 6 }
 0x4f8   : > { %v16890_v37 = vadd.f32 %v10710_v8, %v16644_v42  ;;  %v13042_v42 = vld [vmem:[#allocation3 + $0x234] sm:$0xf0] }
 0x4f9   : > { %v8902_v18 = vsel %vm14736_vm14, %v8900_v34, %v8901_v30  ;;  %v17511_v8 = vld [vmem:[#allocation29_spill] sm:$0xff]  ;;  %v13040_v30 = vld [vmem:[#allocation3 + $0x210] sm:$0xf] }
 0x4fa   : > { %v10848_v6 = vpop.f32.mrf.mxu1  ;;  %8976 = vst [vmem:[#allocation3 + $0x3ec] sm:$0xf] %v8902_v18  ;;  %v10762_v40 = vadd.f32 %v17511_v8, %v17510_v62  ;;  %v14021_v18 = vld [vmem:[#allocation3 + $0x468] sm:$0xf0] }
 0x4fb   : > { %v10849_v33 = vadd.f32 %v10848_v6, %v10760_v24  ;;  %v13045_v24 = vor.u32 %v13946_v44, %v13042_v42  ;;  %v13041_v6 = vor.u32 %v13950_v57, %v13040_v30  ;;  %v16914_v57 = vpop.f32.mrf.mxu0  ;;  %v14017_v44 = vld [vmem:[#allocation3 + $0x44c] sm:$0xf] }
 0x4fd   : > { %10887 = vmatmul.bf16.gmra.mxu1 %v13285_v61  ;;  %v14099_v61 = vld [vmem:[#allocation11 + $0x18] sm:$0xff] }
 0x4fe   : > { %v16896_v31 = vpop.f32.mrf.mxu2  ;;  %11342 = vmatpush.bf16.msra.mxu2 %v14099_v61  ;;  %v13959_v61 = vld [vmem:[#allocation3 + $0x278] sm:$0xf0] }
 0x4ff   : > { %v10712_v59 = vpop.f32.mrf.mxu3 }
 0x500   : > { %v16901_v54 = vadd.f32 %v10712_v59, %v16653_v52  ;;  %v17513_v52 = vld [vmem:[#allocation62_spill] sm:$0xff] }
 0x501   : > { %v10765_v59 = vadd.f32 %v17514_v50, %v17513_v52  ;;  %v13955_v52 = vld [vmem:[#allocation3 + $0x25c] sm:$0xf] }
 0x502   : > { %v10850_v19 = vpop.f32.mrf.mxu1  ;;  %11119 = vmatmul.bf16.gmra.mxu0 %v13045_v24  ;;  %v13078_v24 = vld [vmem:[#allocation3 + $0x27c] sm:$0xf0] }
 0x503   : > { %v16905_v34 = vadd.f32 %v10850_v19, %v10762_v40  ;;  %10976 = vmatmul.bf16.gmra.mxu2 %v13289_v46  ;;  %v13320_v40 = vld [vmem:[#allocation3 + $0x448] sm:$0xf]  ;;  %v13081_v50 = vor.u32 %v13955_v52, %v13078_v24  ;;  %v10772_v52 = vadd.f32 %v16712_v1, %v16706_v36  ;;  %v10775_v36 = vadd.f32 %v16744_v63, %v16717_v7 }
 0x504   : > { %11030 = vmatmul.bf16.gmra.mxu3 %v13041_v6  ;;  %v13321_v46 = vor.u32 %v14021_v18, %v13320_v40  ;;  %v10767_v6 = vadd.f32 %v16672_v10, %v16662_v12  ;;  %v13888_v12 = vld [vmem:[#allocation3 + $0x40] sm:$0xf0] }
 0x506   : > { %v10937_v16 = vpop.f32.mrf.mxu2 }
 0x507   : > { %v16907_v3 = vadd.f32 %v10937_v16, %v10849_v33  ;;  %v10715_v0 = vpop.f32.mrf.mxu3  ;;  %v13322_v33 = vld [vmem:[#allocation3 + $0x46c] sm:$0xf0] }
 0x508   : > { %v16912_v62 = vadd.f32 %v10715_v0, %v16679_v5  ;;  %v13325_v16 = vor.u32 %v14017_v44, %v13322_v33 }
 0x509   : > { %17512 = vst [vmem:[#allocation63_spill] sm:$0xff] %v16907_v3 }
 0x50a   : > { %v10853_v8 = vpop.f32.mrf.mxu1 }
 0x50b   : > { %v10854_v42 = vadd.f32 %v10853_v8, %v10765_v59  ;;  %v13076_v59 = vld [vmem:[#allocation3 + $0x258] sm:$0xf] }
 0x50c   : > { %v13077_v8 = vor.u32 %v13959_v61, %v13076_v59  ;;  %v13114_v61 = vld [vmem:[#allocation3 + $0x2c4] sm:$0xf0] }
 0x50d   : > { %10892 = vmatmul.bf16.gmra.mxu1 %v13321_v46  ;;  %v16925_v46 = vpop.f32.mrf.mxu0 }
 0x50e   : > { %v16916_v19 = vpop.f32.mrf.mxu2 }
 0x50f   : > { %v10717_v30 = vpop.f32.mrf.mxu3 }
 0x510   : > { %v16921_v5 = vadd.f32 %v10717_v30, %v16696_v22  ;;  %v10770_v22 = vadd.f32 %v16693_v26, %v16686_v53  ;;  %v12796_v30 = vld [vmem:[#allocation3 + $0x20] sm:$0xf] }
 0x512   : > { %v10855_v0 = vpop.f32.mrf.mxu1  ;;  %11124 = vmatmul.bf16.gmra.mxu0 %v13081_v50  ;;  %v13968_v50 = vld [vmem:[#allocation3 + $0x2c0] sm:$0xf0] }
 0x513   : > { %v16923_v18 = vadd.f32 %v10855_v0, %v10767_v6  ;;  %10981 = vmatmul.bf16.gmra.mxu2 %v13325_v16  ;;  %v12797_v6 = vor.u32 %v13888_v12, %v12796_v30  ;;  %v13897_v30 = vld [vmem:[#allocation3 + $0x88] sm:$0xf0] }
 0x514   : > { %11035 = vmatmul.bf16.gmra.mxu3 %v13077_v8 }
 0x515   : > { %v16936_v0 = vpop.f32.mrf.mxu0 }
 0x516   : > { %v10942_v40 = vpop.f32.mrf.mxu2 }
 0x517   : > { %v16927_v3 = vadd.f32 %v10942_v40, %v10854_v42  ;;  %v10996_v10 = vpop.f32.mrf.mxu3  ;;  %v13112_v40 = vld [vmem:[#allocation3 + $0x2a0] sm:$0xf] }
 0x518   : > { %v16932_v33 = vadd.f32 %v10996_v10, %v16710_v17  ;;  %v13964_v17 = vld [vmem:[#allocation3 + $0x2a4] sm:$0xf]  ;;  %v13113_v12 = vor.u32 %v13968_v50, %v13112_v40  ;;  %v13977_v40 = vld [vmem:[#allocation3 + $0x308] sm:$0xf0] }
 0x519   : > { %v13117_v8 = vor.u32 %v13964_v17, %v13114_v61 }
 0x51a   : > { %v10858_v44 = vpop.f32.mrf.mxu1 }
 0x51b   : > { %v10859_v24 = vadd.f32 %v10858_v44, %v10770_v22  ;;  %v14098_v44 = vld [vmem:[#allocation11 + $0x10] sm:$0xff] }
 0x51c   : > { %11343 = vmatpush.bf16.msra.mxu2 %v14098_v44  ;;  %v13148_v44 = vld [vmem:[#allocation3 + $0x2e8] sm:$0xf] }
 0x51d   : > { %11173 = vmatmul.bf16.vlgmr.msra.gmra.mxu1 %v12797_v6  ;;  %v16952_v61 = vpop.f32.mrf.mxu0 }
 0x51e   : > { %v16934_v16 = vpop.f32.mrf.mxu2 }
 0x51f   : > { %v10998_v42 = vpop.f32.mrf.mxu3 }
 0x520   : > { %v16941_v53 = vadd.f32 %v10998_v42, %v16728_v21  ;;  %v12832_v42 = vld [vmem:[#allocation3 + $0x68] sm:$0xf] }
 0x521   : > { %v12833_v50 = vor.u32 %v13897_v30, %v12832_v42  ;;  %v13906_v42 = vld [vmem:[#allocation3 + $0xd0] sm:$0xf0] }
 0x522   : > { %v10860_v26 = vpop.f32.mrf.mxu1  ;;  %11129 = vmatmul.bf16.gmra.mxu0 %v13117_v8  ;;  %v10777_v8 = vadd.f32 %v16762_v58, %v16738_v55  ;;  %v10780_v58 = vadd.f32 %v16783_v23, %v16756_v48 }
 0x523   : > { %v16943_v59 = vadd.f32 %v10860_v26, %v10772_v52 }
 0x524   : > { %11040 = vmatmul.bf16.gmra.mxu3 %v13113_v12 }
 0x525   : > { %v16963_v30 = vpop.f32.mrf.mxu0 }
 0x526   : > { %v10947_v10 = vpop.f32.mrf.mxu2 }
 0x527   : > { %v16945_v22 = vadd.f32 %v10947_v10, %v10859_v24  ;;  %v11001_v6 = vpop.f32.mrf.mxu3  ;;  %v13150_v24 = vld [vmem:[#allocation3 + $0x30c] sm:$0xf0] }
 0x528   : > { %v16950_v1 = vadd.f32 %v11001_v6, %v16749_v15  ;;  %v13973_v15 = vld [vmem:[#allocation3 + $0x2ec] sm:$0xf]  ;;  %v13149_v6 = vor.u32 %v13977_v40, %v13148_v44  ;;  %v13986_v44 = vld [vmem:[#allocation3 + $0x350] sm:$0xf0] }
 0x529   : > { %v13153_v10 = vor.u32 %v13973_v15, %v13150_v24  ;;  %v13186_v15 = vld [vmem:[#allocation3 + $0x354] sm:$0xf0] }
 0x52a   : > { %v10863_v21 = vpop.f32.mrf.mxu1 }
 0x52b   : > { %v10864_v52 = vadd.f32 %v10863_v21, %v10775_v36 }
 0x52d   : > { %11178 = vmatmul.bf16.gmra.mxu1 %v12833_v50 }
 0x52e   : > { %v16954_v26 = vpop.f32.mrf.mxu2 }
 0x52f   : > { %v11003_v17 = vpop.f32.mrf.mxu3 }
 0x530   : > { %v16959_v7 = vadd.f32 %v11003_v17, %v16764_v9  ;;  %v12868_v17 = vld [vmem:[#allocation3 + $0xb0] sm:$0xf] }
 0x532   : > { %v10865_v63 = vpop.f32.mrf.mxu1  ;;  %11134 = vmatmul.bf16.gmra.mxu0 %v13153_v10  ;;  %v10782_v10 = vadd.f32 %v16805_v2, %v16775_v38 }
 0x533   : > { %v16961_v12 = vadd.f32 %v10865_v63, %v10777_v8  ;;  %v12869_v8 = vor.u32 %v13906_v42, %v12868_v17  ;;  %v16974_v63 = vpop.f32.mrf.mxu0  ;;  %v13184_v42 = vld [vmem:[#allocation3 + $0x330] sm:$0xf]  ;;  %v14097_v17 = vld [vmem:[#allocation11 + $0x8] sm:$0xff] }
 0x534   : > { %11045 = vmatmul.bf16.gmra.mxu3 %v13149_v6  ;;  %11344 = vmatpush.bf16.msra.mxu2 %v14097_v17 }
 0x536   : > { %v10952_v36 = vpop.f32.mrf.mxu2 }
 0x537   : > { %v16965_v21 = vadd.f32 %v10952_v36, %v10864_v52  ;;  %v11006_v55 = vpop.f32.mrf.mxu3 }
 0x538   : > { %v16970_v9 = vadd.f32 %v11006_v55, %v16786_v14  ;;  %v13982_v14 = vld [vmem:[#allocation3 + $0x334] sm:$0xf]  ;;  %v13185_v55 = vor.u32 %v13986_v44, %v13184_v42  ;;  %v13995_v42 = vld [vmem:[#allocation3 + $0x398] sm:$0xf0] }
 0x539   : > { %17515 = vst [vmem:[#allocation66_spill] sm:$0xff] %v16965_v21  ;;  %v13189_v36 = vor.u32 %v13982_v14, %v13186_v15 }
 0x53a   : > { %v10868_v50 = vpop.f32.mrf.mxu1 }
 0x53b   : > { %v10869_v24 = vadd.f32 %v10868_v50, %v10780_v58  ;;  %v16985_v21 = vpop.f32.mrf.mxu0 }
 0x53d   : > { %11183 = vmatmul.bf16.gmra.mxu1 %v12869_v8  ;;  %v13915_v8 = vld [vmem:[#allocation3 + $0x118] sm:$0xf0] }
 0x53e   : > { %v16972_v40 = vpop.f32.mrf.mxu2 }
 0x53f   : > { %v11008_v52 = vpop.f32.mrf.mxu3 }
 0x540   : > { %v16979_v48 = vadd.f32 %v11008_v52, %v16799_v56  ;;  %v10785_v56 = vadd.f32 %v16832_v4, %v16791_v45  ;;  %v12904_v52 = vld [vmem:[#allocation3 + $0xf8] sm:$0xf]  ;;  %v13991_v4 = vld [vmem:[#allocation3 + $0x37c] sm:$0xf] }
 0x541   : > { %v12905_v44 = vor.u32 %v13915_v8, %v12904_v52  ;;  %v13220_v8 = vld [vmem:[#allocation3 + $0x378] sm:$0xf]  ;;  %v13924_v52 = vld [vmem:[#allocation3 + $0x160] sm:$0xf0] }
 0x542   : > { %v10870_v23 = vpop.f32.mrf.mxu1  ;;  %11139 = vmatmul.bf16.gmra.mxu0 %v13189_v36  ;;  %v10787_v36 = vadd.f32 %v16851_v43, %v16812_v39  ;;  %v10790_v39 = vadd.f32 %v16870_v49, %v16828_v47  ;;  %v12940_v43 = vld [vmem:[#allocation3 + $0x140] sm:$0xf] }
 0x543   : > { %v16981_v6 = vadd.f32 %v10870_v23, %v10782_v10  ;;  %v13256_v47 = vld [vmem:[#allocation3 + $0x3c0] sm:$0xf] }
 0x544   : > { %11050 = vmatmul.bf16.gmra.mxu3 %v13185_v55 }
 0x546   : > { %v10957_v58 = vpop.f32.mrf.mxu2 }
 0x547   : > { %v16983_v50 = vadd.f32 %v10957_v58, %v10869_v24  ;;  %v11011_v38 = vpop.f32.mrf.mxu3  ;;  %v13222_v24 = vld [vmem:[#allocation3 + $0x39c] sm:$0xf0] }
 0x548   : > { %v16990_v2 = vadd.f32 %v11011_v38, %v16821_v35  ;;  %v16999_v35 = vpop.f32.mrf.mxu0  ;;  %v13225_v17 = vor.u32 %v13991_v4, %v13222_v24  ;;  %v13221_v38 = vor.u32 %v13995_v42, %v13220_v8  ;;  %v13258_v24 = vld [vmem:[#allocation3 + $0x3e4] sm:$0xf0]  ;;  %v10792_v42 = vadd.f32 %v16885_v20, %v16845_v27  ;;  %v14000_v4 = vld [vmem:[#allocation3 + $0x3c4] sm:$0xf] }
 0x549   : > { %17516 = vst [vmem:[#allocation64_spill] sm:$0xff] %v16983_v50  ;;  %v13261_v8 = vor.u32 %v14000_v4, %v13258_v24  ;;  %v10795_v27 = vadd.f32 %v16903_v51, %v16862_v41  ;;  %v13292_v4 = vld [vmem:[#allocation3 + $0x408] sm:$0xf] }
 0x54a   : > { %v10873_v15 = vpop.f32.mrf.mxu1 }
 0x54b   : > { %v10874_v10 = vadd.f32 %v10873_v15, %v10785_v56 }
 0x54d   : > { %11188 = vmatmul.bf16.gmra.mxu1 %v12905_v44 }
 0x54e   : > { %v16992_v23 = vpop.f32.mrf.mxu2 }
 0x54f   : > { %v11013_v14 = vpop.f32.mrf.mxu3 }
 0x550   : > { %v16997_v55 = vadd.f32 %v11013_v14, %v16834_v60  ;;  %v12941_v14 = vor.u32 %v13924_v52, %v12940_v43  ;;  %v17007_v50 = vpop.f32.mrf.mxu0  ;;  %v12976_v43 = vld [vmem:[#allocation3 + $0x188] sm:$0xf] }
 0x552   : > { %v10875_v45 = vpop.f32.mrf.mxu1  ;;  %11144 = vmatmul.bf16.gmra.mxu0 %v13225_v17 }
 0x553   : > { %v17001_v58 = vadd.f32 %v10875_v45, %v10787_v36  ;;  %v14004_v45 = vld [vmem:[#allocation3 + $0x3e0] sm:$0xf0] }
 0x554   : > { %11055 = vmatmul.bf16.gmra.mxu3 %v13221_v38  ;;  %v13257_v49 = vor.u32 %v14004_v45, %v13256_v47  ;;  %v14009_v45 = vld [vmem:[#allocation3 + $0x40c] sm:$0xf] }
 0x556   : > { %v10962_v56 = vpop.f32.mrf.mxu2 }
 0x557   : > { %v17003_v15 = vadd.f32 %v10962_v56, %v10874_v10 }
 0x558   : > { %v17015_v56 = vpop.f32.mrf.mxu0 }
 0x55a   : > { %v10878_v60 = vpop.f32.mrf.mxu1 }
 0x55b   : > { %v10879_v44 = vadd.f32 %v10878_v60, %v10790_v39  ;;  %v14096_v39 = vld [vmem:[#allocation11] sm:$0xff]  ;;  %v13933_v60 = vld [vmem:[#allocation3 + $0x1a8] sm:$0xf0] }
 0x55c   : > { %11345 = vmatpush.bf16.msra.mxu2 %v14096_v39 }
 0x55d   : > { %11193 = vmatmul.bf16.gmra.mxu1 %v12941_v14 }
 0x55e   : > { %v17009_v36 = vpop.f32.mrf.mxu2 }
 0x560   : > { %v17023_v47 = vpop.f32.mrf.mxu0 }
 0x562   : > { %v10880_v10 = vpop.f32.mrf.mxu1  ;;  %11149 = vmatmul.bf16.gmra.mxu0 %v13261_v8  ;;  %v14013_v8 = vld [vmem:[#allocation3 + $0x428] sm:$0xf0] }
 0x563   : > { %v17013_v17 = vadd.f32 %v10880_v10, %v10792_v42  ;;  %v12977_v42 = vor.u32 %v13933_v60, %v12976_v43  ;;  %v13294_v10 = vld [vmem:[#allocation3 + $0x42c] sm:$0xf0]  ;;  %v13293_v41 = vor.u32 %v14013_v8, %v13292_v4  ;;  %v14022_v8 = vld [vmem:[#allocation3 + $0x470] sm:$0xf0] }
 0x564   : > { %11060 = vmatmul.bf16.gmra.mxu3 %v13257_v49  ;;  %v13297_v49 = vor.u32 %v14009_v45, %v13294_v10  ;;  %v14018_v45 = vld [vmem:[#allocation3 + $0x454] sm:$0xf]  ;;  %v13330_v10 = vld [vmem:[#allocation3 + $0x474] sm:$0xf0]  ;;  %v13328_v4 = vld [vmem:[#allocation3 + $0x450] sm:$0xf] }
 0x566   : > { %v10967_v38 = vpop.f32.mrf.mxu2 }
 0x567   : > { %v17017_v52 = vadd.f32 %v10967_v38, %v10879_v44  ;;  %v10797_v44 = vadd.f32 %v16914_v57, %v16875_v29 }
 0x569   : > { %17517 = vst [vmem:[#allocation33_spill] sm:$0xff] %v17017_v52  ;;  %v17033_v52 = vpop.f32.mrf.mxu0 }
 0x56a   : > { %v10883_v20 = vpop.f32.mrf.mxu1 }
 0x56b   : > { %v10884_v14 = vadd.f32 %v10883_v20, %v10795_v27  ;;  %v13942_v27 = vld [vmem:[#allocation3 + $0x1f0] sm:$0xf0]  ;;  %v10800_v20 = vadd.f32 %v16925_v46, %v16890_v37 }
 0x56d   : > { %11198 = vmatmul.bf16.gmra.mxu1 %v12977_v42  ;;  %v13012_v42 = vld [vmem:[#allocation3 + $0x1d0] sm:$0xf] }
 0x56e   : > { %v17021_v24 = vpop.f32.mrf.mxu2  ;;  %v13013_v29 = vor.u32 %v13942_v27, %v13012_v42  ;;  %v13951_v27 = vld [vmem:[#allocation3 + $0x238] sm:$0xf0]  ;;  %v13048_v42 = vld [vmem:[#allocation3 + $0x218] sm:$0xf] }
 0x56f   : > { %17518 = vst [vmem:[#allocation34_spill] sm:$0xff] %v17021_v24 }
 0x571   : > { %v17041_v46 = vpop.f32.mrf.mxu0 }
 0x572   : > { %v10885_v38 = vpop.f32.mrf.mxu1  ;;  %11154 = vmatmul.bf16.gmra.mxu0 %v13297_v49 }
 0x573   : > { %v17027_v51 = vadd.f32 %v10885_v38, %v10797_v44  ;;  %v13333_v44 = vor.u32 %v14018_v45, %v13330_v10  ;;  %v13329_v38 = vor.u32 %v14022_v8, %v13328_v4  ;;  %v10807_v45 = vadd.f32 %v16963_v30, %v16921_v5 }
 0x574   : > { %11065 = vmatmul.bf16.gmra.mxu3 %v13293_v41 }
 0x576   : > { %v10972_v39 = vpop.f32.mrf.mxu2 }
 0x577   : > { %v17029_v60 = vadd.f32 %v10972_v39, %v10884_v14  ;;  %v10802_v14 = vadd.f32 %v16936_v0, %v16901_v54  ;;  %v13049_v54 = vor.u32 %v13951_v27, %v13048_v42  ;;  %v11016_v27 = vpop.f32.mrf.mxu3 }
 0x579   : > { %v11105_v42 = vpop.f32.mrf.mxu0 }
 0x57a   : > { %v10888_v43 = vpop.f32.mrf.mxu1 }
 0x57b   : > { %v10889_v24 = vadd.f32 %v10888_v43, %v10800_v20  ;;  %v10805_v20 = vadd.f32 %v16952_v61, %v16912_v62  ;;  %v11086_v61 = vadd.f32 %v16974_v63, %v16932_v33  ;;  %v11093_v33 = vadd.f32 %v17007_v50, %v16959_v7 }
 0x57c   : > { %v11098_v7 = vadd.f32 %v17023_v47, %v16979_v48 }
 0x57d   : > { %11203 = vmatmul.bf16.gmra.mxu1 %v13013_v29 }
 0x57e   : > { %v17035_v57 = vpop.f32.mrf.mxu2 }
 0x582   : > { %v10890_v49 = vpop.f32.mrf.mxu1  ;;  %11159 = vmatmul.bf16.gmra.mxu0 %v13333_v44 }
 0x583   : > { %v17039_v37 = vadd.f32 %v10890_v49, %v10802_v14  ;;  %v13960_v14 = vld [vmem:[#allocation3 + $0x280] sm:$0xf0]  ;;  %v13084_v49 = vld [vmem:[#allocation3 + $0x260] sm:$0xf] }
 0x584   : > { %11070 = vmatmul.bf16.gmra.mxu3 %v13329_v38  ;;  %v13085_v62 = vor.u32 %v13960_v14, %v13084_v49  ;;  %v11088_v38 = vadd.f32 %v16985_v21, %v16941_v53  ;;  %v11107_v21 = vpop.f32.mrf.mxu0 }
 0x586   : > { %v10977_v41 = vpop.f32.mrf.mxu2 }
 0x587   : > { %v17043_v39 = vadd.f32 %v10977_v41, %v10889_v24 }
 0x58a   : > { %v10893_v43 = vpop.f32.mrf.mxu1 }
 0x58b   : > { %v10894_v29 = vadd.f32 %v10893_v43, %v10805_v20  ;;  %v13969_v43 = vld [vmem:[#allocation3 + $0x2c8] sm:$0xf0] }
 0x58d   : > { %11208 = vmatmul.bf16.gmra.mxu1 %v13049_v54  ;;  %v13120_v54 = vld [vmem:[#allocation3 + $0x2a8] sm:$0xf] }
 0x58e   : > { %v17047_v0 = vpop.f32.mrf.mxu2 }
 0x592   : > { %v10895_v10 = vpop.f32.mrf.mxu1 }
 0x593   : > { %v17051_v4 = vadd.f32 %v10895_v10, %v10807_v45  ;;  %v13121_v45 = vor.u32 %v13969_v43, %v13120_v54  ;;  %v11018_v10 = vpop.f32.mrf.mxu3  ;;  %v13987_v54 = vld [vmem:[#allocation3 + $0x358] sm:$0xf0] }
 0x596   : > { %v10982_v8 = vpop.f32.mrf.mxu2 }
 0x597   : > { %v17053_v24 = vadd.f32 %v10982_v8, %v10894_v29  ;;  %v11091_v8 = vadd.f32 %v16999_v35, %v16950_v1  ;;  %v11096_v1 = vadd.f32 %v17015_v56, %v16970_v9  ;;  %v11103_v9 = vadd.f32 %v17041_v46, %v16997_v55 }
 0x59a   : > { %v11174_v44 = vpop.f32.mrf.mxu1 }
 0x59b   : > { %v11175_v5 = vadd.f32 %v11174_v44, %v11086_v61  ;;  %v11021_v49 = vpop.f32.mrf.mxu3 }
 0x59d   : > { %11213 = vmatmul.bf16.gmra.mxu1 %v13085_v62  ;;  %v13978_v62 = vld [vmem:[#allocation3 + $0x310] sm:$0xf0] }
 0x5a2   : > { %v11176_v41 = vpop.f32.mrf.mxu1 }
 0x5a3   : > { %v11177_v30 = vadd.f32 %v11176_v41, %v11088_v38  ;;  %v13156_v38 = vld [vmem:[#allocation3 + $0x2f0] sm:$0xf] }
 0x5a4   : > { %v13157_v41 = vor.u32 %v13978_v62, %v13156_v38 }
 0x5a5   : > { %v11254_v20 = vpack.c.bf16 %v11177_v30, %v11175_v5  ;;  %v11110_v5 = vpop.f32.mrf.mxu0  ;;  %v11023_v30 = vpop.f32.mrf.mxu3 }
 0x5a7   : > { %11346 = vmatmul.bf16.vlgmr.msra.gmra.mxu2 %v11254_v20 }
 0x5aa   : > { %v11179_v29 = vpop.f32.mrf.mxu1 }
 0x5ab   : > { %v11180_v63 = vadd.f32 %v11179_v29, %v11091_v8  ;;  %v13192_v8 = vld [vmem:[#allocation3 + $0x338] sm:$0xf] }
 0x5ad   : > { %11218 = vmatmul.bf16.gmra.mxu1 %v13121_v45  ;;  %v11112_v29 = vpop.f32.mrf.mxu0 }
 0x5b2   : > { %v11181_v53 = vpop.f32.mrf.mxu1 }
 0x5b3   : > { %v11182_v14 = vadd.f32 %v11181_v53, %v11093_v33  ;;  %v11026_v33 = vpop.f32.mrf.mxu3  ;;  %v13193_v53 = vor.u32 %v13987_v54, %v13192_v8 }
 0x5b5   : > { %v11255_v44 = vpack.c.bf16 %v11182_v14, %v11180_v63  ;;  %v11115_v63 = vpop.f32.mrf.mxu0  ;;  %v11101_v14 = vadd.f32 %v17033_v52, %v16990_v2 }
 0x5b7   : > { %11351 = vmatmul.bf16.gmra.mxu2 %v11255_v44 }
 0x5ba   : > { %v11184_v61 = vpop.f32.mrf.mxu1 }
 0x5bb   : > { %v11185_v35 = vadd.f32 %v11184_v61, %v11096_v1  ;;  %v11028_v44 = vpop.f32.mrf.mxu3  ;;  %v13996_v61 = vld [vmem:[#allocation3 + $0x3a0] sm:$0xf0]  ;;  %v10930_v1 = vadd.f32 %v16868_v13, %v16849_v28  ;;  %v10935_v28 = vadd.f32 %v16896_v31, %v16877_v11  ;;  %v10940_v11 = vadd.f32 %v16916_v19, %v16905_v34 }
 0x5bc   : > { %v10945_v34 = vadd.f32 %v16934_v16, %v16923_v18 }
 0x5bd   : > { %11223 = vmatmul.bf16.gmra.mxu1 %v13157_v41  ;;  %v13228_v41 = vld [vmem:[#allocation3 + $0x380] sm:$0xf]  ;;  %v11019_v2 = vadd.f32 %v11018_v10, %v10930_v1  ;;  %v14014_v1 = vld [vmem:[#allocation3 + $0x430] sm:$0xf0] }
 0x5bf   : > { %v11108_v46 = vadd.f32 %v11107_v21, %v11019_v2 }
 0x5c2   : > { %v11186_v50 = vpop.f32.mrf.mxu1 }
 0x5c3   : > { %v11187_v20 = vadd.f32 %v11186_v50, %v11098_v7  ;;  %v11117_v7 = vpop.f32.mrf.mxu0  ;;  %v13229_v50 = vor.u32 %v13996_v61, %v13228_v41  ;;  %v11031_v52 = vpop.f32.mrf.mxu3  ;;  %v13300_v41 = vld [vmem:[#allocation3 + $0x410] sm:$0xf] }
 0x5c4   : > { %v11032_v19 = vadd.f32 %v11031_v52, %v16927_v3 }
 0x5c5   : > { %v11256_v43 = vpack.c.bf16 %v11187_v20, %v11185_v35  ;;  %v11017_v35 = vadd.f32 %v11016_v27, %v16853_v25  ;;  %v11022_v25 = vadd.f32 %v11021_v49, %v16879_v32  ;;  %v11024_v27 = vadd.f32 %v11023_v30, %v10935_v28  ;;  %v17519_v32 = vld [vmem:[#allocation63_spill] sm:$0xff] }
 0x5c6   : > { %v11027_v31 = vadd.f32 %v11026_v33, %v17519_v32  ;;  %v11029_v49 = vadd.f32 %v11028_v44, %v10940_v11 }
 0x5c7   : > { %11356 = vmatmul.bf16.gmra.mxu2 %v11256_v43  ;;  %v11106_v55 = vadd.f32 %v11105_v42, %v11017_v35  ;;  %v11111_v10 = vadd.f32 %v11110_v5, %v11022_v25  ;;  %v11113_v21 = vadd.f32 %v11112_v29, %v11024_v27  ;;  %v13301_v35 = vor.u32 %v14014_v1, %v13300_v41  ;;  %v17086_v41 = vpop.f32.mrf.mxu2 }
 0x5c8   : > { %v11116_v5 = vadd.f32 %v11115_v63, %v11027_v31  ;;  %v11118_v29 = vadd.f32 %v11117_v7, %v11029_v49  ;;  %v17520_v31 = vld [vmem:[#allocation66_spill] sm:$0xff] }
 0x5ca   : > { %v11189_v45 = vpop.f32.mrf.mxu1 }
 0x5cb   : > { %v11190_v56 = vadd.f32 %v11189_v45, %v11101_v14  ;;  %v11120_v45 = vpop.f32.mrf.mxu0  ;;  %v11033_v14 = vpop.f32.mrf.mxu3 }
 0x5cc   : > { %v11034_v33 = vadd.f32 %v11033_v14, %v10945_v34  ;;  %v11121_v7 = vadd.f32 %v11120_v45, %v11032_v19  ;;  %v11526_v19 = vld [vmem:[%s14575_s10 + $0x8] sm:$0xff] }
 0x5cd   : > { %11228 = vmatmul.bf16.gmra.mxu1 %v13193_v53  ;;  %v14005_v53 = vld [vmem:[#allocation3 + $0x3e8] sm:$0xf0] }
 0x5d2   : > { %v11191_v48 = vpop.f32.mrf.mxu1 }
 0x5d3   : > { %v11192_v47 = vadd.f32 %v11191_v48, %v11103_v9  ;;  %v13264_v48 = vld [vmem:[#allocation3 + $0x3c8] sm:$0xf]  ;;  %v11122_v42 = vpop.f32.mrf.mxu0 }
 0x5d4   : > { %v13265_v13 = vor.u32 %v14005_v53, %v13264_v48  ;;  %v14023_v53 = vld [vmem:[#allocation3 + $0x478] sm:$0xf0] }
 0x5d5   : > { %v11257_v62 = vpack.c.bf16 %v11192_v47, %v11190_v56  ;;  %v11036_v47 = vpop.f32.mrf.mxu3 }
 0x5d6   : > { %v11037_v18 = vadd.f32 %v11036_v47, %v16945_v22  ;;  %v17093_v47 = vstv %s11427_s28  ;;  %s14354_s28 = scalar_lea.hbm %s17288_s6, 512 }
 0x5d7   : > { %11361 = vmatmul.bf16.gmra.mxu2 %v11257_v62  ;;  %p14356_p9 = scmp.lt.s32.totalorder %s14354_s28, %s14350_s17 }
 0x5d9   : > { %p14357_p2 = por %p14356_p9, %p14355_p11 }
 0x5da   : > { %v11194_v38 = vpop.f32.mrf.mxu1 }
 0x5db   : > { %v11195_v43 = vadd.f32 %v11194_v38, %v11106_v55  ;;  %p14358_p10 = pnand %p14357_p2, %p14353_p8 }
 0x5dd   : > { %11233 = vmatmul.bf16.gmra.mxu1 %v13229_v50  ;;  %v11125_v50 = vpop.f32.mrf.mxu0  ;;  %v11038_v30 = vpop.f32.mrf.mxu3 }
 0x5de   : > { %v11126_v52 = vadd.f32 %v11125_v50, %v11037_v18  ;;  %v10955_v50 = vadd.f32 %v16972_v40, %v16961_v12 }
 0x5e2   : > { %v11196_v20 = vpop.f32.mrf.mxu1 }
 0x5e3   : > { %v11197_v54 = vadd.f32 %v11196_v20, %v11108_v46 }
 0x5e5   : > { %v11258_v8 = vpack.c.bf16 %v11197_v54, %v11195_v43  ;;  %v11127_v46 = vpop.f32.mrf.mxu0 }
 0x5e7   : > { %11366 = vmatmul.bf16.gmra.mxu2 %v11258_v8  ;;  %v13336_v8 = vld [vmem:[#allocation3 + $0x458] sm:$0xf] }
 0x5e8   : > { %v13337_v48 = vor.u32 %v14023_v53, %v13336_v8 }
 0x5ea   : > { %v11199_v9 = vpop.f32.mrf.mxu1 }
 0x5eb   : > { %v11200_v62 = vadd.f32 %v11199_v9, %v11111_v10  ;;  %v11041_v9 = vpop.f32.mrf.mxu3 }
 0x5ec   : > { %v11042_v49 = vadd.f32 %v11041_v9, %v17520_v31 }
 0x5ed   : > { %11238 = vmatmul.bf16.gmra.mxu1 %v13265_v13  ;;  %v11130_v44 = vpop.f32.mrf.mxu0  ;;  %v11123_v13 = vadd.f32 %v11122_v42, %v11034_v33 }
 0x5f2   : > { %v11201_v56 = vpop.f32.mrf.mxu1 }
 0x5f3   : > { %v11202_v61 = vadd.f32 %v11201_v56, %v11113_v21  ;;  %v11043_v63 = vpop.f32.mrf.mxu3 }
 0x5f5   : > { %v11259_v38 = vpack.c.bf16 %v11202_v61, %v11200_v62  ;;  %v11132_v56 = vpop.f32.mrf.mxu0  ;;  %v10950_v61 = vadd.f32 %v16954_v26, %v16943_v59  ;;  %v17091_v59 = vld [vmem:[%s17286_s4] ss:$0 sm:$0xff] }
 0x5f7   : > { %11371 = vmatmul.bf16.gmra.mxu2 %v11259_v38  ;;  %v11039_v3 = vadd.f32 %v11038_v30, %v10950_v61  ;;  %v11044_v30 = vadd.f32 %v11043_v63, %v10955_v50  ;;  %v11527_v61 = vld [vmem:[%s14575_s10 + $0x10] sm:$0xff] }
 0x5f9   : > { %v11128_v14 = vadd.f32 %v11127_v46, %v11039_v3 }
 0x5fa   : > { %v11204_v2 = vpop.f32.mrf.mxu1 }
 0x5fb   : > { %v11205_v20 = vadd.f32 %v11204_v2, %v11116_v5  ;;  %v11046_v38 = vpop.f32.mrf.mxu3 }
 0x5fd   : > { %11243 = vmatmul.bf16.gmra.mxu1 %v13301_v35  ;;  %v11135_v16 = vpop.f32.mrf.mxu0 }
 0x602   : > { %v11206_v55 = vpop.f32.mrf.mxu1 }
 0x603   : > { %v11207_v43 = vadd.f32 %v11206_v55, %v11118_v29  ;;  %v11048_v35 = vpop.f32.mrf.mxu3  ;;  %v11525_v29 = vld [vmem:[%s14575_s10] sm:$0xff] }
 0x605   : > { %v11260_v54 = vpack.c.bf16 %v11207_v43, %v11205_v20  ;;  %v11137_v11 = vpop.f32.mrf.mxu0  ;;  %v11131_v43 = vadd.f32 %v11130_v44, %v11042_v49  ;;  %v10965_v49 = vadd.f32 %v17009_v36, %v17001_v58 }
 0x607   : > { %11376 = vmatmul.bf16.gmra.mxu2 %v11260_v54  ;;  %v11133_v54 = vadd.f32 %v11132_v56, %v11044_v30 }
 0x60a   : > { %v11209_v28 = vpop.f32.mrf.mxu1 }
 0x60b   : > { %v11210_v27 = vadd.f32 %v11209_v28, %v11121_v7  ;;  %v11051_v55 = vpop.f32.mrf.mxu3 }
 0x60d   : > { %11248 = vmatmul.bf16.gmra.mxu1 %v13337_v48  ;;  %v11140_v48 = vpop.f32.mrf.mxu0 }
 0x612   : > { %v11211_v25 = vpop.f32.mrf.mxu1 }
 0x613   : > { %v11212_v10 = vadd.f32 %v11211_v25, %v11123_v13  ;;  %v11053_v63 = vpop.f32.mrf.mxu3  ;;  %v10960_v25 = vadd.f32 %v16992_v23, %v16981_v6 }
 0x615   : > { %v11261_v21 = vpack.c.bf16 %v11212_v10, %v11210_v27  ;;  %v17521_v10 = vld [vmem:[#allocation64_spill] sm:$0xff]  ;;  %v11049_v56 = vadd.f32 %v11048_v35, %v10960_v25  ;;  %v11142_v18 = vpop.f32.mrf.mxu0 }
 0x617   : > { %11381 = vmatmul.bf16.gmra.mxu2 %v11261_v21  ;;  %v11047_v21 = vadd.f32 %v11046_v38, %v17521_v10  ;;  %v17523_v10 = vld [vmem:[#allocation33_spill] sm:$0xff] }
 0x61a   : > { %v11214_v62 = vpop.f32.mrf.mxu1 }
 0x61b   : > { %v11215_v42 = vadd.f32 %v11214_v62, %v11126_v52  ;;  %v11056_v6 = vpop.f32.mrf.mxu3 }
 0x622   : > { %v11216_v45 = vpop.f32.mrf.mxu1 }
 0x623   : > { %v11217_v1 = vadd.f32 %v11216_v45, %v11128_v14  ;;  %v11136_v14 = vadd.f32 %v11135_v16, %v11047_v21  ;;  %v11138_v45 = vadd.f32 %v11137_v11, %v11049_v56  ;;  %v11145_v16 = vpop.f32.mrf.mxu0  ;;  %v11057_v21 = vadd.f32 %v11056_v6, %v17523_v10 }
 0x625   : > { %v11262_v2 = vpack.c.bf16 %v11217_v1, %v11215_v42 }
 0x627   : > { %11386 = vmatmul.bf16.gmra.mxu2 %v11262_v2 }
 0x62a   : > { %v11219_v22 = vpop.f32.mrf.mxu1  ;;  %v11347_v26 = vpop.f32.mrf.mxu2 }
 0x62b   : > { %v11348_v32 = vadd.f32 %v17091_v59, %v11347_v26  ;;  %v11220_v8 = vadd.f32 %v11219_v22, %v11131_v43  ;;  %v11528_v26 = vld [vmem:[%s14575_s10 + $0x18] sm:$0xff]  ;;  %v11529_v43 = vld [vmem:[%s14575_s10 + $0x20] sm:$0xff]  ;;  %v11147_v58 = vpop.f32.mrf.mxu0 }
 0x62d   : > { %vm11428_vm15 = vcmp.ge.f32.partialorder %v11348_v32, 0.0  ;;  %v11461_v5 = vmul.f32 %v17093_v47, %v11348_v32 }
 0x62f   : > { %v11493_v46 = vsel %vm11428_vm15, %v11348_v32, %v11461_v5  ;;  %v11052_v5 = vadd.f32 %v11051_v55, %v17003_v15 }
 0x630   : > { %v11557_v20 = vadd.f32 %v11525_v29, %v11493_v46  ;;  %v11054_v29 = vadd.f32 %v11053_v63, %v10965_v49  ;;  %v11058_v46 = vpop.f32.mrf.mxu3 }
 0x632   : > { %11589 = vst [vmem:[%s17103_s21] sm:$0xff] %v11557_v20  ;;  %v11221_v12 = vpop.f32.mrf.mxu1  ;;  %v11349_v40 = vpop.f32.mrf.mxu2 }
 0x633   : > { %v11222_v53 = vadd.f32 %v11221_v12, %v11133_v54  ;;  %v11350_v9 = vadd.f32 %v17091_v59, %v11349_v40  ;;  %v11141_v40 = vadd.f32 %v11140_v48, %v11052_v5 }
 0x635   : > { %v11263_v28 = vpack.c.bf16 %v11222_v53, %v11220_v8  ;;  %vm11429_vm0 = vcmp.ge.f32.partialorder %v11350_v9, 0.0  ;;  %v11462_v34 = vmul.f32 %v17093_v47, %v11350_v9  ;;  %v11143_v8 = vadd.f32 %v11142_v18, %v11054_v29  ;;  %v11531_v18 = vld [vmem:[%s14575_s10 + $0x30] sm:$0xff] }
 0x637   : > { %v11494_v33 = vsel %vm11429_vm0, %v11350_v9, %v11462_v34  ;;  %11391 = vmatmul.bf16.gmra.mxu2 %v11263_v28 }
 0x638   : > { %v11558_v44 = vadd.f32 %v11526_v19, %v11494_v33  ;;  %v11530_v19 = vld [vmem:[%s14575_s10 + $0x28] sm:$0xff]  ;;  %v11061_v33 = vpop.f32.mrf.mxu3 }
 0x639   : > { %v11062_v5 = vadd.f32 %v11061_v33, %v17029_v60 }
 0x63a   : > { %11590 = vst [vmem:[%s17103_s21 + $0x8] sm:$0xff] %v11558_v44  ;;  %v11224_v7 = vpop.f32.mrf.mxu1  ;;  %v11352_v13 = vpop.f32.mrf.mxu2 }
 0x63b   : > { %v11353_v27 = vadd.f32 %v17091_v59, %v11352_v13  ;;  %v11225_v23 = vadd.f32 %v11224_v7, %v11136_v14  ;;  %v17522_v13 = vld [vmem:[#allocation34_spill] sm:$0xff] }
 0x63c   : > { %v10970_v25 = vadd.f32 %v17522_v13, %v17013_v17 }
 0x63d   : > { %vm11430_vm1 = vcmp.ge.f32.partialorder %v11353_v27, 0.0  ;;  %v11463_v62 = vmul.f32 %v17093_v47, %v11353_v27 }
 0x63e   : > { %v11059_v56 = vadd.f32 %v11058_v46, %v10970_v25 }
 0x63f   : > { %v11495_v3 = vsel %vm11430_vm1, %v11353_v27, %v11463_v62  ;;  %v11150_v62 = vpop.f32.mrf.mxu0 }
 0x640   : > { %v11559_v52 = vadd.f32 %v11527_v61, %v11495_v3  ;;  %v11063_v14 = vpop.f32.mrf.mxu3 }
 0x642   : > { %11591 = vst [vmem:[%s17103_s21 + $0x10] sm:$0xff] %v11559_v52  ;;  %v11226_v42 = vpop.f32.mrf.mxu1  ;;  %v11354_v1 = vpop.f32.mrf.mxu2 }
 0x643   : > { %v11227_v2 = vadd.f32 %v11226_v42, %v11138_v45  ;;  %v11355_v38 = vadd.f32 %v17091_v59, %v11354_v1  ;;  %v11146_v45 = vadd.f32 %v11145_v16, %v11057_v21  ;;  %v11148_v42 = vadd.f32 %v11147_v58, %v11059_v56 }
 0x645   : > { %v11264_v35 = vpack.c.bf16 %v11227_v2, %v11225_v23  ;;  %vm11431_vm2 = vcmp.ge.f32.partialorder %v11355_v38, 0.0  ;;  %v11464_v22 = vmul.f32 %v17093_v47, %v11355_v38 }
 0x647   : > { %v11496_v50 = vsel %vm11431_vm2, %v11355_v38, %v11464_v22  ;;  %11396 = vmatmul.bf16.gmra.mxu2 %v11264_v35  ;;  %v11532_v22 = vld [vmem:[%s14575_s10 + $0x38] sm:$0xff] }
 0x648   : > { %v11560_v32 = vadd.f32 %v11528_v26, %v11496_v50  ;;  %v11152_v26 = vpop.f32.mrf.mxu0  ;;  %v11066_v49 = vpop.f32.mrf.mxu3 }
 0x64a   : > { %11592 = vst [vmem:[%s17103_s21 + $0x18] sm:$0xff] %v11560_v32  ;;  %v11229_v11 = vpop.f32.mrf.mxu1  ;;  %v11357_v31 = vpop.f32.mrf.mxu2 }
 0x64b   : > { %v11358_v30 = vadd.f32 %v17091_v59, %v11357_v31  ;;  %v11230_v36 = vadd.f32 %v11229_v11, %v11141_v40  ;;  %v10975_v31 = vadd.f32 %v17035_v57, %v17027_v51  ;;  %v11151_v40 = vadd.f32 %v11150_v62, %v11062_v5 }
 0x64d   : > { %vm11432_vm3 = vcmp.ge.f32.partialorder %v11358_v30, 0.0  ;;  %v11465_v20 = vmul.f32 %v17093_v47, %v11358_v30  ;;  %v11064_v29 = vadd.f32 %v11063_v14, %v10975_v31 }
 0x64f   : > { %v11497_v54 = vsel %vm11432_vm3, %v11358_v30, %v11465_v20  ;;  %v11533_v20 = vld [vmem:[%s14575_s10 + $0x40] sm:$0xff] }
 0x650   : > { %v11561_v12 = vadd.f32 %v11529_v43, %v11497_v54  ;;  %v11155_v43 = vpop.f32.mrf.mxu0  ;;  %v11068_v60 = vpop.f32.mrf.mxu3 }
 0x652   : > { %11593 = vst [vmem:[%s17103_s21 + $0x20] sm:$0xff] %v11561_v12  ;;  %v11231_v53 = vpop.f32.mrf.mxu1  ;;  %v11359_v9 = vpop.f32.mrf.mxu2 }
 0x653   : > { %v11232_v28 = vadd.f32 %v11231_v53, %v11143_v8  ;;  %v11360_v15 = vadd.f32 %v17091_v59, %v11359_v9  ;;  %v11153_v8 = vadd.f32 %v11152_v26, %v11064_v29 }
 0x655   : > { %v11265_v55 = vpack.c.bf16 %v11232_v28, %v11230_v36  ;;  %vm11433_vm4 = vcmp.ge.f32.partialorder %v11360_v15, 0.0  ;;  %v11466_v34 = vmul.f32 %v17093_v47, %v11360_v15 }
 0x657   : > { %v11498_v44 = vsel %vm11433_vm4, %v11360_v15, %v11466_v34  ;;  %11401 = vmatmul.bf16.gmra.mxu2 %v11265_v55  ;;  %v11534_v15 = vld [vmem:[%s14575_s10 + $0x48] sm:$0xff] }
 0x658   : > { %v11562_v48 = vadd.f32 %v11530_v19, %v11498_v44  ;;  %v11157_v19 = vpop.f32.mrf.mxu0  ;;  %v11071_v10 = vpop.f32.mrf.mxu3 }
 0x65a   : > { %11594 = vst [vmem:[%s17103_s21 + $0x28] sm:$0xff] %v11562_v48  ;;  %v11234_v63 = vpop.f32.mrf.mxu1  ;;  %v11362_v7 = vpop.f32.mrf.mxu2  ;;  %v10980_v48 = vadd.f32 %v17047_v0, %v17039_v37 }
 0x65b   : > { %v11363_v27 = vadd.f32 %v17091_v59, %v11362_v7  ;;  %v11235_v23 = vadd.f32 %v11234_v63, %v11146_v45  ;;  %v11067_v7 = vadd.f32 %v11066_v49, %v17043_v39 }
 0x65c   : > { %v11069_v13 = vadd.f32 %v11068_v60, %v10980_v48 }
 0x65d   : > { %vm11434_vm5 = vcmp.ge.f32.partialorder %v11363_v27, 0.0  ;;  %v11467_v61 = vmul.f32 %v17093_v47, %v11363_v27  ;;  %v11156_v62 = vadd.f32 %v11155_v43, %v11067_v7  ;;  %v11538_v43 = vld [vmem:[%s14575_s10 + $0x68] sm:$0xff] }
 0x65f   : > { %v11499_v3 = vsel %vm11434_vm5, %v11363_v27, %v11467_v61  ;;  %v11535_v27 = vld [vmem:[%s14575_s10 + $0x50] sm:$0xff]  ;;  %v11158_v61 = vadd.f32 %v11157_v19, %v11069_v13 }
 0x660   : > { %v11563_v52 = vadd.f32 %v11531_v18, %v11499_v3  ;;  %v11160_v39 = vpop.f32.mrf.mxu0 }
 0x662   : > { %11595 = vst [vmem:[%s17103_s21 + $0x30] sm:$0xff] %v11563_v52  ;;  %v11236_v1 = vpop.f32.mrf.mxu1  ;;  %v11364_v17 = vpop.f32.mrf.mxu2 }
 0x663   : > { %v11237_v2 = vadd.f32 %v11236_v1, %v11148_v42  ;;  %v11365_v6 = vadd.f32 %v17091_v59, %v11364_v17  ;;  %v11536_v42 = vld [vmem:[%s14575_s10 + $0x58] sm:$0xff] }
 0x665   : > { %v11266_v38 = vpack.c.bf16 %v11237_v2, %v11235_v23  ;;  %vm11435_vm6 = vcmp.ge.f32.partialorder %v11365_v6, 0.0  ;;  %v11468_v35 = vmul.f32 %v17093_v47, %v11365_v6  ;;  %v11073_v23 = vpop.f32.mrf.mxu3 }
 0x667   : > { %v11500_v50 = vsel %vm11435_vm6, %v11365_v6, %v11468_v35  ;;  %11406 = vmatmul.bf16.gmra.mxu2 %v11266_v38  ;;  %v10985_v38 = vadd.f32 %v17086_v41, %v17051_v4 }
 0x668   : > { %v11564_v32 = vadd.f32 %v11532_v22, %v11500_v50  ;;  %v11072_v22 = vadd.f32 %v11071_v10, %v17053_v24 }
 0x669   : > { %v11074_v26 = vadd.f32 %v11073_v23, %v10985_v38 }
 0x66a   : > { %11596 = vst [vmem:[%s17103_s21 + $0x38] sm:$0xff] %v11564_v32  ;;  %v11239_v16 = vpop.f32.mrf.mxu1  ;;  %v11367_v11 = vpop.f32.mrf.mxu2  ;;  %v11537_v32 = vld [vmem:[%s14575_s10 + $0x60] sm:$0xff]  ;;  %v11161_v49 = vadd.f32 %v11160_v39, %v11072_v22 }
 0x66b   : > { %v11368_v30 = vadd.f32 %v17091_v59, %v11367_v11  ;;  %v11240_v57 = vadd.f32 %v11239_v16, %v11151_v40  ;;  %v11162_v16 = vpop.f32.mrf.mxu0 }
 0x66d   : > { %vm11436_vm7 = vcmp.ge.f32.partialorder %v11368_v30, 0.0  ;;  %v11469_v46 = vmul.f32 %v17093_v47, %v11368_v30 }
 0x66f   : > { %v11501_v54 = vsel %vm11436_vm7, %v11368_v30, %v11469_v46  ;;  %v11163_v30 = vadd.f32 %v11162_v16, %v11074_v26 }
 0x670   : > { %v11565_v12 = vadd.f32 %v11533_v20, %v11501_v54 }
 0x672   : > { %11597 = vst [vmem:[%s17103_s21 + $0x40] sm:$0xff] %v11565_v12  ;;  %v11241_v53 = vpop.f32.mrf.mxu1  ;;  %v11369_v51 = vpop.f32.mrf.mxu2 }
 0x673   : > { %v11242_v9 = vadd.f32 %v11241_v53, %v11153_v8  ;;  %v11370_v58 = vadd.f32 %v17091_v59, %v11369_v51  ;;  %v11539_v51 = vld [vmem:[%s14575_s10 + $0x70] sm:$0xff] }
 0x675   : > { %v11267_v36 = vpack.c.bf16 %v11242_v9, %v11240_v57  ;;  %vm11437_vm8 = vcmp.ge.f32.partialorder %v11370_v58, 0.0  ;;  %v11470_v28 = vmul.f32 %v17093_v47, %v11370_v58 }
 0x677   : > { %v11502_v55 = vsel %vm11437_vm8, %v11370_v58, %v11470_v28  ;;  %11411 = vmatmul.bf16.gmra.mxu2 %v11267_v36  ;;  %v11540_v28 = vld [vmem:[%s14575_s10 + $0x78] sm:$0xff] }
 0x678   : > { %v11566_v34 = vadd.f32 %v11534_v15, %v11502_v55 }
 0x67a   : > { %11598 = vst [vmem:[%s17103_s21 + $0x48] sm:$0xff] %v11566_v34  ;;  %v11244_v33 = vpop.f32.mrf.mxu1  ;;  %v11372_v44 = vpop.f32.mrf.mxu2 }
 0x67b   : > { %v11373_v63 = vadd.f32 %v17091_v59, %v11372_v44  ;;  %v11245_v37 = vadd.f32 %v11244_v33, %v11156_v62  ;;  %v11541_v44 = vld [vmem:[%s14575_s10 + $0x80] sm:$0xff] }
 0x67d   : > { %vm11438_vm9 = vcmp.ge.f32.partialorder %v11373_v63, 0.0  ;;  %v11471_v25 = vmul.f32 %v17093_v47, %v11373_v63 }
 0x67f   : > { %v11503_v21 = vsel %vm11438_vm9, %v11373_v63, %v11471_v25 }
 0x680   : > { %v11567_v56 = vadd.f32 %v11535_v27, %v11503_v21  ;;  %v11542_v27 = vld [vmem:[%s14575_s10 + $0x88] sm:$0xff] }
 0x682   : > { %11599 = vst [vmem:[%s17103_s21 + $0x50] sm:$0xff] %v11567_v56  ;;  %v11246_v18 = vpop.f32.mrf.mxu1  ;;  %v11374_v3 = vpop.f32.mrf.mxu2 }
 0x683   : > { %v11247_v0 = vadd.f32 %v11246_v18, %v11158_v61  ;;  %v11375_v52 = vadd.f32 %v17091_v59, %v11374_v3  ;;  %v11543_v18 = vld [vmem:[%s14575_s10 + $0x90] sm:$0xff] }
 0x685   : > { %v11268_v14 = vpack.c.bf16 %v11247_v0, %v11245_v37  ;;  %vm11439_vm10 = vcmp.ge.f32.partialorder %v11375_v52, 0.0  ;;  %v11472_v45 = vmul.f32 %v17093_v47, %v11375_v52 }
 0x687   : > { %v11504_v1 = vsel %vm11439_vm10, %v11375_v52, %v11472_v45  ;;  %11416 = vmatmul.bf16.gmra.mxu2 %v11268_v14  ;;  %v11544_v14 = vld [vmem:[%s14575_s10 + $0x98] sm:$0xff] }
 0x688   : > { %v11568_v17 = vadd.f32 %v11536_v42, %v11504_v1 }
 0x68a   : > { %11600 = vst [vmem:[%s17103_s21 + $0x58] sm:$0xff] %v11568_v17  ;;  %v11249_v2 = vpop.f32.mrf.mxu1  ;;  %v11377_v6 = vpop.f32.mrf.mxu2 }
 0x68b   : > { %v11378_v35 = vadd.f32 %v17091_v59, %v11377_v6  ;;  %v11250_v4 = vadd.f32 %v11249_v2, %v11161_v49  ;;  %v11545_v2 = vld [vmem:[%s14575_s10 + $0xa0] sm:$0xff] }
 0x68d   : > { %vm11440_vm11 = vcmp.ge.f32.partialorder %v11378_v35, 0.0  ;;  %v11473_v50 = vmul.f32 %v17093_v47, %v11378_v35 }
 0x68f   : > { %v11505_v11 = vsel %vm11440_vm11, %v11378_v35, %v11473_v50  ;;  %v11546_v50 = vld [vmem:[%s14575_s10 + $0xa8] sm:$0xff] }
 0x690   : > { %v11569_v31 = vadd.f32 %v11537_v32, %v11505_v11 }
 0x692   : > { %11601 = vst [vmem:[%s17103_s21 + $0x60] sm:$0xff] %v11569_v31  ;;  %v11251_v5 = vpop.f32.mrf.mxu1  ;;  %v11379_v29 = vpop.f32.mrf.mxu2 }
 0x693   : > { %v11252_v41 = vadd.f32 %v11251_v5, %v11163_v30  ;;  %v11380_v24 = vadd.f32 %v17091_v59, %v11379_v29  ;;  %v11547_v30 = vld [vmem:[%s14575_s10 + $0xb0] sm:$0xff] }
 0x695   : > { %v11269_v46 = vpack.c.bf16 %v11252_v41, %v11250_v4  ;;  %vm11441_vm12 = vcmp.ge.f32.partialorder %v11380_v24, 0.0  ;;  %v11474_v20 = vmul.f32 %v17093_v47, %v11380_v24 }
 0x697   : > { %v11506_v54 = vsel %vm11441_vm12, %v11380_v24, %v11474_v20  ;;  %11421 = vmatmul.bf16.gmra.mxu2 %v11269_v46  ;;  %v11548_v46 = vld [vmem:[%s14575_s10 + $0xb8] sm:$0xff] }
 0x698   : > { %v11570_v12 = vadd.f32 %v11538_v43, %v11506_v54 }
 0x69a   : > { %11602 = vst [vmem:[%s17103_s21 + $0x68] sm:$0xff] %v11570_v12  ;;  %v11382_v40 = vpop.f32.mrf.mxu2 }
 0x69b   : > { %v11383_v8 = vadd.f32 %v17091_v59, %v11382_v40 }
 0x69d   : > { %vm11442_vm13 = vcmp.ge.f32.partialorder %v11383_v8, 0.0  ;;  %v11475_v53 = vmul.f32 %v17093_v47, %v11383_v8 }
 0x69f   : > { %v11507_v57 = vsel %vm11442_vm13, %v11383_v8, %v11475_v53  ;;  %v11549_v8 = vld [vmem:[%s14575_s10 + $0xc0] sm:$0xff] }
 0x6a0   : > { %v11571_v9 = vadd.f32 %v11539_v51, %v11507_v57 }
 0x6a2   : > { %11603 = vst [vmem:[%s17103_s21 + $0x70] sm:$0xff] %v11571_v9  ;;  %v11384_v58 = vpop.f32.mrf.mxu2 }
 0x6a3   : > { %v11385_v60 = vadd.f32 %v17091_v59, %v11384_v58 }
 0x6a5   : > { %vm11443_vm14 = vcmp.ge.f32.partialorder %v11385_v60, 0.0  ;;  %v11476_v36 = vmul.f32 %v17093_v47, %v11385_v60 }
 0x6a7   : > { %v11508_v15 = vsel %vm11443_vm14, %v11385_v60, %v11476_v36  ;;  %v11550_v60 = vld [vmem:[%s14575_s10 + $0xc8] sm:$0xff] }
 0x6a8   : > { %v11572_v55 = vadd.f32 %v11540_v28, %v11508_v15 }
 0x6aa   : > { %11604 = vst [vmem:[%s17103_s21 + $0x78] sm:$0xff] %v11572_v55  ;;  %v11387_v34 = vpop.f32.mrf.mxu2 }
 0x6ab   : > { %v11388_v19 = vadd.f32 %v17091_v59, %v11387_v34 }
 0x6ad   : > { %vm11444_vm15 = vcmp.ge.f32.partialorder %v11388_v19, 0.0  ;;  %v11477_v33 = vmul.f32 %v17093_v47, %v11388_v19 }
 0x6af   : > { %v11509_v48 = vsel %vm11444_vm15, %v11388_v19, %v11477_v33  ;;  %v11551_v19 = vld [vmem:[%s14575_s10 + $0xd0] sm:$0xff] }
 0x6b0   : > { %v11573_v63 = vadd.f32 %v11541_v44, %v11509_v48 }
 0x6b2   : > { %11605 = vst [vmem:[%s17103_s21 + $0x80] sm:$0xff] %v11573_v63  ;;  %v11389_v7 = vpop.f32.mrf.mxu2 }
 0x6b3   : > { %v11390_v13 = vadd.f32 %v17091_v59, %v11389_v7 }
 0x6b5   : > { %vm11445_vm0 = vcmp.ge.f32.partialorder %v11390_v13, 0.0  ;;  %v11478_v25 = vmul.f32 %v17093_v47, %v11390_v13 }
 0x6b7   : > { %v11510_v10 = vsel %vm11445_vm0, %v11390_v13, %v11478_v25  ;;  %v11552_v13 = vld [vmem:[%s14575_s10 + $0xd8] sm:$0xff] }
 0x6b8   : > { %v11574_v21 = vadd.f32 %v11542_v27, %v11510_v10 }
 0x6ba   : > { %11606 = vst [vmem:[%s17103_s21 + $0x88] sm:$0xff] %v11574_v21  ;;  %v11392_v56 = vpop.f32.mrf.mxu2 }
 0x6bb   : > { %v11393_v62 = vadd.f32 %v17091_v59, %v11392_v56 }
 0x6bd   : > { %vm11446_vm1 = vcmp.ge.f32.partialorder %v11393_v62, 0.0  ;;  %v11479_v61 = vmul.f32 %v17093_v47, %v11393_v62 }
 0x6bf   : > { %v11511_v3 = vsel %vm11446_vm1, %v11393_v62, %v11479_v61  ;;  %v11553_v62 = vld [vmem:[%s14575_s10 + $0xe0] sm:$0xff] }
 0x6c0   : > { %v11575_v37 = vadd.f32 %v11543_v18, %v11511_v3 }
 0x6c2   : > { %11607 = vst [vmem:[%s17103_s21 + $0x90] sm:$0xff] %v11575_v37  ;;  %v11394_v0 = vpop.f32.mrf.mxu2 }
 0x6c3   : > { %v11395_v52 = vadd.f32 %v17091_v59, %v11394_v0 }
 0x6c5   : > { %vm11447_vm2 = vcmp.ge.f32.partialorder %v11395_v52, 0.0  ;;  %v11480_v39 = vmul.f32 %v17093_v47, %v11395_v52 }
 0x6c7   : > { %v11512_v45 = vsel %vm11447_vm2, %v11395_v52, %v11480_v39  ;;  %v11554_v52 = vld [vmem:[%s14575_s10 + $0xe8] sm:$0xff] }
 0x6c8   : > { %v11576_v42 = vadd.f32 %v11544_v14, %v11512_v45 }
 0x6ca   : > { %11608 = vst [vmem:[%s17103_s21 + $0x98] sm:$0xff] %v11576_v42  ;;  %v11397_v1 = vpop.f32.mrf.mxu2 }
 0x6cb   : > { %v11398_v17 = vadd.f32 %v17091_v59, %v11397_v1 }
 0x6cd   : > { %vm11448_vm3 = vcmp.ge.f32.partialorder %v11398_v17, 0.0  ;;  %v11481_v23 = vmul.f32 %v17093_v47, %v11398_v17 }
 0x6cf   : > { %v11513_v6 = vsel %vm11448_vm3, %v11398_v17, %v11481_v23  ;;  %v11555_v17 = vld [vmem:[%s14575_s10 + $0xf0] sm:$0xff] }
 0x6d0   : > { %v11577_v38 = vadd.f32 %v11545_v2, %v11513_v6 }
 0x6d2   : > { %11609 = vst [vmem:[%s17103_s21 + $0xa0] sm:$0xff] %v11577_v38  ;;  %v11399_v35 = vpop.f32.mrf.mxu2 }
 0x6d3   : > { %v11400_v22 = vadd.f32 %v17091_v59, %v11399_v35 }
 0x6d5   : > { %vm11449_vm4 = vcmp.ge.f32.partialorder %v11400_v22, 0.0  ;;  %v11482_v26 = vmul.f32 %v17093_v47, %v11400_v22 }
 0x6d7   : > { %v11514_v32 = vsel %vm11449_vm4, %v11400_v22, %v11482_v26  ;;  %v11556_v22 = vld [vmem:[%s14575_s10 + $0xf8] sm:$0xff] }
 0x6d8   : > { %v11578_v16 = vadd.f32 %v11546_v50, %v11514_v32 }
 0x6da   : > { %11610 = vst [vmem:[%s17103_s21 + $0xa8] sm:$0xff] %v11578_v16  ;;  %v11402_v11 = vpop.f32.mrf.mxu2 }
 0x6db   : > { %v11403_v31 = vadd.f32 %v17091_v59, %v11402_v11 }
 0x6dd   : > { %vm11450_vm5 = vcmp.ge.f32.partialorder %v11403_v31, 0.0  ;;  %v11483_v49 = vmul.f32 %v17093_v47, %v11403_v31 }
 0x6df   : > { %v11515_v5 = vsel %vm11450_vm5, %v11403_v31, %v11483_v49 }
 0x6e0   : > { %v11579_v29 = vadd.f32 %v11547_v30, %v11515_v5 }
 0x6e2   : > { %11611 = vst [vmem:[%s17103_s21 + $0xb0] sm:$0xff] %v11579_v29  ;;  %v11404_v4 = vpop.f32.mrf.mxu2 }
 0x6e3   : > { %v11405_v41 = vadd.f32 %v17091_v59, %v11404_v4 }
 0x6e5   : > { %vm11451_vm6 = vcmp.ge.f32.partialorder %v11405_v41, 0.0  ;;  %v11484_v24 = vmul.f32 %v17093_v47, %v11405_v41 }
 0x6e7   : > { %v11516_v20 = vsel %vm11451_vm6, %v11405_v41, %v11484_v24 }
 0x6e8   : > { %v11580_v43 = vadd.f32 %v11548_v46, %v11516_v20 }
 0x6ea   : > { %11612 = vst [vmem:[%s17103_s21 + $0xb8] sm:$0xff] %v11580_v43  ;;  %v11407_v54 = vpop.f32.mrf.mxu2 }
 0x6eb   : > { %v11408_v12 = vadd.f32 %v17091_v59, %v11407_v54 }
 0x6ed   : > { %vm11452_vm7 = vcmp.ge.f32.partialorder %v11408_v12, 0.0  ;;  %v11485_v40 = vmul.f32 %v17093_v47, %v11408_v12 }
 0x6ef   : > { %v11517_v53 = vsel %vm11452_vm7, %v11408_v12, %v11485_v40 }
 0x6f0   : > { %v11581_v51 = vadd.f32 %v11549_v8, %v11517_v53 }
 0x6f2   : > { %11613 = vst [vmem:[%s17103_s21 + $0xc0] sm:$0xff] %v11581_v51  ;;  %v11409_v57 = vpop.f32.mrf.mxu2 }
 0x6f3   : > { %v11410_v9 = vadd.f32 %v17091_v59, %v11409_v57 }
 0x6f5   : > { %vm11453_vm8 = vcmp.ge.f32.partialorder %v11410_v9, 0.0  ;;  %v11486_v58 = vmul.f32 %v17093_v47, %v11410_v9 }
 0x6f7   : > { %v11518_v36 = vsel %vm11453_vm8, %v11410_v9, %v11486_v58 }
 0x6f8   : > { %v11582_v28 = vadd.f32 %v11550_v60, %v11518_v36 }
 0x6fa   : > { %11614 = vst [vmem:[%s17103_s21 + $0xc8] sm:$0xff] %v11582_v28  ;;  %v11412_v15 = vpop.f32.mrf.mxu2 }
 0x6fb   : > { %v11413_v55 = vadd.f32 %v17091_v59, %v11412_v15 }
 0x6fd   : > { %vm11454_vm9 = vcmp.ge.f32.partialorder %v11413_v55, 0.0  ;;  %v11487_v34 = vmul.f32 %v17093_v47, %v11413_v55 }
 0x6ff   : > { %v11519_v33 = vsel %vm11454_vm9, %v11413_v55, %v11487_v34 }
 0x700   : > { %v11583_v44 = vadd.f32 %v11551_v19, %v11519_v33 }
 0x702   : > { %11615 = vst [vmem:[%s17103_s21 + $0xd0] sm:$0xff] %v11583_v44  ;;  %v11414_v48 = vpop.f32.mrf.mxu2 }
 0x703   : > { %v11415_v63 = vadd.f32 %v17091_v59, %v11414_v48 }
 0x705   : > { %vm11455_vm10 = vcmp.ge.f32.partialorder %v11415_v63, 0.0  ;;  %v11488_v7 = vmul.f32 %v17093_v47, %v11415_v63 }
 0x707   : > { %v11520_v25 = vsel %vm11455_vm10, %v11415_v63, %v11488_v7 }
 0x708   : > { %v11584_v27 = vadd.f32 %v11552_v13, %v11520_v25 }
 0x70a   : > { %11616 = vst [vmem:[%s17103_s21 + $0xd8] sm:$0xff] %v11584_v27  ;;  %v11417_v10 = vpop.f32.mrf.mxu2 }
 0x70b   : > { %v11418_v21 = vadd.f32 %v17091_v59, %v11417_v10 }
 0x70d   : > { %vm11456_vm11 = vcmp.ge.f32.partialorder %v11418_v21, 0.0  ;;  %v11489_v56 = vmul.f32 %v17093_v47, %v11418_v21 }
 0x70f   : > { %v11521_v61 = vsel %vm11456_vm11, %v11418_v21, %v11489_v56 }
 0x710   : > { %v11585_v18 = vadd.f32 %v11553_v62, %v11521_v61 }
 0x712   : > { %11617 = vst [vmem:[%s17103_s21 + $0xe0] sm:$0xff] %v11585_v18  ;;  %v11419_v3 = vpop.f32.mrf.mxu2 }
 0x713   : > { %v11420_v37 = vadd.f32 %v17091_v59, %v11419_v3 }
 0x715   : > { %vm11457_vm12 = vcmp.ge.f32.partialorder %v11420_v37, 0.0  ;;  %v11490_v0 = vmul.f32 %v17093_v47, %v11420_v37 }
 0x717   : > { %v11522_v39 = vsel %vm11457_vm12, %v11420_v37, %v11490_v0 }
 0x718   : > { %v11586_v14 = vadd.f32 %v11554_v52, %v11522_v39 }
 0x71a   : > { %11618 = vst [vmem:[%s17103_s21 + $0xe8] sm:$0xff] %v11586_v14  ;;  %v11422_v45 = vpop.f32.mrf.mxu2 }
 0x71b   : > { %v11423_v42 = vadd.f32 %v17091_v59, %v11422_v45 }
 0x71d   : > { %vm11458_vm13 = vcmp.ge.f32.partialorder %v11423_v42, 0.0  ;;  %v11491_v1 = vmul.f32 %v17093_v47, %v11423_v42 }
 0x71f   : > { %v11523_v23 = vsel %vm11458_vm13, %v11423_v42, %v11491_v1 }
 0x720   : > { %v11587_v2 = vadd.f32 %v11555_v17, %v11523_v23 }
 0x722   : > { %11619 = vst [vmem:[%s17103_s21 + $0xf0] sm:$0xff] %v11587_v2  ;;  %v11424_v6 = vpop.f32.mrf.mxu2 }
 0x723   : > { %v11425_v38 = vadd.f32 %v17091_v59, %v11424_v6 }
 0x725   : > { %vm11459_vm14 = vcmp.ge.f32.partialorder %v11425_v38, 0.0  ;;  %v11492_v35 = vmul.f32 %v17093_v47, %v11425_v38 }
 0x727   : > { %v11524_v26 = vsel %vm11459_vm14, %v11425_v38, %v11492_v35 }
 0x728   : > { %v11588_v50 = vadd.f32 %v11556_v22, %v11524_v26 }
 0x72a   : > { %11620 = vst [vmem:[%s17103_s21 + $0xf8] sm:$0xff] %v11588_v50 }
 0x72b   : > { %14361 = shalt.err (!%p14358_p10)
}
 0x72c   : > { %s14418_s20 = smov 128   ;;  %s14419_s10 = smov 8  }
 0x72d   : > { %14143 = dma.vmem_to_hbm [thread:$0]  (%p14541_p7), %s11635_s18, 4096, %s11637_s16, %s11622_s5, %s14418_s20, %s14418_s20, %s14419_s10  }
 0x72e PF: > { %s11651_s21 = sand.u32 1, %s14396_s23   ;;  %p17524_p12 = scmp.ge.s32.totalorder %s14408_s26, 2 }
 0x72f   : > { %s11652_s22 = scalar_lea.sflag [#allocation7], %s11651_s21 }
 0x730   : > { %p14160_p13 = pnand %p17524_p12, %p14493_p6 }
 0x732   : > { %p14161_p0 = pneg %p14160_p13 }
 0x734   : > { %14391 = dma.done.wait (%p14161_p0), %s11652_s22, 4096  }
 0x735   : > { %14393 = vsyncadd (%p14161_p0), %s11652_s22, 4294963200  ;;  %p22_p3 = scmp.ge.s32.totalorder %s14525_s7, 4   ;;  %s17525_s23 = smov %s14400_s24 }
 0x736   : > { %s17526_s24 = smov %s14404_s25  ;;  %s17527_s25 = smov %s14537_s11 }
 0x737   : > { %s17528_s26 = smov %s14525_s7  ;;  %24 = sbr.rel (!%p22_p3) target bundleno = 9 (0x9), region = 106 }
 0x73c   :  { %11658 = vsyncpa [#allocation6], 1 }
 0x73d   :  { %11660 = vsyncpa [#allocation6 + $0x1], 1 }
 0x73e   :  { %11661 = vsyncpa [#allocation9], 1 }
 0x73f   :  { %11662 = vsyncpa [#allocation12], 1 }
 0x740   :  { %11663 = vsyncpa [#allocation7], 1 }
 0x741   :  { %11665 = vsyncpa [#allocation7 + $0x1], 1 }

</bundles_post_ra>
